<compile_context>
chip_gen: v7x
topology: tpu7x:2x2x1
jax: 0.10.0
libtpu: 0.0.40
codegen_flags: <defaults>
</compile_context>

<pallas_src>
import jax
import jax.numpy as jnp
from jax.experimental import pallas as pl
from jax.experimental.pallas import tpu as pltpu


# ----------------------------------------------------------------------------
# Fused Conv(im2col matmul, BN-scale folded into W) + shift + ReLU + MaxPool(2,2)
# ----------------------------------------------------------------------------
def _conv_bn_relu_pool_kernel(p_ref, w_ref, shift_ref, o_ref):
    # p_ref:     (1, 4, K, TM) bf16 im2col patches; axis 1 = the 4 members of each
    #                          2x2 max-pool window (per pooled output pixel).
    # w_ref:     (Cout, K)     bf16 conv weight with the BN scale pre-folded in.
    # shift_ref: (Cout, 1)     f32  folded (conv bias * scale + BN shift).
    # o_ref:     (1, Cout, TM) pooled output; TM multiple of 128 (lane-dense).
    w = w_ref[...]
    r = jnp.dot(w, p_ref[0, 0], preferred_element_type=jnp.float32)
    for q in range(1, 4):                       # fused 2x2 max-pool over the 4 offsets
        r = jnp.maximum(r, jnp.dot(w, p_ref[0, q], preferred_element_type=jnp.float32))
    # shift & ReLU hoisted past the max: max_q(z_q) + c == max_q(z_q + c), ReLU monotone.
    o_ref[0] = jnp.maximum(r + shift_ref[...], 0.0).astype(o_ref.dtype)


def conv_bn_relu_pool(patches, w, shift, *, tile_m, out_dtype=jnp.bfloat16):
    n, _, k, mp = patches.shape
    c_out = w.shape[0]
    m_pad = pl.cdiv(mp, tile_m) * tile_m
    if m_pad != mp:
        # zero-pad the pooled-pixel axis so TM tiles are lane-aligned; padded
        # columns are sliced off below.
        patches = jnp.pad(patches, ((0, 0), (0, 0), (0, 0), (0, m_pad - mp)))

    flops = 2 * n * 4 * c_out * k * m_pad
    bytes_acc = (patches.dtype.itemsize * n * 4 * k * m_pad
                 + jnp.dtype(out_dtype).itemsize * n * c_out * m_pad
                 + 2 * c_out * k + 4 * c_out)

    out = pl.pallas_call(
        _conv_bn_relu_pool_kernel,
        out_shape=jax.ShapeDtypeStruct((n, c_out, m_pad), out_dtype),
        grid_spec=pltpu.PrefetchScalarGridSpec(
            num_scalar_prefetch=0,
            grid=(n, m_pad // tile_m),
            in_specs=[
                pl.BlockSpec((1, 4, k, tile_m), lambda i, j: (i, 0, 0, j)),
                pl.BlockSpec((c_out, k), lambda i, j: (0, 0)),
                pl.BlockSpec((c_out, 1), lambda i, j: (0, 0)),
            ],
            out_specs=pl.BlockSpec((1, c_out, tile_m), lambda i, j: (i, 0, j)),
        ),
        compiler_params=pltpu.CompilerParams(
            dimension_semantics=("parallel", "parallel")),
        cost_estimate=pl.CostEstimate(flops=int(flops), transcendentals=0,
                                      bytes_accessed=int(bytes_acc)),
    )(patches, w, shift)
    return out[:, :, :mp]


# ----------------------------------------------------------------------------
# im2col glue (pure JAX) for a conv that is immediately followed by MaxPool(2,2).
# Emits bf16 directly so the materialized patch array (the dominant HBM stream)
# is half the size.  Patch K-axis is ordered (Cin, KH, KW) to match the torch
# weight flatten order.
# ----------------------------------------------------------------------------
def im2col_pool(x, kh, kw, sh, sw, ph, pw, *, dtype=jnp.bfloat16):
    """Returns (patches, ho, wo) with patches of shape (N, 4, Cin*kh*kw, ho*wo).

    (ho, wo) is the POOLED output grid (floor semantics, like nn.MaxPool2d(2,2));
    axis 1 enumerates the four 2x2 pool-window offsets (a, b).  Only conv output
    pixels that survive pooling are gathered.
    """
    n, c, h, w = x.shape
    xp = jnp.pad(x.astype(dtype), ((0, 0), (0, 0), (ph, ph), (pw, pw)))
    oh = (h + 2 * ph - kh) // sh + 1
    ow = (w + 2 * pw - kw) // sw + 1
    ho, wo = oh // 2, ow // 2
    slabs = []
    for a in range(2):
        for b in range(2):
            taps = []
            for i in range(kh):
                for j in range(kw):
                    # conv output pixel (2r+a, 2c+b) tap (i, j) reads
                    # xpad[sh*(2r+a)+i, sw*(2c+b)+j]
                    r0 = sh * a + i
                    c0 = sw * b + j
                    sl = xp[:, :,
                            r0: r0 + 2 * sh * (ho - 1) + 1: 2 * sh,
                            c0: c0 + 2 * sw * (wo - 1) + 1: 2 * sw]
                    taps.append(sl)                       # (N, C, ho, wo)
            pk = jnp.stack(taps, axis=2)                  # (N, C, kh*kw, ho, wo)
            slabs.append(pk.reshape(n, c * kh * kw, ho * wo))
    return jnp.stack(slabs, axis=1), ho, wo               # (N, 4, K, ho*wo) bf16


# ----------------------------------------------------------------------------
# FC head: Linear(17200,256)+ReLU -> Linear(256,2)+ReLU -> Linear(2,1)+Sigmoid
# w1 streams from HBM in bf16 (the dominant cost); accumulation is f32.
# ----------------------------------------------------------------------------
def _fc_kernel(x_ref, w1_ref, b1_ref, w2_ref, b2_ref, w3_ref, b3_ref, o_ref, acc_ref):
    k = pl.program_id(0)

    @pl.when(k == 0)
    def _():
        acc_ref[...] = jnp.zeros_like(acc_ref)

    acc_ref[...] += jnp.dot(x_ref[...].astype(jnp.bfloat16), w1_ref[...],
                            preferred_element_type=jnp.float32)

    @pl.when(k == pl.num_programs(0) - 1)
    def _():
        h = jnp.maximum(acc_ref[...] + b1_ref[...], 0.0)
        h = jnp.dot(h, w2_ref[...], preferred_element_type=jnp.float32) + b2_ref[...]
        h = jnp.maximum(h, 0.0)
        z = jnp.dot(h, w3_ref[...], preferred_element_type=jnp.float32) + b3_ref[...]
        o_ref[...] = jax.nn.sigmoid(z)


def fc_forward(x, w1, b1, w2, b2, w3, b3, *, tile_k=4352):
    n, k_in = x.shape
    hidden = w1.shape[1]
    k_pad = pl.cdiv(k_in, tile_k) * tile_k
    if k_in != k_pad:
        x = jnp.pad(x, ((0, 0), (0, k_pad - k_in)))        # tiny (n x pad) copy
    if w1.shape[0] != k_pad:                               # fc1_w is pre-padded at init
        w1 = jnp.pad(w1, ((0, k_pad - w1.shape[0]), (0, 0)))

    flops = 2 * n * (k_pad * hidden + hidden * 2 + 2)
    bytes_acc = (4 * n * k_pad + 2 * k_pad * hidden        # x f32, w1 bf16
                 + 4 * (hidden * 3 + 2 * hidden + 5 + n))

    return pl.pallas_call(
        _fc_kernel,
        out_shape=jax.ShapeDtypeStruct((n, 1), jnp.float32),
        grid_spec=pltpu.PrefetchScalarGridSpec(
            num_scalar_prefetch=0,
            grid=(k_pad // tile_k,),
            in_specs=[
                pl.BlockSpec((n, tile_k), lambda k: (0, k)),
                pl.BlockSpec((tile_k, hidden), lambda k: (k, 0)),
                pl.BlockSpec((1, hidden), lambda k: (0, 0)),
                pl.BlockSpec((hidden, 2), lambda k: (0, 0)),
                pl.BlockSpec((1, 2), lambda k: (0, 0)),
                pl.BlockSpec((2, 1), lambda k: (0, 0)),
                pl.BlockSpec((1, 1), lambda k: (0, 0)),
            ],
            out_specs=pl.BlockSpec((n, 1), lambda k: (0, 0)),
            scratch_shapes=[pltpu.VMEM((n, hidden), jnp.float32)],
        ),
        compiler_params=pltpu.CompilerParams(dimension_semantics=("arbitrary",)),
        cost_estimate=pl.CostEstimate(flops=int(flops), transcendentals=int(n),
                                      bytes_accessed=int(bytes_acc)),
    )(x, w1, b1, w2, b2, w3, b3)


# ----------------------------------------------------------------------------
# Full forward pass
# ----------------------------------------------------------------------------
def net_forward(x, params):
    n = x.shape[0]

    # layer1: Conv2d(1,8,k=5,stride=(3,1),pad=2)+BN+Dropout(eval)+ReLU+MaxPool(2,2)
    p1, ho1, wo1 = im2col_pool(x, 5, 5, 3, 1, 2, 2)        # (N, 4, 25, 39000) bf16
    y1 = conv_bn_relu_pool(p1, params["w1"], params["shift1"],
                           tile_m=7808)                    # 5 lane-dense M-tiles / image
    y1 = y1.reshape(n, 8, ho1, wo1)                        # (N, 8, 150, 260) bf16

    # layer2: Conv2d(8,16,k=4,stride=(3,3),pad=1)+BN+Dropout(eval)+ReLU+MaxPool(2,2)
    p2, ho2, wo2 = im2col_pool(y1, 4, 4, 3, 3, 1, 1)       # (N, 4, 128, 1075) bf16
    y2 = conv_bn_relu_pool(p2, params["w2"], params["shift2"],
                           tile_m=1152, out_dtype=jnp.float32)
    y2 = y2.reshape(n, 16, ho2, wo2)                       # (N, 16, 25, 43) f32

    # fc head (x.view(N, -1) flattens C, H, W in that order — matches this reshape)
    flat = y2.reshape(n, -1)                               # (N, 17200) f32
    return fc_forward(flat, params["fc1_w"], params["fc1_b"],
                      params["fc2_w"], params["fc2_b"],
                      params["fc3_w"], params["fc3_b"])


# ----------------------------------------------------------------------------
# Pure-JAX/XLA reference of the same forward pass (numerical cross-check).
# Uses the same folded (bf16-stored) weights so the only difference is bf16
# activation/patch rounding and accumulation order.
# ----------------------------------------------------------------------------
def reference_forward(x, params):
    def layer(x, w_flat, shift, cin, cout, kh, kw, sh, sw, ph, pw):
        w = w_flat.astype(jnp.float32).reshape(cout, cin, kh, kw)
        y = jax.lax.conv_general_dilated(
            x, w, window_strides=(sh, sw), padding=((ph, ph), (pw, pw)),
            dimension_numbers=("NCHW", "OIHW", "NCHW"))
        y = jnp.maximum(y + shift.reshape(1, cout, 1, 1), 0.0)
        n_, c_, hh, ww = y.shape
        y = y[:, :, : hh // 2 * 2, : ww // 2 * 2]
        return y.reshape(n_, c_, hh // 2, 2, ww // 2, 2).max(axis=(3, 5))

    y = layer(x, params["w1"], params["shift1"], 1, 8, 5, 5, 3, 1, 2, 2)
    y = layer(y, params["w2"], params["shift2"], 8, 16, 4, 4, 3, 3, 1, 1)
    flat = y.reshape(y.shape[0], -1)
    w1 = params["fc1_w"][: flat.shape[1]].astype(jnp.float32)
    h = jnp.maximum(flat @ w1 + params["fc1_b"], 0.0)
    h = jnp.maximum(h @ params["fc2_w"] + params["fc2_b"], 0.0)
    return jax.nn.sigmoid(h @ params["fc3_w"] + params["fc3_b"])


# ----------------------------------------------------------------------------
# Deterministic synthetic parameter init (shapes from Net.__init__), with the
# Conv+BatchNorm(inference) affine folded: W' = W*scale (bf16), shift' =
# BN_shift + conv_bias*scale (f32).  Exact re-parameterization of the module.
# ----------------------------------------------------------------------------
def _fold_conv_bn(w, b, gamma, beta, mean, var, eps=1e-5):
    scale = gamma / jnp.sqrt(var + eps)                    # (Cout,)
    cout = w.shape[0]
    w_f = (w.reshape(cout, -1) * scale[:, None]).astype(jnp.bfloat16)
    shift = (beta - mean * scale + b * scale).reshape(cout, 1).astype(jnp.float32)
    return w_f, shift


def init_params(key, fc1_k_pad=4 * 4352):
    ks = jax.random.split(key, 18)
    f32 = jnp.float32
    p = {}
    # layer1: Conv2d(1, 8, 5, stride=(3,1), pad=2) + BatchNorm2d(8)
    w1 = 0.1 * jax.random.normal(ks[0], (8, 1, 5, 5), f32)
    b1 = 0.05 * jax.random.normal(ks[1], (8,), f32)
    g1 = 1.0 + 0.1 * jax.random.normal(ks[2], (8,), f32)
    be1 = 0.1 * jax.random.normal(ks[3], (8,), f32)
    m1 = 0.1 * jax.random.normal(ks[4], (8,), f32)
    v1 = 0.5 + jax.random.uniform(ks[5], (8,), f32)
    p["w1"], p["shift1"] = _fold_conv_bn(w1, b1, g1, be1, m1, v1)
    # layer2: Conv2d(8, 16, 4, stride=(3,3), pad=1) + BatchNorm2d(16)
    w2 = 0.1 * jax.random.normal(ks[6], (16, 8, 4, 4), f32)
    b2 = 0.05 * jax.random.normal(ks[7], (16,), f32)
    g2 = 1.0 + 0.1 * jax.random.normal(ks[8], (16,), f32)
    be2 = 0.1 * jax.random.normal(ks[9], (16,), f32)
    m2 = 0.1 * jax.random.normal(ks[10], (16,), f32)
    v2 = 0.5 + jax.random.uniform(ks[11], (16,), f32)
    p["w2"], p["shift2"] = _fold_conv_bn(w2, b2, g2, be2, m2, v2)
    # fc: Linear(17200,256), Linear(256,2), Linear(2,1) — stored as (in, out).
    # fc1_w is bf16 (halves the dominant FC-head HBM stream) and pre-padded along
    # K to the kernel K-tile multiple (padded rows are zero -> identical math).
    fc1 = 0.01 * jax.random.normal(ks[12], (17200, 256), f32)
    p["fc1_w"] = jnp.pad(fc1, ((0, fc1_k_pad - 17200), (0, 0))).astype(jnp.bfloat16)
    p["fc1_b"] = (0.01 * jax.random.normal(ks[13], (256,), f32)).reshape(1, 256)
    p["fc2_w"] = 0.1 * jax.random.normal(ks[14], (256, 2), f32)
    p["fc2_b"] = (0.1 * jax.random.normal(ks[15], (2,), f32)).reshape(1, 2)
    p["fc3_w"] = 0.5 * jax.random.normal(ks[16], (2, 1), f32)
    p["fc3_b"] = (0.1 * jax.random.normal(ks[17], (1,), f32)).reshape(1, 1)
    return p


if __name__ == "__main__":
    key = jax.random.PRNGKey(0)
    pkey, xkey = jax.random.split(key)
    params = init_params(pkey)
    # Spatial size is forced by Linear(17200, 256); batch kept small.
    x = jax.random.normal(xkey, (2, 1, 900, 520), dtype=jnp.float32)

    fwd = jax.jit(net_forward)
    out = jax.block_until_ready(fwd(x, params))

    assert out.shape == (2, 1), out.shape
    assert bool(jnp.all(jnp.isfinite(out)))
    assert bool(jnp.all((out >= 0.0) & (out <= 1.0)))      # sigmoid output

    # Cross-check against a pure-JAX/XLA reference of the same forward pass.
    ref = jax.block_until_ready(jax.jit(reference_forward)(x, params))
    max_err = float(jnp.max(jnp.abs(out - ref)))
    assert max_err < 2e-2, f"mismatch vs XLA reference: max_err={max_err}"

    print("KERNEL_OK")
</pallas_src>

<mosaic_0001>
module attributes {stable_mosaic.version = 11 : i64} {
  func.func @_conv_bn_relu_pool_kernel(%arg0: i32, %arg1: i32, %arg2: memref<1x4x25x7808xbf16, #tpu.memory_space<vmem>>, %arg3: memref<8x25xbf16, #tpu.memory_space<vmem>>, %arg4: memref<8x1xf32, #tpu.memory_space<vmem>>, %arg5: memref<1x8x7808xbf16, #tpu.memory_space<vmem>>) attributes {dimension_semantics = [#tpu.dimension_semantics<parallel>, #tpu.dimension_semantics<parallel>], iteration_bounds = array<i64: 2, 5>, scalar_prefetch = 0 : i64, scratch_operands = 0 : i64, tpu.core_type = #tpu.core_type<tc>, window_params = [{transform_indices = @transform_0, window_bounds = array<i64: 1, 4, 25, 7808>}, {pipeline_mode = #tpu.pipeline_mode<synchronous>, transform_indices = @transform_1, window_bounds = array<i64: 8, 25>}, {pipeline_mode = #tpu.pipeline_mode<synchronous>, transform_indices = @transform_2, window_bounds = array<i64: 8, 1>}, {transform_indices = @transform_3, window_bounds = array<i64: 1, 8, 7808>}]} {
    %c0 = arith.constant 0 : index
    %c0_0 = arith.constant 0 : index
    %0 = vector.load %arg3[%c0, %c0_0] : memref<8x25xbf16, #tpu.memory_space<vmem>>, vector<8x25xbf16>
    %c0_1 = arith.constant 0 : index
    %c0_2 = arith.constant 0 : index
    %c0_3 = arith.constant 0 : index
    %c0_4 = arith.constant 0 : index
    %1 = vector.load %arg2[%c0_1, %c0_2, %c0_3, %c0_4] : memref<1x4x25x7808xbf16, #tpu.memory_space<vmem>>, vector<1x1x25x7808xbf16>
    %2 = vector.shape_cast %1 : vector<1x1x25x7808xbf16> to vector<25x7808xbf16>
    %cst = arith.constant dense<0.000000e+00> : vector<8x7808xf32>
    %3 = tpu.matmul %0, %2, %cst {dimension_numbers = #tpu.dot_dimension_numbers<[1], [0], [0], [1], [0, 0, 1, 1], [], []>} : vector<8x25xbf16>, vector<25x7808xbf16>, vector<8x7808xf32> -> vector<8x7808xf32>
    %c0_5 = arith.constant 0 : index
    %c1 = arith.constant 1 : index
    %c0_6 = arith.constant 0 : index
    %c0_7 = arith.constant 0 : index
    %4 = vector.load %arg2[%c0_5, %c1, %c0_6, %c0_7] : memref<1x4x25x7808xbf16, #tpu.memory_space<vmem>>, vector<1x1x25x7808xbf16>
    %5 = vector.shape_cast %4 : vector<1x1x25x7808xbf16> to vector<25x7808xbf16>
    %cst_8 = arith.constant dense<0.000000e+00> : vector<8x7808xf32>
    %6 = tpu.matmul %0, %5, %cst_8 {dimension_numbers = #tpu.dot_dimension_numbers<[1], [0], [0], [1], [0, 0, 1, 1], [], []>} : vector<8x25xbf16>, vector<25x7808xbf16>, vector<8x7808xf32> -> vector<8x7808xf32>
    %7 = arith.maximumf %3, %6 : vector<8x7808xf32>
    %c0_9 = arith.constant 0 : index
    %c2 = arith.constant 2 : index
    %c0_10 = arith.constant 0 : index
    %c0_11 = arith.constant 0 : index
    %8 = vector.load %arg2[%c0_9, %c2, %c0_10, %c0_11] : memref<1x4x25x7808xbf16, #tpu.memory_space<vmem>>, vector<1x1x25x7808xbf16>
    %9 = vector.shape_cast %8 : vector<1x1x25x7808xbf16> to vector<25x7808xbf16>
    %cst_12 = arith.constant dense<0.000000e+00> : vector<8x7808xf32>
    %10 = tpu.matmul %0, %9, %cst_12 {dimension_numbers = #tpu.dot_dimension_numbers<[1], [0], [0], [1], [0, 0, 1, 1], [], []>} : vector<8x25xbf16>, vector<25x7808xbf16>, vector<8x7808xf32> -> vector<8x7808xf32>
    %11 = arith.maximumf %7, %10 : vector<8x7808xf32>
    %c0_13 = arith.constant 0 : index
    %c3 = arith.constant 3 : index
    %c0_14 = arith.constant 0 : index
    %c0_15 = arith.constant 0 : index
    %12 = vector.load %arg2[%c0_13, %c3, %c0_14, %c0_15] : memref<1x4x25x7808xbf16, #tpu.memory_space<vmem>>, vector<1x1x25x7808xbf16>
    %13 = vector.shape_cast %12 : vector<1x1x25x7808xbf16> to vector<25x7808xbf16>
    %cst_16 = arith.constant dense<0.000000e+00> : vector<8x7808xf32>
    %14 = tpu.matmul %0, %13, %cst_16 {dimension_numbers = #tpu.dot_dimension_numbers<[1], [0], [0], [1], [0, 0, 1, 1], [], []>} : vector<8x25xbf16>, vector<25x7808xbf16>, vector<8x7808xf32> -> vector<8x7808xf32>
    %15 = arith.maximumf %11, %14 : vector<8x7808xf32>
    %c0_17 = arith.constant 0 : index
    %c0_18 = arith.constant 0 : index
    %16 = vector.load %arg4[%c0_17, %c0_18] : memref<8x1xf32, #tpu.memory_space<vmem>>, vector<8x1xf32>
    %17 = vector.broadcast %16 : vector<8x1xf32> to vector<8x7808xf32>
    %18 = arith.addf %15, %17 : vector<8x7808xf32>
    %cst_19 = arith.constant 0.000000e+00 : f32
    %19 = vector.broadcast %cst_19 : f32 to vector<8x7808xf32>
    %20 = arith.maximumf %18, %19 : vector<8x7808xf32>
    %21 = arith.truncf %20 : vector<8x7808xf32> to vector<8x7808xbf16>
    %c0_20 = arith.constant 0 : index
    %c0_21 = arith.constant 0 : index
    %c0_22 = arith.constant 0 : index
    %22 = vector.load %arg5[%c0_20, %c0_21, %c0_22] : memref<1x8x7808xbf16, #tpu.memory_space<vmem>>, vector<1x8x7808xbf16>
    %23 = vector.shape_cast %22 : vector<1x8x7808xbf16> to vector<8x7808xbf16>
    %24 = vector.shape_cast %21 : vector<8x7808xbf16> to vector<1x8x7808xbf16>
    tpu.vector_store %arg5[%c0_20, %c0_21, %c0_22], %24 {strides = array<i32>} : memref<1x8x7808xbf16, #tpu.memory_space<vmem>>, vector<1x8x7808xbf16>,
    return
  }
  func.func @transform_0(%arg0: i32, %arg1: i32) -> (i32, i32, i32, i32) {
    %c0_i32 = arith.constant 0 : i32
    %c0_i32_0 = arith.constant 0 : i32
    %c0_i32_1 = arith.constant 0 : i32
    return %arg0, %c0_i32, %c0_i32_0, %arg1 : i32, i32, i32, i32
  }
  func.func @transform_1(%arg0: i32, %arg1: i32) -> (i32, i32) {
    %c0_i32 = arith.constant 0 : i32
    %c0_i32_0 = arith.constant 0 : i32
    %c0_i32_1 = arith.constant 0 : i32
    return %c0_i32, %c0_i32_0 : i32, i32
  }
  func.func @transform_2(%arg0: i32, %arg1: i32) -> (i32, i32) {
    %c0_i32 = arith.constant 0 : i32
    %c0_i32_0 = arith.constant 0 : i32
    %c0_i32_1 = arith.constant 0 : i32
    return %c0_i32, %c0_i32_0 : i32, i32
  }
  func.func @transform_3(%arg0: i32, %arg1: i32) -> (i32, i32, i32) {
    %c0_i32 = arith.constant 0 : i32
    %c0_i32_0 = arith.constant 0 : i32
    return %arg0, %c0_i32, %arg1 : i32, i32, i32
  }
}

module attributes {stable_mosaic.version = 11 : i64} {
  func.func @_conv_bn_relu_pool_kernel(%arg0: i32, %arg1: i32, %arg2: memref<1x4x128x1152xbf16, #tpu.memory_space<vmem>>, %arg3: memref<16x128xbf16, #tpu.memory_space<vmem>>, %arg4: memref<16x1xf32, #tpu.memory_space<vmem>>, %arg5: memref<1x16x1152xf32, #tpu.memory_space<vmem>>) attributes {dimension_semantics = [#tpu.dimension_semantics<parallel>, #tpu.dimension_semantics<parallel>], iteration_bounds = array<i64: 2, 1>, scalar_prefetch = 0 : i64, scratch_operands = 0 : i64, tpu.core_type = #tpu.core_type<tc>, window_params = [{transform_indices = @transform_0, window_bounds = array<i64: 1, 4, 128, 1152>}, {pipeline_mode = #tpu.pipeline_mode<synchronous>, transform_indices = @transform_1, window_bounds = array<i64: 16, 128>}, {pipeline_mode = #tpu.pipeline_mode<synchronous>, transform_indices = @transform_2, window_bounds = array<i64: 16, 1>}, {transform_indices = @transform_3, window_bounds = array<i64: 1, 16, 1152>}]} {
    %c0 = arith.constant 0 : index
    %c0_0 = arith.constant 0 : index
    %0 = vector.load %arg3[%c0, %c0_0] : memref<16x128xbf16, #tpu.memory_space<vmem>>, vector<16x128xbf16>
    %c0_1 = arith.constant 0 : index
    %c0_2 = arith.constant 0 : index
    %c0_3 = arith.constant 0 : index
    %c0_4 = arith.constant 0 : index
    %1 = vector.load %arg2[%c0_1, %c0_2, %c0_3, %c0_4] : memref<1x4x128x1152xbf16, #tpu.memory_space<vmem>>, vector<1x1x128x1152xbf16>
    %2 = vector.shape_cast %1 : vector<1x1x128x1152xbf16> to vector<128x1152xbf16>
    %cst = arith.constant dense<0.000000e+00> : vector<16x1152xf32>
    %3 = tpu.matmul %0, %2, %cst {dimension_numbers = #tpu.dot_dimension_numbers<[1], [0], [0], [1], [0, 0, 1, 1], [], []>} : vector<16x128xbf16>, vector<128x1152xbf16>, vector<16x1152xf32> -> vector<16x1152xf32>
    %c0_5 = arith.constant 0 : index
    %c1 = arith.constant 1 : index
    %c0_6 = arith.constant 0 : index
    %c0_7 = arith.constant 0 : index
    %4 = vector.load %arg2[%c0_5, %c1, %c0_6, %c0_7] : memref<1x4x128x1152xbf16, #tpu.memory_space<vmem>>, vector<1x1x128x1152xbf16>
    %5 = vector.shape_cast %4 : vector<1x1x128x1152xbf16> to vector<128x1152xbf16>
    %cst_8 = arith.constant dense<0.000000e+00> : vector<16x1152xf32>
    %6 = tpu.matmul %0, %5, %cst_8 {dimension_numbers = #tpu.dot_dimension_numbers<[1], [0], [0], [1], [0, 0, 1, 1], [], []>} : vector<16x128xbf16>, vector<128x1152xbf16>, vector<16x1152xf32> -> vector<16x1152xf32>
    %7 = arith.maximumf %3, %6 : vector<16x1152xf32>
    %c0_9 = arith.constant 0 : index
    %c2 = arith.constant 2 : index
    %c0_10 = arith.constant 0 : index
    %c0_11 = arith.constant 0 : index
    %8 = vector.load %arg2[%c0_9, %c2, %c0_10, %c0_11] : memref<1x4x128x1152xbf16, #tpu.memory_space<vmem>>, vector<1x1x128x1152xbf16>
    %9 = vector.shape_cast %8 : vector<1x1x128x1152xbf16> to vector<128x1152xbf16>
    %cst_12 = arith.constant dense<0.000000e+00> : vector<16x1152xf32>
    %10 = tpu.matmul %0, %9, %cst_12 {dimension_numbers = #tpu.dot_dimension_numbers<[1], [0], [0], [1], [0, 0, 1, 1], [], []>} : vector<16x128xbf16>, vector<128x1152xbf16>, vector<16x1152xf32> -> vector<16x1152xf32>
    %11 = arith.maximumf %7, %10 : vector<16x1152xf32>
    %c0_13 = arith.constant 0 : index
    %c3 = arith.constant 3 : index
    %c0_14 = arith.constant 0 : index
    %c0_15 = arith.constant 0 : index
    %12 = vector.load %arg2[%c0_13, %c3, %c0_14, %c0_15] : memref<1x4x128x1152xbf16, #tpu.memory_space<vmem>>, vector<1x1x128x1152xbf16>
    %13 = vector.shape_cast %12 : vector<1x1x128x1152xbf16> to vector<128x1152xbf16>
    %cst_16 = arith.constant dense<0.000000e+00> : vector<16x1152xf32>
    %14 = tpu.matmul %0, %13, %cst_16 {dimension_numbers = #tpu.dot_dimension_numbers<[1], [0], [0], [1], [0, 0, 1, 1], [], []>} : vector<16x128xbf16>, vector<128x1152xbf16>, vector<16x1152xf32> -> vector<16x1152xf32>
    %15 = arith.maximumf %11, %14 : vector<16x1152xf32>
    %c0_17 = arith.constant 0 : index
    %c0_18 = arith.constant 0 : index
    %16 = vector.load %arg4[%c0_17, %c0_18] : memref<16x1xf32, #tpu.memory_space<vmem>>, vector<16x1xf32>
    %17 = vector.broadcast %16 : vector<16x1xf32> to vector<16x1152xf32>
    %18 = arith.addf %15, %17 : vector<16x1152xf32>
    %cst_19 = arith.constant 0.000000e+00 : f32
    %19 = vector.broadcast %cst_19 : f32 to vector<16x1152xf32>
    %20 = arith.maximumf %18, %19 : vector<16x1152xf32>
    %c0_20 = arith.constant 0 : index
    %c0_21 = arith.constant 0 : index
    %c0_22 = arith.constant 0 : index
    %21 = vector.load %arg5[%c0_20, %c0_21, %c0_22] : memref<1x16x1152xf32, #tpu.memory_space<vmem>>, vector<1x16x1152xf32>
    %22 = vector.shape_cast %21 : vector<1x16x1152xf32> to vector<16x1152xf32>
    %23 = vector.shape_cast %20 : vector<16x1152xf32> to vector<1x16x1152xf32>
    tpu.vector_store %arg5[%c0_20, %c0_21, %c0_22], %23 {strides = array<i32>} : memref<1x16x1152xf32, #tpu.memory_space<vmem>>, vector<1x16x1152xf32>,
    return
  }
  func.func @transform_0(%arg0: i32, %arg1: i32) -> (i32, i32, i32, i32) {
    %c0_i32 = arith.constant 0 : i32
    %c0_i32_0 = arith.constant 0 : i32
    %c0_i32_1 = arith.constant 0 : i32
    return %arg0, %c0_i32, %c0_i32_0, %arg1 : i32, i32, i32, i32
  }
  func.func @transform_1(%arg0: i32, %arg1: i32) -> (i32, i32) {
    %c0_i32 = arith.constant 0 : i32
    %c0_i32_0 = arith.constant 0 : i32
    %c0_i32_1 = arith.constant 0 : i32
    return %c0_i32, %c0_i32_0 : i32, i32
  }
  func.func @transform_2(%arg0: i32, %arg1: i32) -> (i32, i32) {
    %c0_i32 = arith.constant 0 : i32
    %c0_i32_0 = arith.constant 0 : i32
    %c0_i32_1 = arith.constant 0 : i32
    return %c0_i32, %c0_i32_0 : i32, i32
  }
  func.func @transform_3(%arg0: i32, %arg1: i32) -> (i32, i32, i32) {
    %c0_i32 = arith.constant 0 : i32
    %c0_i32_0 = arith.constant 0 : i32
    return %arg0, %c0_i32, %arg1 : i32, i32, i32
  }
}

module attributes {stable_mosaic.version = 11 : i64} {
  func.func @_fc_kernel(%arg0: i32, %arg1: memref<2x4352xf32, #tpu.memory_space<vmem>>, %arg2: memref<4352x256xbf16, #tpu.memory_space<vmem>>, %arg3: memref<1x256xf32, #tpu.memory_space<vmem>>, %arg4: memref<256x2xf32, #tpu.memory_space<vmem>>, %arg5: memref<1x2xf32, #tpu.memory_space<vmem>>, %arg6: memref<2x1xf32, #tpu.memory_space<vmem>>, %arg7: memref<1x1xf32, #tpu.memory_space<vmem>>, %arg8: memref<2x1xf32, #tpu.memory_space<vmem>>, %arg9: memref<2x256xf32, #tpu.memory_space<vmem>>) attributes {dimension_semantics = [#tpu.dimension_semantics<arbitrary>], iteration_bounds = array<i64: 4>, scalar_prefetch = 0 : i64, scratch_operands = 1 : i64, tpu.core_type = #tpu.core_type<tc>, window_params = [{transform_indices = @transform_0, window_bounds = array<i64: 2, 4352>}, {transform_indices = @transform_1, window_bounds = array<i64: 4352, 256>}, {pipeline_mode = #tpu.pipeline_mode<synchronous>, transform_indices = @transform_2, window_bounds = array<i64: 1, 256>}, {pipeline_mode = #tpu.pipeline_mode<synchronous>, transform_indices = @transform_3, window_bounds = array<i64: 256, 2>}, {pipeline_mode = #tpu.pipeline_mode<synchronous>, transform_indices = @transform_4, window_bounds = array<i64: 1, 2>}, {pipeline_mode = #tpu.pipeline_mode<synchronous>, transform_indices = @transform_5, window_bounds = array<i64: 2, 1>}, {pipeline_mode = #tpu.pipeline_mode<synchronous>, transform_indices = @transform_6, window_bounds = array<i64: 1, 1>}, {pipeline_mode = #tpu.pipeline_mode<synchronous>, transform_indices = @transform_7, window_bounds = array<i64: 2, 1>}]} {
    %c0_i32 = arith.constant 0 : i32
    %0 = arith.cmpi eq, %arg0, %c0_i32 : i32
    %1 = arith.extui %0 : i1 to i32
    %c0_i32_0 = arith.constant 0 : i32
    %2 = arith.cmpi ne, %1, %c0_i32_0 : i32
    scf.if %2 {
      %cst_9 = arith.constant 0.000000e+00 : f32
      %13 = vector.broadcast %cst_9 : f32 to vector<2x256xf32>
      %c0_10 = arith.constant 0 : index
      %c0_11 = arith.constant 0 : index
      %14 = vector.load %arg9[%c0_10, %c0_11] : memref<2x256xf32, #tpu.memory_space<vmem>>, vector<2x256xf32>
      tpu.vector_store %arg9[%c0_10, %c0_11], %13 {strides = array<i32>} : memref<2x256xf32, #tpu.memory_space<vmem>>, vector<2x256xf32>,
    } else {
    }
    %c0 = arith.constant 0 : index
    %c0_1 = arith.constant 0 : index
    %3 = vector.load %arg9[%c0, %c0_1] : memref<2x256xf32, #tpu.memory_space<vmem>>, vector<2x256xf32>
    %c0_2 = arith.constant 0 : index
    %c0_3 = arith.constant 0 : index
    %4 = vector.load %arg1[%c0_2, %c0_3] : memref<2x4352xf32, #tpu.memory_space<vmem>>, vector<2x4352xf32>
    %5 = arith.truncf %4 : vector<2x4352xf32> to vector<2x4352xbf16>
    %c0_4 = arith.constant 0 : index
    %c0_5 = arith.constant 0 : index
    %6 = vector.load %arg2[%c0_4, %c0_5] : memref<4352x256xbf16, #tpu.memory_space<vmem>>, vector<4352x256xbf16>
    %cst = arith.constant dense<0.000000e+00> : vector<2x256xf32>
    %7 = tpu.matmul %5, %6, %cst {dimension_numbers = #tpu.dot_dimension_numbers<[1], [0], [0], [1], [0, 0, 1, 1], [], []>} : vector<2x4352xbf16>, vector<4352x256xbf16>, vector<2x256xf32> -> vector<2x256xf32>
    %8 = arith.addf %3, %7 : vector<2x256xf32>
    %c0_6 = arith.constant 0 : index
    %c0_7 = arith.constant 0 : index
    %9 = vector.load %arg9[%c0_6, %c0_7] : memref<2x256xf32, #tpu.memory_space<vmem>>, vector<2x256xf32>
    tpu.vector_store %arg9[%c0_6, %c0_7], %8 {strides = array<i32>} : memref<2x256xf32, #tpu.memory_space<vmem>>, vector<2x256xf32>,
    %c3_i32 = arith.constant 3 : i32
    %10 = arith.cmpi eq, %arg0, %c3_i32 : i32
    %11 = arith.extui %10 : i1 to i32
    %c0_i32_8 = arith.constant 0 : i32
    %12 = arith.cmpi ne, %11, %c0_i32_8 : i32
    scf.if %12 {
      %c0_9 = arith.constant 0 : index
      %c0_10 = arith.constant 0 : index
      %13 = vector.load %arg9[%c0_9, %c0_10] : memref<2x256xf32, #tpu.memory_space<vmem>>, vector<2x256xf32>
      %c0_11 = arith.constant 0 : index
      %c0_12 = arith.constant 0 : index
      %14 = vector.load %arg3[%c0_11, %c0_12] : memref<1x256xf32, #tpu.memory_space<vmem>>, vector<1x256xf32>
      %15 = vector.broadcast %14 : vector<1x256xf32> to vector<2x256xf32>
      %16 = arith.addf %13, %15 : vector<2x256xf32>
      %cst_13 = arith.constant 0.000000e+00 : f32
      %17 = vector.broadcast %cst_13 : f32 to vector<2x256xf32>
      %18 = arith.maximumf %16, %17 : vector<2x256xf32>
      %c0_14 = arith.constant 0 : index
      %c0_15 = arith.constant 0 : index
      %19 = vector.load %arg4[%c0_14, %c0_15] : memref<256x2xf32, #tpu.memory_space<vmem>>, vector<256x2xf32>
      %cst_16 = arith.constant dense<0.000000e+00> : vector<2x2xf32>
      %20 = tpu.matmul %18, %19, %cst_16 {dimension_numbers = #tpu.dot_dimension_numbers<[1], [0], [0], [1], [0, 0, 1, 1], [], []>} : vector<2x256xf32>, vector<256x2xf32>, vector<2x2xf32> -> vector<2x2xf32>
      %c0_17 = arith.constant 0 : index
      %c0_18 = arith.constant 0 : index
      %21 = vector.load %arg5[%c0_17, %c0_18] : memref<1x2xf32, #tpu.memory_space<vmem>>, vector<1x2xf32>
      %22 = vector.broadcast %21 : vector<1x2xf32> to vector<2x2xf32>
      %23 = arith.addf %20, %22 : vector<2x2xf32>
      %cst_19 = arith.constant 0.000000e+00 : f32
      %24 = vector.broadcast %cst_19 : f32 to vector<2x2xf32>
      %25 = arith.maximumf %23, %24 : vector<2x2xf32>
      %c0_20 = arith.constant 0 : index
      %c0_21 = arith.constant 0 : index
      %26 = vector.load %arg6[%c0_20, %c0_21] : memref<2x1xf32, #tpu.memory_space<vmem>>, vector<2x1xf32>
      %cst_22 = arith.constant dense<0.000000e+00> : vector<2x1xf32>
      %27 = tpu.matmul %25, %26, %cst_22 {dimension_numbers = #tpu.dot_dimension_numbers<[1], [0], [0], [1], [0, 0, 1, 1], [], []>} : vector<2x2xf32>, vector<2x1xf32>, vector<2x1xf32> -> vector<2x1xf32>
      %c0_23 = arith.constant 0 : index
      %c0_24 = arith.constant 0 : index
      %28 = vector.load %arg7[%c0_23, %c0_24] : memref<1x1xf32, #tpu.memory_space<vmem>>, vector<1x1xf32>
      %29 = vector.broadcast %28 : vector<1x1xf32> to vector<2x1xf32>
      %30 = arith.addf %27, %29 : vector<2x1xf32>
      %31 = arith.negf %30 : vector<2x1xf32>
      %32 = math.exp %31 : vector<2x1xf32>
      %cst_25 = arith.constant 1.000000e+00 : f32
      %33 = vector.broadcast %cst_25 : f32 to vector<2x1xf32>
      %34 = arith.addf %33, %32 : vector<2x1xf32>
      %35 = arith.divf %33, %34 : vector<2x1xf32>
      %c0_26 = arith.constant 0 : index
      %c0_27 = arith.constant 0 : index
      %36 = vector.load %arg8[%c0_26, %c0_27] : memref<2x1xf32, #tpu.memory_space<vmem>>, vector<2x1xf32>
      tpu.vector_store %arg8[%c0_26, %c0_27], %35 {strides = array<i32>} : memref<2x1xf32, #tpu.memory_space<vmem>>, vector<2x1xf32>,
    } else {
    }
    return
  }
  func.func @transform_0(%arg0: i32) -> (i32, i32) {
    %c0_i32 = arith.constant 0 : i32
    %c0_i32_0 = arith.constant 0 : i32
    return %c0_i32, %arg0 : i32, i32
  }
  func.func @transform_1(%arg0: i32) -> (i32, i32) {
    %c0_i32 = arith.constant 0 : i32
    %c0_i32_0 = arith.constant 0 : i32
    return %arg0, %c0_i32 : i32, i32
  }
  func.func @transform_2(%arg0: i32) -> (i32, i32) {
    %c0_i32 = arith.constant 0 : i32
    %c0_i32_0 = arith.constant 0 : i32
    %c0_i32_1 = arith.constant 0 : i32
    return %c0_i32, %c0_i32_0 : i32, i32
  }
  func.func @transform_3(%arg0: i32) -> (i32, i32) {
    %c0_i32 = arith.constant 0 : i32
    %c0_i32_0 = arith.constant 0 : i32
    %c0_i32_1 = arith.constant 0 : i32
    return %c0_i32, %c0_i32_0 : i32, i32
  }
  func.func @transform_4(%arg0: i32) -> (i32, i32) {
    %c0_i32 = arith.constant 0 : i32
    %c0_i32_0 = arith.constant 0 : i32
    %c0_i32_1 = arith.constant 0 : i32
    return %c0_i32, %c0_i32_0 : i32, i32
  }
  func.func @transform_5(%arg0: i32) -> (i32, i32) {
    %c0_i32 = arith.constant 0 : i32
    %c0_i32_0 = arith.constant 0 : i32
    %c0_i32_1 = arith.constant 0 : i32
    return %c0_i32, %c0_i32_0 : i32, i32
  }
  func.func @transform_6(%arg0: i32) -> (i32, i32) {
    %c0_i32 = arith.constant 0 : i32
    %c0_i32_0 = arith.constant 0 : i32
    %c0_i32_1 = arith.constant 0 : i32
    return %c0_i32, %c0_i32_0 : i32, i32
  }
  func.func @transform_7(%arg0: i32) -> (i32, i32) {
    %c0_i32 = arith.constant 0 : i32
    %c0_i32_0 = arith.constant 0 : i32
    %c0_i32_1 = arith.constant 0 : i32
    return %c0_i32, %c0_i32_0 : i32, i32
  }
}

</mosaic_0001>

<bundles_post_ra>
// kernel: net_forward.3
= control target key start
LH: loop header
LB: loop body
LE: loop exit
PB: predicated region body
PF: predicated region fallthrough
CT: control target
= control target key end

     0   :  { %s12435_s12 = smov 0   ;;  %s12437_s13 = smov 0   ;;  %s15498_s0 = inlined_call_operand.vmem [shape: bf16[2,4,25,39040], index: 0, kind: input, shape index: {}]   ;;  %s15499_s1 = inlined_call_operand.vmem [shape: bf16[8,25], index: 1, kind: input, shape index: {}]   ;;  %s15500_s2 = inlined_call_operand.vmem [shape: f32[8,1], index: 2, kind: input, shape index: {}]   ;;  %s15501_s3 = inlined_call_operand.vmem [shape: bf16[2,8,39040], index: 3, kind: output, shape index: {}]  }
   0x1   :  { %s12439_s14 = smov 0   ;;  %s12441_s15 = smov 0  }
   0x2   :  { %s12443_s16 = smov 0   ;;  %s12445_s17 = smov 0  }
   0x3   :  { %s12447_s18 = smov 0  }
   0x4 LB: > { %s22_s19 = sadd.s32 1, %s12401_s16  ;;  %s25_s20 = sadd.s32 1, %s12405_s17  ;;  %s12409_s18 = sphi %s12447_s18, %s13_s18   ;;  %s12405_s17 = sphi %s12445_s17, %s15878_s17   ;;  %s12401_s16 = sphi %s12443_s16, %s15877_s16   ;;  %s12397_s15 = sphi %s12441_s15, %s15876_s15   ;;  %s12393_s14 = sphi %s12439_s14, %s15875_s14   ;;  %s12389_s13 = sphi %s12437_s13, %s15874_s13   ;;  %s12385_s12 = sphi %s12435_s12, %s15873_s12  }
   0x5   : > { %p23_p0 = scmp.ge.s32.totalorder %s22_s19, 5  ;;  %p41_p1 = scmp.ne.s32.totalorder %s12389_s13, %s12385_s12 }
   0x6   : > { %p42_p2 = scmp.eq.s32.totalorder %s12409_s18, 0  ;;  %s34_s24 = sadd.s32 1, %s12389_s13 }
   0x7   : > { %s15880_s19 = smov (%p23_p0, %s22_s19), 0  ;;  %s15882_s20 = smov (!%p23_p0, %s25_s20), %s12405_s17 }
   0x8   : > { %p43_p3 = por %p42_p2, %p41_p1  ;;  %p27_p4 = scmp.ge.s32.totalorder %s15882_s20, 2 }
   0x9   : > { %s30_s21 = ssub.s32 %s12401_s16, %s15880_s19  ;;  %p10430_p6 = scmp.ge.s32.totalorder %s12409_s18, 10 }
   0xa   : > { %s15884_s20 = smov (%p27_p4, %s15882_s20), 0 }
   0xb   : > { %s29_s22 = ssub.s32 %s12405_s17, %s15884_s20  ;;  %143 = sbr.rel (%p10430_p6) target bundleno = 277 (0x115), region = 24 }
   0xc   : > { %s31_s23 = sor.u32 %s30_s21, %s29_s22 }
   0xd   : > { %p32_p5 = scmp.eq.s32.totalorder %s31_s23, 0 }
   0xf   : > { %s12486_s25 = scalar_select %p32_p5, %s12389_s13, %s34_s24  }
  0x12   : > { %146 = sbr.rel (!%p43_p3) target bundleno = 277 (0x115), region = 28  ;;  %s148_s26 = sand.u32 (%p43_p3), 1, %s12389_s13  }
  0x13   : > { %s151_s27 = smul.u32 (%p43_p3), 61, %s12401_s16 }
  0x14   : > { %s11558_s28 = smul.u32 (%p43_p3), 3904, %s148_s26 }
  0x15   : > { %s11559_s29 = smul.u32 (%p43_p3), 4880, %s12405_s17 }
  0x16   : > { %s12500_s8 = scalar_lea.vmem (%p43_p3), [#allocation2], %s11558_s28 }
  0x17   : > { %s153_s30 = sadd.s32 (%p43_p3), %s11559_s29, %s151_s27 }
  0x18   : > { %s10431_s4 = sshll.u32 (%p43_p3), %s153_s30, 2 }
  0x19   : > { %s12495_s7 = scalar_lea.vmem %s15498_s0, %s10431_s4 }
  0x1a   : > { %v170_v0 = vld [vmem:[%s12495_s7] sm:$0xff]  ;;  %v172_v1 = vld [vmem:[%s12495_s7 + $0x8] sm:$0xff]  ;;  %v174_v2 = vld [vmem:[%s12495_s7 + $0x10] sm:$0xff] }
  0x1b   : > { %171 = vst [vmem:[%s12500_s8] sm:$0xff] %v170_v0  ;;  %173 = vst [vmem:[%s12500_s8 + $0x8] sm:$0xff] %v172_v1  ;;  %v176_v3 = vld [vmem:[%s12495_s7 + $0x18] sm:$0xff]  ;;  %v178_v4 = vld [vmem:[%s12495_s7 + $0x20] sm:$0xff] }
  0x1c   : > { %175 = vst [vmem:[%s12500_s8 + $0x10] sm:$0xff] %v174_v2  ;;  %v180_v5 = vld [vmem:[%s12495_s7 + $0x28] sm:$0xff]  ;;  %177 = vst [vmem:[%s12500_s8 + $0x18] sm:$0xff] %v176_v3  ;;  %v182_v6 = vld [vmem:[%s12495_s7 + $0x30] sm:$0xff] }
  0x1d   : > { %179 = vst [vmem:[%s12500_s8 + $0x20] sm:$0xff] %v178_v4  ;;  %181 = vst [vmem:[%s12500_s8 + $0x28] sm:$0xff] %v180_v5  ;;  %v184_v7 = vld [vmem:[%s12495_s7 + $0x38] sm:$0xff]  ;;  %v186_v8 = vld [vmem:[%s12495_s7 + $0x40] sm:$0xff] }
  0x1e   : > { %183 = vst [vmem:[%s12500_s8 + $0x30] sm:$0xff] %v182_v6  ;;  %185 = vst [vmem:[%s12500_s8 + $0x38] sm:$0xff] %v184_v7  ;;  %v188_v9 = vld [vmem:[%s12495_s7 + $0x48] sm:$0xff]  ;;  %v190_v10 = vld [vmem:[%s12495_s7 + $0x50] sm:$0xff] }
  0x1f   : > { %187 = vst [vmem:[%s12500_s8 + $0x40] sm:$0xff] %v186_v8  ;;  %v192_v11 = vld [vmem:[%s12495_s7 + $0x58] sm:$0xff]  ;;  %189 = vst [vmem:[%s12500_s8 + $0x48] sm:$0xff] %v188_v9  ;;  %v194_v12 = vld [vmem:[%s12495_s7 + $0x60] sm:$0xff] }
  0x20   : > { %191 = vst [vmem:[%s12500_s8 + $0x50] sm:$0xff] %v190_v10  ;;  %193 = vst [vmem:[%s12500_s8 + $0x58] sm:$0xff] %v192_v11  ;;  %v196_v13 = vld [vmem:[%s12495_s7 + $0x68] sm:$0xff]  ;;  %v198_v14 = vld [vmem:[%s12495_s7 + $0x70] sm:$0xff] }
  0x21   : > { %195 = vst [vmem:[%s12500_s8 + $0x60] sm:$0xff] %v194_v12  ;;  %197 = vst [vmem:[%s12500_s8 + $0x68] sm:$0xff] %v196_v13  ;;  %v200_v15 = vld [vmem:[%s12495_s7 + $0x78] sm:$0xff]  ;;  %v202_v16 = vld [vmem:[%s12495_s7 + $0x80] sm:$0xff] }
  0x22   : > { %199 = vst [vmem:[%s12500_s8 + $0x70] sm:$0xff] %v198_v14  ;;  %v204_v17 = vld [vmem:[%s12495_s7 + $0x88] sm:$0xff]  ;;  %201 = vst [vmem:[%s12500_s8 + $0x78] sm:$0xff] %v200_v15  ;;  %v206_v18 = vld [vmem:[%s12495_s7 + $0x90] sm:$0xff] }
  0x23   : > { %203 = vst [vmem:[%s12500_s8 + $0x80] sm:$0xff] %v202_v16  ;;  %205 = vst [vmem:[%s12500_s8 + $0x88] sm:$0xff] %v204_v17  ;;  %v208_v19 = vld [vmem:[%s12495_s7 + $0x98] sm:$0xff]  ;;  %v210_v20 = vld [vmem:[%s12495_s7 + $0xa0] sm:$0xff] }
  0x24   : > { %207 = vst [vmem:[%s12500_s8 + $0x90] sm:$0xff] %v206_v18  ;;  %209 = vst [vmem:[%s12500_s8 + $0x98] sm:$0xff] %v208_v19  ;;  %v212_v21 = vld [vmem:[%s12495_s7 + $0xa8] sm:$0xff]  ;;  %v214_v22 = vld [vmem:[%s12495_s7 + $0xb0] sm:$0xff] }
  0x25   : > { %211 = vst [vmem:[%s12500_s8 + $0xa0] sm:$0xff] %v210_v20  ;;  %v216_v23 = vld [vmem:[%s12495_s7 + $0xb8] sm:$0xff]  ;;  %213 = vst [vmem:[%s12500_s8 + $0xa8] sm:$0xff] %v212_v21  ;;  %v218_v24 = vld [vmem:[%s12495_s7 + $0xc0] sm:$0xff] }
  0x26   : > { %215 = vst [vmem:[%s12500_s8 + $0xb0] sm:$0xff] %v214_v22  ;;  %217 = vst [vmem:[%s12500_s8 + $0xb8] sm:$0xff] %v216_v23  ;;  %v220_v25 = vld [vmem:[%s12495_s7 + $0xc8] sm:$0xff]  ;;  %v222_v26 = vld [vmem:[%s12495_s7 + $0xd0] sm:$0xff] }
  0x27   : > { %219 = vst [vmem:[%s12500_s8 + $0xc0] sm:$0xff] %v218_v24  ;;  %221 = vst [vmem:[%s12500_s8 + $0xc8] sm:$0xff] %v220_v25  ;;  %v224_v27 = vld [vmem:[%s12495_s7 + $0xd8] sm:$0xff]  ;;  %v226_v28 = vld [vmem:[%s12495_s7 + $0xe0] sm:$0xff] }
  0x28   : > { %223 = vst [vmem:[%s12500_s8 + $0xd0] sm:$0xff] %v222_v26  ;;  %v228_v29 = vld [vmem:[%s12495_s7 + $0xe8] sm:$0xff]  ;;  %225 = vst [vmem:[%s12500_s8 + $0xd8] sm:$0xff] %v224_v27  ;;  %v234_v32 = vld [vmem:[%s12495_s7 + $0x4d4] sm:$0xff] }
  0x29   : > { %227 = vst [vmem:[%s12500_s8 + $0xe0] sm:$0xff] %v226_v28  ;;  %229 = vst [vmem:[%s12500_s8 + $0xe8] sm:$0xff] %v228_v29  ;;  %v230_v30 = vld [vmem:[%s12495_s7 + $0x4c4] sm:$0xff]  ;;  %v232_v31 = vld [vmem:[%s12495_s7 + $0x4cc] sm:$0xff] }
  0x2a   : > { %231 = vst [vmem:[%s12500_s8 + $0xf4] sm:$0xff] %v230_v30  ;;  %233 = vst [vmem:[%s12500_s8 + $0xfc] sm:$0xff] %v232_v31  ;;  %v236_v33 = vld [vmem:[%s12495_s7 + $0x4dc] sm:$0xff]  ;;  %v238_v34 = vld [vmem:[%s12495_s7 + $0x4e4] sm:$0xff] }
  0x2b   : > { %235 = vst [vmem:[%s12500_s8 + $0x104] sm:$0xff] %v234_v32  ;;  %v240_v35 = vld [vmem:[%s12495_s7 + $0x4ec] sm:$0xff]  ;;  %237 = vst [vmem:[%s12500_s8 + $0x10c] sm:$0xff] %v236_v33  ;;  %v242_v36 = vld [vmem:[%s12495_s7 + $0x4f4] sm:$0xff] }
  0x2c   : > { %239 = vst [vmem:[%s12500_s8 + $0x114] sm:$0xff] %v238_v34  ;;  %241 = vst [vmem:[%s12500_s8 + $0x11c] sm:$0xff] %v240_v35  ;;  %v244_v37 = vld [vmem:[%s12495_s7 + $0x4fc] sm:$0xff]  ;;  %v246_v38 = vld [vmem:[%s12495_s7 + $0x504] sm:$0xff] }
  0x2d   : > { %243 = vst [vmem:[%s12500_s8 + $0x124] sm:$0xff] %v242_v36  ;;  %245 = vst [vmem:[%s12500_s8 + $0x12c] sm:$0xff] %v244_v37  ;;  %v248_v39 = vld [vmem:[%s12495_s7 + $0x50c] sm:$0xff]  ;;  %v250_v40 = vld [vmem:[%s12495_s7 + $0x514] sm:$0xff] }
  0x2e   : > { %247 = vst [vmem:[%s12500_s8 + $0x134] sm:$0xff] %v246_v38  ;;  %v252_v41 = vld [vmem:[%s12495_s7 + $0x51c] sm:$0xff]  ;;  %249 = vst [vmem:[%s12500_s8 + $0x13c] sm:$0xff] %v248_v39  ;;  %v254_v42 = vld [vmem:[%s12495_s7 + $0x524] sm:$0xff] }
  0x2f   : > { %251 = vst [vmem:[%s12500_s8 + $0x144] sm:$0xff] %v250_v40  ;;  %253 = vst [vmem:[%s12500_s8 + $0x14c] sm:$0xff] %v252_v41  ;;  %v256_v43 = vld [vmem:[%s12495_s7 + $0x52c] sm:$0xff]  ;;  %v258_v44 = vld [vmem:[%s12495_s7 + $0x534] sm:$0xff] }
  0x30   : > { %255 = vst [vmem:[%s12500_s8 + $0x154] sm:$0xff] %v254_v42  ;;  %257 = vst [vmem:[%s12500_s8 + $0x15c] sm:$0xff] %v256_v43  ;;  %v260_v45 = vld [vmem:[%s12495_s7 + $0x53c] sm:$0xff]  ;;  %v262_v46 = vld [vmem:[%s12495_s7 + $0x544] sm:$0xff] }
  0x31   : > { %259 = vst [vmem:[%s12500_s8 + $0x164] sm:$0xff] %v258_v44  ;;  %v264_v47 = vld [vmem:[%s12495_s7 + $0x54c] sm:$0xff]  ;;  %261 = vst [vmem:[%s12500_s8 + $0x16c] sm:$0xff] %v260_v45  ;;  %v266_v48 = vld [vmem:[%s12495_s7 + $0x554] sm:$0xff] }
  0x32   : > { %263 = vst [vmem:[%s12500_s8 + $0x174] sm:$0xff] %v262_v46  ;;  %265 = vst [vmem:[%s12500_s8 + $0x17c] sm:$0xff] %v264_v47  ;;  %v268_v49 = vld [vmem:[%s12495_s7 + $0x55c] sm:$0xff]  ;;  %v270_v50 = vld [vmem:[%s12495_s7 + $0x564] sm:$0xff] }
  0x33   : > { %267 = vst [vmem:[%s12500_s8 + $0x184] sm:$0xff] %v266_v48  ;;  %269 = vst [vmem:[%s12500_s8 + $0x18c] sm:$0xff] %v268_v49  ;;  %v272_v51 = vld [vmem:[%s12495_s7 + $0x56c] sm:$0xff]  ;;  %v274_v52 = vld [vmem:[%s12495_s7 + $0x574] sm:$0xff] }
  0x34   : > { %271 = vst [vmem:[%s12500_s8 + $0x194] sm:$0xff] %v270_v50  ;;  %v276_v53 = vld [vmem:[%s12495_s7 + $0x57c] sm:$0xff]  ;;  %273 = vst [vmem:[%s12500_s8 + $0x19c] sm:$0xff] %v272_v51  ;;  %v278_v54 = vld [vmem:[%s12495_s7 + $0x584] sm:$0xff] }
  0x35   : > { %275 = vst [vmem:[%s12500_s8 + $0x1a4] sm:$0xff] %v274_v52  ;;  %277 = vst [vmem:[%s12500_s8 + $0x1ac] sm:$0xff] %v276_v53  ;;  %v280_v55 = vld [vmem:[%s12495_s7 + $0x58c] sm:$0xff]  ;;  %v282_v56 = vld [vmem:[%s12495_s7 + $0x594] sm:$0xff] }
  0x36   : > { %279 = vst [vmem:[%s12500_s8 + $0x1b4] sm:$0xff] %v278_v54  ;;  %281 = vst [vmem:[%s12500_s8 + $0x1bc] sm:$0xff] %v280_v55  ;;  %v284_v57 = vld [vmem:[%s12495_s7 + $0x59c] sm:$0xff]  ;;  %v286_v58 = vld [vmem:[%s12495_s7 + $0x5a4] sm:$0xff] }
  0x37   : > { %283 = vst [vmem:[%s12500_s8 + $0x1c4] sm:$0xff] %v282_v56  ;;  %v288_v59 = vld [vmem:[%s12495_s7 + $0x5ac] sm:$0xff]  ;;  %285 = vst [vmem:[%s12500_s8 + $0x1cc] sm:$0xff] %v284_v57  ;;  %v294_v62 = vld [vmem:[%s12495_s7 + $0x998] sm:$0xff] }
  0x38   : > { %287 = vst [vmem:[%s12500_s8 + $0x1d4] sm:$0xff] %v286_v58  ;;  %289 = vst [vmem:[%s12500_s8 + $0x1dc] sm:$0xff] %v288_v59  ;;  %v290_v60 = vld [vmem:[%s12495_s7 + $0x988] sm:$0xff]  ;;  %v292_v61 = vld [vmem:[%s12495_s7 + $0x990] sm:$0xff] }
  0x39   : > { %291 = vst [vmem:[%s12500_s8 + $0x1e8] sm:$0xff] %v290_v60  ;;  %293 = vst [vmem:[%s12500_s8 + $0x1f0] sm:$0xff] %v292_v61  ;;  %v296_v63 = vld [vmem:[%s12495_s7 + $0x9a0] sm:$0xff]  ;;  %v298_v0 = vld [vmem:[%s12495_s7 + $0x9a8] sm:$0xff] }
  0x3a   : > { %295 = vst [vmem:[%s12500_s8 + $0x1f8] sm:$0xff] %v294_v62  ;;  %v300_v1 = vld [vmem:[%s12495_s7 + $0x9b0] sm:$0xff]  ;;  %297 = vst [vmem:[%s12500_s8 + $0x200] sm:$0xff] %v296_v63  ;;  %v302_v2 = vld [vmem:[%s12495_s7 + $0x9b8] sm:$0xff] }
  0x3b   : > { %299 = vst [vmem:[%s12500_s8 + $0x208] sm:$0xff] %v298_v0  ;;  %301 = vst [vmem:[%s12500_s8 + $0x210] sm:$0xff] %v300_v1  ;;  %v304_v3 = vld [vmem:[%s12495_s7 + $0x9c0] sm:$0xff]  ;;  %v306_v4 = vld [vmem:[%s12495_s7 + $0x9c8] sm:$0xff] }
  0x3c   : > { %303 = vst [vmem:[%s12500_s8 + $0x218] sm:$0xff] %v302_v2  ;;  %305 = vst [vmem:[%s12500_s8 + $0x220] sm:$0xff] %v304_v3  ;;  %v308_v5 = vld [vmem:[%s12495_s7 + $0x9d0] sm:$0xff]  ;;  %v310_v6 = vld [vmem:[%s12495_s7 + $0x9d8] sm:$0xff] }
  0x3d   : > { %307 = vst [vmem:[%s12500_s8 + $0x228] sm:$0xff] %v306_v4  ;;  %v312_v7 = vld [vmem:[%s12495_s7 + $0x9e0] sm:$0xff]  ;;  %309 = vst [vmem:[%s12500_s8 + $0x230] sm:$0xff] %v308_v5  ;;  %v314_v8 = vld [vmem:[%s12495_s7 + $0x9e8] sm:$0xff] }
  0x3e   : > { %311 = vst [vmem:[%s12500_s8 + $0x238] sm:$0xff] %v310_v6  ;;  %313 = vst [vmem:[%s12500_s8 + $0x240] sm:$0xff] %v312_v7  ;;  %v316_v9 = vld [vmem:[%s12495_s7 + $0x9f0] sm:$0xff]  ;;  %v318_v10 = vld [vmem:[%s12495_s7 + $0x9f8] sm:$0xff] }
  0x3f   : > { %315 = vst [vmem:[%s12500_s8 + $0x248] sm:$0xff] %v314_v8  ;;  %317 = vst [vmem:[%s12500_s8 + $0x250] sm:$0xff] %v316_v9  ;;  %v320_v11 = vld [vmem:[%s12495_s7 + $0xa00] sm:$0xff]  ;;  %v322_v12 = vld [vmem:[%s12495_s7 + $0xa08] sm:$0xff] }
  0x40   : > { %319 = vst [vmem:[%s12500_s8 + $0x258] sm:$0xff] %v318_v10  ;;  %v324_v13 = vld [vmem:[%s12495_s7 + $0xa10] sm:$0xff]  ;;  %321 = vst [vmem:[%s12500_s8 + $0x260] sm:$0xff] %v320_v11  ;;  %v326_v14 = vld [vmem:[%s12495_s7 + $0xa18] sm:$0xff] }
  0x41   : > { %323 = vst [vmem:[%s12500_s8 + $0x268] sm:$0xff] %v322_v12  ;;  %325 = vst [vmem:[%s12500_s8 + $0x270] sm:$0xff] %v324_v13  ;;  %v328_v15 = vld [vmem:[%s12495_s7 + $0xa20] sm:$0xff]  ;;  %v330_v16 = vld [vmem:[%s12495_s7 + $0xa28] sm:$0xff] }
  0x42   : > { %327 = vst [vmem:[%s12500_s8 + $0x278] sm:$0xff] %v326_v14  ;;  %329 = vst [vmem:[%s12500_s8 + $0x280] sm:$0xff] %v328_v15  ;;  %v332_v17 = vld [vmem:[%s12495_s7 + $0xa30] sm:$0xff]  ;;  %v334_v18 = vld [vmem:[%s12495_s7 + $0xa38] sm:$0xff] }
  0x43   : > { %331 = vst [vmem:[%s12500_s8 + $0x288] sm:$0xff] %v330_v16  ;;  %v336_v19 = vld [vmem:[%s12495_s7 + $0xa40] sm:$0xff]  ;;  %333 = vst [vmem:[%s12500_s8 + $0x290] sm:$0xff] %v332_v17  ;;  %v338_v20 = vld [vmem:[%s12495_s7 + $0xa48] sm:$0xff] }
  0x44   : > { %335 = vst [vmem:[%s12500_s8 + $0x298] sm:$0xff] %v334_v18  ;;  %337 = vst [vmem:[%s12500_s8 + $0x2a0] sm:$0xff] %v336_v19  ;;  %v340_v21 = vld [vmem:[%s12495_s7 + $0xa50] sm:$0xff]  ;;  %v342_v22 = vld [vmem:[%s12495_s7 + $0xa58] sm:$0xff] }
  0x45   : > { %339 = vst [vmem:[%s12500_s8 + $0x2a8] sm:$0xff] %v338_v20  ;;  %341 = vst [vmem:[%s12500_s8 + $0x2b0] sm:$0xff] %v340_v21  ;;  %v344_v23 = vld [vmem:[%s12495_s7 + $0xa60] sm:$0xff]  ;;  %v346_v24 = vld [vmem:[%s12495_s7 + $0xa68] sm:$0xff] }
  0x46   : > { %343 = vst [vmem:[%s12500_s8 + $0x2b8] sm:$0xff] %v342_v22  ;;  %v348_v25 = vld [vmem:[%s12495_s7 + $0xa70] sm:$0xff]  ;;  %345 = vst [vmem:[%s12500_s8 + $0x2c0] sm:$0xff] %v344_v23  ;;  %v354_v28 = vld [vmem:[%s12495_s7 + $0xe5c] sm:$0xff] }
  0x47   : > { %347 = vst [vmem:[%s12500_s8 + $0x2c8] sm:$0xff] %v346_v24  ;;  %349 = vst [vmem:[%s12500_s8 + $0x2d0] sm:$0xff] %v348_v25  ;;  %v350_v26 = vld [vmem:[%s12495_s7 + $0xe4c] sm:$0xff]  ;;  %v352_v27 = vld [vmem:[%s12495_s7 + $0xe54] sm:$0xff] }
  0x48   : > { %351 = vst [vmem:[%s12500_s8 + $0x2dc] sm:$0xff] %v350_v26  ;;  %353 = vst [vmem:[%s12500_s8 + $0x2e4] sm:$0xff] %v352_v27  ;;  %v356_v29 = vld [vmem:[%s12495_s7 + $0xe64] sm:$0xff]  ;;  %v358_v30 = vld [vmem:[%s12495_s7 + $0xe6c] sm:$0xff] }
  0x49   : > { %355 = vst [vmem:[%s12500_s8 + $0x2ec] sm:$0xff] %v354_v28  ;;  %v360_v31 = vld [vmem:[%s12495_s7 + $0xe74] sm:$0xff]  ;;  %357 = vst [vmem:[%s12500_s8 + $0x2f4] sm:$0xff] %v356_v29  ;;  %v362_v32 = vld [vmem:[%s12495_s7 + $0xe7c] sm:$0xff] }
  0x4a   : > { %359 = vst [vmem:[%s12500_s8 + $0x2fc] sm:$0xff] %v358_v30  ;;  %361 = vst [vmem:[%s12500_s8 + $0x304] sm:$0xff] %v360_v31  ;;  %v364_v33 = vld [vmem:[%s12495_s7 + $0xe84] sm:$0xff]  ;;  %v366_v34 = vld [vmem:[%s12495_s7 + $0xe8c] sm:$0xff] }
  0x4b   : > { %363 = vst [vmem:[%s12500_s8 + $0x30c] sm:$0xff] %v362_v32  ;;  %365 = vst [vmem:[%s12500_s8 + $0x314] sm:$0xff] %v364_v33  ;;  %v368_v35 = vld [vmem:[%s12495_s7 + $0xe94] sm:$0xff]  ;;  %v370_v36 = vld [vmem:[%s12495_s7 + $0xe9c] sm:$0xff] }
  0x4c   : > { %367 = vst [vmem:[%s12500_s8 + $0x31c] sm:$0xff] %v366_v34  ;;  %v372_v37 = vld [vmem:[%s12495_s7 + $0xea4] sm:$0xff]  ;;  %369 = vst [vmem:[%s12500_s8 + $0x324] sm:$0xff] %v368_v35  ;;  %v374_v38 = vld [vmem:[%s12495_s7 + $0xeac] sm:$0xff] }
  0x4d   : > { %371 = vst [vmem:[%s12500_s8 + $0x32c] sm:$0xff] %v370_v36  ;;  %373 = vst [vmem:[%s12500_s8 + $0x334] sm:$0xff] %v372_v37  ;;  %v376_v39 = vld [vmem:[%s12495_s7 + $0xeb4] sm:$0xff]  ;;  %v378_v40 = vld [vmem:[%s12495_s7 + $0xebc] sm:$0xff] }
  0x4e   : > { %375 = vst [vmem:[%s12500_s8 + $0x33c] sm:$0xff] %v374_v38  ;;  %377 = vst [vmem:[%s12500_s8 + $0x344] sm:$0xff] %v376_v39  ;;  %v380_v41 = vld [vmem:[%s12495_s7 + $0xec4] sm:$0xff]  ;;  %v382_v42 = vld [vmem:[%s12495_s7 + $0xecc] sm:$0xff] }
  0x4f   : > { %379 = vst [vmem:[%s12500_s8 + $0x34c] sm:$0xff] %v378_v40  ;;  %v384_v43 = vld [vmem:[%s12495_s7 + $0xed4] sm:$0xff]  ;;  %381 = vst [vmem:[%s12500_s8 + $0x354] sm:$0xff] %v380_v41  ;;  %v386_v44 = vld [vmem:[%s12495_s7 + $0xedc] sm:$0xff] }
  0x50   : > { %383 = vst [vmem:[%s12500_s8 + $0x35c] sm:$0xff] %v382_v42  ;;  %385 = vst [vmem:[%s12500_s8 + $0x364] sm:$0xff] %v384_v43  ;;  %v388_v45 = vld [vmem:[%s12495_s7 + $0xee4] sm:$0xff]  ;;  %v390_v46 = vld [vmem:[%s12495_s7 + $0xeec] sm:$0xff] }
  0x51   : > { %387 = vst [vmem:[%s12500_s8 + $0x36c] sm:$0xff] %v386_v44  ;;  %389 = vst [vmem:[%s12500_s8 + $0x374] sm:$0xff] %v388_v45  ;;  %v392_v47 = vld [vmem:[%s12495_s7 + $0xef4] sm:$0xff]  ;;  %v394_v48 = vld [vmem:[%s12495_s7 + $0xefc] sm:$0xff] }
  0x52   : > { %391 = vst [vmem:[%s12500_s8 + $0x37c] sm:$0xff] %v390_v46  ;;  %v396_v49 = vld [vmem:[%s12495_s7 + $0xf04] sm:$0xff]  ;;  %393 = vst [vmem:[%s12500_s8 + $0x384] sm:$0xff] %v392_v47  ;;  %v398_v50 = vld [vmem:[%s12495_s7 + $0xf0c] sm:$0xff] }
  0x53   : > { %395 = vst [vmem:[%s12500_s8 + $0x38c] sm:$0xff] %v394_v48  ;;  %397 = vst [vmem:[%s12500_s8 + $0x394] sm:$0xff] %v396_v49  ;;  %v400_v51 = vld [vmem:[%s12495_s7 + $0xf14] sm:$0xff]  ;;  %v402_v52 = vld [vmem:[%s12495_s7 + $0xf1c] sm:$0xff] }
  0x54   : > { %399 = vst [vmem:[%s12500_s8 + $0x39c] sm:$0xff] %v398_v50  ;;  %401 = vst [vmem:[%s12500_s8 + $0x3a4] sm:$0xff] %v400_v51  ;;  %v404_v53 = vld [vmem:[%s12495_s7 + $0xf24] sm:$0xff]  ;;  %v406_v54 = vld [vmem:[%s12495_s7 + $0xf2c] sm:$0xff] }
  0x55   : > { %403 = vst [vmem:[%s12500_s8 + $0x3ac] sm:$0xff] %v402_v52  ;;  %v408_v55 = vld [vmem:[%s12495_s7 + $0xf34] sm:$0xff]  ;;  %405 = vst [vmem:[%s12500_s8 + $0x3b4] sm:$0xff] %v404_v53  ;;  %v414_v58 = vld [vmem:[%s12495_s7 + $0x1320] sm:$0xff] }
  0x56   : > { %407 = vst [vmem:[%s12500_s8 + $0x3bc] sm:$0xff] %v406_v54  ;;  %409 = vst [vmem:[%s12500_s8 + $0x3c4] sm:$0xff] %v408_v55  ;;  %v410_v56 = vld [vmem:[%s12495_s7 + $0x1310] sm:$0xff]  ;;  %v412_v57 = vld [vmem:[%s12495_s7 + $0x1318] sm:$0xff] }
  0x57   : > { %411 = vst [vmem:[%s12500_s8 + $0x3d0] sm:$0xff] %v410_v56  ;;  %413 = vst [vmem:[%s12500_s8 + $0x3d8] sm:$0xff] %v412_v57  ;;  %v416_v59 = vld [vmem:[%s12495_s7 + $0x1328] sm:$0xff]  ;;  %v418_v60 = vld [vmem:[%s12495_s7 + $0x1330] sm:$0xff] }
  0x58   : > { %415 = vst [vmem:[%s12500_s8 + $0x3e0] sm:$0xff] %v414_v58  ;;  %v420_v61 = vld [vmem:[%s12495_s7 + $0x1338] sm:$0xff]  ;;  %417 = vst [vmem:[%s12500_s8 + $0x3e8] sm:$0xff] %v416_v59  ;;  %v422_v62 = vld [vmem:[%s12495_s7 + $0x1340] sm:$0xff] }
  0x59   : > { %419 = vst [vmem:[%s12500_s8 + $0x3f0] sm:$0xff] %v418_v60  ;;  %421 = vst [vmem:[%s12500_s8 + $0x3f8] sm:$0xff] %v420_v61  ;;  %v424_v63 = vld [vmem:[%s12495_s7 + $0x1348] sm:$0xff]  ;;  %v426_v0 = vld [vmem:[%s12495_s7 + $0x1350] sm:$0xff] }
  0x5a   : > { %423 = vst [vmem:[%s12500_s8 + $0x400] sm:$0xff] %v422_v62  ;;  %425 = vst [vmem:[%s12500_s8 + $0x408] sm:$0xff] %v424_v63  ;;  %v428_v1 = vld [vmem:[%s12495_s7 + $0x1358] sm:$0xff]  ;;  %v430_v2 = vld [vmem:[%s12495_s7 + $0x1360] sm:$0xff] }
  0x5b   : > { %427 = vst [vmem:[%s12500_s8 + $0x410] sm:$0xff] %v426_v0  ;;  %v432_v3 = vld [vmem:[%s12495_s7 + $0x1368] sm:$0xff]  ;;  %429 = vst [vmem:[%s12500_s8 + $0x418] sm:$0xff] %v428_v1  ;;  %v434_v4 = vld [vmem:[%s12495_s7 + $0x1370] sm:$0xff] }
  0x5c   : > { %431 = vst [vmem:[%s12500_s8 + $0x420] sm:$0xff] %v430_v2  ;;  %433 = vst [vmem:[%s12500_s8 + $0x428] sm:$0xff] %v432_v3  ;;  %v436_v5 = vld [vmem:[%s12495_s7 + $0x1378] sm:$0xff]  ;;  %v438_v6 = vld [vmem:[%s12495_s7 + $0x1380] sm:$0xff] }
  0x5d   : > { %435 = vst [vmem:[%s12500_s8 + $0x430] sm:$0xff] %v434_v4  ;;  %437 = vst [vmem:[%s12500_s8 + $0x438] sm:$0xff] %v436_v5  ;;  %v440_v7 = vld [vmem:[%s12495_s7 + $0x1388] sm:$0xff]  ;;  %v442_v8 = vld [vmem:[%s12495_s7 + $0x1390] sm:$0xff] }
  0x5e   : > { %439 = vst [vmem:[%s12500_s8 + $0x440] sm:$0xff] %v438_v6  ;;  %v444_v9 = vld [vmem:[%s12495_s7 + $0x1398] sm:$0xff]  ;;  %441 = vst [vmem:[%s12500_s8 + $0x448] sm:$0xff] %v440_v7  ;;  %v446_v10 = vld [vmem:[%s12495_s7 + $0x13a0] sm:$0xff] }
  0x5f   : > { %443 = vst [vmem:[%s12500_s8 + $0x450] sm:$0xff] %v442_v8  ;;  %445 = vst [vmem:[%s12500_s8 + $0x458] sm:$0xff] %v444_v9  ;;  %v448_v11 = vld [vmem:[%s12495_s7 + $0x13a8] sm:$0xff]  ;;  %v450_v12 = vld [vmem:[%s12495_s7 + $0x13b0] sm:$0xff] }
  0x60   : > { %447 = vst [vmem:[%s12500_s8 + $0x460] sm:$0xff] %v446_v10  ;;  %449 = vst [vmem:[%s12500_s8 + $0x468] sm:$0xff] %v448_v11  ;;  %v452_v13 = vld [vmem:[%s12495_s7 + $0x13b8] sm:$0xff]  ;;  %v454_v14 = vld [vmem:[%s12495_s7 + $0x13c0] sm:$0xff] }
  0x61   : > { %451 = vst [vmem:[%s12500_s8 + $0x470] sm:$0xff] %v450_v12  ;;  %v456_v15 = vld [vmem:[%s12495_s7 + $0x13c8] sm:$0xff]  ;;  %453 = vst [vmem:[%s12500_s8 + $0x478] sm:$0xff] %v452_v13  ;;  %v458_v16 = vld [vmem:[%s12495_s7 + $0x13d0] sm:$0xff] }
  0x62   : > { %455 = vst [vmem:[%s12500_s8 + $0x480] sm:$0xff] %v454_v14  ;;  %457 = vst [vmem:[%s12500_s8 + $0x488] sm:$0xff] %v456_v15  ;;  %v460_v17 = vld [vmem:[%s12495_s7 + $0x13d8] sm:$0xff]  ;;  %v462_v18 = vld [vmem:[%s12495_s7 + $0x13e0] sm:$0xff] }
  0x63   : > { %459 = vst [vmem:[%s12500_s8 + $0x490] sm:$0xff] %v458_v16  ;;  %461 = vst [vmem:[%s12500_s8 + $0x498] sm:$0xff] %v460_v17  ;;  %v464_v19 = vld [vmem:[%s12495_s7 + $0x13e8] sm:$0xff]  ;;  %v466_v20 = vld [vmem:[%s12495_s7 + $0x13f0] sm:$0xff] }
  0x64   : > { %463 = vst [vmem:[%s12500_s8 + $0x4a0] sm:$0xff] %v462_v18  ;;  %v468_v21 = vld [vmem:[%s12495_s7 + $0x13f8] sm:$0xff]  ;;  %465 = vst [vmem:[%s12500_s8 + $0x4a8] sm:$0xff] %v464_v19  ;;  %v474_v24 = vld [vmem:[%s12495_s7 + $0x17e4] sm:$0xff] }
  0x65   : > { %467 = vst [vmem:[%s12500_s8 + $0x4b0] sm:$0xff] %v466_v20  ;;  %469 = vst [vmem:[%s12500_s8 + $0x4b8] sm:$0xff] %v468_v21  ;;  %v470_v22 = vld [vmem:[%s12495_s7 + $0x17d4] sm:$0xff]  ;;  %v472_v23 = vld [vmem:[%s12495_s7 + $0x17dc] sm:$0xff] }
  0x66   : > { %471 = vst [vmem:[%s12500_s8 + $0x4c4] sm:$0xff] %v470_v22  ;;  %473 = vst [vmem:[%s12500_s8 + $0x4cc] sm:$0xff] %v472_v23  ;;  %v476_v25 = vld [vmem:[%s12495_s7 + $0x17ec] sm:$0xff]  ;;  %v478_v26 = vld [vmem:[%s12495_s7 + $0x17f4] sm:$0xff] }
  0x67   : > { %475 = vst [vmem:[%s12500_s8 + $0x4d4] sm:$0xff] %v474_v24  ;;  %v480_v27 = vld [vmem:[%s12495_s7 + $0x17fc] sm:$0xff]  ;;  %477 = vst [vmem:[%s12500_s8 + $0x4dc] sm:$0xff] %v476_v25  ;;  %v482_v28 = vld [vmem:[%s12495_s7 + $0x1804] sm:$0xff] }
  0x68   : > { %479 = vst [vmem:[%s12500_s8 + $0x4e4] sm:$0xff] %v478_v26  ;;  %481 = vst [vmem:[%s12500_s8 + $0x4ec] sm:$0xff] %v480_v27  ;;  %v484_v29 = vld [vmem:[%s12495_s7 + $0x180c] sm:$0xff]  ;;  %v486_v30 = vld [vmem:[%s12495_s7 + $0x1814] sm:$0xff] }
  0x69   : > { %483 = vst [vmem:[%s12500_s8 + $0x4f4] sm:$0xff] %v482_v28  ;;  %485 = vst [vmem:[%s12500_s8 + $0x4fc] sm:$0xff] %v484_v29  ;;  %v488_v31 = vld [vmem:[%s12495_s7 + $0x181c] sm:$0xff]  ;;  %v490_v32 = vld [vmem:[%s12495_s7 + $0x1824] sm:$0xff] }
  0x6a   : > { %487 = vst [vmem:[%s12500_s8 + $0x504] sm:$0xff] %v486_v30  ;;  %v492_v33 = vld [vmem:[%s12495_s7 + $0x182c] sm:$0xff]  ;;  %489 = vst [vmem:[%s12500_s8 + $0x50c] sm:$0xff] %v488_v31  ;;  %v494_v34 = vld [vmem:[%s12495_s7 + $0x1834] sm:$0xff] }
  0x6b   : > { %491 = vst [vmem:[%s12500_s8 + $0x514] sm:$0xff] %v490_v32  ;;  %493 = vst [vmem:[%s12500_s8 + $0x51c] sm:$0xff] %v492_v33  ;;  %v496_v35 = vld [vmem:[%s12495_s7 + $0x183c] sm:$0xff]  ;;  %v498_v36 = vld [vmem:[%s12495_s7 + $0x1844] sm:$0xff] }
  0x6c   : > { %495 = vst [vmem:[%s12500_s8 + $0x524] sm:$0xff] %v494_v34  ;;  %497 = vst [vmem:[%s12500_s8 + $0x52c] sm:$0xff] %v496_v35  ;;  %v500_v37 = vld [vmem:[%s12495_s7 + $0x184c] sm:$0xff]  ;;  %v502_v38 = vld [vmem:[%s12495_s7 + $0x1854] sm:$0xff] }
  0x6d   : > { %499 = vst [vmem:[%s12500_s8 + $0x534] sm:$0xff] %v498_v36  ;;  %v504_v39 = vld [vmem:[%s12495_s7 + $0x185c] sm:$0xff]  ;;  %501 = vst [vmem:[%s12500_s8 + $0x53c] sm:$0xff] %v500_v37  ;;  %v506_v40 = vld [vmem:[%s12495_s7 + $0x1864] sm:$0xff] }
  0x6e   : > { %503 = vst [vmem:[%s12500_s8 + $0x544] sm:$0xff] %v502_v38  ;;  %505 = vst [vmem:[%s12500_s8 + $0x54c] sm:$0xff] %v504_v39  ;;  %v508_v41 = vld [vmem:[%s12495_s7 + $0x186c] sm:$0xff]  ;;  %v510_v42 = vld [vmem:[%s12495_s7 + $0x1874] sm:$0xff] }
  0x6f   : > { %507 = vst [vmem:[%s12500_s8 + $0x554] sm:$0xff] %v506_v40  ;;  %509 = vst [vmem:[%s12500_s8 + $0x55c] sm:$0xff] %v508_v41  ;;  %v512_v43 = vld [vmem:[%s12495_s7 + $0x187c] sm:$0xff]  ;;  %v514_v44 = vld [vmem:[%s12495_s7 + $0x1884] sm:$0xff] }
  0x70   : > { %511 = vst [vmem:[%s12500_s8 + $0x564] sm:$0xff] %v510_v42  ;;  %v516_v45 = vld [vmem:[%s12495_s7 + $0x188c] sm:$0xff]  ;;  %513 = vst [vmem:[%s12500_s8 + $0x56c] sm:$0xff] %v512_v43  ;;  %v518_v46 = vld [vmem:[%s12495_s7 + $0x1894] sm:$0xff] }
  0x71   : > { %515 = vst [vmem:[%s12500_s8 + $0x574] sm:$0xff] %v514_v44  ;;  %517 = vst [vmem:[%s12500_s8 + $0x57c] sm:$0xff] %v516_v45  ;;  %v520_v47 = vld [vmem:[%s12495_s7 + $0x189c] sm:$0xff]  ;;  %v522_v48 = vld [vmem:[%s12495_s7 + $0x18a4] sm:$0xff] }
  0x72   : > { %519 = vst [vmem:[%s12500_s8 + $0x584] sm:$0xff] %v518_v46  ;;  %521 = vst [vmem:[%s12500_s8 + $0x58c] sm:$0xff] %v520_v47  ;;  %v524_v49 = vld [vmem:[%s12495_s7 + $0x18ac] sm:$0xff]  ;;  %v526_v50 = vld [vmem:[%s12495_s7 + $0x18b4] sm:$0xff] }
  0x73   : > { %523 = vst [vmem:[%s12500_s8 + $0x594] sm:$0xff] %v522_v48  ;;  %v528_v51 = vld [vmem:[%s12495_s7 + $0x18bc] sm:$0xff]  ;;  %525 = vst [vmem:[%s12500_s8 + $0x59c] sm:$0xff] %v524_v49  ;;  %v534_v54 = vld [vmem:[%s12495_s7 + $0x1ca8] sm:$0xff] }
  0x74   : > { %527 = vst [vmem:[%s12500_s8 + $0x5a4] sm:$0xff] %v526_v50  ;;  %529 = vst [vmem:[%s12500_s8 + $0x5ac] sm:$0xff] %v528_v51  ;;  %v530_v52 = vld [vmem:[%s12495_s7 + $0x1c98] sm:$0xff]  ;;  %v532_v53 = vld [vmem:[%s12495_s7 + $0x1ca0] sm:$0xff] }
  0x75   : > { %531 = vst [vmem:[%s12500_s8 + $0x5b8] sm:$0xff] %v530_v52  ;;  %533 = vst [vmem:[%s12500_s8 + $0x5c0] sm:$0xff] %v532_v53  ;;  %v536_v55 = vld [vmem:[%s12495_s7 + $0x1cb0] sm:$0xff]  ;;  %v538_v56 = vld [vmem:[%s12495_s7 + $0x1cb8] sm:$0xff] }
  0x76   : > { %535 = vst [vmem:[%s12500_s8 + $0x5c8] sm:$0xff] %v534_v54  ;;  %v540_v57 = vld [vmem:[%s12495_s7 + $0x1cc0] sm:$0xff]  ;;  %537 = vst [vmem:[%s12500_s8 + $0x5d0] sm:$0xff] %v536_v55  ;;  %v542_v58 = vld [vmem:[%s12495_s7 + $0x1cc8] sm:$0xff] }
  0x77   : > { %539 = vst [vmem:[%s12500_s8 + $0x5d8] sm:$0xff] %v538_v56  ;;  %541 = vst [vmem:[%s12500_s8 + $0x5e0] sm:$0xff] %v540_v57  ;;  %v544_v59 = vld [vmem:[%s12495_s7 + $0x1cd0] sm:$0xff]  ;;  %v546_v60 = vld [vmem:[%s12495_s7 + $0x1cd8] sm:$0xff] }
  0x78   : > { %543 = vst [vmem:[%s12500_s8 + $0x5e8] sm:$0xff] %v542_v58  ;;  %545 = vst [vmem:[%s12500_s8 + $0x5f0] sm:$0xff] %v544_v59  ;;  %v548_v61 = vld [vmem:[%s12495_s7 + $0x1ce0] sm:$0xff]  ;;  %v550_v62 = vld [vmem:[%s12495_s7 + $0x1ce8] sm:$0xff] }
  0x79   : > { %547 = vst [vmem:[%s12500_s8 + $0x5f8] sm:$0xff] %v546_v60  ;;  %v552_v63 = vld [vmem:[%s12495_s7 + $0x1cf0] sm:$0xff]  ;;  %549 = vst [vmem:[%s12500_s8 + $0x600] sm:$0xff] %v548_v61  ;;  %v554_v0 = vld [vmem:[%s12495_s7 + $0x1cf8] sm:$0xff] }
  0x7a   : > { %551 = vst [vmem:[%s12500_s8 + $0x608] sm:$0xff] %v550_v62  ;;  %553 = vst [vmem:[%s12500_s8 + $0x610] sm:$0xff] %v552_v63  ;;  %v556_v1 = vld [vmem:[%s12495_s7 + $0x1d00] sm:$0xff]  ;;  %v558_v2 = vld [vmem:[%s12495_s7 + $0x1d08] sm:$0xff] }
  0x7b   : > { %555 = vst [vmem:[%s12500_s8 + $0x618] sm:$0xff] %v554_v0  ;;  %557 = vst [vmem:[%s12500_s8 + $0x620] sm:$0xff] %v556_v1  ;;  %v560_v3 = vld [vmem:[%s12495_s7 + $0x1d10] sm:$0xff]  ;;  %v562_v4 = vld [vmem:[%s12495_s7 + $0x1d18] sm:$0xff] }
  0x7c   : > { %559 = vst [vmem:[%s12500_s8 + $0x628] sm:$0xff] %v558_v2  ;;  %v564_v5 = vld [vmem:[%s12495_s7 + $0x1d20] sm:$0xff]  ;;  %561 = vst [vmem:[%s12500_s8 + $0x630] sm:$0xff] %v560_v3  ;;  %v566_v6 = vld [vmem:[%s12495_s7 + $0x1d28] sm:$0xff] }
  0x7d   : > { %563 = vst [vmem:[%s12500_s8 + $0x638] sm:$0xff] %v562_v4  ;;  %565 = vst [vmem:[%s12500_s8 + $0x640] sm:$0xff] %v564_v5  ;;  %v568_v7 = vld [vmem:[%s12495_s7 + $0x1d30] sm:$0xff]  ;;  %v570_v8 = vld [vmem:[%s12495_s7 + $0x1d38] sm:$0xff] }
  0x7e   : > { %567 = vst [vmem:[%s12500_s8 + $0x648] sm:$0xff] %v566_v6  ;;  %569 = vst [vmem:[%s12500_s8 + $0x650] sm:$0xff] %v568_v7  ;;  %v572_v9 = vld [vmem:[%s12495_s7 + $0x1d40] sm:$0xff]  ;;  %v574_v10 = vld [vmem:[%s12495_s7 + $0x1d48] sm:$0xff] }
  0x7f   : > { %571 = vst [vmem:[%s12500_s8 + $0x658] sm:$0xff] %v570_v8  ;;  %v576_v11 = vld [vmem:[%s12495_s7 + $0x1d50] sm:$0xff]  ;;  %573 = vst [vmem:[%s12500_s8 + $0x660] sm:$0xff] %v572_v9  ;;  %v578_v12 = vld [vmem:[%s12495_s7 + $0x1d58] sm:$0xff] }
  0x80   : > { %575 = vst [vmem:[%s12500_s8 + $0x668] sm:$0xff] %v574_v10  ;;  %577 = vst [vmem:[%s12500_s8 + $0x670] sm:$0xff] %v576_v11  ;;  %v580_v13 = vld [vmem:[%s12495_s7 + $0x1d60] sm:$0xff]  ;;  %v582_v14 = vld [vmem:[%s12495_s7 + $0x1d68] sm:$0xff] }
  0x81   : > { %579 = vst [vmem:[%s12500_s8 + $0x678] sm:$0xff] %v578_v12  ;;  %581 = vst [vmem:[%s12500_s8 + $0x680] sm:$0xff] %v580_v13  ;;  %v584_v15 = vld [vmem:[%s12495_s7 + $0x1d70] sm:$0xff]  ;;  %v586_v16 = vld [vmem:[%s12495_s7 + $0x1d78] sm:$0xff] }
  0x82   : > { %583 = vst [vmem:[%s12500_s8 + $0x688] sm:$0xff] %v582_v14  ;;  %v588_v17 = vld [vmem:[%s12495_s7 + $0x1d80] sm:$0xff]  ;;  %585 = vst [vmem:[%s12500_s8 + $0x690] sm:$0xff] %v584_v15  ;;  %v594_v20 = vld [vmem:[%s12495_s7 + $0x216c] sm:$0xff] }
  0x83   : > { %587 = vst [vmem:[%s12500_s8 + $0x698] sm:$0xff] %v586_v16  ;;  %589 = vst [vmem:[%s12500_s8 + $0x6a0] sm:$0xff] %v588_v17  ;;  %v590_v18 = vld [vmem:[%s12495_s7 + $0x215c] sm:$0xff]  ;;  %v592_v19 = vld [vmem:[%s12495_s7 + $0x2164] sm:$0xff] }
  0x84   : > { %591 = vst [vmem:[%s12500_s8 + $0x6ac] sm:$0xff] %v590_v18  ;;  %593 = vst [vmem:[%s12500_s8 + $0x6b4] sm:$0xff] %v592_v19  ;;  %v596_v21 = vld [vmem:[%s12495_s7 + $0x2174] sm:$0xff]  ;;  %v598_v22 = vld [vmem:[%s12495_s7 + $0x217c] sm:$0xff] }
  0x85   : > { %595 = vst [vmem:[%s12500_s8 + $0x6bc] sm:$0xff] %v594_v20  ;;  %v600_v23 = vld [vmem:[%s12495_s7 + $0x2184] sm:$0xff]  ;;  %597 = vst [vmem:[%s12500_s8 + $0x6c4] sm:$0xff] %v596_v21  ;;  %v602_v24 = vld [vmem:[%s12495_s7 + $0x218c] sm:$0xff] }
  0x86   : > { %599 = vst [vmem:[%s12500_s8 + $0x6cc] sm:$0xff] %v598_v22  ;;  %601 = vst [vmem:[%s12500_s8 + $0x6d4] sm:$0xff] %v600_v23  ;;  %v604_v25 = vld [vmem:[%s12495_s7 + $0x2194] sm:$0xff]  ;;  %v606_v26 = vld [vmem:[%s12495_s7 + $0x219c] sm:$0xff] }
  0x87   : > { %603 = vst [vmem:[%s12500_s8 + $0x6dc] sm:$0xff] %v602_v24  ;;  %605 = vst [vmem:[%s12500_s8 + $0x6e4] sm:$0xff] %v604_v25  ;;  %v608_v27 = vld [vmem:[%s12495_s7 + $0x21a4] sm:$0xff]  ;;  %v610_v28 = vld [vmem:[%s12495_s7 + $0x21ac] sm:$0xff] }
  0x88   : > { %607 = vst [vmem:[%s12500_s8 + $0x6ec] sm:$0xff] %v606_v26  ;;  %v612_v29 = vld [vmem:[%s12495_s7 + $0x21b4] sm:$0xff]  ;;  %609 = vst [vmem:[%s12500_s8 + $0x6f4] sm:$0xff] %v608_v27  ;;  %v614_v30 = vld [vmem:[%s12495_s7 + $0x21bc] sm:$0xff] }
  0x89   : > { %611 = vst [vmem:[%s12500_s8 + $0x6fc] sm:$0xff] %v610_v28  ;;  %613 = vst [vmem:[%s12500_s8 + $0x704] sm:$0xff] %v612_v29  ;;  %v616_v31 = vld [vmem:[%s12495_s7 + $0x21c4] sm:$0xff]  ;;  %v618_v32 = vld [vmem:[%s12495_s7 + $0x21cc] sm:$0xff] }
  0x8a   : > { %615 = vst [vmem:[%s12500_s8 + $0x70c] sm:$0xff] %v614_v30  ;;  %617 = vst [vmem:[%s12500_s8 + $0x714] sm:$0xff] %v616_v31  ;;  %v620_v33 = vld [vmem:[%s12495_s7 + $0x21d4] sm:$0xff]  ;;  %v622_v34 = vld [vmem:[%s12495_s7 + $0x21dc] sm:$0xff] }
  0x8b   : > { %619 = vst [vmem:[%s12500_s8 + $0x71c] sm:$0xff] %v618_v32  ;;  %v624_v35 = vld [vmem:[%s12495_s7 + $0x21e4] sm:$0xff]  ;;  %621 = vst [vmem:[%s12500_s8 + $0x724] sm:$0xff] %v620_v33  ;;  %v626_v36 = vld [vmem:[%s12495_s7 + $0x21ec] sm:$0xff] }
  0x8c   : > { %623 = vst [vmem:[%s12500_s8 + $0x72c] sm:$0xff] %v622_v34  ;;  %625 = vst [vmem:[%s12500_s8 + $0x734] sm:$0xff] %v624_v35  ;;  %v628_v37 = vld [vmem:[%s12495_s7 + $0x21f4] sm:$0xff]  ;;  %v630_v38 = vld [vmem:[%s12495_s7 + $0x21fc] sm:$0xff] }
  0x8d   : > { %627 = vst [vmem:[%s12500_s8 + $0x73c] sm:$0xff] %v626_v36  ;;  %629 = vst [vmem:[%s12500_s8 + $0x744] sm:$0xff] %v628_v37  ;;  %v632_v39 = vld [vmem:[%s12495_s7 + $0x2204] sm:$0xff]  ;;  %v634_v40 = vld [vmem:[%s12495_s7 + $0x220c] sm:$0xff] }
  0x8e   : > { %631 = vst [vmem:[%s12500_s8 + $0x74c] sm:$0xff] %v630_v38  ;;  %v636_v41 = vld [vmem:[%s12495_s7 + $0x2214] sm:$0xff]  ;;  %633 = vst [vmem:[%s12500_s8 + $0x754] sm:$0xff] %v632_v39  ;;  %v638_v42 = vld [vmem:[%s12495_s7 + $0x221c] sm:$0xff] }
  0x8f   : > { %635 = vst [vmem:[%s12500_s8 + $0x75c] sm:$0xff] %v634_v40  ;;  %637 = vst [vmem:[%s12500_s8 + $0x764] sm:$0xff] %v636_v41  ;;  %v640_v43 = vld [vmem:[%s12495_s7 + $0x2224] sm:$0xff]  ;;  %v642_v44 = vld [vmem:[%s12495_s7 + $0x222c] sm:$0xff] }
  0x90   : > { %639 = vst [vmem:[%s12500_s8 + $0x76c] sm:$0xff] %v638_v42  ;;  %641 = vst [vmem:[%s12500_s8 + $0x774] sm:$0xff] %v640_v43  ;;  %v644_v45 = vld [vmem:[%s12495_s7 + $0x2234] sm:$0xff]  ;;  %v646_v46 = vld [vmem:[%s12495_s7 + $0x223c] sm:$0xff] }
  0x91   : > { %643 = vst [vmem:[%s12500_s8 + $0x77c] sm:$0xff] %v642_v44  ;;  %v648_v47 = vld [vmem:[%s12495_s7 + $0x2244] sm:$0xff]  ;;  %645 = vst [vmem:[%s12500_s8 + $0x784] sm:$0xff] %v644_v45  ;;  %v654_v50 = vld [vmem:[%s12495_s7 + $0x2630] sm:$0xff] }
  0x92   : > { %647 = vst [vmem:[%s12500_s8 + $0x78c] sm:$0xff] %v646_v46  ;;  %649 = vst [vmem:[%s12500_s8 + $0x794] sm:$0xff] %v648_v47  ;;  %v650_v48 = vld [vmem:[%s12495_s7 + $0x2620] sm:$0xff]  ;;  %v652_v49 = vld [vmem:[%s12495_s7 + $0x2628] sm:$0xff] }
  0x93   : > { %651 = vst [vmem:[%s12500_s8 + $0x7a0] sm:$0xff] %v650_v48  ;;  %653 = vst [vmem:[%s12500_s8 + $0x7a8] sm:$0xff] %v652_v49  ;;  %v656_v51 = vld [vmem:[%s12495_s7 + $0x2638] sm:$0xff]  ;;  %v658_v52 = vld [vmem:[%s12495_s7 + $0x2640] sm:$0xff] }
  0x94   : > { %655 = vst [vmem:[%s12500_s8 + $0x7b0] sm:$0xff] %v654_v50  ;;  %v660_v53 = vld [vmem:[%s12495_s7 + $0x2648] sm:$0xff]  ;;  %657 = vst [vmem:[%s12500_s8 + $0x7b8] sm:$0xff] %v656_v51  ;;  %v662_v54 = vld [vmem:[%s12495_s7 + $0x2650] sm:$0xff] }
  0x95   : > { %659 = vst [vmem:[%s12500_s8 + $0x7c0] sm:$0xff] %v658_v52  ;;  %661 = vst [vmem:[%s12500_s8 + $0x7c8] sm:$0xff] %v660_v53  ;;  %v664_v55 = vld [vmem:[%s12495_s7 + $0x2658] sm:$0xff]  ;;  %v666_v56 = vld [vmem:[%s12495_s7 + $0x2660] sm:$0xff] }
  0x96   : > { %663 = vst [vmem:[%s12500_s8 + $0x7d0] sm:$0xff] %v662_v54  ;;  %665 = vst [vmem:[%s12500_s8 + $0x7d8] sm:$0xff] %v664_v55  ;;  %v668_v57 = vld [vmem:[%s12495_s7 + $0x2668] sm:$0xff]  ;;  %v670_v58 = vld [vmem:[%s12495_s7 + $0x2670] sm:$0xff] }
  0x97   : > { %667 = vst [vmem:[%s12500_s8 + $0x7e0] sm:$0xff] %v666_v56  ;;  %v672_v59 = vld [vmem:[%s12495_s7 + $0x2678] sm:$0xff]  ;;  %669 = vst [vmem:[%s12500_s8 + $0x7e8] sm:$0xff] %v668_v57  ;;  %v674_v60 = vld [vmem:[%s12495_s7 + $0x2680] sm:$0xff] }
  0x98   : > { %671 = vst [vmem:[%s12500_s8 + $0x7f0] sm:$0xff] %v670_v58  ;;  %673 = vst [vmem:[%s12500_s8 + $0x7f8] sm:$0xff] %v672_v59  ;;  %v676_v61 = vld [vmem:[%s12495_s7 + $0x2688] sm:$0xff]  ;;  %v678_v62 = vld [vmem:[%s12495_s7 + $0x2690] sm:$0xff] }
  0x99   : > { %675 = vst [vmem:[%s12500_s8 + $0x800] sm:$0xff] %v674_v60  ;;  %677 = vst [vmem:[%s12500_s8 + $0x808] sm:$0xff] %v676_v61  ;;  %v680_v63 = vld [vmem:[%s12495_s7 + $0x2698] sm:$0xff]  ;;  %v682_v0 = vld [vmem:[%s12495_s7 + $0x26a0] sm:$0xff] }
  0x9a   : > { %679 = vst [vmem:[%s12500_s8 + $0x810] sm:$0xff] %v678_v62  ;;  %v684_v1 = vld [vmem:[%s12495_s7 + $0x26a8] sm:$0xff]  ;;  %681 = vst [vmem:[%s12500_s8 + $0x818] sm:$0xff] %v680_v63  ;;  %v686_v2 = vld [vmem:[%s12495_s7 + $0x26b0] sm:$0xff] }
  0x9b   : > { %683 = vst [vmem:[%s12500_s8 + $0x820] sm:$0xff] %v682_v0  ;;  %685 = vst [vmem:[%s12500_s8 + $0x828] sm:$0xff] %v684_v1  ;;  %v688_v3 = vld [vmem:[%s12495_s7 + $0x26b8] sm:$0xff]  ;;  %v690_v4 = vld [vmem:[%s12495_s7 + $0x26c0] sm:$0xff] }
  0x9c   : > { %687 = vst [vmem:[%s12500_s8 + $0x830] sm:$0xff] %v686_v2  ;;  %689 = vst [vmem:[%s12500_s8 + $0x838] sm:$0xff] %v688_v3  ;;  %v692_v5 = vld [vmem:[%s12495_s7 + $0x26c8] sm:$0xff]  ;;  %v694_v6 = vld [vmem:[%s12495_s7 + $0x26d0] sm:$0xff] }
  0x9d   : > { %691 = vst [vmem:[%s12500_s8 + $0x840] sm:$0xff] %v690_v4  ;;  %v696_v7 = vld [vmem:[%s12495_s7 + $0x26d8] sm:$0xff]  ;;  %693 = vst [vmem:[%s12500_s8 + $0x848] sm:$0xff] %v692_v5  ;;  %v698_v8 = vld [vmem:[%s12495_s7 + $0x26e0] sm:$0xff] }
  0x9e   : > { %695 = vst [vmem:[%s12500_s8 + $0x850] sm:$0xff] %v694_v6  ;;  %697 = vst [vmem:[%s12500_s8 + $0x858] sm:$0xff] %v696_v7  ;;  %v700_v9 = vld [vmem:[%s12495_s7 + $0x26e8] sm:$0xff]  ;;  %v702_v10 = vld [vmem:[%s12495_s7 + $0x26f0] sm:$0xff] }
  0x9f   : > { %699 = vst [vmem:[%s12500_s8 + $0x860] sm:$0xff] %v698_v8  ;;  %701 = vst [vmem:[%s12500_s8 + $0x868] sm:$0xff] %v700_v9  ;;  %v704_v11 = vld [vmem:[%s12495_s7 + $0x26f8] sm:$0xff]  ;;  %v706_v12 = vld [vmem:[%s12495_s7 + $0x2700] sm:$0xff] }
  0xa0   : > { %703 = vst [vmem:[%s12500_s8 + $0x870] sm:$0xff] %v702_v10  ;;  %v708_v13 = vld [vmem:[%s12495_s7 + $0x2708] sm:$0xff]  ;;  %705 = vst [vmem:[%s12500_s8 + $0x878] sm:$0xff] %v704_v11  ;;  %v714_v16 = vld [vmem:[%s12495_s7 + $0x2af4] sm:$0xff] }
  0xa1   : > { %707 = vst [vmem:[%s12500_s8 + $0x880] sm:$0xff] %v706_v12  ;;  %709 = vst [vmem:[%s12500_s8 + $0x888] sm:$0xff] %v708_v13  ;;  %v710_v14 = vld [vmem:[%s12495_s7 + $0x2ae4] sm:$0xff]  ;;  %v712_v15 = vld [vmem:[%s12495_s7 + $0x2aec] sm:$0xff] }
  0xa2   : > { %711 = vst [vmem:[%s12500_s8 + $0x894] sm:$0xff] %v710_v14  ;;  %713 = vst [vmem:[%s12500_s8 + $0x89c] sm:$0xff] %v712_v15  ;;  %v716_v17 = vld [vmem:[%s12495_s7 + $0x2afc] sm:$0xff]  ;;  %v718_v18 = vld [vmem:[%s12495_s7 + $0x2b04] sm:$0xff] }
  0xa3   : > { %715 = vst [vmem:[%s12500_s8 + $0x8a4] sm:$0xff] %v714_v16  ;;  %v720_v19 = vld [vmem:[%s12495_s7 + $0x2b0c] sm:$0xff]  ;;  %717 = vst [vmem:[%s12500_s8 + $0x8ac] sm:$0xff] %v716_v17  ;;  %v722_v20 = vld [vmem:[%s12495_s7 + $0x2b14] sm:$0xff] }
  0xa4   : > { %719 = vst [vmem:[%s12500_s8 + $0x8b4] sm:$0xff] %v718_v18  ;;  %721 = vst [vmem:[%s12500_s8 + $0x8bc] sm:$0xff] %v720_v19  ;;  %v724_v21 = vld [vmem:[%s12495_s7 + $0x2b1c] sm:$0xff]  ;;  %v726_v22 = vld [vmem:[%s12495_s7 + $0x2b24] sm:$0xff] }
  0xa5   : > { %723 = vst [vmem:[%s12500_s8 + $0x8c4] sm:$0xff] %v722_v20  ;;  %725 = vst [vmem:[%s12500_s8 + $0x8cc] sm:$0xff] %v724_v21  ;;  %v728_v23 = vld [vmem:[%s12495_s7 + $0x2b2c] sm:$0xff]  ;;  %v730_v24 = vld [vmem:[%s12495_s7 + $0x2b34] sm:$0xff] }
  0xa6   : > { %727 = vst [vmem:[%s12500_s8 + $0x8d4] sm:$0xff] %v726_v22  ;;  %v732_v25 = vld [vmem:[%s12495_s7 + $0x2b3c] sm:$0xff]  ;;  %729 = vst [vmem:[%s12500_s8 + $0x8dc] sm:$0xff] %v728_v23  ;;  %v734_v26 = vld [vmem:[%s12495_s7 + $0x2b44] sm:$0xff] }
  0xa7   : > { %731 = vst [vmem:[%s12500_s8 + $0x8e4] sm:$0xff] %v730_v24  ;;  %733 = vst [vmem:[%s12500_s8 + $0x8ec] sm:$0xff] %v732_v25  ;;  %v736_v27 = vld [vmem:[%s12495_s7 + $0x2b4c] sm:$0xff]  ;;  %v738_v28 = vld [vmem:[%s12495_s7 + $0x2b54] sm:$0xff] }
  0xa8   : > { %735 = vst [vmem:[%s12500_s8 + $0x8f4] sm:$0xff] %v734_v26  ;;  %737 = vst [vmem:[%s12500_s8 + $0x8fc] sm:$0xff] %v736_v27  ;;  %v740_v29 = vld [vmem:[%s12495_s7 + $0x2b5c] sm:$0xff]  ;;  %v742_v30 = vld [vmem:[%s12495_s7 + $0x2b64] sm:$0xff] }
  0xa9   : > { %739 = vst [vmem:[%s12500_s8 + $0x904] sm:$0xff] %v738_v28  ;;  %v744_v31 = vld [vmem:[%s12495_s7 + $0x2b6c] sm:$0xff]  ;;  %741 = vst [vmem:[%s12500_s8 + $0x90c] sm:$0xff] %v740_v29  ;;  %v746_v32 = vld [vmem:[%s12495_s7 + $0x2b74] sm:$0xff] }
  0xaa   : > { %743 = vst [vmem:[%s12500_s8 + $0x914] sm:$0xff] %v742_v30  ;;  %745 = vst [vmem:[%s12500_s8 + $0x91c] sm:$0xff] %v744_v31  ;;  %v748_v33 = vld [vmem:[%s12495_s7 + $0x2b7c] sm:$0xff]  ;;  %v750_v34 = vld [vmem:[%s12495_s7 + $0x2b84] sm:$0xff] }
  0xab   : > { %747 = vst [vmem:[%s12500_s8 + $0x924] sm:$0xff] %v746_v32  ;;  %749 = vst [vmem:[%s12500_s8 + $0x92c] sm:$0xff] %v748_v33  ;;  %v752_v35 = vld [vmem:[%s12495_s7 + $0x2b8c] sm:$0xff]  ;;  %v754_v36 = vld [vmem:[%s12495_s7 + $0x2b94] sm:$0xff] }
  0xac   : > { %751 = vst [vmem:[%s12500_s8 + $0x934] sm:$0xff] %v750_v34  ;;  %v756_v37 = vld [vmem:[%s12495_s7 + $0x2b9c] sm:$0xff]  ;;  %753 = vst [vmem:[%s12500_s8 + $0x93c] sm:$0xff] %v752_v35  ;;  %v758_v38 = vld [vmem:[%s12495_s7 + $0x2ba4] sm:$0xff] }
  0xad   : > { %755 = vst [vmem:[%s12500_s8 + $0x944] sm:$0xff] %v754_v36  ;;  %757 = vst [vmem:[%s12500_s8 + $0x94c] sm:$0xff] %v756_v37  ;;  %v760_v39 = vld [vmem:[%s12495_s7 + $0x2bac] sm:$0xff]  ;;  %v762_v40 = vld [vmem:[%s12495_s7 + $0x2bb4] sm:$0xff] }
  0xae   : > { %759 = vst [vmem:[%s12500_s8 + $0x954] sm:$0xff] %v758_v38  ;;  %761 = vst [vmem:[%s12500_s8 + $0x95c] sm:$0xff] %v760_v39  ;;  %v764_v41 = vld [vmem:[%s12495_s7 + $0x2bbc] sm:$0xff]  ;;  %v766_v42 = vld [vmem:[%s12495_s7 + $0x2bc4] sm:$0xff] }
  0xaf   : > { %763 = vst [vmem:[%s12500_s8 + $0x964] sm:$0xff] %v762_v40  ;;  %v768_v43 = vld [vmem:[%s12495_s7 + $0x2bcc] sm:$0xff]  ;;  %765 = vst [vmem:[%s12500_s8 + $0x96c] sm:$0xff] %v764_v41  ;;  %v774_v46 = vld [vmem:[%s12495_s7 + $0x2fb8] sm:$0xff] }
  0xb0   : > { %767 = vst [vmem:[%s12500_s8 + $0x974] sm:$0xff] %v766_v42  ;;  %769 = vst [vmem:[%s12500_s8 + $0x97c] sm:$0xff] %v768_v43  ;;  %v770_v44 = vld [vmem:[%s12495_s7 + $0x2fa8] sm:$0xff]  ;;  %v772_v45 = vld [vmem:[%s12495_s7 + $0x2fb0] sm:$0xff] }
  0xb1   : > { %771 = vst [vmem:[%s12500_s8 + $0x988] sm:$0xff] %v770_v44  ;;  %773 = vst [vmem:[%s12500_s8 + $0x990] sm:$0xff] %v772_v45  ;;  %v776_v47 = vld [vmem:[%s12495_s7 + $0x2fc0] sm:$0xff]  ;;  %v778_v48 = vld [vmem:[%s12495_s7 + $0x2fc8] sm:$0xff] }
  0xb2   : > { %775 = vst [vmem:[%s12500_s8 + $0x998] sm:$0xff] %v774_v46  ;;  %v780_v49 = vld [vmem:[%s12495_s7 + $0x2fd0] sm:$0xff]  ;;  %777 = vst [vmem:[%s12500_s8 + $0x9a0] sm:$0xff] %v776_v47  ;;  %v782_v50 = vld [vmem:[%s12495_s7 + $0x2fd8] sm:$0xff] }
  0xb3   : > { %779 = vst [vmem:[%s12500_s8 + $0x9a8] sm:$0xff] %v778_v48  ;;  %781 = vst [vmem:[%s12500_s8 + $0x9b0] sm:$0xff] %v780_v49  ;;  %v784_v51 = vld [vmem:[%s12495_s7 + $0x2fe0] sm:$0xff]  ;;  %v786_v52 = vld [vmem:[%s12495_s7 + $0x2fe8] sm:$0xff] }
  0xb4   : > { %783 = vst [vmem:[%s12500_s8 + $0x9b8] sm:$0xff] %v782_v50  ;;  %785 = vst [vmem:[%s12500_s8 + $0x9c0] sm:$0xff] %v784_v51  ;;  %v788_v53 = vld [vmem:[%s12495_s7 + $0x2ff0] sm:$0xff]  ;;  %v790_v54 = vld [vmem:[%s12495_s7 + $0x2ff8] sm:$0xff] }
  0xb5   : > { %787 = vst [vmem:[%s12500_s8 + $0x9c8] sm:$0xff] %v786_v52  ;;  %v792_v55 = vld [vmem:[%s12495_s7 + $0x3000] sm:$0xff]  ;;  %789 = vst [vmem:[%s12500_s8 + $0x9d0] sm:$0xff] %v788_v53  ;;  %v794_v56 = vld [vmem:[%s12495_s7 + $0x3008] sm:$0xff] }
  0xb6   : > { %791 = vst [vmem:[%s12500_s8 + $0x9d8] sm:$0xff] %v790_v54  ;;  %793 = vst [vmem:[%s12500_s8 + $0x9e0] sm:$0xff] %v792_v55  ;;  %v796_v57 = vld [vmem:[%s12495_s7 + $0x3010] sm:$0xff]  ;;  %v798_v58 = vld [vmem:[%s12495_s7 + $0x3018] sm:$0xff] }
  0xb7   : > { %795 = vst [vmem:[%s12500_s8 + $0x9e8] sm:$0xff] %v794_v56  ;;  %797 = vst [vmem:[%s12500_s8 + $0x9f0] sm:$0xff] %v796_v57  ;;  %v800_v59 = vld [vmem:[%s12495_s7 + $0x3020] sm:$0xff]  ;;  %v802_v60 = vld [vmem:[%s12495_s7 + $0x3028] sm:$0xff] }
  0xb8   : > { %799 = vst [vmem:[%s12500_s8 + $0x9f8] sm:$0xff] %v798_v58  ;;  %v804_v61 = vld [vmem:[%s12495_s7 + $0x3030] sm:$0xff]  ;;  %801 = vst [vmem:[%s12500_s8 + $0xa00] sm:$0xff] %v800_v59  ;;  %v806_v62 = vld [vmem:[%s12495_s7 + $0x3038] sm:$0xff] }
  0xb9   : > { %803 = vst [vmem:[%s12500_s8 + $0xa08] sm:$0xff] %v802_v60  ;;  %805 = vst [vmem:[%s12500_s8 + $0xa10] sm:$0xff] %v804_v61  ;;  %v808_v63 = vld [vmem:[%s12495_s7 + $0x3040] sm:$0xff]  ;;  %v810_v0 = vld [vmem:[%s12495_s7 + $0x3048] sm:$0xff] }
  0xba   : > { %807 = vst [vmem:[%s12500_s8 + $0xa18] sm:$0xff] %v806_v62  ;;  %809 = vst [vmem:[%s12500_s8 + $0xa20] sm:$0xff] %v808_v63  ;;  %v812_v1 = vld [vmem:[%s12495_s7 + $0x3050] sm:$0xff]  ;;  %v814_v2 = vld [vmem:[%s12495_s7 + $0x3058] sm:$0xff] }
  0xbb   : > { %811 = vst [vmem:[%s12500_s8 + $0xa28] sm:$0xff] %v810_v0  ;;  %v816_v3 = vld [vmem:[%s12495_s7 + $0x3060] sm:$0xff]  ;;  %813 = vst [vmem:[%s12500_s8 + $0xa30] sm:$0xff] %v812_v1  ;;  %v818_v4 = vld [vmem:[%s12495_s7 + $0x3068] sm:$0xff] }
  0xbc   : > { %815 = vst [vmem:[%s12500_s8 + $0xa38] sm:$0xff] %v814_v2  ;;  %817 = vst [vmem:[%s12500_s8 + $0xa40] sm:$0xff] %v816_v3  ;;  %v820_v5 = vld [vmem:[%s12495_s7 + $0x3070] sm:$0xff]  ;;  %v822_v6 = vld [vmem:[%s12495_s7 + $0x3078] sm:$0xff] }
  0xbd   : > { %819 = vst [vmem:[%s12500_s8 + $0xa48] sm:$0xff] %v818_v4  ;;  %821 = vst [vmem:[%s12500_s8 + $0xa50] sm:$0xff] %v820_v5  ;;  %v824_v7 = vld [vmem:[%s12495_s7 + $0x3080] sm:$0xff]  ;;  %v826_v8 = vld [vmem:[%s12495_s7 + $0x3088] sm:$0xff] }
  0xbe   : > { %823 = vst [vmem:[%s12500_s8 + $0xa58] sm:$0xff] %v822_v6  ;;  %v828_v9 = vld [vmem:[%s12495_s7 + $0x3090] sm:$0xff]  ;;  %825 = vst [vmem:[%s12500_s8 + $0xa60] sm:$0xff] %v824_v7  ;;  %v834_v12 = vld [vmem:[%s12495_s7 + $0x347c] sm:$0xff] }
  0xbf   : > { %827 = vst [vmem:[%s12500_s8 + $0xa68] sm:$0xff] %v826_v8  ;;  %829 = vst [vmem:[%s12500_s8 + $0xa70] sm:$0xff] %v828_v9  ;;  %v830_v10 = vld [vmem:[%s12495_s7 + $0x346c] sm:$0xff]  ;;  %v832_v11 = vld [vmem:[%s12495_s7 + $0x3474] sm:$0xff] }
  0xc0   : > { %831 = vst [vmem:[%s12500_s8 + $0xa7c] sm:$0xff] %v830_v10  ;;  %833 = vst [vmem:[%s12500_s8 + $0xa84] sm:$0xff] %v832_v11  ;;  %v836_v13 = vld [vmem:[%s12495_s7 + $0x3484] sm:$0xff]  ;;  %v838_v14 = vld [vmem:[%s12495_s7 + $0x348c] sm:$0xff] }
  0xc1   : > { %835 = vst [vmem:[%s12500_s8 + $0xa8c] sm:$0xff] %v834_v12  ;;  %v840_v15 = vld [vmem:[%s12495_s7 + $0x3494] sm:$0xff]  ;;  %837 = vst [vmem:[%s12500_s8 + $0xa94] sm:$0xff] %v836_v13  ;;  %v842_v16 = vld [vmem:[%s12495_s7 + $0x349c] sm:$0xff] }
  0xc2   : > { %839 = vst [vmem:[%s12500_s8 + $0xa9c] sm:$0xff] %v838_v14  ;;  %841 = vst [vmem:[%s12500_s8 + $0xaa4] sm:$0xff] %v840_v15  ;;  %v844_v17 = vld [vmem:[%s12495_s7 + $0x34a4] sm:$0xff]  ;;  %v846_v18 = vld [vmem:[%s12495_s7 + $0x34ac] sm:$0xff] }
  0xc3   : > { %843 = vst [vmem:[%s12500_s8 + $0xaac] sm:$0xff] %v842_v16  ;;  %845 = vst [vmem:[%s12500_s8 + $0xab4] sm:$0xff] %v844_v17  ;;  %v848_v19 = vld [vmem:[%s12495_s7 + $0x34b4] sm:$0xff]  ;;  %v850_v20 = vld [vmem:[%s12495_s7 + $0x34bc] sm:$0xff] }
  0xc4   : > { %847 = vst [vmem:[%s12500_s8 + $0xabc] sm:$0xff] %v846_v18  ;;  %v852_v21 = vld [vmem:[%s12495_s7 + $0x34c4] sm:$0xff]  ;;  %849 = vst [vmem:[%s12500_s8 + $0xac4] sm:$0xff] %v848_v19  ;;  %v854_v22 = vld [vmem:[%s12495_s7 + $0x34cc] sm:$0xff] }
  0xc5   : > { %851 = vst [vmem:[%s12500_s8 + $0xacc] sm:$0xff] %v850_v20  ;;  %853 = vst [vmem:[%s12500_s8 + $0xad4] sm:$0xff] %v852_v21  ;;  %v856_v23 = vld [vmem:[%s12495_s7 + $0x34d4] sm:$0xff]  ;;  %v858_v24 = vld [vmem:[%s12495_s7 + $0x34dc] sm:$0xff] }
  0xc6   : > { %855 = vst [vmem:[%s12500_s8 + $0xadc] sm:$0xff] %v854_v22  ;;  %857 = vst [vmem:[%s12500_s8 + $0xae4] sm:$0xff] %v856_v23  ;;  %v860_v25 = vld [vmem:[%s12495_s7 + $0x34e4] sm:$0xff]  ;;  %v862_v26 = vld [vmem:[%s12495_s7 + $0x34ec] sm:$0xff] }
  0xc7   : > { %859 = vst [vmem:[%s12500_s8 + $0xaec] sm:$0xff] %v858_v24  ;;  %v864_v27 = vld [vmem:[%s12495_s7 + $0x34f4] sm:$0xff]  ;;  %861 = vst [vmem:[%s12500_s8 + $0xaf4] sm:$0xff] %v860_v25  ;;  %v866_v28 = vld [vmem:[%s12495_s7 + $0x34fc] sm:$0xff] }
  0xc8   : > { %863 = vst [vmem:[%s12500_s8 + $0xafc] sm:$0xff] %v862_v26  ;;  %865 = vst [vmem:[%s12500_s8 + $0xb04] sm:$0xff] %v864_v27  ;;  %v868_v29 = vld [vmem:[%s12495_s7 + $0x3504] sm:$0xff]  ;;  %v870_v30 = vld [vmem:[%s12495_s7 + $0x350c] sm:$0xff] }
  0xc9   : > { %867 = vst [vmem:[%s12500_s8 + $0xb0c] sm:$0xff] %v866_v28  ;;  %869 = vst [vmem:[%s12500_s8 + $0xb14] sm:$0xff] %v868_v29  ;;  %v872_v31 = vld [vmem:[%s12495_s7 + $0x3514] sm:$0xff]  ;;  %v874_v32 = vld [vmem:[%s12495_s7 + $0x351c] sm:$0xff] }
  0xca   : > { %871 = vst [vmem:[%s12500_s8 + $0xb1c] sm:$0xff] %v870_v30  ;;  %v876_v33 = vld [vmem:[%s12495_s7 + $0x3524] sm:$0xff]  ;;  %873 = vst [vmem:[%s12500_s8 + $0xb24] sm:$0xff] %v872_v31  ;;  %v878_v34 = vld [vmem:[%s12495_s7 + $0x352c] sm:$0xff] }
  0xcb   : > { %875 = vst [vmem:[%s12500_s8 + $0xb2c] sm:$0xff] %v874_v32  ;;  %877 = vst [vmem:[%s12500_s8 + $0xb34] sm:$0xff] %v876_v33  ;;  %v880_v35 = vld [vmem:[%s12495_s7 + $0x3534] sm:$0xff]  ;;  %v882_v36 = vld [vmem:[%s12495_s7 + $0x353c] sm:$0xff] }
  0xcc   : > { %879 = vst [vmem:[%s12500_s8 + $0xb3c] sm:$0xff] %v878_v34  ;;  %881 = vst [vmem:[%s12500_s8 + $0xb44] sm:$0xff] %v880_v35  ;;  %v884_v37 = vld [vmem:[%s12495_s7 + $0x3544] sm:$0xff]  ;;  %v886_v38 = vld [vmem:[%s12495_s7 + $0x354c] sm:$0xff] }
  0xcd   : > { %883 = vst [vmem:[%s12500_s8 + $0xb4c] sm:$0xff] %v882_v36  ;;  %v888_v39 = vld [vmem:[%s12495_s7 + $0x3554] sm:$0xff]  ;;  %885 = vst [vmem:[%s12500_s8 + $0xb54] sm:$0xff] %v884_v37  ;;  %v894_v42 = vld [vmem:[%s12495_s7 + $0x3940] sm:$0xff] }
  0xce   : > { %887 = vst [vmem:[%s12500_s8 + $0xb5c] sm:$0xff] %v886_v38  ;;  %889 = vst [vmem:[%s12500_s8 + $0xb64] sm:$0xff] %v888_v39  ;;  %v890_v40 = vld [vmem:[%s12495_s7 + $0x3930] sm:$0xff]  ;;  %v892_v41 = vld [vmem:[%s12495_s7 + $0x3938] sm:$0xff] }
  0xcf   : > { %891 = vst [vmem:[%s12500_s8 + $0xb70] sm:$0xff] %v890_v40  ;;  %893 = vst [vmem:[%s12500_s8 + $0xb78] sm:$0xff] %v892_v41  ;;  %v896_v43 = vld [vmem:[%s12495_s7 + $0x3948] sm:$0xff]  ;;  %v898_v44 = vld [vmem:[%s12495_s7 + $0x3950] sm:$0xff] }
  0xd0   : > { %895 = vst [vmem:[%s12500_s8 + $0xb80] sm:$0xff] %v894_v42  ;;  %v900_v45 = vld [vmem:[%s12495_s7 + $0x3958] sm:$0xff]  ;;  %897 = vst [vmem:[%s12500_s8 + $0xb88] sm:$0xff] %v896_v43  ;;  %v902_v46 = vld [vmem:[%s12495_s7 + $0x3960] sm:$0xff] }
  0xd1   : > { %899 = vst [vmem:[%s12500_s8 + $0xb90] sm:$0xff] %v898_v44  ;;  %901 = vst [vmem:[%s12500_s8 + $0xb98] sm:$0xff] %v900_v45  ;;  %v904_v47 = vld [vmem:[%s12495_s7 + $0x3968] sm:$0xff]  ;;  %v906_v48 = vld [vmem:[%s12495_s7 + $0x3970] sm:$0xff] }
  0xd2   : > { %903 = vst [vmem:[%s12500_s8 + $0xba0] sm:$0xff] %v902_v46  ;;  %905 = vst [vmem:[%s12500_s8 + $0xba8] sm:$0xff] %v904_v47  ;;  %v908_v49 = vld [vmem:[%s12495_s7 + $0x3978] sm:$0xff]  ;;  %v910_v50 = vld [vmem:[%s12495_s7 + $0x3980] sm:$0xff] }
  0xd3   : > { %907 = vst [vmem:[%s12500_s8 + $0xbb0] sm:$0xff] %v906_v48  ;;  %v912_v51 = vld [vmem:[%s12495_s7 + $0x3988] sm:$0xff]  ;;  %909 = vst [vmem:[%s12500_s8 + $0xbb8] sm:$0xff] %v908_v49  ;;  %v914_v52 = vld [vmem:[%s12495_s7 + $0x3990] sm:$0xff] }
  0xd4   : > { %911 = vst [vmem:[%s12500_s8 + $0xbc0] sm:$0xff] %v910_v50  ;;  %913 = vst [vmem:[%s12500_s8 + $0xbc8] sm:$0xff] %v912_v51  ;;  %v916_v53 = vld [vmem:[%s12495_s7 + $0x3998] sm:$0xff]  ;;  %v918_v54 = vld [vmem:[%s12495_s7 + $0x39a0] sm:$0xff] }
  0xd5   : > { %915 = vst [vmem:[%s12500_s8 + $0xbd0] sm:$0xff] %v914_v52  ;;  %917 = vst [vmem:[%s12500_s8 + $0xbd8] sm:$0xff] %v916_v53  ;;  %v920_v55 = vld [vmem:[%s12495_s7 + $0x39a8] sm:$0xff]  ;;  %v922_v56 = vld [vmem:[%s12495_s7 + $0x39b0] sm:$0xff] }
  0xd6   : > { %919 = vst [vmem:[%s12500_s8 + $0xbe0] sm:$0xff] %v918_v54  ;;  %v924_v57 = vld [vmem:[%s12495_s7 + $0x39b8] sm:$0xff]  ;;  %921 = vst [vmem:[%s12500_s8 + $0xbe8] sm:$0xff] %v920_v55  ;;  %v926_v58 = vld [vmem:[%s12495_s7 + $0x39c0] sm:$0xff] }
  0xd7   : > { %923 = vst [vmem:[%s12500_s8 + $0xbf0] sm:$0xff] %v922_v56  ;;  %925 = vst [vmem:[%s12500_s8 + $0xbf8] sm:$0xff] %v924_v57  ;;  %v928_v59 = vld [vmem:[%s12495_s7 + $0x39c8] sm:$0xff]  ;;  %v930_v60 = vld [vmem:[%s12495_s7 + $0x39d0] sm:$0xff] }
  0xd8   : > { %927 = vst [vmem:[%s12500_s8 + $0xc00] sm:$0xff] %v926_v58  ;;  %929 = vst [vmem:[%s12500_s8 + $0xc08] sm:$0xff] %v928_v59  ;;  %v932_v61 = vld [vmem:[%s12495_s7 + $0x39d8] sm:$0xff]  ;;  %v934_v62 = vld [vmem:[%s12495_s7 + $0x39e0] sm:$0xff] }
  0xd9   : > { %931 = vst [vmem:[%s12500_s8 + $0xc10] sm:$0xff] %v930_v60  ;;  %v936_v63 = vld [vmem:[%s12495_s7 + $0x39e8] sm:$0xff]  ;;  %933 = vst [vmem:[%s12500_s8 + $0xc18] sm:$0xff] %v932_v61  ;;  %v938_v0 = vld [vmem:[%s12495_s7 + $0x39f0] sm:$0xff] }
  0xda   : > { %935 = vst [vmem:[%s12500_s8 + $0xc20] sm:$0xff] %v934_v62  ;;  %937 = vst [vmem:[%s12500_s8 + $0xc28] sm:$0xff] %v936_v63  ;;  %v940_v1 = vld [vmem:[%s12495_s7 + $0x39f8] sm:$0xff]  ;;  %v942_v2 = vld [vmem:[%s12495_s7 + $0x3a00] sm:$0xff] }
  0xdb   : > { %939 = vst [vmem:[%s12500_s8 + $0xc30] sm:$0xff] %v938_v0  ;;  %941 = vst [vmem:[%s12500_s8 + $0xc38] sm:$0xff] %v940_v1  ;;  %v944_v3 = vld [vmem:[%s12495_s7 + $0x3a08] sm:$0xff]  ;;  %v946_v4 = vld [vmem:[%s12495_s7 + $0x3a10] sm:$0xff] }
  0xdc   : > { %943 = vst [vmem:[%s12500_s8 + $0xc40] sm:$0xff] %v942_v2  ;;  %v948_v5 = vld [vmem:[%s12495_s7 + $0x3a18] sm:$0xff]  ;;  %945 = vst [vmem:[%s12500_s8 + $0xc48] sm:$0xff] %v944_v3  ;;  %v954_v8 = vld [vmem:[%s12495_s7 + $0x3e04] sm:$0xff] }
  0xdd   : > { %947 = vst [vmem:[%s12500_s8 + $0xc50] sm:$0xff] %v946_v4  ;;  %949 = vst [vmem:[%s12500_s8 + $0xc58] sm:$0xff] %v948_v5  ;;  %v950_v6 = vld [vmem:[%s12495_s7 + $0x3df4] sm:$0xff]  ;;  %v952_v7 = vld [vmem:[%s12495_s7 + $0x3dfc] sm:$0xff] }
  0xde   : > { %951 = vst [vmem:[%s12500_s8 + $0xc64] sm:$0xff] %v950_v6  ;;  %953 = vst [vmem:[%s12500_s8 + $0xc6c] sm:$0xff] %v952_v7  ;;  %v956_v9 = vld [vmem:[%s12495_s7 + $0x3e0c] sm:$0xff]  ;;  %v958_v10 = vld [vmem:[%s12495_s7 + $0x3e14] sm:$0xff] }
  0xdf   : > { %955 = vst [vmem:[%s12500_s8 + $0xc74] sm:$0xff] %v954_v8  ;;  %v960_v11 = vld [vmem:[%s12495_s7 + $0x3e1c] sm:$0xff]  ;;  %957 = vst [vmem:[%s12500_s8 + $0xc7c] sm:$0xff] %v956_v9  ;;  %v962_v12 = vld [vmem:[%s12495_s7 + $0x3e24] sm:$0xff] }
  0xe0   : > { %959 = vst [vmem:[%s12500_s8 + $0xc84] sm:$0xff] %v958_v10  ;;  %961 = vst [vmem:[%s12500_s8 + $0xc8c] sm:$0xff] %v960_v11  ;;  %v964_v13 = vld [vmem:[%s12495_s7 + $0x3e2c] sm:$0xff]  ;;  %v966_v14 = vld [vmem:[%s12495_s7 + $0x3e34] sm:$0xff] }
  0xe1   : > { %963 = vst [vmem:[%s12500_s8 + $0xc94] sm:$0xff] %v962_v12  ;;  %965 = vst [vmem:[%s12500_s8 + $0xc9c] sm:$0xff] %v964_v13  ;;  %v968_v15 = vld [vmem:[%s12495_s7 + $0x3e3c] sm:$0xff]  ;;  %v970_v16 = vld [vmem:[%s12495_s7 + $0x3e44] sm:$0xff] }
  0xe2   : > { %967 = vst [vmem:[%s12500_s8 + $0xca4] sm:$0xff] %v966_v14  ;;  %v972_v17 = vld [vmem:[%s12495_s7 + $0x3e4c] sm:$0xff]  ;;  %969 = vst [vmem:[%s12500_s8 + $0xcac] sm:$0xff] %v968_v15  ;;  %v974_v18 = vld [vmem:[%s12495_s7 + $0x3e54] sm:$0xff] }
  0xe3   : > { %971 = vst [vmem:[%s12500_s8 + $0xcb4] sm:$0xff] %v970_v16  ;;  %973 = vst [vmem:[%s12500_s8 + $0xcbc] sm:$0xff] %v972_v17  ;;  %v976_v19 = vld [vmem:[%s12495_s7 + $0x3e5c] sm:$0xff]  ;;  %v978_v20 = vld [vmem:[%s12495_s7 + $0x3e64] sm:$0xff] }
  0xe4   : > { %975 = vst [vmem:[%s12500_s8 + $0xcc4] sm:$0xff] %v974_v18  ;;  %977 = vst [vmem:[%s12500_s8 + $0xccc] sm:$0xff] %v976_v19  ;;  %v980_v21 = vld [vmem:[%s12495_s7 + $0x3e6c] sm:$0xff]  ;;  %v982_v22 = vld [vmem:[%s12495_s7 + $0x3e74] sm:$0xff] }
  0xe5   : > { %979 = vst [vmem:[%s12500_s8 + $0xcd4] sm:$0xff] %v978_v20  ;;  %v984_v23 = vld [vmem:[%s12495_s7 + $0x3e7c] sm:$0xff]  ;;  %981 = vst [vmem:[%s12500_s8 + $0xcdc] sm:$0xff] %v980_v21  ;;  %v986_v24 = vld [vmem:[%s12495_s7 + $0x3e84] sm:$0xff] }
  0xe6   : > { %983 = vst [vmem:[%s12500_s8 + $0xce4] sm:$0xff] %v982_v22  ;;  %985 = vst [vmem:[%s12500_s8 + $0xcec] sm:$0xff] %v984_v23  ;;  %v988_v25 = vld [vmem:[%s12495_s7 + $0x3e8c] sm:$0xff]  ;;  %v990_v26 = vld [vmem:[%s12495_s7 + $0x3e94] sm:$0xff] }
  0xe7   : > { %987 = vst [vmem:[%s12500_s8 + $0xcf4] sm:$0xff] %v986_v24  ;;  %989 = vst [vmem:[%s12500_s8 + $0xcfc] sm:$0xff] %v988_v25  ;;  %v992_v27 = vld [vmem:[%s12495_s7 + $0x3e9c] sm:$0xff]  ;;  %v994_v28 = vld [vmem:[%s12495_s7 + $0x3ea4] sm:$0xff] }
  0xe8   : > { %991 = vst [vmem:[%s12500_s8 + $0xd04] sm:$0xff] %v990_v26  ;;  %v996_v29 = vld [vmem:[%s12495_s7 + $0x3eac] sm:$0xff]  ;;  %993 = vst [vmem:[%s12500_s8 + $0xd0c] sm:$0xff] %v992_v27  ;;  %v998_v30 = vld [vmem:[%s12495_s7 + $0x3eb4] sm:$0xff] }
  0xe9   : > { %995 = vst [vmem:[%s12500_s8 + $0xd14] sm:$0xff] %v994_v28  ;;  %997 = vst [vmem:[%s12500_s8 + $0xd1c] sm:$0xff] %v996_v29  ;;  %v1000_v31 = vld [vmem:[%s12495_s7 + $0x3ebc] sm:$0xff]  ;;  %v1002_v32 = vld [vmem:[%s12495_s7 + $0x3ec4] sm:$0xff] }
  0xea   : > { %999 = vst [vmem:[%s12500_s8 + $0xd24] sm:$0xff] %v998_v30  ;;  %1001 = vst [vmem:[%s12500_s8 + $0xd2c] sm:$0xff] %v1000_v31  ;;  %v1004_v33 = vld [vmem:[%s12495_s7 + $0x3ecc] sm:$0xff]  ;;  %v1006_v34 = vld [vmem:[%s12495_s7 + $0x3ed4] sm:$0xff] }
  0xeb   : > { %1003 = vst [vmem:[%s12500_s8 + $0xd34] sm:$0xff] %v1002_v32  ;;  %v1008_v35 = vld [vmem:[%s12495_s7 + $0x3edc] sm:$0xff]  ;;  %1005 = vst [vmem:[%s12500_s8 + $0xd3c] sm:$0xff] %v1004_v33  ;;  %v1014_v38 = vld [vmem:[%s12495_s7 + $0x42c8] sm:$0xff] }
  0xec   : > { %1007 = vst [vmem:[%s12500_s8 + $0xd44] sm:$0xff] %v1006_v34  ;;  %1009 = vst [vmem:[%s12500_s8 + $0xd4c] sm:$0xff] %v1008_v35  ;;  %v1010_v36 = vld [vmem:[%s12495_s7 + $0x42b8] sm:$0xff]  ;;  %v1012_v37 = vld [vmem:[%s12495_s7 + $0x42c0] sm:$0xff] }
  0xed   : > { %1011 = vst [vmem:[%s12500_s8 + $0xd58] sm:$0xff] %v1010_v36  ;;  %1013 = vst [vmem:[%s12500_s8 + $0xd60] sm:$0xff] %v1012_v37  ;;  %v1016_v39 = vld [vmem:[%s12495_s7 + $0x42d0] sm:$0xff]  ;;  %v1018_v40 = vld [vmem:[%s12495_s7 + $0x42d8] sm:$0xff] }
  0xee   : > { %1015 = vst [vmem:[%s12500_s8 + $0xd68] sm:$0xff] %v1014_v38  ;;  %v1020_v41 = vld [vmem:[%s12495_s7 + $0x42e0] sm:$0xff]  ;;  %1017 = vst [vmem:[%s12500_s8 + $0xd70] sm:$0xff] %v1016_v39  ;;  %v1022_v42 = vld [vmem:[%s12495_s7 + $0x42e8] sm:$0xff] }
  0xef   : > { %1019 = vst [vmem:[%s12500_s8 + $0xd78] sm:$0xff] %v1018_v40  ;;  %1021 = vst [vmem:[%s12500_s8 + $0xd80] sm:$0xff] %v1020_v41  ;;  %v1024_v43 = vld [vmem:[%s12495_s7 + $0x42f0] sm:$0xff]  ;;  %v1026_v44 = vld [vmem:[%s12495_s7 + $0x42f8] sm:$0xff] }
  0xf0   : > { %1023 = vst [vmem:[%s12500_s8 + $0xd88] sm:$0xff] %v1022_v42  ;;  %1025 = vst [vmem:[%s12500_s8 + $0xd90] sm:$0xff] %v1024_v43  ;;  %v1028_v45 = vld [vmem:[%s12495_s7 + $0x4300] sm:$0xff]  ;;  %v1030_v46 = vld [vmem:[%s12495_s7 + $0x4308] sm:$0xff] }
  0xf1   : > { %1027 = vst [vmem:[%s12500_s8 + $0xd98] sm:$0xff] %v1026_v44  ;;  %v1032_v47 = vld [vmem:[%s12495_s7 + $0x4310] sm:$0xff]  ;;  %1029 = vst [vmem:[%s12500_s8 + $0xda0] sm:$0xff] %v1028_v45  ;;  %v1034_v48 = vld [vmem:[%s12495_s7 + $0x4318] sm:$0xff] }
  0xf2   : > { %1031 = vst [vmem:[%s12500_s8 + $0xda8] sm:$0xff] %v1030_v46  ;;  %1033 = vst [vmem:[%s12500_s8 + $0xdb0] sm:$0xff] %v1032_v47  ;;  %v1036_v49 = vld [vmem:[%s12495_s7 + $0x4320] sm:$0xff]  ;;  %v1038_v50 = vld [vmem:[%s12495_s7 + $0x4328] sm:$0xff] }
  0xf3   : > { %1035 = vst [vmem:[%s12500_s8 + $0xdb8] sm:$0xff] %v1034_v48  ;;  %1037 = vst [vmem:[%s12500_s8 + $0xdc0] sm:$0xff] %v1036_v49  ;;  %v1040_v51 = vld [vmem:[%s12495_s7 + $0x4330] sm:$0xff]  ;;  %v1042_v52 = vld [vmem:[%s12495_s7 + $0x4338] sm:$0xff] }
  0xf4   : > { %1039 = vst [vmem:[%s12500_s8 + $0xdc8] sm:$0xff] %v1038_v50  ;;  %v1044_v53 = vld [vmem:[%s12495_s7 + $0x4340] sm:$0xff]  ;;  %1041 = vst [vmem:[%s12500_s8 + $0xdd0] sm:$0xff] %v1040_v51  ;;  %v1046_v54 = vld [vmem:[%s12495_s7 + $0x4348] sm:$0xff] }
  0xf5   : > { %1043 = vst [vmem:[%s12500_s8 + $0xdd8] sm:$0xff] %v1042_v52  ;;  %1045 = vst [vmem:[%s12500_s8 + $0xde0] sm:$0xff] %v1044_v53  ;;  %v1048_v55 = vld [vmem:[%s12495_s7 + $0x4350] sm:$0xff]  ;;  %v1050_v56 = vld [vmem:[%s12495_s7 + $0x4358] sm:$0xff] }
  0xf6   : > { %1047 = vst [vmem:[%s12500_s8 + $0xde8] sm:$0xff] %v1046_v54  ;;  %1049 = vst [vmem:[%s12500_s8 + $0xdf0] sm:$0xff] %v1048_v55  ;;  %v1052_v57 = vld [vmem:[%s12495_s7 + $0x4360] sm:$0xff]  ;;  %v1054_v58 = vld [vmem:[%s12495_s7 + $0x4368] sm:$0xff] }
  0xf7   : > { %1051 = vst [vmem:[%s12500_s8 + $0xdf8] sm:$0xff] %v1050_v56  ;;  %v1056_v59 = vld [vmem:[%s12495_s7 + $0x4370] sm:$0xff]  ;;  %1053 = vst [vmem:[%s12500_s8 + $0xe00] sm:$0xff] %v1052_v57  ;;  %v1058_v60 = vld [vmem:[%s12495_s7 + $0x4378] sm:$0xff] }
  0xf8   : > { %1055 = vst [vmem:[%s12500_s8 + $0xe08] sm:$0xff] %v1054_v58  ;;  %1057 = vst [vmem:[%s12500_s8 + $0xe10] sm:$0xff] %v1056_v59  ;;  %v1060_v61 = vld [vmem:[%s12495_s7 + $0x4380] sm:$0xff]  ;;  %v1062_v62 = vld [vmem:[%s12495_s7 + $0x4388] sm:$0xff] }
  0xf9   : > { %1059 = vst [vmem:[%s12500_s8 + $0xe18] sm:$0xff] %v1058_v60  ;;  %1061 = vst [vmem:[%s12500_s8 + $0xe20] sm:$0xff] %v1060_v61  ;;  %v1064_v63 = vld [vmem:[%s12495_s7 + $0x4390] sm:$0xff]  ;;  %v1066_v0 = vld [vmem:[%s12495_s7 + $0x4398] sm:$0xff] }
  0xfa   : > { %1063 = vst [vmem:[%s12500_s8 + $0xe28] sm:$0xff] %v1062_v62  ;;  %v1068_v1 = vld [vmem:[%s12495_s7 + $0x43a0] sm:$0xff]  ;;  %1065 = vst [vmem:[%s12500_s8 + $0xe30] sm:$0xff] %v1064_v63  ;;  %v1074_v4 = vld [vmem:[%s12495_s7 + $0x478c] sm:$0xff] }
  0xfb   : > { %1067 = vst [vmem:[%s12500_s8 + $0xe38] sm:$0xff] %v1066_v0  ;;  %1069 = vst [vmem:[%s12500_s8 + $0xe40] sm:$0xff] %v1068_v1  ;;  %v1070_v2 = vld [vmem:[%s12495_s7 + $0x477c] sm:$0xff]  ;;  %v1072_v3 = vld [vmem:[%s12495_s7 + $0x4784] sm:$0xff] }
  0xfc   : > { %1071 = vst [vmem:[%s12500_s8 + $0xe4c] sm:$0xff] %v1070_v2  ;;  %1073 = vst [vmem:[%s12500_s8 + $0xe54] sm:$0xff] %v1072_v3  ;;  %v1076_v5 = vld [vmem:[%s12495_s7 + $0x4794] sm:$0xff]  ;;  %v1078_v6 = vld [vmem:[%s12495_s7 + $0x479c] sm:$0xff] }
  0xfd   : > { %1075 = vst [vmem:[%s12500_s8 + $0xe5c] sm:$0xff] %v1074_v4  ;;  %v1080_v7 = vld [vmem:[%s12495_s7 + $0x47a4] sm:$0xff]  ;;  %1077 = vst [vmem:[%s12500_s8 + $0xe64] sm:$0xff] %v1076_v5  ;;  %v1082_v8 = vld [vmem:[%s12495_s7 + $0x47ac] sm:$0xff] }
  0xfe   : > { %1079 = vst [vmem:[%s12500_s8 + $0xe6c] sm:$0xff] %v1078_v6  ;;  %1081 = vst [vmem:[%s12500_s8 + $0xe74] sm:$0xff] %v1080_v7  ;;  %v1084_v9 = vld [vmem:[%s12495_s7 + $0x47b4] sm:$0xff]  ;;  %v1086_v10 = vld [vmem:[%s12495_s7 + $0x47bc] sm:$0xff] }
  0xff   : > { %1083 = vst [vmem:[%s12500_s8 + $0xe7c] sm:$0xff] %v1082_v8  ;;  %1085 = vst [vmem:[%s12500_s8 + $0xe84] sm:$0xff] %v1084_v9  ;;  %v1088_v11 = vld [vmem:[%s12495_s7 + $0x47c4] sm:$0xff]  ;;  %v1090_v12 = vld [vmem:[%s12495_s7 + $0x47cc] sm:$0xff] }
 0x100   : > { %1087 = vst [vmem:[%s12500_s8 + $0xe8c] sm:$0xff] %v1086_v10  ;;  %v1092_v13 = vld [vmem:[%s12495_s7 + $0x47d4] sm:$0xff]  ;;  %1089 = vst [vmem:[%s12500_s8 + $0xe94] sm:$0xff] %v1088_v11  ;;  %v1094_v14 = vld [vmem:[%s12495_s7 + $0x47dc] sm:$0xff] }
 0x101   : > { %1091 = vst [vmem:[%s12500_s8 + $0xe9c] sm:$0xff] %v1090_v12  ;;  %1093 = vst [vmem:[%s12500_s8 + $0xea4] sm:$0xff] %v1092_v13  ;;  %v1096_v15 = vld [vmem:[%s12495_s7 + $0x47e4] sm:$0xff]  ;;  %v1098_v16 = vld [vmem:[%s12495_s7 + $0x47ec] sm:$0xff] }
 0x102   : > { %1095 = vst [vmem:[%s12500_s8 + $0xeac] sm:$0xff] %v1094_v14  ;;  %1097 = vst [vmem:[%s12500_s8 + $0xeb4] sm:$0xff] %v1096_v15  ;;  %v1100_v17 = vld [vmem:[%s12495_s7 + $0x47f4] sm:$0xff]  ;;  %v1102_v18 = vld [vmem:[%s12495_s7 + $0x47fc] sm:$0xff] }
 0x103   : > { %1099 = vst [vmem:[%s12500_s8 + $0xebc] sm:$0xff] %v1098_v16  ;;  %v1104_v19 = vld [vmem:[%s12495_s7 + $0x4804] sm:$0xff]  ;;  %1101 = vst [vmem:[%s12500_s8 + $0xec4] sm:$0xff] %v1100_v17  ;;  %v1106_v20 = vld [vmem:[%s12495_s7 + $0x480c] sm:$0xff] }
 0x104   : > { %1103 = vst [vmem:[%s12500_s8 + $0xecc] sm:$0xff] %v1102_v18  ;;  %1105 = vst [vmem:[%s12500_s8 + $0xed4] sm:$0xff] %v1104_v19  ;;  %v1108_v21 = vld [vmem:[%s12495_s7 + $0x4814] sm:$0xff]  ;;  %v1110_v22 = vld [vmem:[%s12495_s7 + $0x481c] sm:$0xff] }
 0x105   : > { %1107 = vst [vmem:[%s12500_s8 + $0xedc] sm:$0xff] %v1106_v20  ;;  %1109 = vst [vmem:[%s12500_s8 + $0xee4] sm:$0xff] %v1108_v21  ;;  %v1112_v23 = vld [vmem:[%s12495_s7 + $0x4824] sm:$0xff]  ;;  %v1114_v24 = vld [vmem:[%s12495_s7 + $0x482c] sm:$0xff] }
 0x106   : > { %1111 = vst [vmem:[%s12500_s8 + $0xeec] sm:$0xff] %v1110_v22  ;;  %v1116_v25 = vld [vmem:[%s12495_s7 + $0x4834] sm:$0xff]  ;;  %1113 = vst [vmem:[%s12500_s8 + $0xef4] sm:$0xff] %v1112_v23  ;;  %v1118_v26 = vld [vmem:[%s12495_s7 + $0x483c] sm:$0xff] }
 0x107   : > { %1115 = vst [vmem:[%s12500_s8 + $0xefc] sm:$0xff] %v1114_v24  ;;  %1117 = vst [vmem:[%s12500_s8 + $0xf04] sm:$0xff] %v1116_v25  ;;  %v1120_v27 = vld [vmem:[%s12495_s7 + $0x4844] sm:$0xff]  ;;  %v1122_v28 = vld [vmem:[%s12495_s7 + $0x484c] sm:$0xff] }
 0x108   : > { %1119 = vst [vmem:[%s12500_s8 + $0xf0c] sm:$0xff] %v1118_v26  ;;  %1121 = vst [vmem:[%s12500_s8 + $0xf14] sm:$0xff] %v1120_v27  ;;  %v1124_v29 = vld [vmem:[%s12495_s7 + $0x4854] sm:$0xff]  ;;  %v1126_v30 = vld [vmem:[%s12495_s7 + $0x485c] sm:$0xff] }
 0x109   : > { %1123 = vst [vmem:[%s12500_s8 + $0xf1c] sm:$0xff] %v1122_v28  ;;  %v1128_v31 = vld [vmem:[%s12495_s7 + $0x4864] sm:$0xff]  ;;  %1125 = vst [vmem:[%s12500_s8 + $0xf24] sm:$0xff] %v1124_v29  ;;  %v10432_v32 = vld [vmem:[%s12495_s7 + $0xf0] sm:$0xf] }
 0x10a   : > { %1127 = vst [vmem:[%s12500_s8 + $0xf2c] sm:$0xff] %v1126_v30  ;;  %1129 = vst [vmem:[%s12500_s8 + $0xf34] sm:$0xff] %v1128_v31  ;;  %v10434_v33 = vld [vmem:[%s12495_s7 + $0x5b4] sm:$0xf]  ;;  %v10436_v34 = vld [vmem:[%s12495_s7 + $0xa78] sm:$0xf] }
 0x10b   : > { %10433 = vst [vmem:[%s12500_s8 + $0xf0] sm:$0xf] %v10432_v32  ;;  %10435 = vst [vmem:[%s12500_s8 + $0x1e4] sm:$0xf] %v10434_v33  ;;  %v10438_v35 = vld [vmem:[%s12495_s7 + $0xf3c] sm:$0xf] }
 0x10c   : > { %10437 = vst [vmem:[%s12500_s8 + $0x2d8] sm:$0xf] %v10436_v34  ;;  %v10440_v36 = vld [vmem:[%s12495_s7 + $0x1400] sm:$0xf]  ;;  %v10442_v37 = vld [vmem:[%s12495_s7 + $0x18c4] sm:$0xf] }
 0x10d   : > { %10439 = vst [vmem:[%s12500_s8 + $0x3cc] sm:$0xf] %v10438_v35  ;;  %10441 = vst [vmem:[%s12500_s8 + $0x4c0] sm:$0xf] %v10440_v36  ;;  %v10444_v38 = vld [vmem:[%s12495_s7 + $0x1d88] sm:$0xf] }
 0x10e   : > { %10443 = vst [vmem:[%s12500_s8 + $0x5b4] sm:$0xf] %v10442_v37  ;;  %v10446_v39 = vld [vmem:[%s12495_s7 + $0x224c] sm:$0xf]  ;;  %v10448_v40 = vld [vmem:[%s12495_s7 + $0x2710] sm:$0xf] }
 0x10f   : > { %10445 = vst [vmem:[%s12500_s8 + $0x6a8] sm:$0xf] %v10444_v38  ;;  %10447 = vst [vmem:[%s12500_s8 + $0x79c] sm:$0xf] %v10446_v39  ;;  %v10450_v41 = vld [vmem:[%s12495_s7 + $0x2bd4] sm:$0xf] }
 0x110   : > { %10449 = vst [vmem:[%s12500_s8 + $0x890] sm:$0xf] %v10448_v40  ;;  %v10452_v42 = vld [vmem:[%s12495_s7 + $0x3098] sm:$0xf]  ;;  %v10454_v43 = vld [vmem:[%s12495_s7 + $0x355c] sm:$0xf] }
 0x111   : > { %10451 = vst [vmem:[%s12500_s8 + $0x984] sm:$0xf] %v10450_v41  ;;  %10453 = vst [vmem:[%s12500_s8 + $0xa78] sm:$0xf] %v10452_v42  ;;  %v10456_v44 = vld [vmem:[%s12495_s7 + $0x3a20] sm:$0xf] }
 0x112   : > { %10455 = vst [vmem:[%s12500_s8 + $0xb6c] sm:$0xf] %v10454_v43  ;;  %v10458_v45 = vld [vmem:[%s12495_s7 + $0x3ee4] sm:$0xf]  ;;  %v10460_v46 = vld [vmem:[%s12495_s7 + $0x43a8] sm:$0xf] }
 0x113   : > { %10457 = vst [vmem:[%s12500_s8 + $0xc60] sm:$0xf] %v10456_v44  ;;  %10459 = vst [vmem:[%s12500_s8 + $0xd54] sm:$0xf] %v10458_v45  ;;  %v10462_v47 = vld [vmem:[%s12495_s7 + $0x486c] sm:$0xf] }
 0x114   : > { %10461 = vst [vmem:[%s12500_s8 + $0xe48] sm:$0xf] %v10460_v46  ;;  %10463 = vst [vmem:[%s12500_s8 + $0xf3c] sm:$0xf] %v10462_v47 }
 0x115 PF: > { %p10464_p7 = scmp.ge.s32.totalorder %s12409_s18, 1  ;;  %p1173_p8 = scmp.lt.s32.totalorder %s12409_s18, 11 }
 0x117   : > { %p1174_p9 = pnand %p10464_p7, %p1173_p8 }
 0x119   : > { %1177 = sbr.rel (%p1174_p9) target bundleno = 1011 (0x3f3), region = 54 }
 0x120   : > { %s1180_s9 = sand.u32 1, %s12385_s12   ;;  %vm1899_vm0 = vcmask 1043456   ;;  %v15505_v48 = vmov 0   ;;  %vm1900_vm1 = vcmask 1044480   ;;  %v12412_v49 = vmov 65535   ;;  %p1209_p10 = scmp.lt.s32.totalorder %s12397_s15, 1 }
 0x121   : > { %s11560_s10 = smul.u32 3904, %s1180_s9  ;;  %2118 = vmatprep.mubr.bf16.mxu0 %v15505_v48  ;;  %2159 = vmatprep.mubr.bf16.mxu1 %v15505_v48  ;;  %v1901_v50 = vsel %vm1899_vm0, 4294967295, %v12412_v49  ;;  %v13517_v1 = vld [vmem:[%s15499_s1] sm:$0xf]  ;;  %vm1895_vm2 = vcmask 203776   ;;  %vm12414_vm3 = vmmov 0  }
 0x122   : > { %11622 = vset.pattern.permute.xlu0 %v15505_v48  ;;  %v13503_v55 = vsel %vm1900_vm1, %v1901_v50, 0  ;;  %s1208_s6 = smul.u32 61, %s12393_s14  ;;  %s15886_s15 = smov (!%p1209_p10, %s12397_s15), 1 }
 0x123   : > { %s13497_s11 = scalar_lea.vmem [#allocation2], %s11560_s10  ;;  %s11561_s14 = smul.u32 305, %s15886_s15 }
 0x124   : > { %v11623_v51 = vld [vmem:[%s13497_s11 + $0x4] ss:$244 sps:$4 sm:$0xff]   ;;  %v11625_v52 = vld [vmem:[%s13497_s11 + $0xc] ss:$244 sps:$4 sm:$0xff]   ;;  %v11628_v54 = vld [vmem:[%s13497_s11 + $0x8] ss:$244 sps:$4 sm:$0xff]  }
 0x125   : > { %2086 = vmatprep.subr.bf16.mxu0 %v11623_v51  ;;  %v11627_v53 = vld [vmem:[%s13497_s11] ss:$244 sps:$4 sm:$0xff]   ;;  %2127 = vmatprep.subr.bf16.mxu1 %v11625_v52  ;;  %v11633_v59 = vld [vmem:[%s13497_s11 + $0x1e8] ss:$244 sps:$4 sm:$0x1f]   ;;  %p1211_p11 = scmp.lt.s32.totalorder %s1208_s6, 304 }
 0x126   : > { %v11629_v56 = vld [vmem:[%s13497_s11 + $0x1ec] ss:$244 sps:$4 sm:$0x1f]   ;;  %2087 = vmatpush1.bf16.msra.mxu0 %v11627_v53  ;;  %2128 = vmatpush1.bf16.msra.mxu1 %v11628_v54  ;;  %v11631_v57 = vld [vmem:[%s13497_s11 + $0x1f4] ss:$244 sps:$4 sm:$0x1f]   ;;  %v1904_v63 = vand.u32 %v11633_v59, %v13503_v55 }
 0x127   : > { %v1907_v58 = vand.u32 %v11629_v56, %v13503_v55  ;;  %v11634_v60 = vld [vmem:[%s13497_s11 + $0x1f0] ss:$244 sps:$4 sm:$0x1f]   ;;  %v1913_v61 = vand.u32 %v11631_v57, %v13503_v55  ;;  %v11637_v62 = vld [vmem:[%s13497_s11 + $0x14] ss:$244 sps:$4 sm:$0xff]   ;;  %s15888_s6 = smov (!%p1211_p11, %s1208_s6), 304 }
 0x128   : > { %v1910_v0 = vand.u32 %v11634_v60, %v13503_v55  ;;  %v11635_v2 = vld [vmem:[%s13497_s11 + $0x10] ss:$244 sps:$4 sm:$0xff]   ;;  %v11638_v3 = vld [vmem:[%s13497_s11 + $0x18] ss:$244 sps:$4 sm:$0xff]   ;;  %v11647_v15 = vld [vmem:[%s13497_s11 + $0x20] ss:$244 sps:$4 sm:$0xff]   ;;  %s1214_s7 = sadd.s32 %s11561_s14, %s15888_s6 }
 0x129   : > { %2088 = vmatprep.subr.bf16.mxu0 %v1907_v58  ;;  %2129 = vmatprep.subr.bf16.mxu1 %v1913_v61  ;;  %v11640_v4 = vld [vmem:[%s13497_s11 + $0x1c] ss:$244 sps:$4 sm:$0xff]   ;;  %v11641_v5 = vld [vmem:[%s13497_s11 + $0x1f8] ss:$244 sps:$4 sm:$0x1f]   ;;  %s10465_s15 = sshll.u32 %s1214_s7, 2 }
 0x12a   : > { %2089 = vmatpush1.bf16.msra.mxu0 %v1904_v63  ;;  %2130 = vmatpush1.bf16.msra.mxu1 %v1910_v0  ;;  %v11643_v6 = vld [vmem:[%s13497_s11 + $0x1fc] ss:$244 sps:$4 sm:$0x1f]   ;;  %v11644_v7 = vld [vmem:[%s13497_s11 + $0x200] ss:$244 sps:$4 sm:$0x1f]   ;;  %v1916_v11 = vand.u32 %v11641_v5, %v13503_v55  ;;  %s15326_s10 = scalar_lea.vmem %s15501_s3, %s10465_s15 }
 0x12b   : > { %2168 = vmatprep.subr.bf16.mxu0 %v11637_v62  ;;  %2209 = vmatprep.subr.bf16.mxu1 %v11640_v4  ;;  %v1919_v8 = vand.u32 %v11643_v6, %v13503_v55  ;;  %v11646_v9 = vld [vmem:[%s13497_s11 + $0x204] ss:$244 sps:$4 sm:$0x1f]   ;;  %v1922_v12 = vand.u32 %v11644_v7, %v13503_v55  ;;  %v11652_v14 = vld [vmem:[%s13497_s11 + $0x2c] ss:$244 sps:$4 sm:$0xff]  }
 0x12c   : > { %v1925_v10 = vand.u32 %v11646_v9, %v13503_v55  ;;  %v11649_v13 = vld [vmem:[%s13497_s11 + $0x24] ss:$244 sps:$4 sm:$0xff]   ;;  %v11650_v16 = vld [vmem:[%s13497_s11 + $0x28] ss:$244 sps:$4 sm:$0xff]   ;;  %v11676_v39 = vld [vmem:[%s13497_s11 + $0x4c] ss:$244 sps:$4 sm:$0xff]  }
 0x12d   : > { %10588 = vmatmul.mubr.msk.bf16.vlgmr.msra.gmra.mrb[0].mxu0 %vm1895_vm2, %v13517_v1  ;;  %10589 = vmatmul.mubr.msk.bf16.vlgmr.msra.gmra.mrb[0].mxu1 %vm1895_vm2, %v13517_v1  ;;  %v11655_v17 = vld [vmem:[%s13497_s11 + $0x20c] ss:$244 sps:$4 sm:$0x1f]   ;;  %v11653_v18 = vld [vmem:[%s13497_s11 + $0x208] ss:$244 sps:$4 sm:$0x1f]  }
 0x12e   : > { %2169 = vmatpush1.bf16.msra.mxu0 %v11635_v2  ;;  %2210 = vmatpush1.bf16.msra.mxu1 %v11638_v3  ;;  %v11658_v19 = vld [vmem:[%s13497_s11 + $0x214] ss:$244 sps:$4 sm:$0x1f]   ;;  %v11656_v20 = vld [vmem:[%s13497_s11 + $0x210] ss:$244 sps:$4 sm:$0x1f]   ;;  %v1931_v21 = vand.u32 %v11655_v17, %v13503_v55  ;;  %v1928_v24 = vand.u32 %v11653_v18, %v13503_v55 }
 0x12f   : > { %2170 = vmatprep.subr.bf16.mxu0 %v1919_v8  ;;  %2200 = vmatprep.mubr.bf16.mxu0 %v15505_v48  ;;  %v1937_v22 = vand.u32 %v11658_v19, %v13503_v55  ;;  %v11661_v23 = vld [vmem:[%s13497_s11 + $0x34] ss:$244 sps:$4 sm:$0xff]   ;;  %v1934_v25 = vand.u32 %v11656_v20, %v13503_v55  ;;  %v11664_v26 = vld [vmem:[%s13497_s11 + $0x3c] ss:$244 sps:$4 sm:$0xff]   ;;  %v11662_v30 = vld [vmem:[%s13497_s11 + $0x38] ss:$244 sps:$4 sm:$0xff]  }
 0x130   : > { %2211 = vmatprep.subr.bf16.mxu1 %v1925_v10  ;;  %2241 = vmatprep.mubr.bf16.mxu1 %v15505_v48  ;;  %v11667_v27 = vld [vmem:[%s13497_s11 + $0x21c] ss:$244 sps:$4 sm:$0x1f]   ;;  %v11670_v28 = vld [vmem:[%s13497_s11 + $0x224] ss:$244 sps:$4 sm:$0x1f]  }
 0x131   : > { %v11659_v29 = vld [vmem:[%s13497_s11 + $0x30] ss:$244 sps:$4 sm:$0xff]   ;;  %v11665_v31 = vld [vmem:[%s13497_s11 + $0x218] ss:$244 sps:$4 sm:$0x1f]   ;;  %v1943_v33 = vand.u32 %v11667_v27, %v13503_v55  ;;  %v1949_v34 = vand.u32 %v11670_v28, %v13503_v55 }
 0x132   : > { %2171 = vmatpush1.bf16.msra.mxu0 %v1916_v11  ;;  %2212 = vmatpush1.bf16.msra.mxu1 %v1922_v12  ;;  %v11668_v32 = vld [vmem:[%s13497_s11 + $0x220] ss:$244 sps:$4 sm:$0x1f]   ;;  %v1940_v35 = vand.u32 %v11665_v31, %v13503_v55  ;;  %v11673_v37 = vld [vmem:[%s13497_s11 + $0x44] ss:$244 sps:$4 sm:$0xff]  }
 0x133   : > { %2250 = vmatprep.subr.bf16.mxu0 %v11649_v13  ;;  %2291 = vmatprep.subr.bf16.mxu1 %v11652_v14  ;;  %v1946_v36 = vand.u32 %v11668_v32, %v13503_v55  ;;  %v11679_v38 = vld [vmem:[%s13497_s11 + $0x22c] ss:$244 sps:$4 sm:$0x1f]   ;;  %v11682_v40 = vld [vmem:[%s13497_s11 + $0x234] ss:$244 sps:$4 sm:$0x1f]  }
 0x134   : > { %v11671_v41 = vld [vmem:[%s13497_s11 + $0x40] ss:$244 sps:$4 sm:$0xff]   ;;  %v11674_v42 = vld [vmem:[%s13497_s11 + $0x48] ss:$244 sps:$4 sm:$0xff]   ;;  %v1955_v45 = vand.u32 %v11679_v38, %v13503_v55  ;;  %v1961_v46 = vand.u32 %v11682_v40, %v13503_v55  ;;  %v11683_v54 = vld [vmem:[%s13497_s11 + $0x50] ss:$244 sps:$4 sm:$0xff]  }
 0x135   : > { %10590 = vmatmul.mubr.msk.bf16.vlgmr.msra.gmra.mrb[4].mxu0 %vm1895_vm2, %v13517_v1  ;;  %10591 = vmatmul.mubr.msk.bf16.vlgmr.msra.gmra.mrb[4].mxu1 %vm1895_vm2, %v13517_v1  ;;  %v11677_v43 = vld [vmem:[%s13497_s11 + $0x228] ss:$244 sps:$4 sm:$0x1f]   ;;  %v11680_v44 = vld [vmem:[%s13497_s11 + $0x230] ss:$244 sps:$4 sm:$0x1f]  }
 0x136   : > { %2251 = vmatpush1.bf16.msra.mxu0 %v11647_v15  ;;  %2292 = vmatpush1.bf16.msra.mxu1 %v11650_v16  ;;  %v11685_v47 = vld [vmem:[%s13497_s11 + $0x54] ss:$244 sps:$4 sm:$0xff]   ;;  %v11688_v49 = vld [vmem:[%s13497_s11 + $0x5c] ss:$244 sps:$4 sm:$0xff]   ;;  %v1952_v50 = vand.u32 %v11677_v43, %v13503_v55  ;;  %v1958_v51 = vand.u32 %v11680_v44, %v13503_v55  ;;  %v11686_v56 = vld [vmem:[%s13497_s11 + $0x58] ss:$244 sps:$4 sm:$0xff]  }
 0x137   : > { %2252 = vmatprep.subr.bf16.mxu0 %v1931_v21  ;;  %2293 = vmatprep.subr.bf16.mxu1 %v1937_v22  ;;  %v11691_v52 = vld [vmem:[%s13497_s11 + $0x23c] ss:$244 sps:$4 sm:$0x1f]   ;;  %v11694_v53 = vld [vmem:[%s13497_s11 + $0x244] ss:$244 sps:$4 sm:$0x1f]  }
 0x138   : > { %2282 = vmatprep.mubr.bf16.mxu0 %v15505_v48  ;;  %2323 = vmatprep.mubr.bf16.mxu1 %v15505_v48  ;;  %v11689_v57 = vld [vmem:[%s13497_s11 + $0x238] ss:$244 sps:$4 sm:$0x1f]   ;;  %v11692_v58 = vld [vmem:[%s13497_s11 + $0x240] ss:$244 sps:$4 sm:$0x1f]   ;;  %v1967_v59 = vand.u32 %v11691_v52, %v13503_v55  ;;  %v1973_v60 = vand.u32 %v11694_v53, %v13503_v55 }
 0x139   : > { %v11697_v61 = vld [vmem:[%s13497_s11 + $0x64] ss:$244 sps:$4 sm:$0xff]   ;;  %v1964_v62 = vand.u32 %v11689_v57, %v13503_v55  ;;  %v1970_v63 = vand.u32 %v11692_v58, %v13503_v55  ;;  %v11703_v0 = vld [vmem:[%s13497_s11 + $0x24c] ss:$244 sps:$4 sm:$0x1f]  }
 0x13a   : > { %2253 = vmatpush1.bf16.msra.mxu0 %v1928_v24  ;;  %2294 = vmatpush1.bf16.msra.mxu1 %v1934_v25  ;;  %v11700_v2 = vld [vmem:[%s13497_s11 + $0x6c] ss:$244 sps:$4 sm:$0xff]   ;;  %v11706_v3 = vld [vmem:[%s13497_s11 + $0x254] ss:$244 sps:$4 sm:$0x1f]   ;;  %v1979_v8 = vand.u32 %v11703_v0, %v13503_v55 }
 0x13b   : > { %2332 = vmatprep.subr.bf16.mxu0 %v11661_v23  ;;  %2373 = vmatprep.subr.bf16.mxu1 %v11664_v26  ;;  %v11695_v4 = vld [vmem:[%s13497_s11 + $0x60] ss:$244 sps:$4 sm:$0xff]   ;;  %v11698_v5 = vld [vmem:[%s13497_s11 + $0x68] ss:$244 sps:$4 sm:$0xff]   ;;  %v1985_v9 = vand.u32 %v11706_v3, %v13503_v55  ;;  %v11707_v16 = vld [vmem:[%s13497_s11 + $0x70] ss:$244 sps:$4 sm:$0xff]  }
 0x13c   : > { %v11701_v6 = vld [vmem:[%s13497_s11 + $0x248] ss:$244 sps:$4 sm:$0x1f]   ;;  %v11704_v7 = vld [vmem:[%s13497_s11 + $0x250] ss:$244 sps:$4 sm:$0x1f]  }
 0x13d   : > { %10592 = vmatmul.mubr.msk.bf16.vlgmr.msra.gmra.mrb[8].mxu0 %vm1895_vm2, %v13517_v1  ;;  %10593 = vmatmul.mubr.msk.bf16.vlgmr.msra.gmra.mrb[8].mxu1 %vm1895_vm2, %v13517_v1  ;;  %v11709_v10 = vld [vmem:[%s13497_s11 + $0x74] ss:$244 sps:$4 sm:$0xff]   ;;  %v1976_v11 = vand.u32 %v11701_v6, %v13503_v55  ;;  %v1982_v12 = vand.u32 %v11704_v7, %v13503_v55  ;;  %v11712_v13 = vld [vmem:[%s13497_s11 + $0x7c] ss:$244 sps:$4 sm:$0xff]   ;;  %v11710_v18 = vld [vmem:[%s13497_s11 + $0x78] ss:$244 sps:$4 sm:$0xff]  }
 0x13e   : > { %2333 = vmatpush1.bf16.msra.mxu0 %v11659_v29  ;;  %2374 = vmatpush1.bf16.msra.mxu1 %v11662_v30  ;;  %v11715_v14 = vld [vmem:[%s13497_s11 + $0x25c] ss:$244 sps:$4 sm:$0x1f]   ;;  %v11718_v15 = vld [vmem:[%s13497_s11 + $0x264] ss:$244 sps:$4 sm:$0x1f]  }
 0x13f   : > { %2334 = vmatprep.subr.bf16.mxu0 %v1943_v33  ;;  %2375 = vmatprep.subr.bf16.mxu1 %v1949_v34  ;;  %v11713_v17 = vld [vmem:[%s13497_s11 + $0x258] ss:$244 sps:$4 sm:$0x1f]   ;;  %v11716_v19 = vld [vmem:[%s13497_s11 + $0x260] ss:$244 sps:$4 sm:$0x1f]   ;;  %v1991_v20 = vand.u32 %v11715_v14, %v13503_v55  ;;  %v1997_v21 = vand.u32 %v11718_v15, %v13503_v55 }
 0x140   : > { %2364 = vmatprep.mubr.bf16.mxu0 %v15505_v48  ;;  %2405 = vmatprep.mubr.bf16.mxu1 %v15505_v48  ;;  %v11721_v22 = vld [vmem:[%s13497_s11 + $0x84] ss:$244 sps:$4 sm:$0xff]   ;;  %v11724_v23 = vld [vmem:[%s13497_s11 + $0x8c] ss:$244 sps:$4 sm:$0xff]   ;;  %v1988_v24 = vand.u32 %v11713_v17, %v13503_v55  ;;  %v1994_v25 = vand.u32 %v11716_v19, %v13503_v55  ;;  %v11722_v29 = vld [vmem:[%s13497_s11 + $0x88] ss:$244 sps:$4 sm:$0xff]  }
 0x141   : > { %v11727_v26 = vld [vmem:[%s13497_s11 + $0x26c] ss:$244 sps:$4 sm:$0x1f]   ;;  %v11730_v27 = vld [vmem:[%s13497_s11 + $0x274] ss:$244 sps:$4 sm:$0x1f]  }
 0x142   : > { %2335 = vmatpush1.bf16.msra.mxu0 %v1940_v35  ;;  %2376 = vmatpush1.bf16.msra.mxu1 %v1946_v36  ;;  %v11719_v28 = vld [vmem:[%s13497_s11 + $0x80] ss:$244 sps:$4 sm:$0xff]   ;;  %v11725_v30 = vld [vmem:[%s13497_s11 + $0x268] ss:$244 sps:$4 sm:$0x1f]   ;;  %v2003_v32 = vand.u32 %v11727_v26, %v13503_v55  ;;  %v2009_v33 = vand.u32 %v11730_v27, %v13503_v55 }
 0x143   : > { %2414 = vmatprep.subr.bf16.mxu0 %v11673_v37  ;;  %2455 = vmatprep.subr.bf16.mxu1 %v11676_v39  ;;  %v11728_v31 = vld [vmem:[%s13497_s11 + $0x270] ss:$244 sps:$4 sm:$0x1f]   ;;  %v11733_v34 = vld [vmem:[%s13497_s11 + $0x94] ss:$244 sps:$4 sm:$0xff]   ;;  %v2000_v35 = vand.u32 %v11725_v30, %v13503_v55 }
 0x144   : > { %v2006_v36 = vand.u32 %v11728_v31, %v13503_v55  ;;  %v11739_v37 = vld [vmem:[%s13497_s11 + $0x27c] ss:$244 sps:$4 sm:$0x1f]   ;;  %v11742_v39 = vld [vmem:[%s13497_s11 + $0x284] ss:$244 sps:$4 sm:$0x1f]  }
 0x145   : > { %10594 = vmatmul.mubr.msk.bf16.vlgmr.msra.gmra.mrb[12].mxu0 %vm1895_vm2, %v13517_v1  ;;  %10595 = vmatmul.mubr.msk.bf16.vlgmr.msra.gmra.mrb[12].mxu1 %vm1895_vm2, %v13517_v1  ;;  %v11736_v38 = vld [vmem:[%s13497_s11 + $0x9c] ss:$244 sps:$4 sm:$0xff]   ;;  %v11740_v43 = vld [vmem:[%s13497_s11 + $0x280] ss:$244 sps:$4 sm:$0x1f]   ;;  %v2015_v44 = vand.u32 %v11739_v37, %v13503_v55 }
 0x146   : > { %2415 = vmatpush1.bf16.msra.mxu0 %v11671_v41  ;;  %2456 = vmatpush1.bf16.msra.mxu1 %v11674_v42  ;;  %v11731_v40 = vld [vmem:[%s13497_s11 + $0x90] ss:$244 sps:$4 sm:$0xff]   ;;  %v11734_v41 = vld [vmem:[%s13497_s11 + $0x98] ss:$244 sps:$4 sm:$0xff]   ;;  %v11743_v53 = vld [vmem:[%s13497_s11 + $0xa0] ss:$244 sps:$4 sm:$0xff]  }
 0x147   : > { %2416 = vmatprep.subr.bf16.mxu0 %v1955_v45  ;;  %2457 = vmatprep.subr.bf16.mxu1 %v1961_v46  ;;  %v11737_v42 = vld [vmem:[%s13497_s11 + $0x278] ss:$244 sps:$4 sm:$0x1f]   ;;  %v2021_v45 = vand.u32 %v11742_v39, %v13503_v55  ;;  %v11754_v52 = vld [vmem:[%s13497_s11 + $0x294] ss:$244 sps:$4 sm:$0x1f]  }
 0x148   : > { %2446 = vmatprep.mubr.bf16.mxu0 %v15505_v48  ;;  %2487 = vmatprep.mubr.bf16.mxu1 %v15505_v48  ;;  %v11745_v46 = vld [vmem:[%s13497_s11 + $0xa4] ss:$244 sps:$4 sm:$0xff]   ;;  %v11764_v6 = vld [vmem:[%s13497_s11 + $0x2a0] ss:$244 sps:$4 sm:$0x1f]  }
 0x149   : > { %v11752_v57 = vld [vmem:[%s13497_s11 + $0x290] ss:$244 sps:$4 sm:$0x1f]   ;;  %v11778_v14 = vld [vmem:[%s13497_s11 + $0x2b4] ss:$244 sps:$4 sm:$0x1f]  }
 0x14a   : > { %2417 = vmatpush1.bf16.msra.mxu0 %v1952_v50  ;;  %2458 = vmatpush1.bf16.msra.mxu1 %v1958_v51  ;;  %v11748_v50 = vld [vmem:[%s13497_s11 + $0xac] ss:$244 sps:$4 sm:$0xff]   ;;  %v11766_v0 = vld [vmem:[%s13497_s11 + $0x2a4] ss:$244 sps:$4 sm:$0x1f]  }
 0x14b   : > { %2496 = vmatprep.subr.bf16.mxu0 %v11685_v47  ;;  %2537 = vmatprep.subr.bf16.mxu1 %v11688_v49  ;;  %v2012_v47 = vand.u32 %v11737_v42, %v13503_v55  ;;  %v2018_v49 = vand.u32 %v11740_v43, %v13503_v55  ;;  %v11751_v51 = vld [vmem:[%s13497_s11 + $0x28c] ss:$244 sps:$4 sm:$0x1f]   ;;  %v11755_v3 = vld [vmem:[%s13497_s11 + $0xb0] ss:$244 sps:$4 sm:$0xff]  }
 0x14c   : > { %v2027_v58 = vand.u32 %v11751_v51, %v13503_v55  ;;  %v11767_v15 = vld [vmem:[%s13497_s11 + $0xc0] ss:$244 sps:$4 sm:$0xff]   ;;  %v11773_v17 = vld [vmem:[%s13497_s11 + $0x2a8] ss:$244 sps:$4 sm:$0x1f]  }
 0x14d   : > { %10596 = vmatmul.mubr.msk.bf16.vlgmr.msra.gmra.mrb[16].mxu0 %vm1895_vm2, %v13517_v1  ;;  %10597 = vmatmul.mubr.msk.bf16.vlgmr.msra.gmra.mrb[16].mxu1 %vm1895_vm2, %v13517_v1  ;;  %v11790_v26 = vld [vmem:[%s13497_s11 + $0x2c4] ss:$244 sps:$4 sm:$0x1f]   ;;  %v11788_v30 = vld [vmem:[%s13497_s11 + $0x2c0] ss:$244 sps:$4 sm:$0x1f]  }
 0x14e   : > { %2497 = vmatpush1.bf16.msra.mxu0 %v11683_v54  ;;  %2538 = vmatpush1.bf16.msra.mxu1 %v11686_v56  ;;  %v11749_v54 = vld [vmem:[%s13497_s11 + $0x288] ss:$244 sps:$4 sm:$0x1f]   ;;  %v11779_v27 = vld [vmem:[%s13497_s11 + $0xd0] ss:$244 sps:$4 sm:$0xff]  }
 0x14f   : > { %2498 = vmatprep.subr.bf16.mxu0 %v1967_v59  ;;  %2539 = vmatprep.subr.bf16.mxu1 %v1973_v60  ;;  %v11746_v56 = vld [vmem:[%s13497_s11 + $0xa8] ss:$244 sps:$4 sm:$0xff]   ;;  %v2033_v59 = vand.u32 %v11754_v52, %v13503_v55  ;;  %v11799_v37 = vld [vmem:[%s13497_s11 + $0x2cc] ss:$244 sps:$4 sm:$0x1f]  }
 0x150   : > { %2528 = vmatprep.mubr.bf16.mxu0 %v15505_v48  ;;  %2569 = vmatprep.mubr.bf16.mxu1 %v15505_v48  ;;  %v11757_v60 = vld [vmem:[%s13497_s11 + $0xb4] ss:$244 sps:$4 sm:$0xff]   ;;  %v11800_v42 = vld [vmem:[%s13497_s11 + $0x2d0] ss:$244 sps:$4 sm:$0x1f]   ;;  %v2075_v43 = vand.u32 %v11799_v37, %v13503_v55 }
 0x151   : > { %v11791_v39 = vld [vmem:[%s13497_s11 + $0xe0] ss:$244 sps:$4 sm:$0xff]   ;;  %v11806_v51 = vld [vmem:[%s13497_s11 + $0xf0] ss:$244 sps:$4 sm:$0xff]  }
 0x152   : > { %2499 = vmatpush1.bf16.msra.mxu0 %v1964_v62  ;;  %2540 = vmatpush1.bf16.msra.mxu1 %v1970_v63  ;;  %v2024_v62 = vand.u32 %v11749_v54, %v13503_v55  ;;  %v2030_v63 = vand.u32 %v11752_v57, %v13503_v55  ;;  %v11807_v52 = vld [vmem:[%s13497_s11 + $0x5b8] ss:$244 sps:$4 sm:$0x1f]   ;;  %v11813_v57 = vld [vmem:[%s13497_s11 + $0x3dc] ss:$244 sps:$4 sm:$0xff]  }
 0x153   : > { %2578 = vmatprep.subr.bf16.mxu0 %v11697_v61  ;;  %2619 = vmatprep.subr.bf16.mxu1 %v11700_v2  ;;  %v11763_v61 = vld [vmem:[%s13497_s11 + $0x29c] ss:$244 sps:$4 sm:$0x1f]  }
 0x154   : > { %v11760_v2 = vld [vmem:[%s13497_s11 + $0xbc] ss:$244 sps:$4 sm:$0xff]   ;;  %v2039_v7 = vand.u32 %v11763_v61, %v13503_v55  ;;  %v11816_v61 = vld [vmem:[%s13497_s11 + $0x3e4] ss:$244 sps:$4 sm:$0xff]  }
 0x155   : > { %10598 = vmatmul.mubr.msk.bf16.vlgmr.msra.gmra.mrb[20].mxu0 %vm1895_vm2, %v13517_v1  ;;  %10599 = vmatmul.mubr.msk.bf16.vlgmr.msra.gmra.mrb[20].mxu1 %vm1895_vm2, %v13517_v1  ;;  %v11853_v37 = vld [vmem:[%s13497_s11 + $0x5f0] ss:$244 sps:$4 sm:$0x1f]  }
 0x156   : > { %2579 = vmatpush1.bf16.msra.mxu0 %v11695_v4  ;;  %2620 = vmatpush1.bf16.msra.mxu1 %v11698_v5  ;;  %v11758_v4 = vld [vmem:[%s13497_s11 + $0xb8] ss:$244 sps:$4 sm:$0xff]  }
 0x157   : > { %2580 = vmatprep.subr.bf16.mxu0 %v1979_v8  ;;  %2621 = vmatprep.subr.bf16.mxu1 %v1985_v9  ;;  %v11761_v5 = vld [vmem:[%s13497_s11 + $0x298] ss:$244 sps:$4 sm:$0x1f]   ;;  %v2045_v8 = vand.u32 %v11766_v0, %v13503_v55  ;;  %v11814_v0 = vld [vmem:[%s13497_s11 + $0x3e0] ss:$244 sps:$4 sm:$0xff]  }
 0x158   : > { %2610 = vmatprep.mubr.bf16.mxu0 %v15505_v48  ;;  %2651 = vmatprep.mubr.bf16.mxu1 %v15505_v48  ;;  %v11769_v9 = vld [vmem:[%s13497_s11 + $0xc4] ss:$244 sps:$4 sm:$0xff]  }
 0x15a   : > { %2581 = vmatpush1.bf16.msra.mxu0 %v1976_v11  ;;  %2622 = vmatpush1.bf16.msra.mxu1 %v1982_v12  ;;  %v2036_v11 = vand.u32 %v11761_v5, %v13503_v55  ;;  %v2042_v12 = vand.u32 %v11764_v6, %v13503_v55  ;;  %v11825_v6 = vld [vmem:[%s13497_s11 + $0x3ec] ss:$244 sps:$4 sm:$0xff]  }
 0x15b   : > { %2660 = vmatprep.subr.bf16.mxu0 %v11709_v10  ;;  %2701 = vmatprep.subr.bf16.mxu1 %v11712_v13  ;;  %v11772_v10 = vld [vmem:[%s13497_s11 + $0xcc] ss:$244 sps:$4 sm:$0xff]  }
 0x15c   : > { %v11775_v13 = vld [vmem:[%s13497_s11 + $0x2ac] ss:$244 sps:$4 sm:$0x1f]  }
 0x15d   : > { %10600 = vmatmul.mubr.msk.bf16.vlgmr.msra.gmra.mrb[24].mxu0 %vm1895_vm2, %v13517_v1  ;;  %10601 = vmatmul.mubr.msk.bf16.vlgmr.msra.gmra.mrb[24].mxu1 %vm1895_vm2, %v13517_v1  ;;  %v2051_v19 = vand.u32 %v11775_v13, %v13503_v55  ;;  %v11829_v13 = vld [vmem:[%s13497_s11 + $0x5d0] ss:$244 sps:$4 sm:$0x1f]  }
 0x15e   : > { %2661 = vmatpush1.bf16.msra.mxu0 %v11707_v16  ;;  %2702 = vmatpush1.bf16.msra.mxu1 %v11710_v18  ;;  %v11770_v16 = vld [vmem:[%s13497_s11 + $0xc8] ss:$244 sps:$4 sm:$0xff]   ;;  %v11776_v18 = vld [vmem:[%s13497_s11 + $0x2b0] ss:$244 sps:$4 sm:$0x1f]  }
 0x15f   : > { %2662 = vmatprep.subr.bf16.mxu0 %v1991_v20  ;;  %2703 = vmatprep.subr.bf16.mxu1 %v1997_v21  ;;  %v2057_v20 = vand.u32 %v11778_v14, %v13503_v55  ;;  %v11781_v21 = vld [vmem:[%s13497_s11 + $0xd4] ss:$244 sps:$4 sm:$0xff]   ;;  %v11826_v14 = vld [vmem:[%s13497_s11 + $0x3f0] ss:$244 sps:$4 sm:$0xff]  }
 0x160   : > { %2692 = vmatprep.mubr.bf16.mxu0 %v15505_v48  ;;  %2733 = vmatprep.mubr.bf16.mxu1 %v15505_v48 }
 0x162   : > { %2663 = vmatpush1.bf16.msra.mxu0 %v1988_v24  ;;  %2704 = vmatpush1.bf16.msra.mxu1 %v1994_v25  ;;  %v11787_v24 = vld [vmem:[%s13497_s11 + $0x2bc] ss:$244 sps:$4 sm:$0x1f]  }
 0x163   : > { %2742 = vmatprep.subr.bf16.mxu0 %v11721_v22  ;;  %2783 = vmatprep.subr.bf16.mxu1 %v11724_v23  ;;  %v2048_v22 = vand.u32 %v11773_v17, %v13503_v55  ;;  %v2054_v23 = vand.u32 %v11776_v18, %v13503_v55  ;;  %v11784_v25 = vld [vmem:[%s13497_s11 + $0xdc] ss:$244 sps:$4 sm:$0xff]   ;;  %v2063_v31 = vand.u32 %v11787_v24, %v13503_v55  ;;  %v11835_v24 = vld [vmem:[%s13497_s11 + $0x3f8] ss:$244 sps:$4 sm:$0xff]  }
 0x164   : > { %v11837_v18 = vld [vmem:[%s13497_s11 + $0x3fc] ss:$244 sps:$4 sm:$0xff]  }
 0x165   : > { %10602 = vmatmul.mubr.msk.bf16.vlgmr.msra.gmra.mrb[28].mxu0 %vm1895_vm2, %v13517_v1  ;;  %10603 = vmatmul.mubr.msk.bf16.vlgmr.msra.gmra.mrb[28].mxu1 %vm1895_vm2, %v13517_v1 }
 0x166   : > { %2743 = vmatpush1.bf16.msra.mxu0 %v11719_v28  ;;  %2784 = vmatpush1.bf16.msra.mxu1 %v11722_v29  ;;  %v11782_v28 = vld [vmem:[%s13497_s11 + $0xd8] ss:$244 sps:$4 sm:$0xff]  }
 0x167   : > { %2744 = vmatprep.subr.bf16.mxu0 %v2003_v32  ;;  %2785 = vmatprep.subr.bf16.mxu1 %v2009_v33  ;;  %v11785_v29 = vld [vmem:[%s13497_s11 + $0x2b8] ss:$244 sps:$4 sm:$0x1f]   ;;  %v2069_v32 = vand.u32 %v11790_v26, %v13503_v55  ;;  %v11841_v26 = vld [vmem:[%s13497_s11 + $0x5e0] ss:$244 sps:$4 sm:$0x1f]  }
 0x168   : > { %2774 = vmatprep.mubr.bf16.mxu0 %v15505_v48  ;;  %2815 = vmatprep.mubr.bf16.mxu1 %v15505_v48  ;;  %v11793_v33 = vld [vmem:[%s13497_s11 + $0xe4] ss:$244 sps:$4 sm:$0xff]  }
 0x16a   : > { %2745 = vmatpush1.bf16.msra.mxu0 %v2000_v35  ;;  %2786 = vmatpush1.bf16.msra.mxu1 %v2006_v36  ;;  %v2066_v35 = vand.u32 %v11788_v30, %v13503_v55  ;;  %v11796_v36 = vld [vmem:[%s13497_s11 + $0xec] ss:$244 sps:$4 sm:$0xff]  }
 0x16b   : > { %2824 = vmatprep.subr.bf16.mxu0 %v11733_v34  ;;  %2865 = vmatprep.subr.bf16.mxu1 %v11736_v38  ;;  %v2060_v34 = vand.u32 %v11785_v29, %v13503_v55  ;;  %v11802_v38 = vld [vmem:[%s13497_s11 + $0x2d4] ss:$244 sps:$4 sm:$0x1f]   ;;  %v11849_v30 = vld [vmem:[%s13497_s11 + $0x40c] ss:$244 sps:$4 sm:$0xff]  }
 0x16d   : > { %10604 = vmatmul.mubr.msk.bf16.vlgmr.msra.gmra.mrb[32].mxu0 %vm1895_vm2, %v13517_v1  ;;  %10605 = vmatmul.mubr.msk.bf16.vlgmr.msra.gmra.mrb[32].mxu1 %vm1895_vm2, %v13517_v1 }
 0x16e   : > { %2825 = vmatpush1.bf16.msra.mxu0 %v11731_v40  ;;  %2866 = vmatpush1.bf16.msra.mxu1 %v11734_v41  ;;  %v11797_v40 = vld [vmem:[%s13497_s11 + $0x2c8] ss:$244 sps:$4 sm:$0x1f]  }
 0x16f   : > { %2826 = vmatprep.subr.bf16.mxu0 %v2015_v44  ;;  %2867 = vmatprep.subr.bf16.mxu1 %v2021_v45  ;;  %v11794_v41 = vld [vmem:[%s13497_s11 + $0xe8] ss:$244 sps:$4 sm:$0xff]   ;;  %v2081_v44 = vand.u32 %v11802_v38, %v13503_v55  ;;  %v2072_v45 = vand.u32 %v11797_v40, %v13503_v55  ;;  %v11850_v38 = vld [vmem:[%s13497_s11 + $0x410] ss:$244 sps:$4 sm:$0xff]  }
 0x170   : > { %2856 = vmatprep.mubr.bf16.mxu0 %v15505_v48  ;;  %2897 = vmatprep.mubr.bf16.mxu1 %v15505_v48 }
 0x172   : > { %2827 = vmatpush1.bf16.msra.mxu0 %v2012_v47  ;;  %2868 = vmatpush1.bf16.msra.mxu1 %v2018_v49  ;;  %v11805_v47 = vld [vmem:[%s13497_s11 + $0x3d4] ss:$244 sps:$4 sm:$0xff]   ;;  %v11809_v49 = vld [vmem:[%s13497_s11 + $0x5bc] ss:$244 sps:$4 sm:$0x1f]  }
 0x173   : > { %2906 = vmatprep.subr.bf16.mxu0 %v11745_v46  ;;  %2947 = vmatprep.subr.bf16.mxu1 %v11748_v50  ;;  %v2078_v46 = vand.u32 %v11800_v42, %v13503_v55  ;;  %v11803_v50 = vld [vmem:[%s13497_s11 + $0x3d0] ss:$244 sps:$4 sm:$0xff]   ;;  %v4036_v54 = vand.u32 %v11809_v49, %v13503_v55  ;;  %v11859_v49 = vld [vmem:[%s13497_s11 + $0x418] ss:$244 sps:$4 sm:$0xff]  }
 0x174   : > { %v11861_v42 = vld [vmem:[%s13497_s11 + $0x41c] ss:$244 sps:$4 sm:$0xff]  }
 0x175   : > { %10606 = vmatmul.mubr.msk.bf16.vlgmr.msra.gmra.mrb[36].mxu0 %vm1895_vm2, %v13517_v1  ;;  %10607 = vmatmul.mubr.msk.bf16.vlgmr.msra.gmra.mrb[36].mxu1 %vm1895_vm2, %v13517_v1 }
 0x176   : > { %2907 = vmatpush1.bf16.msra.mxu0 %v11743_v53  ;;  %2948 = vmatpush1.bf16.msra.mxu1 %v11746_v56  ;;  %v15502_v53 = vmov 0.0   ;;  %v13781_v56 = vld [vmem:[%s15499_s1] sm:$0xf] }
 0x177   : > { %2908 = vmatprep.subr.bf16.mxu0 %v2027_v58  ;;  %2949 = vmatprep.subr.bf16.mxu1 %v2033_v59  ;;  %v4033_v59 = vand.u32 %v11807_v52, %v13503_v55  ;;  %v11868_v52 = vld [vmem:[%s13497_s11 + $0x608] ss:$244 sps:$4 sm:$0x1f]  }
 0x178   : > { %2938 = vmatprep.mubr.bf16.mxu0 %v15505_v48  ;;  %2979 = vmatprep.mubr.bf16.mxu1 %v15505_v48 }
 0x17a   : > { %2909 = vmatpush1.bf16.msra.mxu0 %v2024_v62  ;;  %2950 = vmatpush1.bf16.msra.mxu1 %v2030_v63  ;;  %v11822_v62 = vld [vmem:[%s13497_s11 + $0x5cc] ss:$244 sps:$4 sm:$0x1f]  }
 0x17b   : > { %2988 = vmatprep.subr.bf16.mxu0 %v11757_v60  ;;  %3029 = vmatprep.subr.bf16.mxu1 %v11760_v2  ;;  %v11819_v60 = vld [vmem:[%s13497_s11 + $0x5c4] ss:$244 sps:$4 sm:$0x1f]   ;;  %v11817_v2 = vld [vmem:[%s13497_s11 + $0x5c0] ss:$244 sps:$4 sm:$0x1f]   ;;  %v4048_v5 = vand.u32 %v11822_v62, %v13503_v55 }
 0x17c   : > { %v11811_v63 = vld [vmem:[%s13497_s11 + $0x3d8] ss:$244 sps:$4 sm:$0xff]   ;;  %v11882_v62 = vld [vmem:[%s13497_s11 + $0x61c] ss:$244 sps:$4 sm:$0x1f]  }
 0x17d   : > { %10608 = vmatmul.mubr.msk.bf16.vlgmr.msra.gmra.mrb[40].mxu0 %vm1895_vm2, %v13517_v1  ;;  %10609 = vmatmul.mubr.msk.bf16.vlgmr.msra.gmra.mrb[40].mxu1 %vm1895_vm2, %v13517_v1 }
 0x17e   : > { %2989 = vmatpush1.bf16.msra.mxu0 %v11755_v3  ;;  %3030 = vmatpush1.bf16.msra.mxu1 %v11758_v4  ;;  %v11820_v3 = vld [vmem:[%s13497_s11 + $0x5c8] ss:$244 sps:$4 sm:$0x1f]   ;;  %v4042_v4 = vand.u32 %v11819_v60, %v13503_v55  ;;  %v4093_v60 = vand.u32 %v11868_v52, %v13503_v55  ;;  %v11928_v52 = vld [vmem:[%s13497_s11 + $0x658] ss:$244 sps:$4 sm:$0x1f]  }
 0x17f   : > { %2990 = vmatprep.subr.bf16.mxu0 %v2039_v7  ;;  %3031 = vmatprep.subr.bf16.mxu1 %v2045_v8  ;;  %v4039_v7 = vand.u32 %v11817_v2, %v13503_v55  ;;  %v4045_v8 = vand.u32 %v11820_v3, %v13503_v55  ;;  %v11877_v2 = vld [vmem:[%s13497_s11 + $0x610] ss:$244 sps:$4 sm:$0x1f]   ;;  %v11880_v3 = vld [vmem:[%s13497_s11 + $0x618] ss:$244 sps:$4 sm:$0x1f]  }
 0x180   : > { %3020 = vmatprep.mubr.bf16.mxu0 %v15505_v48  ;;  %3061 = vmatprep.mubr.bf16.mxu1 %v15505_v48 }
 0x182   : > { %2991 = vmatpush1.bf16.msra.mxu0 %v2036_v11  ;;  %3032 = vmatpush1.bf16.msra.mxu1 %v2042_v12  ;;  %v11834_v11 = vld [vmem:[%s13497_s11 + $0x5dc] ss:$244 sps:$4 sm:$0x1f]  }
 0x183   : > { %3070 = vmatprep.subr.bf16.mxu0 %v11769_v9  ;;  %3111 = vmatprep.subr.bf16.mxu1 %v11772_v10  ;;  %v11828_v9 = vld [vmem:[%s13497_s11 + $0x3f4] ss:$244 sps:$4 sm:$0xff]   ;;  %v4060_v17 = vand.u32 %v11834_v11, %v13503_v55  ;;  %v11894_v11 = vld [vmem:[%s13497_s11 + $0x62c] ss:$244 sps:$4 sm:$0x1f]  }
 0x184   : > { %v11831_v10 = vld [vmem:[%s13497_s11 + $0x5d4] ss:$244 sps:$4 sm:$0x1f]  }
 0x185   : > { %10610 = vmatmul.mubr.msk.bf16.vlgmr.msra.gmra.mrb[44].mxu0 %vm1895_vm2, %v13517_v1  ;;  %10611 = vmatmul.mubr.msk.bf16.vlgmr.msra.gmra.mrb[44].mxu1 %vm1895_vm2, %v13517_v1  ;;  %v11823_v12 = vld [vmem:[%s13497_s11 + $0x3e8] ss:$244 sps:$4 sm:$0xff]  }
 0x186   : > { %3071 = vmatpush1.bf16.msra.mxu0 %v11767_v15  ;;  %3112 = vmatpush1.bf16.msra.mxu1 %v11770_v16  ;;  %v11832_v15 = vld [vmem:[%s13497_s11 + $0x5d8] ss:$244 sps:$4 sm:$0x1f]   ;;  %v4054_v16 = vand.u32 %v11831_v10, %v13503_v55 }
 0x187   : > { %3072 = vmatprep.subr.bf16.mxu0 %v2051_v19  ;;  %3113 = vmatprep.subr.bf16.mxu1 %v2057_v20  ;;  %v11840_v19 = vld [vmem:[%s13497_s11 + $0x404] ss:$244 sps:$4 sm:$0xff]   ;;  %v4051_v20 = vand.u32 %v11829_v13, %v13503_v55  ;;  %v11886_v13 = vld [vmem:[%s13497_s11 + $0x440] ss:$244 sps:$4 sm:$0xff]  }
 0x188   : > { %3102 = vmatprep.mubr.bf16.mxu0 %v15505_v48  ;;  %3143 = vmatprep.mubr.bf16.mxu1 %v15505_v48  ;;  %v11891_v10 = vld [vmem:[%s13497_s11 + $0x624] ss:$244 sps:$4 sm:$0x1f]  }
 0x18a   : > { %3073 = vmatpush1.bf16.msra.mxu0 %v2048_v22  ;;  %3114 = vmatpush1.bf16.msra.mxu1 %v2054_v23  ;;  %v11843_v22 = vld [vmem:[%s13497_s11 + $0x5e4] ss:$244 sps:$4 sm:$0x1f]   ;;  %v11846_v23 = vld [vmem:[%s13497_s11 + $0x5ec] ss:$244 sps:$4 sm:$0x1f]  }
 0x18b   : > { %3152 = vmatprep.subr.bf16.mxu0 %v11781_v21  ;;  %3193 = vmatprep.subr.bf16.mxu1 %v11784_v25  ;;  %v4057_v21 = vand.u32 %v11832_v15, %v13503_v55  ;;  %v11838_v25 = vld [vmem:[%s13497_s11 + $0x400] ss:$244 sps:$4 sm:$0xff]   ;;  %v4072_v29 = vand.u32 %v11846_v23, %v13503_v55  ;;  %v11892_v15 = vld [vmem:[%s13497_s11 + $0x628] ss:$244 sps:$4 sm:$0x1f]  }
 0x18c   : > { %v11906_v23 = vld [vmem:[%s13497_s11 + $0x63c] ss:$244 sps:$4 sm:$0x1f]  }
 0x18d   : > { %10612 = vmatmul.mubr.msk.bf16.vlgmr.msra.gmra.mrb[48].mxu0 %vm1895_vm2, %v13517_v1  ;;  %10613 = vmatmul.mubr.msk.bf16.vlgmr.msra.gmra.mrb[48].mxu1 %vm1895_vm2, %v13517_v1 }
 0x18e   : > { %3153 = vmatpush1.bf16.msra.mxu0 %v11779_v27  ;;  %3194 = vmatpush1.bf16.msra.mxu1 %v11782_v28  ;;  %v11844_v27 = vld [vmem:[%s13497_s11 + $0x5e8] ss:$244 sps:$4 sm:$0x1f]   ;;  %v4066_v28 = vand.u32 %v11843_v22, %v13503_v55 }
 0x18f   : > { %3154 = vmatprep.subr.bf16.mxu0 %v2063_v31  ;;  %3195 = vmatprep.subr.bf16.mxu1 %v2069_v32  ;;  %v4063_v31 = vand.u32 %v11841_v26, %v13503_v55  ;;  %v4069_v32 = vand.u32 %v11844_v27, %v13503_v55  ;;  %v11903_v22 = vld [vmem:[%s13497_s11 + $0x634] ss:$244 sps:$4 sm:$0x1f]   ;;  %v11901_v26 = vld [vmem:[%s13497_s11 + $0x630] ss:$244 sps:$4 sm:$0x1f]  }
 0x190   : > { %3184 = vmatprep.mubr.bf16.mxu0 %v15505_v48  ;;  %3225 = vmatprep.mubr.bf16.mxu1 %v15505_v48  ;;  %v11904_v27 = vld [vmem:[%s13497_s11 + $0x638] ss:$244 sps:$4 sm:$0x1f]  }
 0x192   : > { %3155 = vmatpush1.bf16.msra.mxu0 %v2060_v34  ;;  %3196 = vmatpush1.bf16.msra.mxu1 %v2066_v35  ;;  %v11855_v34 = vld [vmem:[%s13497_s11 + $0x5f4] ss:$244 sps:$4 sm:$0x1f]   ;;  %v11858_v35 = vld [vmem:[%s13497_s11 + $0x5fc] ss:$244 sps:$4 sm:$0x1f]  }
 0x193   : > { %3234 = vmatprep.subr.bf16.mxu0 %v11793_v33  ;;  %3275 = vmatprep.subr.bf16.mxu1 %v11796_v36  ;;  %v11852_v33 = vld [vmem:[%s13497_s11 + $0x414] ss:$244 sps:$4 sm:$0xff]   ;;  %v4078_v40 = vand.u32 %v11855_v34, %v13503_v55  ;;  %v11915_v34 = vld [vmem:[%s13497_s11 + $0x644] ss:$244 sps:$4 sm:$0x1f]  }
 0x194   : > { %v11847_v36 = vld [vmem:[%s13497_s11 + $0x408] ss:$244 sps:$4 sm:$0xff]  }
 0x195   : > { %10614 = vmatmul.mubr.msk.bf16.vlgmr.msra.gmra.mrb[52].mxu0 %vm1895_vm2, %v13517_v1  ;;  %10615 = vmatmul.mubr.msk.bf16.vlgmr.msra.gmra.mrb[52].mxu1 %vm1895_vm2, %v13517_v1  ;;  %v11810_v1 = vld [vmem:[%s13497_s11 + $0x2d8] ss:$244 sps:$4 sm:$0x1f]  }
 0x196   : > { %3235 = vmatpush1.bf16.msra.mxu0 %v11791_v39  ;;  %3276 = vmatpush1.bf16.msra.mxu1 %v11794_v41  ;;  %v2084_v58 = vand.u32 %v11810_v1, %v13503_v55  ;;  %v11856_v39 = vld [vmem:[%s13497_s11 + $0x5f8] ss:$244 sps:$4 sm:$0x1f]   ;;  %v4084_v41 = vand.u32 %v11858_v35, %v13503_v55 }
 0x197   : > { %3236 = vmatprep.subr.bf16.mxu0 %v2075_v43  ;;  %3277 = vmatprep.subr.bf16.mxu1 %v2081_v44  ;;  %v4075_v43 = vand.u32 %v11853_v37, %v13503_v55  ;;  %v4081_v44 = vand.u32 %v11856_v39, %v13503_v55  ;;  %v11918_v35 = vld [vmem:[%s13497_s11 + $0x64c] ss:$244 sps:$4 sm:$0x1f]   ;;  %v11916_v39 = vld [vmem:[%s13497_s11 + $0x648] ss:$244 sps:$4 sm:$0x1f]  }
 0x198   : > { %3266 = vmatprep.mubr.bf16.mxu0 %v15505_v48  ;;  %3307 = vmatprep.mubr.bf16.mxu1 %v15505_v48  ;;  %v11913_v37 = vld [vmem:[%s13497_s11 + $0x640] ss:$244 sps:$4 sm:$0x1f]  }
 0x19a   : > { %3237 = vmatpush1.bf16.msra.mxu0 %v2072_v45  ;;  %3278 = vmatpush1.bf16.msra.mxu1 %v2078_v46  ;;  %v11864_v45 = vld [vmem:[%s13497_s11 + $0x424] ss:$244 sps:$4 sm:$0xff]  }
 0x19b   : > { %11526 = vmatprep.subr.bf16.mxu0 %v15502_v53  ;;  %4215 = vmatprep.subr.bf16.mxu1 %v11805_v47  ;;  %v11867_v46 = vld [vmem:[%s13497_s11 + $0x604] ss:$244 sps:$4 sm:$0x1f]   ;;  %v11870_v47 = vld [vmem:[%s13497_s11 + $0x60c] ss:$244 sps:$4 sm:$0x1f]  }
 0x19c   : > { %v4090_v1 = vand.u32 %v11867_v46, %v13503_v55  ;;  %v11927_v46 = vld [vmem:[%s13497_s11 + $0x654] ss:$244 sps:$4 sm:$0x1f]  }
 0x19d   : > { %10616 = vmatmul.mubr.msk.bf16.vlgmr.msra.gmra.mrb[56].mxu0 %vm1895_vm2, %v13781_v56  ;;  %10617 = vmatmul.mubr.msk.bf16.vlgmr.msra.gmra.mrb[56].mxu1 %vm1895_vm2, %v13781_v56 }
 0x19e   : > { %11527 = vmatpush3.bf16.msra.mxu0 %v11806_v51  ;;  %4216 = vmatpush1.bf16.msra.mxu1 %v11803_v50  ;;  %v11862_v50 = vld [vmem:[%s13497_s11 + $0x420] ss:$244 sps:$4 sm:$0xff]  }
 0x19f   : > { %11528 = vmatprep.subr.bf16.mxu0 %v15502_v53  ;;  %4217 = vmatprep.subr.bf16.mxu1 %v4036_v54  ;;  %v11865_v51 = vld [vmem:[%s13497_s11 + $0x600] ss:$244 sps:$4 sm:$0x1f]   ;;  %v4096_v54 = vand.u32 %v11870_v47, %v13503_v55  ;;  %v11930_v47 = vld [vmem:[%s13497_s11 + $0x65c] ss:$244 sps:$4 sm:$0x1f]  }
 0x1a0   : > { %11530 = vmatprep.mubr.msk.bf16.mxu0 %vm12414_vm3, %v15502_v53  ;;  %4247 = vmatprep.mubr.bf16.mxu1 %v15505_v48 }
 0x1a2   : > { %11529 = vmatpush3.bf16.msra.mxu0 %v2084_v58  ;;  %4218 = vmatpush1.bf16.msra.mxu1 %v4033_v59  ;;  %v11876_v58 = vld [vmem:[%s13497_s11 + $0x434] ss:$244 sps:$4 sm:$0xff]   ;;  %v4087_v59 = vand.u32 %v11865_v51, %v13503_v55  ;;  %v11925_v51 = vld [vmem:[%s13497_s11 + $0x650] ss:$244 sps:$4 sm:$0x1f]  }
 0x1a3   : > { %4256 = vmatprep.subr.bf16.mxu0 %v11813_v57  ;;  %4297 = vmatprep.subr.bf16.mxu1 %v11816_v61  ;;  %v11873_v57 = vld [vmem:[%s13497_s11 + $0x42c] ss:$244 sps:$4 sm:$0xff]   ;;  %v11879_v61 = vld [vmem:[%s13497_s11 + $0x614] ss:$244 sps:$4 sm:$0x1f]  }
 0x1a5   : > { %11531 = vmatmul.mubr.msk.bf16.vlgmr.msra.gmra.mrb[60].mxu0 %vm1895_vm2, %v13781_v56  ;;  %10865 = vmatmul.mubr.msk.bf16.vlgmr.msra.gmra.mrb[60].mxu1 %vm1895_vm2, %v13781_v56 }
 0x1a6   : > { %4257 = vmatpush1.bf16.msra.mxu0 %v11811_v63  ;;  %4298 = vmatpush1.bf16.msra.mxu1 %v11814_v0  ;;  %v11871_v63 = vld [vmem:[%s13497_s11 + $0x428] ss:$244 sps:$4 sm:$0xff]   ;;  %v11874_v0 = vld [vmem:[%s13497_s11 + $0x430] ss:$244 sps:$4 sm:$0xff]  }
 0x1a7   : > { %4258 = vmatprep.subr.bf16.mxu0 %v4042_v4  ;;  %4299 = vmatprep.subr.bf16.mxu1 %v4048_v5  ;;  %v4102_v4 = vand.u32 %v11879_v61, %v13503_v55  ;;  %v4108_v5 = vand.u32 %v11882_v62, %v13503_v55  ;;  %v11939_v61 = vld [vmem:[%s13497_s11 + $0x664] ss:$244 sps:$4 sm:$0x1f]   ;;  %v11942_v62 = vld [vmem:[%s13497_s11 + $0x66c] ss:$244 sps:$4 sm:$0x1f]  }
 0x1a8   : > { %4288 = vmatprep.mubr.bf16.mxu0 %v15505_v48  ;;  %4329 = vmatprep.mubr.bf16.mxu1 %v15505_v48 }
 0x1aa   : > { %4259 = vmatpush1.bf16.msra.mxu0 %v4039_v7  ;;  %4300 = vmatpush1.bf16.msra.mxu1 %v4045_v8  ;;  %v11888_v7 = vld [vmem:[%s13497_s11 + $0x444] ss:$244 sps:$4 sm:$0xff]   ;;  %v4099_v8 = vand.u32 %v11877_v2, %v13503_v55  ;;  %v11937_v2 = vld [vmem:[%s13497_s11 + $0x660] ss:$244 sps:$4 sm:$0x1f]  }
 0x1ab   : > { %4338 = vmatprep.subr.bf16.mxu0 %v11825_v6  ;;  %4379 = vmatprep.subr.bf16.mxu1 %v11828_v9  ;;  %v11885_v6 = vld [vmem:[%s13497_s11 + $0x43c] ss:$244 sps:$4 sm:$0xff]   ;;  %v4105_v9 = vand.u32 %v11880_v3, %v13503_v55 }
 0x1ac   : > { %v11940_v3 = vld [vmem:[%s13497_s11 + $0x668] ss:$244 sps:$4 sm:$0x1f]  }
 0x1ad   : > { %10866 = vmatmul.mubr.msk.bf16.vlgmr.msra.gmra.mrb[64].mxu0 %vm1895_vm2, %v13781_v56  ;;  %10867 = vmatmul.mubr.msk.bf16.vlgmr.msra.gmra.mrb[64].mxu1 %vm1895_vm2, %v13781_v56 }
 0x1ae   : > { %4339 = vmatpush1.bf16.msra.mxu0 %v11823_v12  ;;  %4380 = vmatpush1.bf16.msra.mxu1 %v11826_v14  ;;  %v11883_v12 = vld [vmem:[%s13497_s11 + $0x438] ss:$244 sps:$4 sm:$0xff]   ;;  %v11889_v14 = vld [vmem:[%s13497_s11 + $0x620] ss:$244 sps:$4 sm:$0x1f]  }
 0x1af   : > { %4340 = vmatprep.subr.bf16.mxu0 %v4054_v16  ;;  %4381 = vmatprep.subr.bf16.mxu1 %v4060_v17  ;;  %v4114_v16 = vand.u32 %v11891_v10, %v13503_v55  ;;  %v4120_v17 = vand.u32 %v11894_v11, %v13503_v55  ;;  %v11948_v10 = vld [vmem:[%s13497_s11 + $0x494] ss:$244 sps:$4 sm:$0xff]   ;;  %v11954_v11 = vld [vmem:[%s13497_s11 + $0x67c] ss:$244 sps:$4 sm:$0x1f]  }
 0x1b0   : > { %4370 = vmatprep.mubr.bf16.mxu0 %v15505_v48  ;;  %4411 = vmatprep.mubr.bf16.mxu1 %v15505_v48 }
 0x1b2   : > { %4341 = vmatpush1.bf16.msra.mxu0 %v4051_v20  ;;  %4382 = vmatpush1.bf16.msra.mxu1 %v4057_v21  ;;  %v4111_v20 = vand.u32 %v11889_v14, %v13503_v55  ;;  %v4117_v21 = vand.u32 %v11892_v15, %v13503_v55  ;;  %v11949_v14 = vld [vmem:[%s13497_s11 + $0x670] ss:$244 sps:$4 sm:$0x1f]   ;;  %v11952_v15 = vld [vmem:[%s13497_s11 + $0x678] ss:$244 sps:$4 sm:$0x1f]  }
 0x1b3   : > { %4420 = vmatprep.subr.bf16.mxu0 %v11837_v18  ;;  %4461 = vmatprep.subr.bf16.mxu1 %v11840_v19  ;;  %v11897_v18 = vld [vmem:[%s13497_s11 + $0x44c] ss:$244 sps:$4 sm:$0xff]   ;;  %v11900_v19 = vld [vmem:[%s13497_s11 + $0x454] ss:$244 sps:$4 sm:$0xff]  }
 0x1b5   : > { %10868 = vmatmul.mubr.msk.bf16.vlgmr.msra.gmra.mrb[68].mxu0 %vm1895_vm2, %v13781_v56  ;;  %10869 = vmatmul.mubr.msk.bf16.vlgmr.msra.gmra.mrb[68].mxu1 %vm1895_vm2, %v13781_v56 }
 0x1b6   : > { %4421 = vmatpush1.bf16.msra.mxu0 %v11835_v24  ;;  %4462 = vmatpush1.bf16.msra.mxu1 %v11838_v25  ;;  %v11895_v24 = vld [vmem:[%s13497_s11 + $0x448] ss:$244 sps:$4 sm:$0xff]   ;;  %v11898_v25 = vld [vmem:[%s13497_s11 + $0x450] ss:$244 sps:$4 sm:$0xff]  }
 0x1b7   : > { %4422 = vmatprep.subr.bf16.mxu0 %v4066_v28  ;;  %4463 = vmatprep.subr.bf16.mxu1 %v4072_v29  ;;  %v4126_v28 = vand.u32 %v11903_v22, %v13503_v55  ;;  %v4132_v29 = vand.u32 %v11906_v23, %v13503_v55  ;;  %v11963_v22 = vld [vmem:[%s13497_s11 + $0x684] ss:$244 sps:$4 sm:$0x1f]   ;;  %v11966_v23 = vld [vmem:[%s13497_s11 + $0x68c] ss:$244 sps:$4 sm:$0x1f]  }
 0x1b8   : > { %4452 = vmatprep.mubr.bf16.mxu0 %v15505_v48  ;;  %4493 = vmatprep.mubr.bf16.mxu1 %v15505_v48 }
 0x1ba   : > { %4423 = vmatpush1.bf16.msra.mxu0 %v4063_v31  ;;  %4464 = vmatpush1.bf16.msra.mxu1 %v4069_v32  ;;  %v4123_v31 = vand.u32 %v11901_v26, %v13503_v55  ;;  %v4129_v32 = vand.u32 %v11904_v27, %v13503_v55  ;;  %v11955_v26 = vld [vmem:[%s13497_s11 + $0x498] ss:$244 sps:$4 sm:$0xff]   ;;  %v11958_v27 = vld [vmem:[%s13497_s11 + $0x4a0] ss:$244 sps:$4 sm:$0xff]  }
 0x1bb   : > { %4502 = vmatprep.subr.bf16.mxu0 %v11849_v30  ;;  %4543 = vmatprep.subr.bf16.mxu1 %v11852_v33  ;;  %v11909_v30 = vld [vmem:[%s13497_s11 + $0x45c] ss:$244 sps:$4 sm:$0xff]   ;;  %v11912_v33 = vld [vmem:[%s13497_s11 + $0x464] ss:$244 sps:$4 sm:$0xff]  }
 0x1bd   : > { %10870 = vmatmul.mubr.msk.bf16.vlgmr.msra.gmra.mrb[72].mxu0 %vm1895_vm2, %v13781_v56  ;;  %10871 = vmatmul.mubr.msk.bf16.vlgmr.msra.gmra.mrb[72].mxu1 %vm1895_vm2, %v13781_v56 }
 0x1be   : > { %4503 = vmatpush1.bf16.msra.mxu0 %v11847_v36  ;;  %4544 = vmatpush1.bf16.msra.mxu1 %v11850_v38  ;;  %v11907_v36 = vld [vmem:[%s13497_s11 + $0x458] ss:$244 sps:$4 sm:$0xff]   ;;  %v11910_v38 = vld [vmem:[%s13497_s11 + $0x460] ss:$244 sps:$4 sm:$0xff]  }
 0x1bf   : > { %4504 = vmatprep.subr.bf16.mxu0 %v4078_v40  ;;  %4545 = vmatprep.subr.bf16.mxu1 %v4084_v41  ;;  %v4138_v40 = vand.u32 %v11915_v34, %v13503_v55  ;;  %v4144_v41 = vand.u32 %v11918_v35, %v13503_v55 }
 0x1c0   : > { %4534 = vmatprep.mubr.bf16.mxu0 %v15505_v48  ;;  %4575 = vmatprep.mubr.bf16.mxu1 %v15505_v48 }
 0x1c2   : > { %4505 = vmatpush1.bf16.msra.mxu0 %v4075_v43  ;;  %4546 = vmatpush1.bf16.msra.mxu1 %v4081_v44  ;;  %v4135_v43 = vand.u32 %v11913_v37, %v13503_v55  ;;  %v4141_v44 = vand.u32 %v11916_v39, %v13503_v55  ;;  %v4192_v37 = vand.u32 %v11966_v23, %v13503_v55  ;;  %v11987_v23 = vld [vmem:[%s13497_s11 + $0x7a0] ss:$244 sps:$4 sm:$0xff]  }
 0x1c3   : > { %4584 = vmatprep.subr.bf16.mxu0 %v11861_v42  ;;  %4625 = vmatprep.subr.bf16.mxu1 %v11864_v45  ;;  %v11921_v42 = vld [vmem:[%s13497_s11 + $0x46c] ss:$244 sps:$4 sm:$0xff]   ;;  %v11924_v45 = vld [vmem:[%s13497_s11 + $0x474] ss:$244 sps:$4 sm:$0xff]  }
 0x1c5   : > { %10872 = vmatmul.mubr.msk.bf16.vlgmr.msra.gmra.mrb[76].mxu0 %vm1895_vm2, %v13781_v56  ;;  %10873 = vmatmul.mubr.msk.bf16.vlgmr.msra.gmra.mrb[76].mxu1 %vm1895_vm2, %v13781_v56 }
 0x1c6   : > { %4585 = vmatpush1.bf16.msra.mxu0 %v11859_v49  ;;  %4626 = vmatpush1.bf16.msra.mxu1 %v11862_v50  ;;  %v11919_v49 = vld [vmem:[%s13497_s11 + $0x468] ss:$244 sps:$4 sm:$0xff]   ;;  %v11922_v50 = vld [vmem:[%s13497_s11 + $0x470] ss:$244 sps:$4 sm:$0xff]  }
 0x1c7   : > { %4586 = vmatprep.subr.bf16.mxu0 %v4090_v1  ;;  %4627 = vmatprep.subr.bf16.mxu1 %v4096_v54  ;;  %v4150_v1 = vand.u32 %v11927_v46, %v13503_v55  ;;  %v4156_v54 = vand.u32 %v11930_v47, %v13503_v55  ;;  %v11976_v46 = vld [vmem:[%s13497_s11 + $0x698] ss:$244 sps:$4 sm:$0x1f]  }
 0x1c8   : > { %4616 = vmatprep.mubr.bf16.mxu0 %v15505_v48  ;;  %4657 = vmatprep.mubr.bf16.mxu1 %v15505_v48 }
 0x1ca   : > { %4587 = vmatpush1.bf16.msra.mxu0 %v4087_v59  ;;  %4628 = vmatpush1.bf16.msra.mxu1 %v4093_v60  ;;  %v4147_v59 = vand.u32 %v11925_v51, %v13503_v55  ;;  %v4153_v60 = vand.u32 %v11928_v52, %v13503_v55 }
 0x1cb   : > { %4666 = vmatprep.subr.bf16.mxu0 %v11873_v57  ;;  %4707 = vmatprep.subr.bf16.mxu1 %v11876_v58  ;;  %v11933_v57 = vld [vmem:[%s13497_s11 + $0x47c] ss:$244 sps:$4 sm:$0xff]   ;;  %v11936_v58 = vld [vmem:[%s13497_s11 + $0x484] ss:$244 sps:$4 sm:$0xff]  }
 0x1cd   : > { %10874 = vmatmul.mubr.msk.bf16.vlgmr.msra.gmra.mrb[80].mxu0 %vm1895_vm2, %v13781_v56  ;;  %10875 = vmatmul.mubr.msk.bf16.vlgmr.msra.gmra.mrb[80].mxu1 %vm1895_vm2, %v13781_v56 }
 0x1ce   : > { %4667 = vmatpush1.bf16.msra.mxu0 %v11871_v63  ;;  %4708 = vmatpush1.bf16.msra.mxu1 %v11874_v0  ;;  %v11931_v63 = vld [vmem:[%s13497_s11 + $0x478] ss:$244 sps:$4 sm:$0xff]   ;;  %v11934_v0 = vld [vmem:[%s13497_s11 + $0x480] ss:$244 sps:$4 sm:$0xff]  }
 0x1cf   : > { %4668 = vmatprep.subr.bf16.mxu0 %v4102_v4  ;;  %4709 = vmatprep.subr.bf16.mxu1 %v4108_v5  ;;  %v4162_v4 = vand.u32 %v11939_v61, %v13503_v55  ;;  %v4168_v5 = vand.u32 %v11942_v62, %v13503_v55  ;;  %v4201_v62 = vand.u32 %v11976_v46, %v13503_v55 }
 0x1d0   : > { %4698 = vmatprep.mubr.bf16.mxu0 %v15505_v48  ;;  %4739 = vmatprep.mubr.bf16.mxu1 %v15505_v48 }
 0x1d2   : > { %4669 = vmatpush1.bf16.msra.mxu0 %v4099_v8  ;;  %4710 = vmatpush1.bf16.msra.mxu1 %v4105_v9  ;;  %v11945_v8 = vld [vmem:[%s13497_s11 + $0x48c] ss:$244 sps:$4 sm:$0xff]   ;;  %v11951_v9 = vld [vmem:[%s13497_s11 + $0x674] ss:$244 sps:$4 sm:$0x1f]  }
 0x1d3   : > { %4748 = vmatprep.subr.bf16.mxu0 %v11885_v6  ;;  %4789 = vmatprep.subr.bf16.mxu1 %v11888_v7  ;;  %v4159_v6 = vand.u32 %v11937_v2, %v13503_v55  ;;  %v4165_v7 = vand.u32 %v11940_v3, %v13503_v55 }
 0x1d5   : > { %10876 = vmatmul.mubr.msk.bf16.vlgmr.msra.gmra.mrb[84].mxu0 %vm1895_vm2, %v13781_v56  ;;  %10877 = vmatmul.mubr.msk.bf16.vlgmr.msra.gmra.mrb[84].mxu1 %vm1895_vm2, %v13781_v56 }
 0x1d6   : > { %4749 = vmatpush1.bf16.msra.mxu0 %v11883_v12  ;;  %4790 = vmatpush1.bf16.msra.mxu1 %v11886_v13  ;;  %v11943_v12 = vld [vmem:[%s13497_s11 + $0x488] ss:$244 sps:$4 sm:$0xff]   ;;  %v11946_v13 = vld [vmem:[%s13497_s11 + $0x490] ss:$244 sps:$4 sm:$0xff]  }
 0x1d7   : > { %4750 = vmatprep.subr.bf16.mxu0 %v4114_v16  ;;  %4791 = vmatprep.subr.bf16.mxu1 %v4120_v17  ;;  %v4174_v16 = vand.u32 %v11951_v9, %v13503_v55  ;;  %v4180_v17 = vand.u32 %v11954_v11, %v13503_v55  ;;  %v11982_v9 = vld [vmem:[%s13497_s11 + $0x4c0] ss:$244 sps:$4 sm:$0xff]  }
 0x1d8   : > { %4780 = vmatprep.mubr.bf16.mxu0 %v15505_v48  ;;  %4821 = vmatprep.mubr.bf16.mxu1 %v15505_v48 }
 0x1da   : > { %4751 = vmatpush1.bf16.msra.mxu0 %v4111_v20  ;;  %4792 = vmatpush1.bf16.msra.mxu1 %v4117_v21  ;;  %v4177_v20 = vand.u32 %v11952_v15, %v13503_v55  ;;  %v11960_v21 = vld [vmem:[%s13497_s11 + $0x4a4] ss:$244 sps:$4 sm:$0xff]  }
 0x1db   : > { %4830 = vmatprep.subr.bf16.mxu0 %v11897_v18  ;;  %4871 = vmatprep.subr.bf16.mxu1 %v11900_v19  ;;  %v11957_v18 = vld [vmem:[%s13497_s11 + $0x49c] ss:$244 sps:$4 sm:$0xff]   ;;  %v4171_v19 = vand.u32 %v11949_v14, %v13503_v55  ;;  %v11989_v15 = vld [vmem:[%s13497_s11 + $0x7a4] ss:$244 sps:$4 sm:$0xff]  }
 0x1dd   : > { %10878 = vmatmul.mubr.msk.bf16.vlgmr.msra.gmra.mrb[88].mxu0 %vm1895_vm2, %v13781_v56  ;;  %10879 = vmatmul.mubr.msk.bf16.vlgmr.msra.gmra.mrb[88].mxu1 %vm1895_vm2, %v13781_v56 }
 0x1de   : > { %4831 = vmatpush1.bf16.msra.mxu0 %v11895_v24  ;;  %4872 = vmatpush1.bf16.msra.mxu1 %v11898_v25 }
 0x1df   : > { %4832 = vmatprep.subr.bf16.mxu0 %v4126_v28  ;;  %4873 = vmatprep.subr.bf16.mxu1 %v4132_v29  ;;  %v11961_v28 = vld [vmem:[%s13497_s11 + $0x680] ss:$244 sps:$4 sm:$0x1f]  }
 0x1e0   : > { %4862 = vmatprep.mubr.bf16.mxu0 %v15505_v48  ;;  %4903 = vmatprep.mubr.bf16.mxu1 %v15505_v48  ;;  %v4183_v39 = vand.u32 %v11961_v28, %v13503_v55 }
 0x1e2   : > { %4833 = vmatpush1.bf16.msra.mxu0 %v4123_v31  ;;  %4874 = vmatpush1.bf16.msra.mxu1 %v4129_v32 }
 0x1e3   : > { %4912 = vmatprep.subr.bf16.mxu0 %v11909_v30  ;;  %4953 = vmatprep.subr.bf16.mxu1 %v11912_v33  ;;  %v11964_v33 = vld [vmem:[%s13497_s11 + $0x688] ss:$244 sps:$4 sm:$0x1f]  }
 0x1e5   : > { %10880 = vmatmul.mubr.msk.bf16.vlgmr.msra.gmra.mrb[92].mxu0 %vm1895_vm2, %v13781_v56  ;;  %10881 = vmatmul.mubr.msk.bf16.vlgmr.msra.gmra.mrb[92].mxu1 %vm1895_vm2, %v13781_v56 }
 0x1e6   : > { %4913 = vmatpush1.bf16.msra.mxu0 %v11907_v36  ;;  %4954 = vmatpush1.bf16.msra.mxu1 %v11910_v38  ;;  %v4186_v36 = vand.u32 %v11963_v22, %v13503_v55  ;;  %v11969_v38 = vld [vmem:[%s13497_s11 + $0x4ac] ss:$244 sps:$4 sm:$0xff]  }
 0x1e7   : > { %4914 = vmatprep.subr.bf16.mxu0 %v4138_v40  ;;  %4955 = vmatprep.subr.bf16.mxu1 %v4144_v41  ;;  %v4189_v40 = vand.u32 %v11964_v33, %v13503_v55  ;;  %v11972_v41 = vld [vmem:[%s13497_s11 + $0x4b4] ss:$244 sps:$4 sm:$0xff]  }
 0x1e8   : > { %4944 = vmatprep.mubr.bf16.mxu0 %v15505_v48  ;;  %4985 = vmatprep.mubr.bf16.mxu1 %v15505_v48 }
 0x1ea   : > { %4915 = vmatpush1.bf16.msra.mxu0 %v4135_v43  ;;  %4956 = vmatpush1.bf16.msra.mxu1 %v4141_v44  ;;  %v11978_v43 = vld [vmem:[%s13497_s11 + $0x69c] ss:$244 sps:$4 sm:$0x1f]  }
 0x1eb   : > { %4994 = vmatprep.subr.bf16.mxu0 %v11921_v42  ;;  %5035 = vmatprep.subr.bf16.mxu1 %v11924_v45  ;;  %v11975_v42 = vld [vmem:[%s13497_s11 + $0x694] ss:$244 sps:$4 sm:$0x1f]  }
 0x1ed   : > { %10882 = vmatmul.mubr.msk.bf16.vlgmr.msra.gmra.mrb[96].mxu0 %vm1895_vm2, %v13781_v56  ;;  %10883 = vmatmul.mubr.msk.bf16.vlgmr.msra.gmra.mrb[96].mxu1 %vm1895_vm2, %v13781_v56 }
 0x1ee   : > { %4995 = vmatpush1.bf16.msra.mxu0 %v11919_v49  ;;  %5036 = vmatpush1.bf16.msra.mxu1 %v11922_v50  ;;  %v11967_v50 = vld [vmem:[%s13497_s11 + $0x4a8] ss:$244 sps:$4 sm:$0xff]  }
 0x1ef   : > { %4996 = vmatprep.subr.bf16.mxu0 %v4150_v1  ;;  %5037 = vmatprep.subr.bf16.mxu1 %v4156_v54  ;;  %v11970_v1 = vld [vmem:[%s13497_s11 + $0x4b0] ss:$244 sps:$4 sm:$0xff]  }
 0x1f0   : > { %5026 = vmatprep.mubr.bf16.mxu0 %v15505_v48  ;;  %5067 = vmatprep.mubr.bf16.mxu1 %v15505_v48 }
 0x1f2   : > { %4997 = vmatpush1.bf16.msra.mxu0 %v4147_v59  ;;  %5038 = vmatpush1.bf16.msra.mxu1 %v4153_v60  ;;  %v4204_v59 = vand.u32 %v11978_v43, %v13503_v55  ;;  %v14056_v60 = vld [vmem:[%s15499_s1] sm:$0xf]  ;;  %v12007_v43 = vld [vmem:[%s13497_s11 + $0x99c] ss:$244 sps:$4 sm:$0x1f]  }
 0x1f3   : > { %5076 = vmatprep.subr.bf16.mxu0 %v11933_v57  ;;  %5117 = vmatprep.subr.bf16.mxu1 %v11936_v58  ;;  %v4198_v58 = vand.u32 %v11975_v42, %v13503_v55  ;;  %v12004_v42 = vld [vmem:[%s13497_s11 + $0x7bc] ss:$244 sps:$4 sm:$0xff]  }
 0x1f5   : > { %10884 = vmatmul.mubr.msk.bf16.vlgmr.msra.gmra.mrb[100].mxu0 %vm1895_vm2, %v13781_v56  ;;  %10885 = vmatmul.mubr.msk.bf16.vlgmr.msra.gmra.mrb[100].mxu1 %vm1895_vm2, %v13781_v56 }
 0x1f6   : > { %5077 = vmatpush1.bf16.msra.mxu0 %v11931_v63  ;;  %5118 = vmatpush1.bf16.msra.mxu1 %v11934_v0  ;;  %v11981_v63 = vld [vmem:[%s13497_s11 + $0x4bc] ss:$244 sps:$4 sm:$0xff]   ;;  %v11985_v0 = vld [vmem:[%s13497_s11 + $0x6a4] ss:$244 sps:$4 sm:$0x1f]  }
 0x1f7   : > { %5078 = vmatprep.subr.bf16.mxu0 %v4162_v4  ;;  %5119 = vmatprep.subr.bf16.mxu1 %v4168_v5  ;;  %v11979_v4 = vld [vmem:[%s13497_s11 + $0x4b8] ss:$244 sps:$4 sm:$0xff]   ;;  %v11983_v5 = vld [vmem:[%s13497_s11 + $0x6a0] ss:$244 sps:$4 sm:$0x1f]   ;;  %v4210_v14 = vand.u32 %v11985_v0, %v13503_v55  ;;  %v6238_v0 = vand.u32 %v12007_v43, %v13503_v55 }
 0x1f8   : > { %5108 = vmatprep.mubr.bf16.mxu0 %v15505_v48  ;;  %5149 = vmatprep.mubr.bf16.mxu1 %v15505_v48  ;;  %v12023_v43 = vld [vmem:[%s13497_s11 + $0x7d0] ss:$244 sps:$4 sm:$0xff]  }
 0x1fa   : > { %5079 = vmatpush1.bf16.msra.mxu0 %v4159_v6  ;;  %5120 = vmatpush1.bf16.msra.mxu1 %v4165_v7  ;;  %v11986_v6 = vld [vmem:[%s13497_s11 + $0x6a8] ss:$244 sps:$4 sm:$0x1f]  }
 0x1fb   : > { %5158 = vmatprep.subr.bf16.mxu0 %v11945_v8  ;;  %5199 = vmatprep.subr.bf16.mxu1 %v11948_v10 }
 0x1fd   : > { %10886 = vmatmul.mubr.msk.bf16.vlgmr.msra.gmra.mrb[104].mxu0 %vm1895_vm2, %v13781_v56  ;;  %10887 = vmatmul.mubr.msk.bf16.vlgmr.msra.gmra.mrb[104].mxu1 %vm1895_vm2, %v13781_v56 }
 0x1fe   : > { %5159 = vmatpush1.bf16.msra.mxu0 %v11943_v12  ;;  %5200 = vmatpush1.bf16.msra.mxu1 %v11946_v13 }
 0x1ff   : > { %5160 = vmatprep.subr.bf16.mxu0 %v4174_v16  ;;  %5201 = vmatprep.subr.bf16.mxu1 %v4180_v17  ;;  %v4207_v16 = vand.u32 %v11983_v5, %v13503_v55  ;;  %v4213_v17 = vand.u32 %v11986_v6, %v13503_v55  ;;  %v12013_v5 = vld [vmem:[%s13497_s11 + $0x7c4] ss:$244 sps:$4 sm:$0xff]  }
 0x200   : > { %v14011_v24 = vpop.f32.mrb[0].mxu0  ;;  %v14013_v25 = vpop.f32.mrb[0].mxu1  ;;  %5190 = vmatprep.mubr.bf16.mxu0 %v15505_v48  ;;  %5231 = vmatprep.mubr.bf16.mxu1 %v15505_v48 }
 0x201   : > { %v14020_v29 = vpop.f32.mrb[1].mxu0  ;;  %v14022_v30 = vpop.f32.mrb[1].mxu1 }
 0x202   : > { %15592 = vst [vmem:[#allocation3_spill] sm:$0xff] %v14020_v29  ;;  %v2124_v31 = vpop.f32.mrb[2].mxu0  ;;  %v2165_v32 = vpop.f32.mrb[2].mxu1  ;;  %5161 = vmatpush1.bf16.msra.mxu0 %v4171_v19  ;;  %5202 = vmatpush1.bf16.msra.mxu1 %v4177_v20  ;;  %v11992_v19 = vld [vmem:[%s13497_s11 + $0x7ac] ss:$244 sps:$4 sm:$0xff]  }
 0x203   : > { %v2125_v34 = vpop.f32.mrb[3].mxu0  ;;  %v2166_v35 = vpop.f32.mrb[3].mxu1  ;;  %5240 = vmatprep.subr.bf16.mxu0 %v11957_v18  ;;  %5281 = vmatprep.subr.bf16.mxu1 %v11960_v21  ;;  %v11995_v18 = vld [vmem:[%s13497_s11 + $0x98c] ss:$244 sps:$4 sm:$0x1f]  }
 0x204   : > { %v11998_v20 = vld [vmem:[%s13497_s11 + $0x994] ss:$244 sps:$4 sm:$0x1f]   ;;  %v11996_v34 = vld [vmem:[%s13497_s11 + $0x990] ss:$244 sps:$4 sm:$0x1f]  }
 0x205   : > { %10888 = vmatmul.mubr.msk.bf16.vlgmr.msra.gmra.mrb[108].mxu0 %vm1895_vm2, %v13781_v56  ;;  %10889 = vmatmul.mubr.msk.bf16.vlgmr.msra.gmra.mrb[108].mxu1 %vm1895_vm2, %v13781_v56  ;;  %v11973_v56 = vld [vmem:[%s13497_s11 + $0x690] ss:$244 sps:$4 sm:$0x1f]   ;;  %v11993_v31 = vld [vmem:[%s13497_s11 + $0x988] ss:$244 sps:$4 sm:$0x1f]  }
 0x206   : > { %5241 = vmatpush1.bf16.msra.mxu0 %v11955_v26  ;;  %5282 = vmatpush1.bf16.msra.mxu1 %v11958_v27  ;;  %v4195_v61 = vand.u32 %v11973_v56, %v13503_v55  ;;  %v11990_v26 = vld [vmem:[%s13497_s11 + $0x7a8] ss:$244 sps:$4 sm:$0xff]   ;;  %v12010_v56 = vld [vmem:[%s13497_s11 + $0x9a4] ss:$244 sps:$4 sm:$0x1f]  }
 0x207   : > { %5242 = vmatprep.subr.bf16.mxu0 %v4186_v36  ;;  %5283 = vmatprep.subr.bf16.mxu1 %v4192_v37  ;;  %v6226_v37 = vand.u32 %v11995_v18, %v13503_v55 }
 0x208   : > { %v14037_v44 = vpop.f32.mrb[4].mxu0  ;;  %v14039_v45 = vpop.f32.mrb[4].mxu1  ;;  %5272 = vmatprep.mubr.bf16.mxu0 %v15505_v48  ;;  %5313 = vmatprep.mubr.bf16.mxu1 %v15505_v48 }
 0x209   : > { %15593 = vst [vmem:[#allocation4_spill] sm:$0xff] %v14037_v44  ;;  %v14045_v47 = vpop.f32.mrb[5].mxu0  ;;  %v14047_v49 = vpop.f32.mrb[5].mxu1 }
 0x20a   : > { %15594 = vst [vmem:[#allocation5_spill] sm:$0xff] %v14045_v47  ;;  %v2206_v51 = vpop.f32.mrb[6].mxu0  ;;  %v2247_v52 = vpop.f32.mrb[6].mxu1  ;;  %5243 = vmatpush1.bf16.msra.mxu0 %v4183_v39  ;;  %5284 = vmatpush1.bf16.msra.mxu1 %v4189_v40  ;;  %v12001_v39 = vld [vmem:[%s13497_s11 + $0x7b4] ss:$244 sps:$4 sm:$0xff]   ;;  %v6223_v40 = vand.u32 %v11993_v31, %v13503_v55 }
 0x20b   : > { %v2207_v54 = vpop.f32.mrb[7].mxu0  ;;  %v2248_v57 = vpop.f32.mrb[7].mxu1  ;;  %5322 = vmatprep.subr.bf16.mxu0 %v11969_v38  ;;  %5363 = vmatprep.subr.bf16.mxu1 %v11972_v41  ;;  %v6232_v38 = vand.u32 %v11998_v20, %v13503_v55  ;;  %v6229_v41 = vand.u32 %v11996_v34, %v13503_v55  ;;  %v11999_v51 = vld [vmem:[%s13497_s11 + $0x7b0] ss:$244 sps:$4 sm:$0xff]   ;;  %v12002_v52 = vld [vmem:[%s13497_s11 + $0x7b8] ss:$244 sps:$4 sm:$0xff]  }
 0x20c   : > { %v12005_v57 = vld [vmem:[%s13497_s11 + $0x998] ss:$244 sps:$4 sm:$0x1f]  }
 0x20d   : > { %10890 = vmatmul.mubr.msk.bf16.vlgmr.msra.gmra.mrb[112].mxu0 %vm1895_vm2, %v14056_v60  ;;  %10891 = vmatmul.mubr.msk.bf16.vlgmr.msra.gmra.mrb[112].mxu1 %vm1895_vm2, %v14056_v60  ;;  %v6235_v6 = vand.u32 %v12005_v57, %v13503_v55 }
 0x20e   : > { %5323 = vmatpush1.bf16.msra.mxu0 %v11967_v50  ;;  %5364 = vmatpush1.bf16.msra.mxu1 %v11970_v1 }
 0x20f   : > { %5324 = vmatprep.subr.bf16.mxu0 %v4198_v58  ;;  %5365 = vmatprep.subr.bf16.mxu1 %v4204_v59 }
 0x210   : > { %v14066_v2 = vpop.f32.mrb[8].mxu0  ;;  %v14068_v3 = vpop.f32.mrb[8].mxu1  ;;  %5354 = vmatprep.mubr.bf16.mxu0 %v15505_v48  ;;  %5395 = vmatprep.mubr.bf16.mxu1 %v15505_v48 }
 0x211   : > { %15595 = vst [vmem:[#allocation6_spill] sm:$0xff] %v14066_v2  ;;  %v14075_v7 = vpop.f32.mrb[9].mxu0  ;;  %v14077_v8 = vpop.f32.mrb[9].mxu1 }
 0x212   : > { %v2288_v10 = vpop.f32.mrb[10].mxu0  ;;  %v2329_v11 = vpop.f32.mrb[10].mxu1  ;;  %5325 = vmatpush1.bf16.msra.mxu0 %v4195_v61  ;;  %5366 = vmatpush1.bf16.msra.mxu1 %v4201_v62  ;;  %v12008_v61 = vld [vmem:[%s13497_s11 + $0x9a0] ss:$244 sps:$4 sm:$0x1f]  }
 0x213   : > { %v2289_v12 = vpop.f32.mrb[11].mxu0  ;;  %v2330_v13 = vpop.f32.mrb[11].mxu1  ;;  %5404 = vmatprep.subr.bf16.mxu0 %v11981_v63  ;;  %11534 = vmatprep.subr.bf16.mxu1 %v15502_v53  ;;  %v12016_v10 = vld [vmem:[%s13497_s11 + $0x7cc] ss:$244 sps:$4 sm:$0xff]  }
 0x214   : > { %v12019_v11 = vld [vmem:[%s13497_s11 + $0x9ac] ss:$244 sps:$4 sm:$0x1f]   ;;  %v12022_v12 = vld [vmem:[%s13497_s11 + $0x9b4] ss:$244 sps:$4 sm:$0x1f]  }
 0x215   : > { %10892 = vmatmul.mubr.msk.bf16.vlgmr.msra.gmra.mrb[116].mxu0 %vm1895_vm2, %v14056_v60  ;;  %10893 = vmatmul.mubr.msk.bf16.vlgmr.msra.gmra.mrb[116].mxu1 %vm1895_vm2, %v14056_v60  ;;  %v6256_v34 = vand.u32 %v12022_v12, %v13503_v55  ;;  %v12046_v12 = vld [vmem:[%s13497_s11 + $0x9d4] ss:$244 sps:$4 sm:$0x1f]  }
 0x216   : > { %5405 = vmatpush1.bf16.msra.mxu0 %v11979_v4  ;;  %11535 = vmatpush3.bf16.msra.mxu1 %v11982_v9  ;;  %v6244_v4 = vand.u32 %v12010_v56, %v13503_v55  ;;  %v6241_v9 = vand.u32 %v12008_v61, %v13503_v55  ;;  %v12026_v56 = vld [vmem:[%s13497_s11 + $0x7d8] ss:$244 sps:$4 sm:$0xff]   ;;  %v12032_v61 = vld [vmem:[%s13497_s11 + $0x9c0] ss:$244 sps:$4 sm:$0x1f]  }
 0x217   : > { %5406 = vmatprep.subr.bf16.mxu0 %v4210_v14  ;;  %11536 = vmatprep.subr.bf16.mxu1 %v15502_v53 }
 0x218   : > { %v14093_v21 = vpop.f32.mrb[12].mxu0  ;;  %v14095_v22 = vpop.f32.mrb[12].mxu1  ;;  %5436 = vmatprep.mubr.bf16.mxu0 %v15505_v48  ;;  %11538 = vmatprep.mubr.msk.bf16.mxu1 %vm12414_vm3, %v15502_v53 }
 0x219   : > { %15596 = vst [vmem:[#allocation7_spill] sm:$0xff] %v14093_v21  ;;  %v14102_v27 = vpop.f32.mrb[13].mxu0  ;;  %v14104_v28 = vpop.f32.mrb[13].mxu1 }
 0x21a   : > { %15597 = vst [vmem:[#allocation8_spill] sm:$0xff] %v14102_v27  ;;  %v2370_v32 = vpop.f32.mrb[14].mxu0  ;;  %v2411_v33 = vpop.f32.mrb[14].mxu1  ;;  %5407 = vmatpush1.bf16.msra.mxu0 %v4207_v16  ;;  %11537 = vmatpush3.bf16.msra.mxu1 %v4213_v17  ;;  %v12020_v16 = vld [vmem:[%s13497_s11 + $0x9b0] ss:$244 sps:$4 sm:$0x1f]  }
 0x21b   : > { %v2371_v35 = vpop.f32.mrb[15].mxu0  ;;  %v2412_v36 = vpop.f32.mrb[15].mxu1  ;;  %6405 = vmatprep.subr.bf16.mxu0 %v11989_v15  ;;  %6446 = vmatprep.subr.bf16.mxu1 %v11992_v19  ;;  %v12017_v15 = vld [vmem:[%s13497_s11 + $0x9a8] ss:$244 sps:$4 sm:$0x1f]   ;;  %v6250_v33 = vand.u32 %v12019_v11, %v13503_v55 }
 0x21c   : > { %v12011_v19 = vld [vmem:[%s13497_s11 + $0x7c0] ss:$244 sps:$4 sm:$0xff]   ;;  %v6247_v35 = vand.u32 %v12017_v15, %v13503_v55  ;;  %v6253_v36 = vand.u32 %v12020_v16, %v13503_v55  ;;  %v12265_v27 = vld [vmem:[%s13497_s11 + $0xdd0] ss:$244 sps:$4 sm:$0x1f]  }
 0x21d   : > { %10894 = vmatmul.mubr.msk.bf16.vlgmr.msra.gmra.mrb[120].mxu0 %vm1895_vm2, %v14056_v60  ;;  %11539 = vmatmul.mubr.msk.bf16.vlgmr.msra.gmra.mrb[120].mxu1 %vm1895_vm2, %v14056_v60  ;;  %v12043_v11 = vld [vmem:[%s13497_s11 + $0x9cc] ss:$244 sps:$4 sm:$0x1f]  }
 0x21e   : > { %6406 = vmatpush1.bf16.msra.mxu0 %v11987_v23  ;;  %6447 = vmatpush1.bf16.msra.mxu1 %v11990_v26  ;;  %v12014_v26 = vld [vmem:[%s13497_s11 + $0x7c8] ss:$244 sps:$4 sm:$0xff]  }
 0x21f   : > { %6407 = vmatprep.subr.bf16.mxu0 %v6226_v37  ;;  %6448 = vmatprep.subr.bf16.mxu1 %v6232_v38  ;;  %v12025_v37 = vld [vmem:[%s13497_s11 + $0x7d4] ss:$244 sps:$4 sm:$0xff]   ;;  %v12031_v38 = vld [vmem:[%s13497_s11 + $0x9bc] ss:$244 sps:$4 sm:$0x1f]  }
 0x220   : > { %v14120_v46 = vpop.f32.mrb[16].mxu0  ;;  %v14122_v50 = vpop.f32.mrb[16].mxu1  ;;  %6437 = vmatprep.mubr.bf16.mxu0 %v15505_v48  ;;  %6478 = vmatprep.mubr.bf16.mxu1 %v15505_v48 }
 0x221   : > { %v14128_v1 = vpop.f32.mrb[17].mxu0  ;;  %v14130_v54 = vpop.f32.mrb[17].mxu1 }
 0x222   : > { %15598 = vst [vmem:[#allocation9_spill] sm:$0xff] %v14128_v1  ;;  %v2452_v58 = vpop.f32.mrb[18].mxu0  ;;  %v2493_v59 = vpop.f32.mrb[18].mxu1  ;;  %6408 = vmatpush1.bf16.msra.mxu0 %v6223_v40  ;;  %6449 = vmatpush1.bf16.msra.mxu1 %v6229_v41  ;;  %v12034_v40 = vld [vmem:[%s13497_s11 + $0x9c4] ss:$244 sps:$4 sm:$0x1f]  }
 0x223   : > { %v2453_v62 = vpop.f32.mrb[19].mxu0  ;;  %v2494_v63 = vpop.f32.mrb[19].mxu1  ;;  %6487 = vmatprep.subr.bf16.mxu0 %v12001_v39  ;;  %6528 = vmatprep.subr.bf16.mxu1 %v12004_v42  ;;  %v12028_v39 = vld [vmem:[%s13497_s11 + $0x7dc] ss:$244 sps:$4 sm:$0xff]  }
 0x225   : > { %11142 = vmatmul.mubr.msk.bf16.vlgmr.msra.gmra.mrb[124].mxu0 %vm1895_vm2, %v14056_v60  ;;  %11143 = vmatmul.mubr.msk.bf16.vlgmr.msra.gmra.mrb[124].mxu1 %vm1895_vm2, %v14056_v60 }
 0x226   : > { %6488 = vmatpush1.bf16.msra.mxu0 %v11999_v51  ;;  %6529 = vmatpush1.bf16.msra.mxu1 %v12002_v52  ;;  %v12029_v51 = vld [vmem:[%s13497_s11 + $0x9b8] ss:$244 sps:$4 sm:$0x1f]  }
 0x227   : > { %6489 = vmatprep.subr.bf16.mxu0 %v6238_v0  ;;  %6530 = vmatprep.subr.bf16.mxu1 %v6244_v4  ;;  %v6262_v0 = vand.u32 %v12031_v38, %v13503_v55  ;;  %v6268_v4 = vand.u32 %v12034_v40, %v13503_v55  ;;  %v6280_v38 = vand.u32 %v12046_v12, %v13503_v55 }
 0x228   : > { %v14146_v13 = vpop.f32.mrb[20].mxu0  ;;  %v14148_v14 = vpop.f32.mrb[20].mxu1  ;;  %6519 = vmatprep.mubr.bf16.mxu0 %v15505_v48  ;;  %6560 = vmatprep.mubr.bf16.mxu1 %v15505_v48 }
 0x229   : > { %v14154_v17 = vpop.f32.mrb[21].mxu0  ;;  %v14156_v18 = vpop.f32.mrb[21].mxu1 }
 0x22a   : > { %15599 = vst [vmem:[#allocation10_spill] sm:$0xff] %v14154_v17  ;;  %v2534_v20 = vpop.f32.mrb[22].mxu0  ;;  %v2575_v23 = vpop.f32.mrb[22].mxu1  ;;  %6490 = vmatpush1.bf16.msra.mxu0 %v6235_v6  ;;  %6531 = vmatpush1.bf16.msra.mxu1 %v6241_v9  ;;  %v6259_v6 = vand.u32 %v12029_v51, %v13503_v55  ;;  %v6265_v9 = vand.u32 %v12032_v61, %v13503_v55  ;;  %v12055_v51 = vld [vmem:[%s13497_s11 + $0x9dc] ss:$244 sps:$4 sm:$0x1f]  }
 0x22b   : > { %v2535_v31 = vpop.f32.mrb[23].mxu0  ;;  %v2576_v32 = vpop.f32.mrb[23].mxu1  ;;  %6569 = vmatprep.subr.bf16.mxu0 %v12013_v5  ;;  %6610 = vmatprep.subr.bf16.mxu1 %v12016_v10  ;;  %v12037_v5 = vld [vmem:[%s13497_s11 + $0x7e4] ss:$244 sps:$4 sm:$0xff]   ;;  %v12040_v10 = vld [vmem:[%s13497_s11 + $0x7ec] ss:$244 sps:$4 sm:$0xff]  }
 0x22c   : > { %v12038_v20 = vld [vmem:[%s13497_s11 + $0x7e8] ss:$244 sps:$4 sm:$0xff]  }
 0x22d   : > { %11144 = vmatmul.mubr.msk.bf16.vlgmr.msra.gmra.mrb[128].mxu0 %vm1895_vm2, %v14056_v60  ;;  %11145 = vmatmul.mubr.msk.bf16.vlgmr.msra.gmra.mrb[128].mxu1 %vm1895_vm2, %v14056_v60  ;;  %v12041_v23 = vld [vmem:[%s13497_s11 + $0x9c8] ss:$244 sps:$4 sm:$0x1f]  }
 0x22e   : > { %6570 = vmatpush1.bf16.msra.mxu0 %v12011_v19  ;;  %6611 = vmatpush1.bf16.msra.mxu1 %v12014_v26  ;;  %v12035_v19 = vld [vmem:[%s13497_s11 + $0x7e0] ss:$244 sps:$4 sm:$0xff]   ;;  %v6271_v40 = vand.u32 %v12041_v23, %v13503_v55 }
 0x22f   : > { %6571 = vmatprep.subr.bf16.mxu0 %v6250_v33  ;;  %6612 = vmatprep.subr.bf16.mxu1 %v6256_v34  ;;  %v12044_v34 = vld [vmem:[%s13497_s11 + $0x9d0] ss:$244 sps:$4 sm:$0x1f]  }
 0x230   : > { %v14172_v41 = vpop.f32.mrb[24].mxu0  ;;  %v14174_v42 = vpop.f32.mrb[24].mxu1  ;;  %6601 = vmatprep.mubr.bf16.mxu0 %v15505_v48  ;;  %6642 = vmatprep.mubr.bf16.mxu1 %v15505_v48 }
 0x231   : > { %v14181_v52 = vpop.f32.mrb[25].mxu0  ;;  %v14183_v57 = vpop.f32.mrb[25].mxu1 }
 0x232   : > { %15600 = vst [vmem:[#allocation11_spill] sm:$0xff] %v14181_v52  ;;  %v2616_v58 = vpop.f32.mrb[26].mxu0  ;;  %v2657_v59 = vpop.f32.mrb[26].mxu1  ;;  %6572 = vmatpush1.bf16.msra.mxu0 %v6247_v35  ;;  %6613 = vmatpush1.bf16.msra.mxu1 %v6253_v36 }
 0x233   : > { %v2617_v62 = vpop.f32.mrb[27].mxu0  ;;  %v2658_v63 = vpop.f32.mrb[27].mxu1  ;;  %6651 = vmatprep.subr.bf16.mxu0 %v12025_v37  ;;  %6692 = vmatprep.subr.bf16.mxu1 %v12028_v39  ;;  %v6274_v37 = vand.u32 %v12043_v11, %v13503_v55  ;;  %v12049_v39 = vld [vmem:[%s13497_s11 + $0x7f4] ss:$244 sps:$4 sm:$0xff]  }
 0x234   : > { %v12058_v58 = vld [vmem:[%s13497_s11 + $0x9e4] ss:$244 sps:$4 sm:$0x1f]   ;;  %v12056_v63 = vld [vmem:[%s13497_s11 + $0x9e0] ss:$244 sps:$4 sm:$0x1f]  }
 0x235   : > { %11146 = vmatmul.mubr.msk.bf16.vlgmr.msra.gmra.mrb[132].mxu0 %vm1895_vm2, %v14056_v60  ;;  %11147 = vmatmul.mubr.msk.bf16.vlgmr.msra.gmra.mrb[132].mxu1 %vm1895_vm2, %v14056_v60  ;;  %v12053_v62 = vld [vmem:[%s13497_s11 + $0x9d8] ss:$244 sps:$4 sm:$0x1f]  }
 0x236   : > { %6652 = vmatpush1.bf16.msra.mxu0 %v12023_v43  ;;  %6693 = vmatpush1.bf16.msra.mxu1 %v12026_v56  ;;  %v6277_v43 = vand.u32 %v12044_v34, %v13503_v55  ;;  %v12052_v56 = vld [vmem:[%s13497_s11 + $0x7fc] ss:$244 sps:$4 sm:$0xff]   ;;  %v6283_v23 = vand.u32 %v12053_v62, %v13503_v55  ;;  %v12067_v34 = vld [vmem:[%s13497_s11 + $0x9ec] ss:$244 sps:$4 sm:$0x1f]  }
 0x237   : > { %6653 = vmatprep.subr.bf16.mxu0 %v6262_v0  ;;  %6694 = vmatprep.subr.bf16.mxu1 %v6268_v4 }
 0x238   : > { %v14198_v15 = vpop.f32.mrb[28].mxu0  ;;  %v14200_v16 = vpop.f32.mrb[28].mxu1  ;;  %6683 = vmatprep.mubr.bf16.mxu0 %v15505_v48  ;;  %6724 = vmatprep.mubr.bf16.mxu1 %v15505_v48 }
 0x239   : > { %v14207_v26 = vpop.f32.mrb[29].mxu0  ;;  %v14209_v31 = vpop.f32.mrb[29].mxu1 }
 0x23a   : > { %15601 = vst [vmem:[#allocation12_spill] sm:$0xff] %v14207_v26  ;;  %v2698_v32 = vpop.f32.mrb[30].mxu0  ;;  %v2739_v33 = vpop.f32.mrb[30].mxu1  ;;  %6654 = vmatpush1.bf16.msra.mxu0 %v6259_v6  ;;  %6695 = vmatpush1.bf16.msra.mxu1 %v6265_v9 }
 0x23b   : > { %v2699_v35 = vpop.f32.mrb[31].mxu0  ;;  %v2740_v36 = vpop.f32.mrb[31].mxu1  ;;  %6733 = vmatprep.subr.bf16.mxu0 %v12037_v5  ;;  %6774 = vmatprep.subr.bf16.mxu1 %v12040_v10  ;;  %v12047_v5 = vld [vmem:[%s13497_s11 + $0x7f0] ss:$244 sps:$4 sm:$0xff]   ;;  %v12050_v10 = vld [vmem:[%s13497_s11 + $0x7f8] ss:$244 sps:$4 sm:$0xff]   ;;  %v6289_v32 = vand.u32 %v12056_v63, %v13503_v55 }
 0x23c   : > { %v12061_v33 = vld [vmem:[%s13497_s11 + $0x804] ss:$244 sps:$4 sm:$0xff]   ;;  %v12064_v35 = vld [vmem:[%s13497_s11 + $0x80c] ss:$244 sps:$4 sm:$0xff]  }
 0x23d   : > { %11148 = vmatmul.mubr.msk.bf16.vlgmr.msra.gmra.mrb[136].mxu0 %vm1895_vm2, %v14056_v60  ;;  %11149 = vmatmul.mubr.msk.bf16.vlgmr.msra.gmra.mrb[136].mxu1 %vm1895_vm2, %v14056_v60  ;;  %v12070_v36 = vld [vmem:[%s13497_s11 + $0x9f4] ss:$244 sps:$4 sm:$0x1f]  }
 0x23e   : > { %6734 = vmatpush1.bf16.msra.mxu0 %v12035_v19  ;;  %6775 = vmatpush1.bf16.msra.mxu1 %v12038_v20  ;;  %v6286_v19 = vand.u32 %v12055_v51, %v13503_v55  ;;  %v6292_v20 = vand.u32 %v12058_v58, %v13503_v55  ;;  %v12062_v58 = vld [vmem:[%s13497_s11 + $0x808] ss:$244 sps:$4 sm:$0xff]  }
 0x23f   : > { %6735 = vmatprep.subr.bf16.mxu0 %v6274_v37  ;;  %6776 = vmatprep.subr.bf16.mxu1 %v6280_v38 }
 0x240   : > { %v14224_v59 = vpop.f32.mrb[32].mxu0  ;;  %v14226_v61 = vpop.f32.mrb[32].mxu1  ;;  %6765 = vmatprep.mubr.bf16.mxu0 %v15505_v48  ;;  %6806 = vmatprep.mubr.bf16.mxu1 %v15505_v48 }
 0x241   : > { %v14232_v0 = vpop.f32.mrb[33].mxu0  ;;  %v14234_v4 = vpop.f32.mrb[33].mxu1 }
 0x242   : > { %15602 = vst [vmem:[#allocation13_spill] sm:$0xff] %v14232_v0  ;;  %v2780_v6 = vpop.f32.mrb[34].mxu0  ;;  %v2821_v9 = vpop.f32.mrb[34].mxu1  ;;  %6736 = vmatpush1.bf16.msra.mxu0 %v6271_v40  ;;  %6777 = vmatpush1.bf16.msra.mxu1 %v6277_v43  ;;  %v12065_v40 = vld [vmem:[%s13497_s11 + $0x9e8] ss:$244 sps:$4 sm:$0x1f]  }
 0x243   : > { %v2781_v11 = vpop.f32.mrb[35].mxu0  ;;  %v2822_v12 = vpop.f32.mrb[35].mxu1  ;;  %6815 = vmatprep.subr.bf16.mxu0 %v12049_v39  ;;  %6856 = vmatprep.subr.bf16.mxu1 %v12052_v56  ;;  %v12059_v39 = vld [vmem:[%s13497_s11 + $0x800] ss:$244 sps:$4 sm:$0xff]   ;;  %v6298_v9 = vand.u32 %v12067_v34, %v13503_v55 }
 0x244   : > { %v12068_v43 = vld [vmem:[%s13497_s11 + $0x9f0] ss:$244 sps:$4 sm:$0x1f]   ;;  %v12073_v11 = vld [vmem:[%s13497_s11 + $0x814] ss:$244 sps:$4 sm:$0xff]   ;;  %v6295_v12 = vand.u32 %v12065_v40, %v13503_v55 }
 0x245   : > { %11150 = vmatmul.mubr.msk.bf16.vlgmr.msra.gmra.mrb[140].mxu0 %vm1895_vm2, %v14056_v60  ;;  %11151 = vmatmul.mubr.msk.bf16.vlgmr.msra.gmra.mrb[140].mxu1 %vm1895_vm2, %v14056_v60 }
 0x246   : > { %6816 = vmatpush1.bf16.msra.mxu0 %v12047_v5  ;;  %6857 = vmatpush1.bf16.msra.mxu1 %v12050_v10  ;;  %v6304_v10 = vand.u32 %v12070_v36, %v13503_v55  ;;  %v12074_v36 = vld [vmem:[%s13497_s11 + $0x818] ss:$244 sps:$4 sm:$0xff]  }
 0x247   : > { %6817 = vmatprep.subr.bf16.mxu0 %v6286_v19  ;;  %6858 = vmatprep.subr.bf16.mxu1 %v6292_v20  ;;  %v6301_v19 = vand.u32 %v12068_v43, %v13503_v55  ;;  %v12079_v20 = vld [vmem:[%s13497_s11 + $0x9fc] ss:$244 sps:$4 sm:$0x1f]   ;;  %v12077_v43 = vld [vmem:[%s13497_s11 + $0x9f8] ss:$244 sps:$4 sm:$0x1f]  }
 0x248   : > { %v14250_v37 = vpop.f32.mrb[36].mxu0  ;;  %v14252_v38 = vpop.f32.mrb[36].mxu1  ;;  %6847 = vmatprep.mubr.bf16.mxu0 %v15505_v48  ;;  %6888 = vmatprep.mubr.bf16.mxu1 %v15505_v48 }
 0x249   : > { %15603 = vst [vmem:[#allocation14_spill] sm:$0xff] %v14250_v37  ;;  %15604 = vst [vmem:[#allocation15_spill] sm:$0xff] %v14252_v38  ;;  %v14259_v56 = vpop.f32.mrb[37].mxu0  ;;  %v14261_v51 = vpop.f32.mrb[37].mxu1 }
 0x24a   : > { %15605 = vst [vmem:[#allocation16_spill] sm:$0xff] %v14259_v56  ;;  %15606 = vst [vmem:[#allocation17_spill] sm:$0xff] %v14261_v51  ;;  %v2862_v62 = vpop.f32.mrb[38].mxu0  ;;  %v2903_v63 = vpop.f32.mrb[38].mxu1  ;;  %6818 = vmatpush1.bf16.msra.mxu0 %v6283_v23  ;;  %6859 = vmatpush1.bf16.msra.mxu1 %v6289_v32  ;;  %v12076_v23 = vld [vmem:[%s13497_s11 + $0x81c] ss:$244 sps:$4 sm:$0xff]  }
 0x24b   : > { %v2863_v5 = vpop.f32.mrb[39].mxu0  ;;  %v2904_v6 = vpop.f32.mrb[39].mxu1  ;;  %6897 = vmatprep.subr.bf16.mxu0 %v12061_v33  ;;  %6938 = vmatprep.subr.bf16.mxu1 %v12064_v35  ;;  %v12082_v32 = vld [vmem:[%s13497_s11 + $0xa04] ss:$244 sps:$4 sm:$0x1f]  }
 0x24c   : > { %v12071_v35 = vld [vmem:[%s13497_s11 + $0x810] ss:$244 sps:$4 sm:$0xff]   ;;  %v12080_v63 = vld [vmem:[%s13497_s11 + $0xa00] ss:$244 sps:$4 sm:$0x1f]  }
 0x24d   : > { %11152 = vmatmul.mubr.msk.bf16.vlgmr.msra.gmra.mrb[144].mxu0 %vm1895_vm2, %v14056_v60  ;;  %11153 = vmatmul.mubr.msk.bf16.vlgmr.msra.gmra.mrb[144].mxu1 %vm1895_vm2, %v14056_v60 }
 0x24e   : > { %6898 = vmatpush1.bf16.msra.mxu0 %v12059_v39  ;;  %6939 = vmatpush1.bf16.msra.mxu1 %v12062_v58 }
 0x24f   : > { %6899 = vmatprep.subr.bf16.mxu0 %v6298_v9  ;;  %6940 = vmatprep.subr.bf16.mxu1 %v6304_v10  ;;  %v6310_v9 = vand.u32 %v12079_v20, %v13503_v55  ;;  %v6316_v10 = vand.u32 %v12082_v32, %v13503_v55  ;;  %v12091_v20 = vld [vmem:[%s13497_s11 + $0xa0c] ss:$244 sps:$4 sm:$0x1f]   ;;  %v12094_v32 = vld [vmem:[%s13497_s11 + $0xa14] ss:$244 sps:$4 sm:$0x1f]  }
 0x250   : > { %v14276_v33 = vpop.f32.mrb[40].mxu0  ;;  %v14278_v34 = vpop.f32.mrb[40].mxu1  ;;  %6929 = vmatprep.mubr.bf16.mxu0 %v15505_v48  ;;  %6970 = vmatprep.mubr.bf16.mxu1 %v15505_v48 }
 0x251   : > { %15607 = vst [vmem:[#allocation18_spill] sm:$0xff] %v14276_v33  ;;  %15608 = vst [vmem:[#allocation19_spill] sm:$0xff] %v14278_v34  ;;  %v14284_v39 = vpop.f32.mrb[41].mxu0  ;;  %v14286_v40 = vpop.f32.mrb[41].mxu1 }
 0x252   : > { %15609 = vst [vmem:[#allocation20_spill] sm:$0xff] %v14284_v39  ;;  %15610 = vst [vmem:[#allocation21_spill] sm:$0xff] %v14286_v40  ;;  %v2944_v58 = vpop.f32.mrb[42].mxu0  ;;  %v2985_v62 = vpop.f32.mrb[42].mxu1  ;;  %6900 = vmatpush1.bf16.msra.mxu0 %v6295_v12  ;;  %6941 = vmatpush1.bf16.msra.mxu1 %v6301_v19  ;;  %v12085_v12 = vld [vmem:[%s13497_s11 + $0x824] ss:$244 sps:$4 sm:$0xff]   ;;  %v6307_v19 = vand.u32 %v12077_v43, %v13503_v55 }
 0x253   : > { %v2945_v5 = vpop.f32.mrb[43].mxu0  ;;  %v2986_v6 = vpop.f32.mrb[43].mxu1  ;;  %6979 = vmatprep.subr.bf16.mxu0 %v12073_v11  ;;  %7020 = vmatprep.subr.bf16.mxu1 %v12076_v23  ;;  %v6313_v11 = vand.u32 %v12080_v63, %v13503_v55  ;;  %v12088_v23 = vld [vmem:[%s13497_s11 + $0x82c] ss:$244 sps:$4 sm:$0xff]  }
 0x254   : > { %v12089_v63 = vld [vmem:[%s13497_s11 + $0xa08] ss:$244 sps:$4 sm:$0x1f]  }
 0x255   : > { %11154 = vmatmul.mubr.msk.bf16.vlgmr.msra.gmra.mrb[148].mxu0 %vm1895_vm2, %v14056_v60  ;;  %11155 = vmatmul.mubr.msk.bf16.vlgmr.msra.gmra.mrb[148].mxu1 %vm1895_vm2, %v14056_v60 }
 0x256   : > { %6980 = vmatpush1.bf16.msra.mxu0 %v12071_v35  ;;  %7021 = vmatpush1.bf16.msra.mxu1 %v12074_v36  ;;  %v12083_v35 = vld [vmem:[%s13497_s11 + $0x820] ss:$244 sps:$4 sm:$0xff]   ;;  %v12086_v36 = vld [vmem:[%s13497_s11 + $0x828] ss:$244 sps:$4 sm:$0xff]  }
 0x257   : > { %6981 = vmatprep.subr.bf16.mxu0 %v6310_v9  ;;  %7022 = vmatprep.subr.bf16.mxu1 %v6316_v10  ;;  %v12092_v10 = vld [vmem:[%s13497_s11 + $0xa10] ss:$244 sps:$4 sm:$0x1f]  }
 0x258   : > { %v14302_v58 = vpop.f32.mrb[44].mxu0  ;;  %v14304_v62 = vpop.f32.mrb[44].mxu1  ;;  %7011 = vmatprep.mubr.bf16.mxu0 %v15505_v48  ;;  %7052 = vmatprep.mubr.bf16.mxu1 %v15505_v48  ;;  %v6322_v48 = vand.u32 %v12091_v20, %v13503_v55  ;;  %v12106_v20 = vld [vmem:[%s13497_s11 + $0xa24] ss:$244 sps:$4 sm:$0x1f]  }
 0x259   : > { %15611 = vst [vmem:[#allocation22_spill] sm:$0xff] %v14302_v58  ;;  %15612 = vst [vmem:[#allocation23_spill] sm:$0xff] %v14304_v62  ;;  %v14310_v5 = vpop.f32.mrb[45].mxu0  ;;  %v14312_v43 = vpop.f32.mrb[45].mxu1 }
 0x25a   : > { %15613 = vst [vmem:[#allocation24_spill] sm:$0xff] %v14310_v5  ;;  %15614 = vst [vmem:[#allocation25_spill] sm:$0xff] %v14312_v43  ;;  %v3026_v6 = vpop.f32.mrb[46].mxu0  ;;  %v3067_v9 = vpop.f32.mrb[46].mxu1  ;;  %6982 = vmatpush1.bf16.msra.mxu0 %v6307_v19  ;;  %7023 = vmatpush1.bf16.msra.mxu1 %v6313_v11  ;;  %v6328_v5 = vand.u32 %v12094_v32, %v13503_v55  ;;  %v12097_v19 = vld [vmem:[%s13497_s11 + $0x834] ss:$244 sps:$4 sm:$0xff]  }
 0x25b   : > { %v3027_v53 = vpop.f32.mrb[47].mxu0  ;;  %v3068_v62 = vpop.f32.mrb[47].mxu1  ;;  %7061 = vmatprep.subr.bf16.mxu0 %v12085_v12  ;;  %7102 = vmatprep.subr.bf16.mxu1 %v12088_v23  ;;  %v6325_v12 = vand.u32 %v12092_v10, %v13503_v55  ;;  %v12100_v11 = vld [vmem:[%s13497_s11 + $0x83c] ss:$244 sps:$4 sm:$0xff]   ;;  %v15617_v6 = vmov 0  }
 0x25c   : > { %v6319_v53 = vand.u32 %v12089_v63, %v13503_v55  ;;  %v12103_v23 = vld [vmem:[%s13497_s11 + $0xa1c] ss:$244 sps:$4 sm:$0x1f]   ;;  %v12104_v43 = vld [vmem:[%s13497_s11 + $0xa20] ss:$244 sps:$4 sm:$0x1f]  }
 0x25d   : > { %11156 = vmatmul.mubr.msk.bf16.vlgmr.msra.gmra.mrb[152].mxu0 %vm1895_vm2, %v14056_v60  ;;  %11157 = vmatmul.mubr.msk.bf16.vlgmr.msra.gmra.mrb[152].mxu1 %vm1895_vm2, %v14056_v60  ;;  %v6334_v40 = vand.u32 %v12103_v23, %v13503_v55  ;;  %v12115_v23 = vld [vmem:[%s13497_s11 + $0xa2c] ss:$244 sps:$4 sm:$0x1f]  }
 0x25e   : > { %7062 = vmatpush1.bf16.msra.mxu0 %v12083_v35  ;;  %7103 = vmatpush1.bf16.msra.mxu1 %v12086_v36  ;;  %v12095_v35 = vld [vmem:[%s13497_s11 + $0x830] ss:$244 sps:$4 sm:$0xff]   ;;  %v12101_v36 = vld [vmem:[%s13497_s11 + $0xa18] ss:$244 sps:$4 sm:$0x1f]  }
 0x25f   : > { %7063 = vmatprep.subr.bf16.mxu0 %v6322_v48  ;;  %7104 = vmatprep.subr.bf16.mxu1 %v6328_v5  ;;  %v12098_v48 = vld [vmem:[%s13497_s11 + $0x838] ss:$244 sps:$4 sm:$0xff]  }
 0x260   : > { %v14328_v32 = vpop.f32.mrb[48].mxu0  ;;  %v14330_v62 = vpop.f32.mrb[48].mxu1  ;;  %7093 = vmatprep.mubr.bf16.mxu0 %v15617_v6  ;;  %7134 = vmatprep.mubr.bf16.mxu1 %v15617_v6 }
 0x261   : > { %15615 = vst [vmem:[#allocation26_spill] sm:$0xff] %v14328_v32  ;;  %15616 = vst [vmem:[#allocation27_spill] sm:$0xff] %v14330_v62  ;;  %v14336_v9 = vpop.f32.mrb[49].mxu0  ;;  %v14338_v63 = vpop.f32.mrb[49].mxu1 }
 0x262   : > { %15618 = vst [vmem:[#allocation28_spill] sm:$0xff] %v14336_v9  ;;  %15619 = vst [vmem:[#allocation29_spill] sm:$0xff] %v14338_v63  ;;  %v3108_v5 = vpop.f32.mrb[50].mxu0  ;;  %v3149_v10 = vpop.f32.mrb[50].mxu1  ;;  %7064 = vmatpush1.bf16.msra.mxu0 %v6319_v53  ;;  %7105 = vmatpush1.bf16.msra.mxu1 %v6325_v12  ;;  %v6340_v9 = vand.u32 %v12106_v20, %v13503_v55  ;;  %v12109_v53 = vld [vmem:[%s13497_s11 + $0x844] ss:$244 sps:$4 sm:$0xff]   ;;  %v6331_v12 = vand.u32 %v12101_v36, %v13503_v55 }
 0x263   : > { %v3109_v62 = vpop.f32.mrb[51].mxu0  ;;  %v3150_v32 = vpop.f32.mrb[51].mxu1  ;;  %7143 = vmatprep.subr.bf16.mxu0 %v12097_v19  ;;  %7184 = vmatprep.subr.bf16.mxu1 %v12100_v11  ;;  %v6337_v19 = vand.u32 %v12104_v43, %v13503_v55  ;;  %v12112_v11 = vld [vmem:[%s13497_s11 + $0x84c] ss:$244 sps:$4 sm:$0xff]  }
 0x264   : > { %v12118_v20 = vld [vmem:[%s13497_s11 + $0xa34] ss:$244 sps:$4 sm:$0x1f]  }
 0x265   : > { %11158 = vmatmul.mubr.msk.bf16.vlgmr.msra.gmra.mrb[156].mxu0 %vm1895_vm2, %v14056_v60  ;;  %11159 = vmatmul.mubr.msk.bf16.vlgmr.msra.gmra.mrb[156].mxu1 %vm1895_vm2, %v14056_v60  ;;  %v12113_v5 = vld [vmem:[%s13497_s11 + $0xa28] ss:$244 sps:$4 sm:$0x1f]   ;;  %v6352_v58 = vand.u32 %v12118_v20, %v13503_v55 }
 0x266   : > { %7144 = vmatpush1.bf16.msra.mxu0 %v12095_v35  ;;  %7185 = vmatpush1.bf16.msra.mxu1 %v12098_v48  ;;  %v12107_v35 = vld [vmem:[%s13497_s11 + $0x840] ss:$244 sps:$4 sm:$0xff]   ;;  %v12110_v48 = vld [vmem:[%s13497_s11 + $0x848] ss:$244 sps:$4 sm:$0xff]  }
 0x267   : > { %7145 = vmatprep.subr.bf16.mxu0 %v6334_v40  ;;  %7186 = vmatprep.subr.bf16.mxu1 %v6340_v9  ;;  %v12116_v9 = vld [vmem:[%s13497_s11 + $0xa30] ss:$244 sps:$4 sm:$0x1f]  }
 0x268   : > { %v14354_v32 = vpop.f32.mrb[52].mxu0  ;;  %v14356_v62 = vpop.f32.mrb[52].mxu1  ;;  %7175 = vmatprep.mubr.bf16.mxu0 %v15617_v6  ;;  %7216 = vmatprep.mubr.bf16.mxu1 %v15617_v6 }
 0x269   : > { %15620 = vst [vmem:[#allocation30_spill] sm:$0xff] %v14354_v32  ;;  %15621 = vst [vmem:[#allocation31_spill] sm:$0xff] %v14356_v62  ;;  %v14363_v36 = vpop.f32.mrb[53].mxu0  ;;  %v14365_v43 = vpop.f32.mrb[53].mxu1  ;;  %v6346_v32 = vand.u32 %v12115_v23, %v13503_v55 }
 0x26a   : > { %15622 = vst [vmem:[#allocation32_spill] sm:$0xff] %v14363_v36  ;;  %15623 = vst [vmem:[#allocation33_spill] sm:$0xff] %v14365_v43  ;;  %v3190_v40 = vpop.f32.mrb[54].mxu0  ;;  %v3231_v10 = vpop.f32.mrb[54].mxu1  ;;  %7146 = vmatpush1.bf16.msra.mxu0 %v6331_v12  ;;  %7187 = vmatpush1.bf16.msra.mxu1 %v6337_v19  ;;  %v12121_v12 = vld [vmem:[%s13497_s11 + $0x854] ss:$244 sps:$4 sm:$0xff]  }
 0x26b   : > { %v3191_v62 = vpop.f32.mrb[55].mxu0  ;;  %v3232_v63 = vpop.f32.mrb[55].mxu1  ;;  %7225 = vmatprep.subr.bf16.mxu0 %v12109_v53  ;;  %7266 = vmatprep.subr.bf16.mxu1 %v12112_v11  ;;  %v6349_v53 = vand.u32 %v12116_v9, %v13503_v55  ;;  %v12124_v19 = vld [vmem:[%s13497_s11 + $0x85c] ss:$244 sps:$4 sm:$0xff]   ;;  %v9926_v9 = vld [vmem:[%s15500_s2] sm:$0xff] }
 0x26c   : > { %v6343_v63 = vand.u32 %v12113_v5, %v13503_v55  ;;  %v12127_v11 = vld [vmem:[%s13497_s11 + $0xa3c] ss:$244 sps:$4 sm:$0x1f]   ;;  %v12130_v23 = vld [vmem:[%s13497_s11 + $0xa44] ss:$244 sps:$4 sm:$0x1f]   ;;  %9929 = vperm.xlu0 %11622, %v9926_v9  }
 0x26d   : > { %11160 = vmatmul.mubr.msk.bf16.vlgmr.msra.gmra.mrb[160].mxu0 %vm1895_vm2, %v14056_v60  ;;  %11161 = vmatmul.mubr.msk.bf16.vlgmr.msra.gmra.mrb[160].mxu1 %vm1895_vm2, %v14056_v60  ;;  %v12119_v60 = vld [vmem:[%s13497_s11 + $0x850] ss:$244 sps:$4 sm:$0xff]   ;;  %v12131_v9 = vld [vmem:[%s13497_s11 + $0x860] ss:$244 sps:$4 sm:$0xff]  }
 0x26e   : > { %7226 = vmatpush1.bf16.msra.mxu0 %v12107_v35  ;;  %7267 = vmatpush1.bf16.msra.mxu1 %v12110_v48  ;;  %v12122_v35 = vld [vmem:[%s13497_s11 + $0x858] ss:$244 sps:$4 sm:$0xff]  }
 0x26f   : > { %7227 = vmatprep.subr.bf16.mxu0 %v6346_v32  ;;  %7268 = vmatprep.subr.bf16.mxu1 %v6352_v58  ;;  %v12125_v48 = vld [vmem:[%s13497_s11 + $0xa38] ss:$244 sps:$4 sm:$0x1f]   ;;  %v12128_v58 = vld [vmem:[%s13497_s11 + $0xa40] ss:$244 sps:$4 sm:$0x1f]  }
 0x270   : > { %v14380_v20 = vpop.f32.mrb[56].mxu0  ;;  %v14382_v62 = vpop.f32.mrb[56].mxu1  ;;  %7257 = vmatprep.mubr.bf16.mxu0 %v15617_v6  ;;  %7298 = vmatprep.mubr.bf16.mxu1 %v15617_v6 }
 0x271   : > { %15624 = vst [vmem:[#allocation34_spill] sm:$0xff] %v14380_v20  ;;  %15625 = vst [vmem:[#allocation35_spill] sm:$0xff] %v14382_v62  ;;  %v14389_v5 = vpop.f32.mrb[57].mxu0  ;;  %v14391_v40 = vpop.f32.mrb[57].mxu1 }
 0x272   : > { %15626 = vst [vmem:[#allocation36_spill] sm:$0xff] %v14389_v5  ;;  %15627 = vst [vmem:[#allocation37_spill] sm:$0xff] %v14391_v40  ;;  %v3272_v10 = vpop.f32.mrb[58].mxu0  ;;  %v3313_v32 = vpop.f32.mrb[58].mxu1  ;;  %7228 = vmatpush1.bf16.msra.mxu0 %v6343_v63  ;;  %7269 = vmatpush1.bf16.msra.mxu1 %v6349_v53  ;;  %v6358_v5 = vand.u32 %v12127_v11, %v13503_v55  ;;  %v14402_v63 = vld [vmem:[%s15499_s1] sm:$0xf]  ;;  %v6355_v53 = vand.u32 %v12125_v48, %v13503_v55 }
 0x273   : > { %v3273_v62 = vpop.f32.mrb[59].mxu0  ;;  %v3314_v43 = vpop.f32.mrb[59].mxu1  ;;  %7307 = vmatprep.subr.bf16.mxu0 %v12121_v12  ;;  %7348 = vmatprep.subr.bf16.mxu1 %v12124_v19  ;;  %v6364_v10 = vand.u32 %v12130_v23, %v13503_v55  ;;  %v12136_v12 = vld [vmem:[%s13497_s11 + $0x86c] ss:$244 sps:$4 sm:$0xff]   ;;  %v6361_v19 = vand.u32 %v12128_v58, %v13503_v55 }
 0x274   : > { %v12133_v43 = vld [vmem:[%s13497_s11 + $0x864] ss:$244 sps:$4 sm:$0xff]   ;;  %v12139_v11 = vld [vmem:[%s13497_s11 + $0xa4c] ss:$244 sps:$4 sm:$0x1f]  }
 0x275   : > { %11162 = vmatmul.mubr.msk.bf16.vlgmr.msra.gmra.mrb[164].mxu0 %vm1895_vm2, %v14402_v63  ;;  %11163 = vmatmul.mubr.msk.bf16.vlgmr.msra.gmra.mrb[164].mxu1 %vm1895_vm2, %v14402_v63  ;;  %v12142_v23 = vld [vmem:[%s13497_s11 + $0xa54] ss:$244 sps:$4 sm:$0x1f]  }
 0x276   : > { %7308 = vmatpush1.bf16.msra.mxu0 %v12119_v60  ;;  %7349 = vmatpush1.bf16.msra.mxu1 %v12122_v35  ;;  %v12134_v60 = vld [vmem:[%s13497_s11 + $0x868] ss:$244 sps:$4 sm:$0xff]   ;;  %v6376_v48 = vand.u32 %v12142_v23, %v13503_v55  ;;  %v12143_v23 = vld [vmem:[%s13497_s11 + $0x870] ss:$244 sps:$4 sm:$0xff]  }
 0x277   : > { %7309 = vmatprep.subr.bf16.mxu0 %v6358_v5  ;;  %7350 = vmatprep.subr.bf16.mxu1 %v6364_v10  ;;  %v12137_v35 = vld [vmem:[%s13497_s11 + $0xa48] ss:$244 sps:$4 sm:$0x1f]   ;;  %v12140_v5 = vld [vmem:[%s13497_s11 + $0xa50] ss:$244 sps:$4 sm:$0x1f]  }
 0x278   : > { %v14414_v62 = vpop.f32.mrb[60].mxu0  ;;  %v14416_v32 = vpop.f32.mrb[60].mxu1  ;;  %7339 = vmatprep.mubr.bf16.mxu0 %v15617_v6  ;;  %7380 = vmatprep.mubr.bf16.mxu1 %v15617_v6 }
 0x279   : > { %15628 = vst [vmem:[#allocation38_spill] sm:$0xff] %v14414_v62  ;;  %15629 = vst [vmem:[#allocation39_spill] sm:$0xff] %v14416_v32  ;;  %v11532_v40 = vpop.f32.mrb[61].mxu0  ;;  %v14425_v58 = vpop.f32.mrb[61].mxu1 }
 0x27a   : > { %15630 = vst [vmem:[#allocation40_spill] sm:$0xff] %v14425_v58  ;;  %v3353_v62 = vpop.f32.mrb[62].mxu0  ;;  %v4253_v20 = vpop.f32.mrb[62].mxu1  ;;  %7310 = vmatpush1.bf16.msra.mxu0 %v6355_v53  ;;  %7351 = vmatpush1.bf16.msra.mxu1 %v6361_v19  ;;  %v6370_v40 = vand.u32 %v12139_v11, %v13503_v55  ;;  %v12154_v53 = vld [vmem:[%s13497_s11 + $0xa64] ss:$244 sps:$4 sm:$0x1f]  }
 0x27b   : > { %v11533_v36 = vpop.f32.mrb[63].mxu0  ;;  %v4254_v34 = vpop.f32.mrb[63].mxu1  ;;  %7389 = vmatprep.subr.bf16.mxu0 %v12133_v43  ;;  %7430 = vmatprep.subr.bf16.mxu1 %v12136_v12  ;;  %v12145_v20 = vld [vmem:[%s13497_s11 + $0x874] ss:$244 sps:$4 sm:$0xff]   ;;  %v12148_v43 = vld [vmem:[%s13497_s11 + $0x87c] ss:$244 sps:$4 sm:$0xff]   ;;  %v6388_v44 = vand.u32 %v12154_v53, %v13503_v55 }
 0x27c   : > { %v6367_v34 = vand.u32 %v12137_v35, %v13503_v55  ;;  %v6373_v36 = vand.u32 %v12140_v5, %v13503_v55  ;;  %v12151_v12 = vld [vmem:[%s13497_s11 + $0xa5c] ss:$244 sps:$4 sm:$0x1f]   ;;  %v12146_v62 = vld [vmem:[%s13497_s11 + $0x878] ss:$244 sps:$4 sm:$0xff]  }
 0x27d   : > { %11164 = vmatmul.mubr.msk.bf16.vlgmr.msra.gmra.mrb[168].mxu0 %vm1895_vm2, %v14402_v63  ;;  %11165 = vmatmul.mubr.msk.bf16.vlgmr.msra.gmra.mrb[168].mxu1 %vm1895_vm2, %v14402_v63 }
 0x27e   : > { %7390 = vmatpush1.bf16.msra.mxu0 %v12131_v9  ;;  %7431 = vmatpush1.bf16.msra.mxu1 %v12134_v60  ;;  %v12149_v9 = vld [vmem:[%s13497_s11 + $0xa58] ss:$244 sps:$4 sm:$0x1f]   ;;  %v12152_v60 = vld [vmem:[%s13497_s11 + $0xa60] ss:$244 sps:$4 sm:$0x1f]  }
 0x27f   : > { %7391 = vmatprep.subr.bf16.mxu0 %v6370_v40  ;;  %7432 = vmatprep.subr.bf16.mxu1 %v6376_v48 }
 0x280   : > { %v14442_v19 = vpop.f32.mrb[64].mxu0  ;;  %v14444_v11 = vpop.f32.mrb[64].mxu1  ;;  %7421 = vmatprep.mubr.bf16.mxu0 %v15617_v6  ;;  %7462 = vmatprep.mubr.bf16.mxu1 %v15617_v6 }
 0x281   : > { %15631 = vst [vmem:[#allocation41_spill] sm:$0xff] %v14444_v11  ;;  %v14456_v48 = vpop.f32.mrb[65].mxu0  ;;  %v14458_v40 = vpop.f32.mrb[65].mxu1  ;;  %v6382_v11 = vand.u32 %v12151_v12, %v13503_v55 }
 0x282   : > { %15632 = vst [vmem:[#allocation42_spill] sm:$0xff] %v14458_v40  ;;  %v4294_v29 = vpop.f32.mrb[66].mxu0  ;;  %v4335_v32 = vpop.f32.mrb[66].mxu1  ;;  %7392 = vmatpush1.bf16.msra.mxu0 %v6367_v34  ;;  %7433 = vmatpush1.bf16.msra.mxu1 %v6373_v36  ;;  %v6379_v34 = vand.u32 %v12149_v9, %v13503_v55  ;;  %v12163_v36 = vld [vmem:[%s13497_s11 + $0xa6c] ss:$244 sps:$4 sm:$0x1f]  }
 0x283   : > { %v4295_v35 = vpop.f32.mrb[67].mxu0  ;;  %v4336_v5 = vpop.f32.mrb[67].mxu1  ;;  %7471 = vmatprep.subr.bf16.mxu0 %v12145_v20  ;;  %7512 = vmatprep.subr.bf16.mxu1 %v12148_v43  ;;  %v12157_v29 = vld [vmem:[%s13497_s11 + $0x884] ss:$244 sps:$4 sm:$0xff]   ;;  %v12160_v32 = vld [vmem:[%s13497_s11 + $0x88c] ss:$244 sps:$4 sm:$0xff]   ;;  %v6385_v20 = vand.u32 %v12152_v60, %v13503_v55 }
 0x284   : > { %v12166_v43 = vld [vmem:[%s13497_s11 + $0xa74] ss:$244 sps:$4 sm:$0x1f]   ;;  %v12164_v9 = vld [vmem:[%s13497_s11 + $0xa70] ss:$244 sps:$4 sm:$0x1f]  }
 0x285   : > { %11166 = vmatmul.mubr.msk.bf16.vlgmr.msra.gmra.mrb[172].mxu0 %vm1895_vm2, %v14402_v63  ;;  %11167 = vmatmul.mubr.msk.bf16.vlgmr.msra.gmra.mrb[172].mxu1 %vm1895_vm2, %v14402_v63  ;;  %v6400_v2 = vand.u32 %v12166_v43, %v13503_v55  ;;  %v12174_v43 = vld [vmem:[%s13497_s11 + $0xa78] ss:$244 sps:$4 sm:$0x1f]  }
 0x286   : > { %7472 = vmatpush1.bf16.msra.mxu0 %v12143_v23  ;;  %7513 = vmatpush1.bf16.msra.mxu1 %v12146_v62  ;;  %v12155_v23 = vld [vmem:[%s13497_s11 + $0x880] ss:$244 sps:$4 sm:$0xff]   ;;  %v12158_v62 = vld [vmem:[%s13497_s11 + $0x888] ss:$244 sps:$4 sm:$0xff]  }
 0x287   : > { %7473 = vmatprep.subr.bf16.mxu0 %v6382_v11  ;;  %7514 = vmatprep.subr.bf16.mxu1 %v6388_v44  ;;  %v12161_v11 = vld [vmem:[%s13497_s11 + $0xa68] ss:$244 sps:$4 sm:$0x1f]  }
 0x288   : > { %v14476_v12 = vpop.f32.mrb[68].mxu0  ;;  %v14478_v53 = vpop.f32.mrb[68].mxu1  ;;  %7503 = vmatprep.mubr.bf16.mxu0 %v15617_v6  ;;  %7544 = vmatprep.mubr.bf16.mxu1 %v15617_v6 }
 0x289   : > { %15633 = vst [vmem:[#allocation43_spill] sm:$0xff] %v14478_v53  ;;  %v14488_v35 = vpop.f32.mrb[69].mxu0  ;;  %v14490_v44 = vpop.f32.mrb[69].mxu1  ;;  %v6394_v53 = vand.u32 %v12163_v36, %v13503_v55  ;;  %v12170_v36 = vld [vmem:[%s13497_s11 + $0x890] ss:$244 sps:$4 sm:$0xff]  }
 0x28a   : > { %v4376_v10 = vpop.f32.mrb[70].mxu0  ;;  %v4417_v40 = vpop.f32.mrb[70].mxu1  ;;  %7474 = vmatpush1.bf16.msra.mxu0 %v6379_v34  ;;  %7515 = vmatpush1.bf16.msra.mxu1 %v6385_v20  ;;  %v12167_v20 = vld [vmem:[%s13497_s11 + $0xb70] ss:$244 sps:$4 sm:$0xff]  }
 0x28b   : > { %v4377_v47 = vpop.f32.mrb[71].mxu0  ;;  %v4418_v60 = vpop.f32.mrb[71].mxu1  ;;  %7553 = vmatprep.subr.bf16.mxu0 %v12157_v29  ;;  %7594 = vmatprep.subr.bf16.mxu1 %v12160_v32  ;;  %v6391_v10 = vand.u32 %v12161_v11, %v13503_v55  ;;  %v12169_v40 = vld [vmem:[%s13497_s11 + $0xb74] ss:$244 sps:$4 sm:$0xff]  }
 0x28c   : > { %v6397_v47 = vand.u32 %v12164_v9, %v13503_v55  ;;  %v12173_v29 = vld [vmem:[%s13497_s11 + $0xd5c] ss:$244 sps:$4 sm:$0x1f]   ;;  %v12181_v9 = vld [vmem:[%s13497_s11 + $0xd60] ss:$244 sps:$4 sm:$0x1f]  }
 0x28d   : > { %11168 = vmatmul.mubr.msk.bf16.vlgmr.msra.gmra.mrb[176].mxu0 %vm1895_vm2, %v14402_v63  ;;  %11169 = vmatmul.mubr.msk.bf16.vlgmr.msra.gmra.mrb[176].mxu1 %vm1895_vm2, %v14402_v63  ;;  %v8416_v21 = vand.u32 %v12173_v29, %v13503_v55  ;;  %v12186_v29 = vld [vmem:[%s13497_s11 + $0xd6c] ss:$244 sps:$4 sm:$0x1f]  }
 0x28e   : > { %7554 = vmatpush1.bf16.msra.mxu0 %v12155_v23  ;;  %7595 = vmatpush1.bf16.msra.mxu1 %v12158_v62  ;;  %v12171_v62 = vld [vmem:[%s13497_s11 + $0xd58] ss:$244 sps:$4 sm:$0x1f]  }
 0x28f   : > { %7555 = vmatprep.subr.bf16.mxu0 %v6394_v53  ;;  %7596 = vmatprep.subr.bf16.mxu1 %v6400_v2 }
 0x290   : > { %v14508_v32 = vpop.f32.mrb[72].mxu0  ;;  %v14510_v34 = vpop.f32.mrb[72].mxu1  ;;  %7585 = vmatprep.mubr.bf16.mxu0 %v15617_v6  ;;  %7626 = vmatprep.mubr.bf16.mxu1 %v15617_v6 }
 0x291   : > { %15634 = vst [vmem:[#allocation44_spill] sm:$0xff] %v14510_v34  ;;  %v14520_v2 = vpop.f32.mrb[73].mxu0  ;;  %v14522_v23 = vpop.f32.mrb[73].mxu1  ;;  %v15637_v34 = vmov 0.0  }
 0x292   : > { %15635 = vst [vmem:[#allocation45_spill] sm:$0xff] %v14520_v2  ;;  %15636 = vst [vmem:[#allocation46_spill] sm:$0xff] %v14522_v23  ;;  %v4458_v11 = vpop.f32.mrb[74].mxu0  ;;  %v4499_v58 = vpop.f32.mrb[74].mxu1  ;;  %7556 = vmatpush1.bf16.msra.mxu0 %v6391_v10  ;;  %7597 = vmatpush1.bf16.msra.mxu1 %v6397_v47  ;;  %v8413_v10 = vand.u32 %v12171_v62, %v13503_v55  ;;  %v12180_v47 = vld [vmem:[%s13497_s11 + $0xb84] ss:$244 sps:$4 sm:$0xff]   ;;  %v8428_v23 = vand.u32 %v12186_v29, %v13503_v55 }
 0x293   : > { %v4459_v53 = vpop.f32.mrb[75].mxu0  ;;  %v4500_v5 = vpop.f32.mrb[75].mxu1  ;;  %11542 = vmatprep.subr.bf16.mxu0 %v15637_v34  ;;  %8595 = vmatprep.subr.bf16.mxu1 %v12169_v40  ;;  %v6403_v58 = vand.u32 %v12174_v43, %v13503_v55  ;;  %v12183_v40 = vld [vmem:[%s13497_s11 + $0xd64] ss:$244 sps:$4 sm:$0x1f]  }
 0x294   : > { %v12177_v5 = vld [vmem:[%s13497_s11 + $0xb7c] ss:$244 sps:$4 sm:$0xff]  }
 0x295   : > { %11170 = vmatmul.mubr.msk.bf16.vlgmr.msra.gmra.mrb[180].mxu0 %vm1895_vm2, %v14402_v63  ;;  %11171 = vmatmul.mubr.msk.bf16.vlgmr.msra.gmra.mrb[180].mxu1 %vm1895_vm2, %v14402_v63  ;;  %v12184_v43 = vld [vmem:[%s13497_s11 + $0xd68] ss:$244 sps:$4 sm:$0x1f]  }
 0x296   : > { %11543 = vmatpush3.bf16.msra.mxu0 %v12170_v36  ;;  %8596 = vmatpush1.bf16.msra.mxu1 %v12167_v20  ;;  %v12175_v20 = vld [vmem:[%s13497_s11 + $0xb78] ss:$244 sps:$4 sm:$0xff]   ;;  %v12178_v36 = vld [vmem:[%s13497_s11 + $0xb80] ss:$244 sps:$4 sm:$0xff]  }
 0x297   : > { %11544 = vmatprep.subr.bf16.mxu0 %v15637_v34  ;;  %8597 = vmatprep.subr.bf16.mxu1 %v8416_v21 }
 0x298   : > { %v14543_v53 = vpop.f32.mrb[76].mxu0  ;;  %v14545_v11 = vpop.f32.mrb[76].mxu1  ;;  %11546 = vmatprep.mubr.msk.bf16.mxu0 %vm12414_vm3, %v15637_v34  ;;  %8627 = vmatprep.mubr.bf16.mxu1 %v15617_v6 }
 0x299   : > { %15638 = vst [vmem:[#allocation47_spill] sm:$0xff] %v14543_v53  ;;  %15639 = vst [vmem:[#allocation48_spill] sm:$0xff] %v14545_v11  ;;  %v14556_v62 = vpop.f32.mrb[77].mxu0  ;;  %v14558_v60 = vpop.f32.mrb[77].mxu1  ;;  %v8422_v11 = vand.u32 %v12183_v40, %v13503_v55 }
 0x29a   : > { %15640 = vst [vmem:[#allocation49_spill] sm:$0xff] %v14558_v60  ;;  %v4540_v34 = vpop.f32.mrb[78].mxu0  ;;  %v4581_v2 = vpop.f32.mrb[78].mxu1  ;;  %11545 = vmatpush3.bf16.msra.mxu0 %v6403_v58  ;;  %8598 = vmatpush1.bf16.msra.mxu1 %v8413_v10  ;;  %v12189_v58 = vld [vmem:[%s13497_s11 + $0xb8c] ss:$244 sps:$4 sm:$0xff]  }
 0x29b   : > { %v4541_v53 = vpop.f32.mrb[79].mxu0  ;;  %v4582_v21 = vpop.f32.mrb[79].mxu1  ;;  %8636 = vmatprep.subr.bf16.mxu0 %v12177_v5  ;;  %8677 = vmatprep.subr.bf16.mxu1 %v12180_v47  ;;  %v8419_v34 = vand.u32 %v12181_v9, %v13503_v55  ;;  %v8425_v2 = vand.u32 %v12184_v43, %v13503_v55  ;;  %v12192_v10 = vld [vmem:[%s13497_s11 + $0xb94] ss:$244 sps:$4 sm:$0xff]   ;;  %v12190_v9 = vld [vmem:[%s13497_s11 + $0xb90] ss:$244 sps:$4 sm:$0xff]  }
 0x29c   : > { %v12195_v5 = vld [vmem:[%s13497_s11 + $0xd74] ss:$244 sps:$4 sm:$0x1f]   ;;  %v12198_v47 = vld [vmem:[%s13497_s11 + $0xd7c] ss:$244 sps:$4 sm:$0x1f]  }
 0x29d   : > { %11547 = vmatmul.mubr.msk.bf16.vlgmr.msra.gmra.mrb[184].mxu0 %vm1895_vm2, %v14402_v63  ;;  %11419 = vmatmul.mubr.msk.bf16.vlgmr.msra.gmra.mrb[184].mxu1 %vm1895_vm2, %v14402_v63  ;;  %v12187_v53 = vld [vmem:[%s13497_s11 + $0xb88] ss:$244 sps:$4 sm:$0xff]   ;;  %v12193_v43 = vld [vmem:[%s13497_s11 + $0xd70] ss:$244 sps:$4 sm:$0x1f]   ;;  %v8440_v21 = vand.u32 %v12198_v47, %v13503_v55 }
 0x29e   : > { %8637 = vmatpush1.bf16.msra.mxu0 %v12175_v20  ;;  %8678 = vmatpush1.bf16.msra.mxu1 %v12178_v36  ;;  %v12196_v20 = vld [vmem:[%s13497_s11 + $0xd78] ss:$244 sps:$4 sm:$0x1f]  }
 0x29f   : > { %8638 = vmatprep.subr.bf16.mxu0 %v8422_v11  ;;  %8679 = vmatprep.subr.bf16.mxu1 %v8428_v23 }
 0x2a0   : > { %v14578_v40 = vpop.f32.mrb[80].mxu0  ;;  %v14580_v29 = vpop.f32.mrb[80].mxu1  ;;  %8668 = vmatprep.mubr.bf16.mxu0 %v15617_v6  ;;  %8709 = vmatprep.mubr.bf16.mxu1 %v15617_v6 }
 0x2a1   : > { %15641 = vst [vmem:[#allocation50_spill] sm:$0xff] %v14578_v40  ;;  %15642 = vst [vmem:[#allocation51_spill] sm:$0xff] %v14580_v29  ;;  %v14590_v23 = vpop.f32.mrb[81].mxu0  ;;  %v14592_v36 = vpop.f32.mrb[81].mxu1  ;;  %v8434_v29 = vand.u32 %v12195_v5, %v13503_v55 }
 0x2a2   : > { %15643 = vst [vmem:[#allocation52_spill] sm:$0xff] %v14592_v36  ;;  %v4622_v60 = vpop.f32.mrb[82].mxu0  ;;  %v4663_v1 = vpop.f32.mrb[82].mxu1  ;;  %8639 = vmatpush1.bf16.msra.mxu0 %v8419_v34  ;;  %8680 = vmatpush1.bf16.msra.mxu1 %v8425_v2  ;;  %v12201_v34 = vld [vmem:[%s13497_s11 + $0xb9c] ss:$244 sps:$4 sm:$0xff]  }
 0x2a3   : > { %v4623_v40 = vpop.f32.mrb[83].mxu0  ;;  %v4664_v11 = vpop.f32.mrb[83].mxu1  ;;  %8718 = vmatprep.subr.bf16.mxu0 %v12189_v58  ;;  %8759 = vmatprep.subr.bf16.mxu1 %v12192_v10  ;;  %v8431_v1 = vand.u32 %v12193_v43, %v13503_v55  ;;  %v8437_v60 = vand.u32 %v12196_v20, %v13503_v55  ;;  %v12204_v2 = vld [vmem:[%s13497_s11 + $0xba4] ss:$244 sps:$4 sm:$0xff]  }
 0x2a4   : > { %v12207_v58 = vld [vmem:[%s13497_s11 + $0xd84] ss:$244 sps:$4 sm:$0x1f]   ;;  %v12210_v10 = vld [vmem:[%s13497_s11 + $0xd8c] ss:$244 sps:$4 sm:$0x1f]  }
 0x2a5   : > { %11420 = vmatmul.mubr.msk.bf16.vlgmr.msra.gmra.mrb[188].mxu0 %vm1895_vm2, %v14402_v63  ;;  %11421 = vmatmul.mubr.msk.bf16.vlgmr.msra.gmra.mrb[188].mxu1 %vm1895_vm2, %v14402_v63  ;;  %v12199_v40 = vld [vmem:[%s13497_s11 + $0xb98] ss:$244 sps:$4 sm:$0xff]   ;;  %v12205_v43 = vld [vmem:[%s13497_s11 + $0xd80] ss:$244 sps:$4 sm:$0x1f]  }
 0x2a6   : > { %8719 = vmatpush1.bf16.msra.mxu0 %v12187_v53  ;;  %8760 = vmatpush1.bf16.msra.mxu1 %v12190_v9  ;;  %v12202_v53 = vld [vmem:[%s13497_s11 + $0xba0] ss:$244 sps:$4 sm:$0xff]   ;;  %v12208_v9 = vld [vmem:[%s13497_s11 + $0xd88] ss:$244 sps:$4 sm:$0x1f]  }
 0x2a7   : > { %8720 = vmatprep.subr.bf16.mxu0 %v8434_v29  ;;  %8761 = vmatprep.subr.bf16.mxu1 %v8440_v21  ;;  %v8452_v21 = vand.u32 %v12210_v10, %v13503_v55 }
 0x2a8   : > { %v14612_v5 = vpop.f32.mrb[84].mxu0  ;;  %v14614_v47 = vpop.f32.mrb[84].mxu1  ;;  %8750 = vmatprep.mubr.bf16.mxu0 %v15617_v6  ;;  %8791 = vmatprep.mubr.bf16.mxu1 %v15617_v6 }
 0x2a9   : > { %15644 = vst [vmem:[#allocation53_spill] sm:$0xff] %v14612_v5  ;;  %15645 = vst [vmem:[#allocation54_spill] sm:$0xff] %v14614_v47  ;;  %v14624_v20 = vpop.f32.mrb[85].mxu0  ;;  %v14626_v11 = vpop.f32.mrb[85].mxu1  ;;  %v8446_v47 = vand.u32 %v12207_v58, %v13503_v55 }
 0x2aa   : > { %15646 = vst [vmem:[#allocation55_spill] sm:$0xff] %v14626_v11  ;;  %v4704_v36 = vpop.f32.mrb[86].mxu0  ;;  %v4745_v17 = vpop.f32.mrb[86].mxu1  ;;  %8721 = vmatpush1.bf16.msra.mxu0 %v8431_v1  ;;  %8762 = vmatpush1.bf16.msra.mxu1 %v8437_v60  ;;  %v12213_v1 = vld [vmem:[%s13497_s11 + $0xbac] ss:$244 sps:$4 sm:$0xff]  }
 0x2ab   : > { %v4705_v5 = vpop.f32.mrb[87].mxu0  ;;  %v4746_v29 = vpop.f32.mrb[87].mxu1  ;;  %8800 = vmatprep.subr.bf16.mxu0 %v12201_v34  ;;  %8841 = vmatprep.subr.bf16.mxu1 %v12204_v2  ;;  %v8443_v17 = vand.u32 %v12205_v43, %v13503_v55  ;;  %v8449_v36 = vand.u32 %v12208_v9, %v13503_v55  ;;  %v12216_v60 = vld [vmem:[%s13497_s11 + $0xbb4] ss:$244 sps:$4 sm:$0xff]  }
 0x2ac   : > { %v12219_v34 = vld [vmem:[%s13497_s11 + $0xd94] ss:$244 sps:$4 sm:$0x1f]   ;;  %v12222_v2 = vld [vmem:[%s13497_s11 + $0xd9c] ss:$244 sps:$4 sm:$0x1f]  }
 0x2ad   : > { %11422 = vmatmul.mubr.msk.bf16.vlgmr.msra.gmra.mrb[192].mxu0 %vm1895_vm2, %v14402_v63  ;;  %11423 = vmatmul.mubr.msk.bf16.vlgmr.msra.gmra.mrb[192].mxu1 %vm1895_vm2, %v14402_v63  ;;  %v12211_v5 = vld [vmem:[%s13497_s11 + $0xba8] ss:$244 sps:$4 sm:$0xff]   ;;  %v12217_v43 = vld [vmem:[%s13497_s11 + $0xd90] ss:$244 sps:$4 sm:$0x1f]  }
 0x2ae   : > { %8801 = vmatpush1.bf16.msra.mxu0 %v12199_v40  ;;  %8842 = vmatpush1.bf16.msra.mxu1 %v12202_v53  ;;  %v12214_v40 = vld [vmem:[%s13497_s11 + $0xbb0] ss:$244 sps:$4 sm:$0xff]   ;;  %v12220_v53 = vld [vmem:[%s13497_s11 + $0xd98] ss:$244 sps:$4 sm:$0x1f]  }
 0x2af   : > { %8802 = vmatprep.subr.bf16.mxu0 %v8446_v47  ;;  %8843 = vmatprep.subr.bf16.mxu1 %v8452_v21  ;;  %v8464_v21 = vand.u32 %v12222_v2, %v13503_v55 }
 0x2b0   : > { %v14646_v58 = vpop.f32.mrb[88].mxu0  ;;  %v14648_v10 = vpop.f32.mrb[88].mxu1  ;;  %8832 = vmatprep.mubr.bf16.mxu0 %v15617_v6  ;;  %8873 = vmatprep.mubr.bf16.mxu1 %v15617_v6 }
 0x2b1   : > { %15647 = vst [vmem:[#allocation56_spill] sm:$0xff] %v14646_v58  ;;  %15648 = vst [vmem:[#allocation57_spill] sm:$0xff] %v14648_v10  ;;  %v14658_v9 = vpop.f32.mrb[89].mxu0  ;;  %v14660_v29 = vpop.f32.mrb[89].mxu1  ;;  %v8458_v10 = vand.u32 %v12219_v34, %v13503_v55 }
 0x2b2   : > { %15649 = vst [vmem:[#allocation58_spill] sm:$0xff] %v14660_v29  ;;  %v4786_v11 = vpop.f32.mrb[90].mxu0  ;;  %v4827_v52 = vpop.f32.mrb[90].mxu1  ;;  %8803 = vmatpush1.bf16.msra.mxu0 %v8443_v17  ;;  %8844 = vmatpush1.bf16.msra.mxu1 %v8449_v36  ;;  %v12225_v17 = vld [vmem:[%s13497_s11 + $0xbbc] ss:$244 sps:$4 sm:$0xff]  }
 0x2b3   : > { %v4787_v58 = vpop.f32.mrb[91].mxu0  ;;  %v4828_v47 = vpop.f32.mrb[91].mxu1  ;;  %8882 = vmatprep.subr.bf16.mxu0 %v12213_v1  ;;  %8923 = vmatprep.subr.bf16.mxu1 %v12216_v60  ;;  %v8455_v52 = vand.u32 %v12217_v43, %v13503_v55  ;;  %v8461_v11 = vand.u32 %v12220_v53, %v13503_v55  ;;  %v12228_v36 = vld [vmem:[%s13497_s11 + $0xbc4] ss:$244 sps:$4 sm:$0xff]  }
 0x2b4   : > { %v12231_v1 = vld [vmem:[%s13497_s11 + $0xda4] ss:$244 sps:$4 sm:$0x1f]   ;;  %v12234_v60 = vld [vmem:[%s13497_s11 + $0xdac] ss:$244 sps:$4 sm:$0x1f]  }
 0x2b5   : > { %11424 = vmatmul.mubr.msk.bf16.vlgmr.msra.gmra.mrb[196].mxu0 %vm1895_vm2, %v14402_v63  ;;  %11425 = vmatmul.mubr.msk.bf16.vlgmr.msra.gmra.mrb[196].mxu1 %vm1895_vm2, %v14402_v63  ;;  %v12223_v58 = vld [vmem:[%s13497_s11 + $0xbb8] ss:$244 sps:$4 sm:$0xff]   ;;  %v12229_v43 = vld [vmem:[%s13497_s11 + $0xda0] ss:$244 sps:$4 sm:$0x1f]  }
 0x2b6   : > { %8883 = vmatpush1.bf16.msra.mxu0 %v12211_v5  ;;  %8924 = vmatpush1.bf16.msra.mxu1 %v12214_v40  ;;  %v12226_v5 = vld [vmem:[%s13497_s11 + $0xbc0] ss:$244 sps:$4 sm:$0xff]   ;;  %v12232_v40 = vld [vmem:[%s13497_s11 + $0xda8] ss:$244 sps:$4 sm:$0x1f]  }
 0x2b7   : > { %8884 = vmatprep.subr.bf16.mxu0 %v8458_v10  ;;  %8925 = vmatprep.subr.bf16.mxu1 %v8464_v21  ;;  %v8476_v21 = vand.u32 %v12234_v60, %v13503_v55 }
 0x2b8   : > { %v14680_v34 = vpop.f32.mrb[92].mxu0  ;;  %v14682_v2 = vpop.f32.mrb[92].mxu1  ;;  %8914 = vmatprep.mubr.bf16.mxu0 %v15617_v6  ;;  %8955 = vmatprep.mubr.bf16.mxu1 %v15617_v6 }
 0x2b9   : > { %15650 = vst [vmem:[#allocation59_spill] sm:$0xff] %v14680_v34  ;;  %15651 = vst [vmem:[#allocation60_spill] sm:$0xff] %v14682_v2  ;;  %v14692_v53 = vpop.f32.mrb[93].mxu0  ;;  %v14694_v47 = vpop.f32.mrb[93].mxu1  ;;  %v8470_v2 = vand.u32 %v12231_v1, %v13503_v55 }
 0x2ba   : > { %15652 = vst [vmem:[#allocation61_spill] sm:$0xff] %v14694_v47  ;;  %v4868_v29 = vpop.f32.mrb[94].mxu0  ;;  %v4909_v26 = vpop.f32.mrb[94].mxu1  ;;  %8885 = vmatpush1.bf16.msra.mxu0 %v8455_v52  ;;  %8926 = vmatpush1.bf16.msra.mxu1 %v8461_v11  ;;  %v12237_v52 = vld [vmem:[%s13497_s11 + $0xbcc] ss:$244 sps:$4 sm:$0xff]  }
 0x2bb   : > { %v4869_v34 = vpop.f32.mrb[95].mxu0  ;;  %v4910_v10 = vpop.f32.mrb[95].mxu1  ;;  %8964 = vmatprep.subr.bf16.mxu0 %v12225_v17  ;;  %9005 = vmatprep.subr.bf16.mxu1 %v12228_v36  ;;  %v8467_v26 = vand.u32 %v12229_v43, %v13503_v55  ;;  %v8473_v29 = vand.u32 %v12232_v40, %v13503_v55  ;;  %v12240_v11 = vld [vmem:[%s13497_s11 + $0xbd4] ss:$244 sps:$4 sm:$0xff]  }
 0x2bc   : > { %v12243_v17 = vld [vmem:[%s13497_s11 + $0xdb4] ss:$244 sps:$4 sm:$0x1f]   ;;  %v12246_v36 = vld [vmem:[%s13497_s11 + $0xdbc] ss:$244 sps:$4 sm:$0x1f]  }
 0x2bd   : > { %11426 = vmatmul.mubr.msk.bf16.vlgmr.msra.gmra.mrb[200].mxu0 %vm1895_vm2, %v14402_v63  ;;  %11427 = vmatmul.mubr.msk.bf16.vlgmr.msra.gmra.mrb[200].mxu1 %vm1895_vm2, %v14402_v63  ;;  %v12235_v34 = vld [vmem:[%s13497_s11 + $0xbc8] ss:$244 sps:$4 sm:$0xff]   ;;  %v12241_v43 = vld [vmem:[%s13497_s11 + $0xdb0] ss:$244 sps:$4 sm:$0x1f]  }
 0x2be   : > { %8965 = vmatpush1.bf16.msra.mxu0 %v12223_v58  ;;  %9006 = vmatpush1.bf16.msra.mxu1 %v12226_v5  ;;  %v12238_v58 = vld [vmem:[%s13497_s11 + $0xbd0] ss:$244 sps:$4 sm:$0xff]   ;;  %v12244_v5 = vld [vmem:[%s13497_s11 + $0xdb8] ss:$244 sps:$4 sm:$0x1f]  }
 0x2bf   : > { %8966 = vmatprep.subr.bf16.mxu0 %v8470_v2  ;;  %9007 = vmatprep.subr.bf16.mxu1 %v8476_v21  ;;  %v8488_v21 = vand.u32 %v12246_v36, %v13503_v55 }
 0x2c0   : > { %v14714_v1 = vpop.f32.mrb[96].mxu0  ;;  %v14716_v60 = vpop.f32.mrb[96].mxu1  ;;  %8996 = vmatprep.mubr.bf16.mxu0 %v15617_v6  ;;  %9037 = vmatprep.mubr.bf16.mxu1 %v15617_v6 }
 0x2c1   : > { %15653 = vst [vmem:[#allocation62_spill] sm:$0xff] %v14714_v1  ;;  %15654 = vst [vmem:[#allocation63_spill] sm:$0xff] %v14716_v60  ;;  %v14726_v40 = vpop.f32.mrb[97].mxu0  ;;  %v14728_v10 = vpop.f32.mrb[97].mxu1  ;;  %v8482_v60 = vand.u32 %v12243_v17, %v13503_v55 }
 0x2c2   : > { %15655 = vst [vmem:[#allocation64_spill] sm:$0xff] %v14728_v10  ;;  %v4950_v47 = vpop.f32.mrb[98].mxu0  ;;  %v4991_v0 = vpop.f32.mrb[98].mxu1  ;;  %8967 = vmatpush1.bf16.msra.mxu0 %v8467_v26  ;;  %9008 = vmatpush1.bf16.msra.mxu1 %v8473_v29  ;;  %v12249_v26 = vld [vmem:[%s13497_s11 + $0xbdc] ss:$244 sps:$4 sm:$0xff]  }
 0x2c3   : > { %v4951_v1 = vpop.f32.mrb[99].mxu0  ;;  %v4992_v2 = vpop.f32.mrb[99].mxu1  ;;  %9046 = vmatprep.subr.bf16.mxu0 %v12237_v52  ;;  %9087 = vmatprep.subr.bf16.mxu1 %v12240_v11  ;;  %v8479_v0 = vand.u32 %v12241_v43, %v13503_v55  ;;  %v8485_v47 = vand.u32 %v12244_v5, %v13503_v55  ;;  %v12252_v29 = vld [vmem:[%s13497_s11 + $0xbe4] ss:$244 sps:$4 sm:$0xff]  }
 0x2c4   : > { %v12255_v52 = vld [vmem:[%s13497_s11 + $0xdc4] ss:$244 sps:$4 sm:$0x1f]   ;;  %v12258_v11 = vld [vmem:[%s13497_s11 + $0xdcc] ss:$244 sps:$4 sm:$0x1f]  }
 0x2c5   : > { %11428 = vmatmul.mubr.msk.bf16.vlgmr.msra.gmra.mrb[204].mxu0 %vm1895_vm2, %v14402_v63  ;;  %11429 = vmatmul.mubr.msk.bf16.vlgmr.msra.gmra.mrb[204].mxu1 %vm1895_vm2, %v14402_v63  ;;  %v12247_v1 = vld [vmem:[%s13497_s11 + $0xbd8] ss:$244 sps:$4 sm:$0xff]   ;;  %v12253_v43 = vld [vmem:[%s13497_s11 + $0xdc0] ss:$244 sps:$4 sm:$0x1f]  }
 0x2c6   : > { %9047 = vmatpush1.bf16.msra.mxu0 %v12235_v34  ;;  %9088 = vmatpush1.bf16.msra.mxu1 %v12238_v58  ;;  %v12250_v34 = vld [vmem:[%s13497_s11 + $0xbe0] ss:$244 sps:$4 sm:$0xff]   ;;  %v12256_v58 = vld [vmem:[%s13497_s11 + $0xdc8] ss:$244 sps:$4 sm:$0x1f]  }
 0x2c7   : > { %9048 = vmatprep.subr.bf16.mxu0 %v8482_v60  ;;  %9089 = vmatprep.subr.bf16.mxu1 %v8488_v21  ;;  %v8500_v21 = vand.u32 %v12258_v11, %v13503_v55 }
 0x2c8   : > { %v14748_v17 = vpop.f32.mrb[100].mxu0  ;;  %v14750_v36 = vpop.f32.mrb[100].mxu1  ;;  %9078 = vmatprep.mubr.bf16.mxu0 %v15617_v6  ;;  %9119 = vmatprep.mubr.bf16.mxu1 %v15617_v6 }
 0x2c9   : > { %15656 = vst [vmem:[#allocation65_spill] sm:$0xff] %v14748_v17  ;;  %15657 = vst [vmem:[#allocation66_spill] sm:$0xff] %v14750_v36  ;;  %v14760_v5 = vpop.f32.mrb[101].mxu0  ;;  %v14762_v2 = vpop.f32.mrb[101].mxu1  ;;  %v8494_v36 = vand.u32 %v12255_v52, %v13503_v55 }
 0x2ca   : > { %15658 = vst [vmem:[#allocation67_spill] sm:$0xff] %v14760_v5  ;;  %15659 = vst [vmem:[#allocation68_spill] sm:$0xff] %v14762_v2  ;;  %v5032_v10 = vpop.f32.mrb[102].mxu0  ;;  %v5073_v56 = vpop.f32.mrb[102].mxu1  ;;  %9049 = vmatpush1.bf16.msra.mxu0 %v8479_v0  ;;  %9090 = vmatpush1.bf16.msra.mxu1 %v8485_v47  ;;  %v12261_v0 = vld [vmem:[%s13497_s11 + $0xbec] ss:$244 sps:$4 sm:$0xff]  }
 0x2cb   : > { %v5033_v17 = vpop.f32.mrb[103].mxu0  ;;  %v5074_v60 = vpop.f32.mrb[103].mxu1  ;;  %9128 = vmatprep.subr.bf16.mxu0 %v12249_v26  ;;  %9169 = vmatprep.subr.bf16.mxu1 %v12252_v29  ;;  %v8491_v56 = vand.u32 %v12253_v43, %v13503_v55  ;;  %v8497_v10 = vand.u32 %v12256_v58, %v13503_v55  ;;  %v12264_v47 = vld [vmem:[%s13497_s11 + $0xbf4] ss:$244 sps:$4 sm:$0xff]  }
 0x2cc   : > { %v12267_v26 = vld [vmem:[%s13497_s11 + $0xdd4] ss:$244 sps:$4 sm:$0x1f]   ;;  %v12270_v29 = vld [vmem:[%s13497_s11 + $0xddc] ss:$244 sps:$4 sm:$0x1f]  }
 0x2cd   : > { %11430 = vmatmul.mubr.msk.bf16.vlgmr.msra.gmra.mrb[208].mxu0 %vm1895_vm2, %v14402_v63  ;;  %11431 = vmatmul.mubr.msk.bf16.vlgmr.msra.gmra.mrb[208].mxu1 %vm1895_vm2, %v14402_v63  ;;  %v12259_v17 = vld [vmem:[%s13497_s11 + $0xbe8] ss:$244 sps:$4 sm:$0xff]   ;;  %v12268_v58 = vld [vmem:[%s13497_s11 + $0xdd8] ss:$244 sps:$4 sm:$0x1f]   ;;  %v8512_v39 = vand.u32 %v12270_v29, %v13503_v55 }
 0x2ce   : > { %9129 = vmatpush1.bf16.msra.mxu0 %v12247_v1  ;;  %9170 = vmatpush1.bf16.msra.mxu1 %v12250_v34  ;;  %v12262_v1 = vld [vmem:[%s13497_s11 + $0xbf0] ss:$244 sps:$4 sm:$0xff]   ;;  %v12277_v5 = vld [vmem:[%s13497_s11 + $0xde0] ss:$244 sps:$4 sm:$0x1f]  }
 0x2cf   : > { %9130 = vmatprep.subr.bf16.mxu0 %v8494_v36  ;;  %9171 = vmatprep.subr.bf16.mxu1 %v8500_v21  ;;  %v12316_v60 = vld [vmem:[%s13497_s11 + $0xe18] ss:$244 sps:$4 sm:$0x1f]  }
 0x2d0   : > { %v14782_v52 = vpop.f32.mrb[104].mxu0  ;;  %v14784_v11 = vpop.f32.mrb[104].mxu1  ;;  %9160 = vmatprep.mubr.bf16.mxu0 %v15617_v6  ;;  %9201 = vmatprep.mubr.bf16.mxu1 %v15617_v6 }
 0x2d1   : > { %15660 = vst [vmem:[#allocation69_spill] sm:$0xff] %v14782_v52  ;;  %15661 = vst [vmem:[#allocation70_spill] sm:$0xff] %v14784_v11  ;;  %v14794_v43 = vpop.f32.mrb[105].mxu0  ;;  %v14796_v21 = vpop.f32.mrb[105].mxu1  ;;  %v8506_v11 = vand.u32 %v12267_v26, %v13503_v55 }
 0x2d2   : > { %15664 = vst [vmem:[#allocation71_spill] sm:$0xff] %v14794_v43  ;;  %15665 = vst [vmem:[#allocation72_spill] sm:$0xff] %v14796_v21  ;;  %v5114_v51 = vpop.f32.mrb[106].mxu0  ;;  %v5155_v38 = vpop.f32.mrb[106].mxu1  ;;  %9131 = vmatpush1.bf16.msra.mxu0 %v8491_v56  ;;  %9172 = vmatpush1.bf16.msra.mxu1 %v8497_v10  ;;  %v12273_v56 = vld [vmem:[%s13497_s11 + $0xbfc] ss:$244 sps:$4 sm:$0xff]  }
 0x2d3   : > { %v5115_v52 = vpop.f32.mrb[107].mxu0  ;;  %v5156_v36 = vpop.f32.mrb[107].mxu1  ;;  %9210 = vmatprep.subr.bf16.mxu0 %v12261_v0  ;;  %9251 = vmatprep.subr.bf16.mxu1 %v12264_v47  ;;  %v8503_v38 = vand.u32 %v12265_v27, %v13503_v55  ;;  %v8509_v51 = vand.u32 %v12268_v58, %v13503_v55  ;;  %v12276_v10 = vld [vmem:[%s13497_s11 + $0xc04] ss:$244 sps:$4 sm:$0xff]   ;;  %v12274_v27 = vld [vmem:[%s13497_s11 + $0xc00] ss:$244 sps:$4 sm:$0xff]  }
 0x2d4   : > { %v12279_v0 = vld [vmem:[%s13497_s11 + $0xde4] ss:$244 sps:$4 sm:$0x1f]   ;;  %v12282_v47 = vld [vmem:[%s13497_s11 + $0xdec] ss:$244 sps:$4 sm:$0x1f]  }
 0x2d5   : > { %11432 = vmatmul.mubr.msk.bf16.vlgmr.msra.gmra.mrb[212].mxu0 %vm1895_vm2, %v14402_v63  ;;  %11433 = vmatmul.mubr.msk.bf16.vlgmr.msra.gmra.mrb[212].mxu1 %vm1895_vm2, %v14402_v63  ;;  %v12271_v52 = vld [vmem:[%s13497_s11 + $0xbf8] ss:$244 sps:$4 sm:$0xff]   ;;  %v8524_v33 = vand.u32 %v12282_v47, %v13503_v55  ;;  %v12313_v43 = vld [vmem:[%s13497_s11 + $0xe10] ss:$244 sps:$4 sm:$0x1f]  }
 0x2d6   : > { %9211 = vmatpush1.bf16.msra.mxu0 %v12259_v17  ;;  %9252 = vmatpush1.bf16.msra.mxu1 %v12262_v1  ;;  %v12280_v1 = vld [vmem:[%s13497_s11 + $0xde8] ss:$244 sps:$4 sm:$0x1f]  }
 0x2d7   : > { %9212 = vmatprep.subr.bf16.mxu0 %v8506_v11  ;;  %9253 = vmatprep.subr.bf16.mxu1 %v8512_v39 }
 0x2d8   : > { %v14816_v26 = vpop.f32.mrb[108].mxu0  ;;  %v14818_v29 = vpop.f32.mrb[108].mxu1  ;;  %9242 = vmatprep.mubr.bf16.mxu0 %v15617_v6  ;;  %9283 = vmatprep.mubr.bf16.mxu1 %v15617_v6 }
 0x2d9   : > { %15668 = vst [vmem:[#allocation73_spill] sm:$0xff] %v14816_v26  ;;  %15669 = vst [vmem:[#allocation74_spill] sm:$0xff] %v14818_v29  ;;  %v14828_v39 = vpop.f32.mrb[109].mxu0  ;;  %v14830_v36 = vpop.f32.mrb[109].mxu1  ;;  %v8518_v29 = vand.u32 %v12279_v0, %v13503_v55 }
 0x2da   : > { %15672 = vst [vmem:[#allocation75_spill] sm:$0xff] %v14828_v39  ;;  %15673 = vst [vmem:[#allocation76_spill] sm:$0xff] %v14830_v36  ;;  %v5196_v2 = vpop.f32.mrb[110].mxu0  ;;  %v5237_v34 = vpop.f32.mrb[110].mxu1  ;;  %9213 = vmatpush1.bf16.msra.mxu0 %v8503_v38  ;;  %9254 = vmatpush1.bf16.msra.mxu1 %v8509_v51  ;;  %v12285_v38 = vld [vmem:[%s13497_s11 + $0xc0c] ss:$244 sps:$4 sm:$0xff]  }
 0x2db   : > { %v5197_v26 = vpop.f32.mrb[111].mxu0  ;;  %v5238_v11 = vpop.f32.mrb[111].mxu1  ;;  %9292 = vmatprep.subr.bf16.mxu0 %v12273_v56  ;;  %9333 = vmatprep.subr.bf16.mxu1 %v12276_v10  ;;  %v8515_v2 = vand.u32 %v12277_v5, %v13503_v55  ;;  %v8521_v34 = vand.u32 %v12280_v1, %v13503_v55  ;;  %v12288_v51 = vld [vmem:[%s13497_s11 + $0xc14] ss:$244 sps:$4 sm:$0xff]   ;;  %v12286_v5 = vld [vmem:[%s13497_s11 + $0xc10] ss:$244 sps:$4 sm:$0xff]  }
 0x2dc   : > { %v12291_v56 = vld [vmem:[%s13497_s11 + $0xdf4] ss:$244 sps:$4 sm:$0x1f]   ;;  %v12294_v10 = vld [vmem:[%s13497_s11 + $0xdfc] ss:$244 sps:$4 sm:$0x1f]  }
 0x2dd   : > { %11434 = vmatmul.mubr.msk.bf16.vlgmr.msra.gmra.mrb[216].mxu0 %vm1895_vm2, %v14402_v63  ;;  %11435 = vmatmul.mubr.msk.bf16.vlgmr.msra.gmra.mrb[216].mxu1 %vm1895_vm2, %v14402_v63  ;;  %v12283_v63 = vld [vmem:[%s13497_s11 + $0xc08] ss:$244 sps:$4 sm:$0xff]   ;;  %v12289_v11 = vld [vmem:[%s13497_s11 + $0xdf0] ss:$244 sps:$4 sm:$0x1f]   ;;  %v8536_v36 = vand.u32 %v12294_v10, %v13503_v55 }
 0x2de   : > { %9293 = vmatpush1.bf16.msra.mxu0 %v12271_v52  ;;  %9334 = vmatpush1.bf16.msra.mxu1 %v12274_v27  ;;  %v12292_v52 = vld [vmem:[%s13497_s11 + $0xdf8] ss:$244 sps:$4 sm:$0x1f]  }
 0x2df   : > { %9294 = vmatprep.subr.bf16.mxu0 %v8518_v29  ;;  %9335 = vmatprep.subr.bf16.mxu1 %v8524_v33 }
 0x2e0   : > { %v14850_v0 = vpop.f32.mrb[112].mxu0  ;;  %v14852_v47 = vpop.f32.mrb[112].mxu1  ;;  %9324 = vmatprep.mubr.bf16.mxu0 %v15617_v6  ;;  %9365 = vmatprep.mubr.bf16.mxu1 %v15617_v6 }
 0x2e1   : > { %15676 = vst [vmem:[#allocation77_spill] sm:$0xff] %v14850_v0  ;;  %15677 = vst [vmem:[#allocation78_spill] sm:$0xff] %v14852_v47  ;;  %v14862_v33 = vpop.f32.mrb[113].mxu0  ;;  %v14864_v1 = vpop.f32.mrb[113].mxu1  ;;  %v8530_v47 = vand.u32 %v12291_v56, %v13503_v55 }
 0x2e2   : > { %15680 = vst [vmem:[#allocation79_spill] sm:$0xff] %v14862_v33  ;;  %15681 = vst [vmem:[#allocation80_spill] sm:$0xff] %v14864_v1  ;;  %v5278_v39 = vpop.f32.mrb[114].mxu0  ;;  %v5319_v21 = vpop.f32.mrb[114].mxu1  ;;  %9295 = vmatpush1.bf16.msra.mxu0 %v8515_v2  ;;  %9336 = vmatpush1.bf16.msra.mxu1 %v8521_v34  ;;  %v8533_v2 = vand.u32 %v12292_v52, %v13503_v55  ;;  %v12297_v34 = vld [vmem:[%s13497_s11 + $0xc1c] ss:$244 sps:$4 sm:$0xff]  }
 0x2e3   : > { %v5279_v0 = vpop.f32.mrb[115].mxu0  ;;  %v5320_v29 = vpop.f32.mrb[115].mxu1  ;;  %9374 = vmatprep.subr.bf16.mxu0 %v12285_v38  ;;  %9415 = vmatprep.subr.bf16.mxu1 %v12288_v51  ;;  %v14877_v39 = vld [vmem:[%s15499_s1] sm:$0xf]  ;;  %v8527_v21 = vand.u32 %v12289_v11, %v13503_v55  ;;  %v12300_v38 = vld [vmem:[%s13497_s11 + $0xc24] ss:$244 sps:$4 sm:$0xff]  }
 0x2e4   : > { %v12303_v51 = vld [vmem:[%s13497_s11 + $0xe04] ss:$244 sps:$4 sm:$0x1f]   ;;  %v12306_v56 = vld [vmem:[%s13497_s11 + $0xe0c] ss:$244 sps:$4 sm:$0x1f]  }
 0x2e5   : > { %11436 = vmatmul.mubr.msk.bf16.vlgmr.msra.gmra.mrb[220].mxu0 %vm1895_vm2, %v14877_v39  ;;  %11437 = vmatmul.mubr.msk.bf16.vlgmr.msra.gmra.mrb[220].mxu1 %vm1895_vm2, %v14877_v39  ;;  %v12301_v1 = vld [vmem:[%s13497_s11 + $0xe00] ss:$244 sps:$4 sm:$0x1f]   ;;  %v12304_v29 = vld [vmem:[%s13497_s11 + $0xe08] ss:$244 sps:$4 sm:$0x1f]   ;;  %v8548_v27 = vand.u32 %v12306_v56, %v13503_v55 }
 0x2e6   : > { %9375 = vmatpush1.bf16.msra.mxu0 %v12283_v63  ;;  %9416 = vmatpush1.bf16.msra.mxu1 %v12286_v5  ;;  %v12295_v63 = vld [vmem:[%s13497_s11 + $0xc18] ss:$244 sps:$4 sm:$0xff]   ;;  %v12298_v5 = vld [vmem:[%s13497_s11 + $0xc20] ss:$244 sps:$4 sm:$0xff]  }
 0x2e7   : > { %9376 = vmatprep.subr.bf16.mxu0 %v8530_v47  ;;  %9417 = vmatprep.subr.bf16.mxu1 %v8536_v36 }
 0x2e8   : > { %v14889_v10 = vpop.f32.mrb[116].mxu0  ;;  %v14891_v0 = vpop.f32.mrb[116].mxu1  ;;  %9406 = vmatprep.mubr.bf16.mxu0 %v15617_v6  ;;  %9447 = vmatprep.mubr.bf16.mxu1 %v15617_v6 }
 0x2e9   : > { %15684 = vst [vmem:[#allocation81_spill] sm:$0xff] %v14889_v10  ;;  %15685 = vst [vmem:[#allocation82_spill] sm:$0xff] %v14891_v0  ;;  %v14901_v36 = vpop.f32.mrb[117].mxu0  ;;  %v14903_v58 = vpop.f32.mrb[117].mxu1  ;;  %v8542_v0 = vand.u32 %v12303_v51, %v13503_v55 }
 0x2ea   : > { %15688 = vst [vmem:[#allocation83_spill] sm:$0xff] %v14901_v36  ;;  %15689 = vst [vmem:[#allocation84_spill] sm:$0xff] %v14903_v58  ;;  %v5360_v26 = vpop.f32.mrb[118].mxu0  ;;  %v5401_v17 = vpop.f32.mrb[118].mxu1  ;;  %9377 = vmatpush1.bf16.msra.mxu0 %v8527_v21  ;;  %9418 = vmatpush1.bf16.msra.mxu1 %v8533_v2  ;;  %v12309_v21 = vld [vmem:[%s13497_s11 + $0xc2c] ss:$244 sps:$4 sm:$0xff]  }
 0x2eb   : > { %v5361_v10 = vpop.f32.mrb[119].mxu0  ;;  %v5402_v47 = vpop.f32.mrb[119].mxu1  ;;  %9456 = vmatprep.subr.bf16.mxu0 %v12297_v34  ;;  %9497 = vmatprep.subr.bf16.mxu1 %v12300_v38  ;;  %v8539_v17 = vand.u32 %v12301_v1, %v13503_v55  ;;  %v8545_v26 = vand.u32 %v12304_v29, %v13503_v55  ;;  %v12312_v2 = vld [vmem:[%s13497_s11 + $0xc34] ss:$244 sps:$4 sm:$0xff]   ;;  %v12310_v1 = vld [vmem:[%s13497_s11 + $0xc30] ss:$244 sps:$4 sm:$0xff]  }
 0x2ec   : > { %v12315_v34 = vld [vmem:[%s13497_s11 + $0xe14] ss:$244 sps:$4 sm:$0x1f]   ;;  %v12318_v38 = vld [vmem:[%s13497_s11 + $0xe1c] ss:$244 sps:$4 sm:$0x1f]  }
 0x2ed   : > { %11438 = vmatmul.mubr.msk.bf16.vlgmr.msra.gmra.mrb[224].mxu0 %vm1895_vm2, %v14877_v39  ;;  %11439 = vmatmul.mubr.msk.bf16.vlgmr.msra.gmra.mrb[224].mxu1 %vm1895_vm2, %v14877_v39  ;;  %v12307_v10 = vld [vmem:[%s13497_s11 + $0xc28] ss:$244 sps:$4 sm:$0xff]   ;;  %v15701_v29 = vld [vmem:[#allocation3_spill] sm:$0xff] }
 0x2ee   : > { %9457 = vmatpush1.bf16.msra.mxu0 %v12295_v63  ;;  %9498 = vmatpush1.bf16.msra.mxu1 %v12298_v5  ;;  %v15704_v63 = vmax.f32 %v14022_v30, %v14456_v48 }
 0x2ef   : > { %9458 = vmatprep.subr.bf16.mxu0 %v8542_v0  ;;  %9499 = vmatprep.subr.bf16.mxu1 %v8548_v27  ;;  %v8554_v0 = vand.u32 %v12315_v34, %v13503_v55 }
 0x2f0   : > { %v14923_v51 = vpop.f32.mrb[120].mxu0  ;;  %v14925_v56 = vpop.f32.mrb[120].mxu1  ;;  %9488 = vmatprep.mubr.bf16.mxu0 %v15617_v6  ;;  %9529 = vmatprep.mubr.bf16.mxu1 %v15617_v6 }
 0x2f1   : > { %15692 = vst [vmem:[#allocation85_spill] sm:$0xff] %v14923_v51  ;;  %15693 = vst [vmem:[#allocation86_spill] sm:$0xff] %v14925_v56  ;;  %v14935_v27 = vpop.f32.mrb[121].mxu0  ;;  %v11540_v47 = vpop.f32.mrb[121].mxu1 }
 0x2f2   : > { %15696 = vst [vmem:[#allocation87_spill] sm:$0xff] %v14935_v27  ;;  %v5442_v11 = vpop.f32.mrb[122].mxu0  ;;  %v5482_v36 = vpop.f32.mrb[122].mxu1  ;;  %9459 = vmatpush1.bf16.msra.mxu0 %v8539_v17  ;;  %9500 = vmatpush1.bf16.msra.mxu1 %v8545_v26  ;;  %v8560_v47 = vand.u32 %v12318_v38, %v13503_v55  ;;  %v12324_v17 = vld [vmem:[%s13497_s11 + $0xc44] ss:$244 sps:$4 sm:$0xff]   ;;  %v15702_v27 = vld [vmem:[#allocation40_spill] sm:$0xff] }
 0x2f3   : > { %v5443_v52 = vpop.f32.mrb[123].mxu0  ;;  %v11541_v5 = vpop.f32.mrb[123].mxu1  ;;  %9538 = vmatprep.subr.bf16.mxu0 %v12309_v21  ;;  %9579 = vmatprep.subr.bf16.mxu1 %v12312_v2  ;;  %v8557_v11 = vand.u32 %v12316_v60, %v13503_v55  ;;  %v12321_v36 = vld [vmem:[%s13497_s11 + $0xc3c] ss:$244 sps:$4 sm:$0xff]   ;;  %v12319_v38 = vld [vmem:[%s13497_s11 + $0xc38] ss:$244 sps:$4 sm:$0xff]   ;;  %v15703_v58 = vmax.f32 %v15701_v29, %v15702_v27 }
 0x2f4   : > { %v8551_v52 = vand.u32 %v12313_v43, %v13503_v55  ;;  %v12327_v26 = vld [vmem:[%s13497_s11 + $0xe24] ss:$244 sps:$4 sm:$0x1f]   ;;  %v12330_v21 = vld [vmem:[%s13497_s11 + $0xe2c] ss:$244 sps:$4 sm:$0x1f]   ;;  %v15700_v5 = vmax.f32 %v14013_v25, %v14442_v19 }
 0x2f5   : > { %11440 = vmatmul.mubr.msk.bf16.vlgmr.msra.gmra.mrb[228].mxu0 %vm1895_vm2, %v14877_v39  ;;  %11441 = vmatmul.mubr.msk.bf16.vlgmr.msra.gmra.mrb[228].mxu1 %vm1895_vm2, %v14877_v39  ;;  %v15698_v43 = vld [vmem:[#allocation39_spill] sm:$0xff]  ;;  %v12328_v25 = vld [vmem:[%s13497_s11 + $0xe28] ss:$244 sps:$4 sm:$0x1f]   ;;  %v8572_v29 = vand.u32 %v12330_v21, %v13503_v55 }
 0x2f6   : > { %9539 = vmatpush1.bf16.msra.mxu0 %v12307_v10  ;;  %9580 = vmatpush1.bf16.msra.mxu1 %v12310_v1  ;;  %v12322_v10 = vld [vmem:[%s13497_s11 + $0xc40] ss:$244 sps:$4 sm:$0xff]   ;;  %v15699_v1 = vmax.f32 %v14011_v24, %v15698_v43  ;;  %v8569_v48 = vand.u32 %v12328_v25, %v13503_v55  ;;  %v15705_v21 = vld [vmem:[#allocation4_spill] sm:$0xff]  ;;  %v15708_v43 = vmax.f32 %v14039_v45, %v14476_v12  ;;  %v15710_v25 = vld [vmem:[#allocation42_spill] sm:$0xff] }
 0x2f7   : > { %9540 = vmatprep.subr.bf16.mxu0 %v8554_v0  ;;  %9581 = vmatprep.subr.bf16.mxu1 %v8560_v47  ;;  %v12325_v56 = vld [vmem:[%s13497_s11 + $0xe20] ss:$244 sps:$4 sm:$0x1f]   ;;  %v12340_v45 = vld [vmem:[%s13497_s11 + $0xe38] ss:$244 sps:$4 sm:$0x1f]  }
 0x2f8   : > { %v6439_v2 = vpop.f32.mrb[124].mxu0  ;;  %v6480_v34 = vpop.f32.mrb[124].mxu1  ;;  %9570 = vmatprep.mubr.bf16.mxu0 %v15617_v6  ;;  %9611 = vmatprep.mubr.bf16.mxu1 %v15617_v6  ;;  %v8563_v30 = vand.u32 %v12325_v56, %v13503_v55  ;;  %v12339_v27 = vld [vmem:[%s13497_s11 + $0xe34] ss:$244 sps:$4 sm:$0x1f]  }
 0x2f9   : > { %v14960_v60 = vmax.f32 %v15699_v1, %v6439_v2  ;;  %v14965_v0 = vmax.f32 %v15700_v5, %v6480_v34  ;;  %v6441_v47 = vpop.f32.mrb[125].mxu0  ;;  %v6482_v33 = vpop.f32.mrb[125].mxu1  ;;  %v15706_v56 = vld [vmem:[#allocation41_spill] sm:$0xff] }
 0x2fa   : > { %v14971_v51 = vmax.f32 %v15703_v58, %v6441_v47  ;;  %v14976_v37 = vmax.f32 %v15704_v63, %v6482_v33  ;;  %v6443_v24 = vpop.f32.mrb[126].mxu0  ;;  %v6484_v2 = vpop.f32.mrb[126].mxu1  ;;  %9541 = vmatpush1.bf16.msra.mxu0 %v8551_v52  ;;  %9582 = vmatpush1.bf16.msra.mxu1 %v8557_v11  ;;  %v8566_v58 = vand.u32 %v12327_v26, %v13503_v55  ;;  %v12333_v33 = vld [vmem:[%s13497_s11 + $0xc4c] ss:$244 sps:$4 sm:$0xff]   ;;  %v12336_v63 = vld [vmem:[%s13497_s11 + $0xc54] ss:$244 sps:$4 sm:$0xff]  }
 0x2fb   : > { %v6444_v19 = vpop.f32.mrb[127].mxu0  ;;  %v6485_v34 = vpop.f32.mrb[127].mxu1  ;;  %9620 = vmatprep.subr.bf16.mxu0 %v12321_v36  ;;  %9661 = vmatprep.subr.bf16.mxu1 %v12324_v17  ;;  %v12342_v52 = vld [vmem:[%s13497_s11 + $0xe3c] ss:$244 sps:$4 sm:$0x1f]  }
 0x2fc   : > { %v12331_v17 = vld [vmem:[%s13497_s11 + $0xc48] ss:$244 sps:$4 sm:$0xff]   ;;  %v12334_v26 = vld [vmem:[%s13497_s11 + $0xc50] ss:$244 sps:$4 sm:$0xff]  }
 0x2fd   : > { %11442 = vmatmul.mubr.msk.bf16.vlgmr.msra.gmra.mrb[232].mxu0 %vm1895_vm2, %v14877_v39  ;;  %11443 = vmatmul.mubr.msk.bf16.vlgmr.msra.gmra.mrb[232].mxu1 %vm1895_vm2, %v14877_v39  ;;  %v12337_v24 = vld [vmem:[%s13497_s11 + $0xe30] ss:$244 sps:$4 sm:$0x1f]  }
 0x2fe   : > { %9621 = vmatpush1.bf16.msra.mxu0 %v12319_v38  ;;  %9662 = vmatpush1.bf16.msra.mxu1 %v12322_v10  ;;  %v15707_v38 = vmax.f32 %v15705_v21, %v15706_v56  ;;  %v15709_v2 = vld [vmem:[#allocation5_spill] sm:$0xff]  ;;  %v8578_v56 = vand.u32 %v12339_v27, %v13503_v55  ;;  %v12343_v27 = vld [vmem:[%s13497_s11 + $0xc58] ss:$244 sps:$4 sm:$0xff]  }
 0x2ff   : > { %9622 = vmatprep.subr.bf16.mxu0 %v8566_v58  ;;  %9663 = vmatprep.subr.bf16.mxu1 %v8572_v29  ;;  %v15711_v19 = vmax.f32 %v15709_v2, %v15710_v25  ;;  %v15712_v58 = vmax.f32 %v14047_v49, %v14488_v35  ;;  %v8575_v49 = vand.u32 %v12337_v24, %v13503_v55 }
 0x300   : > { %v6521_v11 = vpop.f32.mrb[128].mxu0  ;;  %v6562_v36 = vpop.f32.mrb[128].mxu1  ;;  %9652 = vmatprep.mubr.bf16.mxu0 %v15617_v6  ;;  %9693 = vmatprep.mubr.bf16.mxu1 %v15617_v6  ;;  %v8581_v35 = vand.u32 %v12340_v45, %v13503_v55 }
 0x301   : > { %v14998_v10 = vmax.f32 %v15707_v38, %v6521_v11  ;;  %v15003_v1 = vmax.f32 %v15708_v43, %v6562_v36  ;;  %v6523_v5 = vpop.f32.mrb[129].mxu0  ;;  %v6564_v47 = vpop.f32.mrb[129].mxu1  ;;  %v8584_v38 = vand.u32 %v12342_v52, %v13503_v55  ;;  %v12346_v52 = vld [vmem:[%s13497_s11 + $0xc60] ss:$244 sps:$4 sm:$0xff]  }
 0x302   : > { %v15009_v34 = vmax.f32 %v15711_v19, %v6523_v5  ;;  %v15014_v29 = vmax.f32 %v15712_v58, %v6564_v47  ;;  %v6525_v11 = vpop.f32.mrb[130].mxu0  ;;  %v6566_v21 = vpop.f32.mrb[130].mxu1  ;;  %9623 = vmatpush1.bf16.msra.mxu0 %v8563_v30  ;;  %9664 = vmatpush1.bf16.msra.mxu1 %v8569_v48  ;;  %v12345_v30 = vld [vmem:[%s13497_s11 + $0xc5c] ss:$244 sps:$4 sm:$0xff]   ;;  %v15716_v47 = vmax.f32 %v14068_v3, %v14508_v32 }
 0x303   : > { %v6526_v12 = vpop.f32.mrb[131].mxu0  ;;  %v6567_v36 = vpop.f32.mrb[131].mxu1  ;;  %9702 = vmatprep.subr.bf16.mxu0 %v12333_v33  ;;  %9743 = vmatprep.subr.bf16.mxu1 %v12336_v63  ;;  %v12349_v48 = vld [vmem:[%s13497_s11 + $0xe44] ss:$244 sps:$4 sm:$0x1f]   ;;  %v15717_v58 = vmax.f32 %v14075_v7, %v14490_v44  ;;  %v15718_v21 = vld [vmem:[#allocation45_spill] sm:$0xff] }
 0x304   : > { %v12347_v19 = vld [vmem:[%s13497_s11 + $0xe40] ss:$244 sps:$4 sm:$0x1f]   ;;  %v15719_v45 = vmax.f32 %v14077_v8, %v15718_v21  ;;  %v12350_v3 = vld [vmem:[%s13497_s11 + $0xe48] ss:$244 sps:$4 sm:$0x1f]  }
 0x305   : > { %11444 = vmatmul.mubr.msk.bf16.vlgmr.msra.gmra.mrb[236].mxu0 %vm1895_vm2, %v14877_v39  ;;  %11445 = vmatmul.mubr.msk.bf16.vlgmr.msra.gmra.mrb[236].mxu1 %vm1895_vm2, %v14877_v39  ;;  %v8587_v7 = vand.u32 %v12347_v19, %v13503_v55  ;;  %v8593_v8 = vand.u32 %v12350_v3, %v13503_v55 }
 0x306   : > { %9703 = vmatpush1.bf16.msra.mxu0 %v12331_v17  ;;  %9744 = vmatpush1.bf16.msra.mxu1 %v12334_v26  ;;  %v15713_v17 = vld [vmem:[#allocation6_spill] sm:$0xff]  ;;  %v15714_v26 = vld [vmem:[#allocation43_spill] sm:$0xff] }
 0x307   : > { %9704 = vmatprep.subr.bf16.mxu0 %v8578_v56  ;;  %9745 = vmatprep.subr.bf16.mxu1 %v8584_v38  ;;  %v15715_v43 = vmax.f32 %v15713_v17, %v15714_v26 }
 0x308   : > { %v6603_v33 = vpop.f32.mrb[132].mxu0  ;;  %v6644_v63 = vpop.f32.mrb[132].mxu1  ;;  %9734 = vmatprep.mubr.bf16.mxu0 %v15617_v6  ;;  %9775 = vmatprep.mubr.bf16.mxu1 %v15617_v6 }
 0x309   : > { %v15034_v5 = vmax.f32 %v15715_v43, %v6603_v33  ;;  %v15039_v24 = vmax.f32 %v15716_v47, %v6644_v63  ;;  %v6605_v2 = vpop.f32.mrb[133].mxu0  ;;  %v6646_v25 = vpop.f32.mrb[133].mxu1  ;;  %v15720_v33 = vmov 0.0   ;;  %v8590_v63 = vand.u32 %v12349_v48, %v13503_v55  ;;  %v15726_v47 = vld [vmem:[#allocation8_spill] sm:$0xff] }
 0x30a   : > { %v15045_v11 = vmax.f32 %v15717_v58, %v6605_v2  ;;  %v15050_v12 = vmax.f32 %v15719_v45, %v6646_v25  ;;  %v6607_v36 = vpop.f32.mrb[134].mxu0  ;;  %v6648_v56 = vpop.f32.mrb[134].mxu1  ;;  %9705 = vmatpush1.bf16.msra.mxu0 %v8575_v49  ;;  %9746 = vmatpush1.bf16.msra.mxu1 %v8581_v35  ;;  %v15721_v35 = vld [vmem:[#allocation7_spill] sm:$0xff]  ;;  %v15727_v2 = vld [vmem:[#allocation46_spill] sm:$0xff] }
 0x30b   : > { %v6608_v32 = vpop.f32.mrb[135].mxu0  ;;  %v6649_v38 = vpop.f32.mrb[135].mxu1  ;;  %9784 = vmatprep.subr.bf16.mxu0 %v12345_v30  ;;  %11550 = vmatprep.subr.bf16.mxu1 %v15720_v33  ;;  %v15722_v30 = vld [vmem:[#allocation44_spill] sm:$0xff]  ;;  %v15728_v25 = vmax.f32 %v15726_v47, %v15727_v2  ;;  %v15738_v47 = vld [vmem:[#allocation51_spill] sm:$0xff] }
 0x30c   : > { %v15723_v48 = vmax.f32 %v15721_v35, %v15722_v30  ;;  %v15730_v32 = vld [vmem:[#allocation48_spill] sm:$0xff]  ;;  %v15739_v2 = vmax.f32 %v14146_v13, %v15738_v47  ;;  %v15753_v47 = vmax.f32 %v14183_v57, %v14658_v9 }
 0x30d   : > { %11446 = vmatmul.mubr.msk.bf16.vlgmr.msra.gmra.mrb[240].mxu0 %vm1895_vm2, %v14877_v39  ;;  %11447 = vmatmul.mubr.msk.bf16.vlgmr.msra.gmra.mrb[240].mxu1 %vm1895_vm2, %v14877_v39  ;;  %v15731_v38 = vmax.f32 %v14120_v46, %v15730_v32  ;;  %v15745_v32 = vmax.f32 %v14156_v18, %v14624_v20  ;;  %v15750_v20 = vld [vmem:[#allocation11_spill] sm:$0xff]  ;;  %v15758_v9 = vld [vmem:[#allocation12_spill] sm:$0xff] }
 0x30e   : > { %9785 = vmatpush1.bf16.msra.mxu0 %v12343_v27  ;;  %11551 = vmatpush3.bf16.msra.mxu1 %v12346_v52  ;;  %v15724_v27 = vld [vmem:[#allocation47_spill] sm:$0xff] }
 0x30f   : > { %9786 = vmatprep.subr.bf16.mxu0 %v8590_v63  ;;  %11552 = vmatprep.subr.bf16.mxu1 %v15720_v33  ;;  %v15725_v52 = vmax.f32 %v14095_v22, %v15724_v27 }
 0x310   : > { %v6685_v44 = vpop.f32.mrb[136].mxu0  ;;  %v6726_v49 = vpop.f32.mrb[136].mxu1  ;;  %9816 = vmatprep.mubr.bf16.mxu0 %v15617_v6  ;;  %11554 = vmatprep.mubr.msk.bf16.mxu1 %vm12414_vm3, %v15720_v33  ;;  %v15729_v6 = vmax.f32 %v14104_v28, %v14556_v62  ;;  %v15732_v62 = vld [vmem:[#allocation50_spill] sm:$0xff] }
 0x311   : > { %v15068_v17 = vmax.f32 %v15723_v48, %v6685_v44  ;;  %v15073_v26 = vmax.f32 %v15725_v52, %v6726_v49  ;;  %v6687_v55 = vpop.f32.mrb[137].mxu0  ;;  %v6728_v43 = vpop.f32.mrb[137].mxu1  ;;  %v15733_v33 = vmax.f32 %v14122_v50, %v15732_v62  ;;  %v15734_v44 = vld [vmem:[#allocation9_spill] sm:$0xff] }
 0x312   : > { %v15078_v19 = vmax.f32 %v15728_v25, %v6687_v55  ;;  %v15083_v58 = vmax.f32 %v15729_v6, %v6728_v43  ;;  %v6689_v21 = vpop.f32.mrb[138].mxu0  ;;  %v6730_v45 = vpop.f32.mrb[138].mxu1  ;;  %9787 = vmatpush1.bf16.msra.mxu0 %v8587_v7  ;;  %11553 = vmatpush3.bf16.msra.mxu1 %v8593_v8  ;;  %v15735_v49 = vld [vmem:[#allocation49_spill] sm:$0xff] }
 0x313   : > { %v6690_v36 = vpop.f32.mrb[139].mxu0  ;;  %v6731_v22 = vpop.f32.mrb[139].mxu1  ;;  %v15736_v35 = vmax.f32 %v15734_v44, %v15735_v49  ;;  %v15740_v6 = vld [vmem:[#allocation53_spill] sm:$0xff]  ;;  %v15746_v44 = vld [vmem:[#allocation54_spill] sm:$0xff] }
 0x314   : > { %v15741_v21 = vmax.f32 %v14148_v14, %v15740_v6  ;;  %v15743_v22 = vld [vmem:[#allocation52_spill] sm:$0xff]  ;;  %v15747_v49 = vmax.f32 %v14172_v41, %v15746_v44  ;;  %v15761_v44 = vmax.f32 %v14209_v31, %v14692_v53  ;;  %v15766_v53 = vld [vmem:[#allocation13_spill] sm:$0xff] }
 0x315   : > { %11448 = vmatmul.mubr.msk.bf16.vlgmr.msra.gmra.mrb[244].mxu0 %vm1895_vm2, %v14877_v39  ;;  %11555 = vmatmul.mubr.msk.bf16.vlgmr.msra.gmra.mrb[244].mxu1 %vm1895_vm2, %v14877_v39  ;;  %v15737_v39 = vmax.f32 %v14130_v54, %v14590_v23  ;;  %v15742_v23 = vld [vmem:[#allocation10_spill] sm:$0xff] }
 0x318   : > { %v6767_v56 = vpop.f32.mrb[140].mxu0  ;;  %v6808_v3 = vpop.f32.mrb[140].mxu1 }
 0x319   : > { %v15092_v28 = vmax.f32 %v15731_v38, %v6767_v56  ;;  %v15097_v63 = vmax.f32 %v15733_v33, %v6808_v3  ;;  %v6769_v7 = vpop.f32.mrb[141].mxu0  ;;  %v6810_v8 = vpop.f32.mrb[141].mxu1  ;;  %v15744_v56 = vmax.f32 %v15742_v23, %v15743_v22  ;;  %v15754_v23 = vld [vmem:[#allocation57_spill] sm:$0xff] }
 0x31a   : > { %v15102_v30 = vmax.f32 %v15736_v35, %v6769_v7  ;;  %v15107_v48 = vmax.f32 %v15737_v39, %v6810_v8  ;;  %v6771_v46 = vpop.f32.mrb[142].mxu0  ;;  %v6812_v27 = vpop.f32.mrb[142].mxu1  ;;  %v15748_v39 = vld [vmem:[#allocation56_spill] sm:$0xff]  ;;  %v15755_v22 = vmax.f32 %v14198_v15, %v15754_v23  ;;  %v15769_v23 = vmax.f32 %v14234_v4, %v14726_v40 }
 0x31b   : > { %v6772_v52 = vpop.f32.mrb[143].mxu0  ;;  %v6813_v55 = vpop.f32.mrb[143].mxu1  ;;  %v15749_v46 = vmax.f32 %v14174_v42, %v15748_v39  ;;  %v15776_v40 = vld [vmem:[#allocation16_spill] sm:$0xff] }
 0x31c   : > { %v15751_v55 = vld [vmem:[#allocation55_spill] sm:$0xff] }
 0x320   : > { %v6849_v43 = vpop.f32.mrb[144].mxu0  ;;  %v6890_v50 = vpop.f32.mrb[144].mxu1 }
 0x321   : > { %v15112_v25 = vmax.f32 %v15739_v2, %v6849_v43  ;;  %v15117_v45 = vmax.f32 %v15741_v21, %v6890_v50  ;;  %v6851_v36 = vpop.f32.mrb[145].mxu0  ;;  %v6892_v54 = vpop.f32.mrb[145].mxu1  ;;  %v15752_v43 = vmax.f32 %v15750_v20, %v15751_v55  ;;  %v15762_v20 = vld [vmem:[#allocation60_spill] sm:$0xff] }
 0x322   : > { %v15122_v3 = vmax.f32 %v15744_v56, %v6851_v36  ;;  %v15127_v38 = vmax.f32 %v15745_v32, %v6892_v54  ;;  %v6853_v13 = vpop.f32.mrb[146].mxu0  ;;  %v6894_v62 = vpop.f32.mrb[146].mxu1  ;;  %v15756_v32 = vld [vmem:[#allocation59_spill] sm:$0xff]  ;;  %v15763_v55 = vmax.f32 %v14224_v59, %v15762_v20 }
 0x323   : > { %v6854_v33 = vpop.f32.mrb[147].mxu0  ;;  %v6895_v7 = vpop.f32.mrb[147].mxu1  ;;  %v15757_v13 = vmax.f32 %v14200_v16, %v15756_v32 }
 0x324   : > { %v15759_v7 = vld [vmem:[#allocation58_spill] sm:$0xff] }
 0x328   : > { %v6931_v8 = vpop.f32.mrb[148].mxu0  ;;  %v6972_v14 = vpop.f32.mrb[148].mxu1 }
 0x329   : > { %v15132_v35 = vmax.f32 %v15747_v49, %v6931_v8  ;;  %v15137_v27 = vmax.f32 %v15749_v46, %v6972_v14  ;;  %v6933_v52 = vpop.f32.mrb[149].mxu0  ;;  %v6974_v18 = vpop.f32.mrb[149].mxu1  ;;  %v15760_v8 = vmax.f32 %v15758_v9, %v15759_v7  ;;  %v15770_v9 = vld [vmem:[#allocation14_spill] sm:$0xff]  ;;  %v15771_v7 = vld [vmem:[#allocation63_spill] sm:$0xff] }
 0x32a   : > { %v15142_v50 = vmax.f32 %v15752_v43, %v6933_v52  ;;  %v15147_v2 = vmax.f32 %v15753_v47, %v6974_v18  ;;  %v6935_v41 = vpop.f32.mrb[150].mxu0  ;;  %v6976_v6 = vpop.f32.mrb[150].mxu1  ;;  %v15764_v47 = vld [vmem:[#allocation62_spill] sm:$0xff] }
 0x32b   : > { %v6936_v21 = vpop.f32.mrb[151].mxu0  ;;  %v6977_v36 = vpop.f32.mrb[151].mxu1  ;;  %v15765_v41 = vmax.f32 %v14226_v61, %v15764_v47  ;;  %v15779_v47 = vld [vmem:[#allocation17_spill] sm:$0xff] }
 0x32c   : > { %v15767_v36 = vld [vmem:[#allocation61_spill] sm:$0xff] }
 0x330   : > { %v7013_v54 = vpop.f32.mrb[152].mxu0  ;;  %v7054_v42 = vpop.f32.mrb[152].mxu1 }
 0x331   : > { %v15152_v56 = vmax.f32 %v15755_v22, %v7013_v54  ;;  %v15157_v62 = vmax.f32 %v15757_v13, %v7054_v42  ;;  %v7015_v33 = vpop.f32.mrb[153].mxu0  ;;  %v7056_v57 = vpop.f32.mrb[153].mxu1  ;;  %v15768_v54 = vmax.f32 %v15766_v53, %v15767_v36 }
 0x332   : > { %v15162_v14 = vmax.f32 %v15760_v8, %v7015_v33  ;;  %v15167_v49 = vmax.f32 %v15761_v44, %v7056_v57  ;;  %v7017_v15 = vpop.f32.mrb[154].mxu0  ;;  %v7058_v39 = vpop.f32.mrb[154].mxu1  ;;  %v15772_v8 = vmax.f32 %v15770_v9, %v15771_v7  ;;  %v15785_v9 = vld [vmem:[#allocation19_spill] sm:$0xff]  ;;  %v15786_v7 = vld [vmem:[#allocation69_spill] sm:$0xff] }
 0x333   : > { %v7018_v46 = vpop.f32.mrb[155].mxu0  ;;  %v7059_v52 = vpop.f32.mrb[155].mxu1  ;;  %v15773_v15 = vld [vmem:[#allocation15_spill] sm:$0xff]  ;;  %v15774_v39 = vld [vmem:[#allocation65_spill] sm:$0xff] }
 0x334   : > { %v15775_v46 = vmax.f32 %v15773_v15, %v15774_v39 }
 0x338   : > { %v7095_v18 = vpop.f32.mrb[156].mxu0  ;;  %v7136_v16 = vpop.f32.mrb[156].mxu1 }
 0x339   : > { %v15172_v43 = vmax.f32 %v15763_v55, %v7095_v18  ;;  %v15177_v6 = vmax.f32 %v15765_v41, %v7136_v16  ;;  %v7097_v21 = vpop.f32.mrb[157].mxu0  ;;  %v7138_v31 = vpop.f32.mrb[157].mxu1  ;;  %v15777_v16 = vld [vmem:[#allocation64_spill] sm:$0xff]  ;;  %v15780_v41 = vld [vmem:[#allocation67_spill] sm:$0xff] }
 0x33a   : > { %v15182_v42 = vmax.f32 %v15768_v54, %v7097_v21  ;;  %v15187_v22 = vmax.f32 %v15769_v23, %v7138_v31  ;;  %v7099_v59 = vpop.f32.mrb[158].mxu0  ;;  %v7140_v32 = vpop.f32.mrb[158].mxu1  ;;  %v15778_v20 = vmax.f32 %v15776_v40, %v15777_v16  ;;  %v15781_v21 = vmax.f32 %v15779_v47, %v15780_v41  ;;  %v15792_v47 = vld [vmem:[#allocation71_spill] sm:$0xff] }
 0x33b   : > { %v7100_v13 = vpop.f32.mrb[159].mxu0  ;;  %v7141_v33 = vpop.f32.mrb[159].mxu1 }
 0x33c   : > { %v15782_v13 = vld [vmem:[#allocation18_spill] sm:$0xff] }
 0x33d   : > { %v15783_v33 = vld [vmem:[#allocation66_spill] sm:$0xff] }
 0x340   : > { %v7177_v57 = vpop.f32.mrb[160].mxu0  ;;  %v7218_v61 = vpop.f32.mrb[160].mxu1 }
 0x341   : > { %v15192_v44 = vmax.f32 %v15772_v8, %v7177_v57  ;;  %v15197_v52 = vmax.f32 %v15775_v46, %v7218_v61  ;;  %v7179_v18 = vpop.f32.mrb[161].mxu0  ;;  %v7220_v4 = vpop.f32.mrb[161].mxu1  ;;  %v15784_v57 = vmax.f32 %v15782_v13, %v15783_v33  ;;  %v15787_v8 = vmax.f32 %v15785_v9, %v15786_v7  ;;  %v15796_v33 = vld [vmem:[#allocation70_spill] sm:$0xff]  ;;  %v15799_v7 = vld [vmem:[#allocation23_spill] sm:$0xff] }
 0x342   : > { %v15202_v55 = vmax.f32 %v15778_v20, %v7179_v18  ;;  %v15207_v31 = vmax.f32 %v15781_v21, %v7220_v4  ;;  %v7181_v53 = vpop.f32.mrb[162].mxu0  ;;  %v7222_v36 = vpop.f32.mrb[162].mxu1  ;;  %v15788_v18 = vld [vmem:[#allocation20_spill] sm:$0xff]  ;;  %v15791_v20 = vld [vmem:[#allocation21_spill] sm:$0xff] }
 0x343   : > { %v7182_v54 = vpop.f32.mrb[163].mxu0  ;;  %v7223_v23 = vpop.f32.mrb[163].mxu1  ;;  %v15789_v4 = vld [vmem:[#allocation68_spill] sm:$0xff]  ;;  %v15793_v41 = vmax.f32 %v15791_v20, %v15792_v47 }
 0x344   : > { %v15790_v40 = vmax.f32 %v15788_v18, %v15789_v4  ;;  %v15804_v20 = vld [vmem:[#allocation72_spill] sm:$0xff] }
 0x348   : > { %v7259_v59 = vpop.f32.mrb[164].mxu0  ;;  %v7300_v32 = vpop.f32.mrb[164].mxu1 }
 0x349   : > { %v15212_v61 = vmax.f32 %v15784_v57, %v7259_v59  ;;  %v15217_v15 = vmax.f32 %v15787_v8, %v7300_v32  ;;  %v7261_v39 = vpop.f32.mrb[165].mxu0  ;;  %v7302_v46 = vpop.f32.mrb[165].mxu1  ;;  %v15795_v32 = vld [vmem:[#allocation22_spill] sm:$0xff]  ;;  %v15800_v8 = vld [vmem:[#allocation73_spill] sm:$0xff] }
 0x34a   : > { %v15222_v16 = vmax.f32 %v15790_v40, %v7261_v39  ;;  %v15227_v21 = vmax.f32 %v15793_v41, %v7302_v46  ;;  %v7263_v53 = vpop.f32.mrb[166].mxu0  ;;  %v7304_v36 = vpop.f32.mrb[166].mxu1  ;;  %v15797_v57 = vmax.f32 %v15795_v32, %v15796_v33  ;;  %v15801_v39 = vmax.f32 %v15799_v7, %v15800_v8  ;;  %v15803_v46 = vld [vmem:[#allocation24_spill] sm:$0xff]  ;;  %v15811_v8 = vld [vmem:[#allocation74_spill] sm:$0xff] }
 0x34b   : > { %v7264_v54 = vpop.f32.mrb[167].mxu0  ;;  %v7305_v23 = vpop.f32.mrb[167].mxu1  ;;  %v15805_v47 = vmax.f32 %v15803_v46, %v15804_v20  ;;  %v15806_v53 = vld [vmem:[#allocation25_spill] sm:$0xff]  ;;  %v15807_v36 = vld [vmem:[#allocation75_spill] sm:$0xff] }
 0x34c   : > { %15794 = vst [vmem:[#allocation39_spill] sm:$0xff] %v15227_v21  ;;  %v15808_v54 = vmax.f32 %v15806_v53, %v15807_v36  ;;  %v15815_v46 = vld [vmem:[#allocation77_spill] sm:$0xff]  ;;  %v15819_v36 = vld [vmem:[#allocation76_spill] sm:$0xff] }
 0x350   : > { %v7341_v59 = vpop.f32.mrb[168].mxu0  ;;  %v7382_v13 = vpop.f32.mrb[168].mxu1 }
 0x351   : > { %v15232_v9 = vmax.f32 %v15797_v57, %v7341_v59  ;;  %v15237_v18 = vmax.f32 %v15801_v39, %v7382_v13  ;;  %v7343_v4 = vpop.f32.mrb[169].mxu0  ;;  %v7384_v40 = vpop.f32.mrb[169].mxu1  ;;  %v15810_v13 = vld [vmem:[#allocation26_spill] sm:$0xff] }
 0x352   : > { %v15242_v41 = vmax.f32 %v15805_v47, %v7343_v4  ;;  %v15247_v23 = vmax.f32 %v15808_v54, %v7384_v40  ;;  %v7345_v32 = vpop.f32.mrb[170].mxu0  ;;  %v7386_v59 = vpop.f32.mrb[170].mxu1  ;;  %v15812_v39 = vmax.f32 %v15810_v13, %v15811_v8  ;;  %v15818_v40 = vld [vmem:[#allocation28_spill] sm:$0xff] }
 0x353   : > { %15798 = vst [vmem:[#allocation3_spill] sm:$0xff] %v15232_v9  ;;  %15802 = vst [vmem:[#allocation40_spill] sm:$0xff] %v15237_v18  ;;  %v7346_v33 = vpop.f32.mrb[171].mxu0  ;;  %v7387_v57 = vpop.f32.mrb[171].mxu1  ;;  %v15814_v9 = vld [vmem:[#allocation27_spill] sm:$0xff]  ;;  %v15820_v54 = vmax.f32 %v15818_v40, %v15819_v36  ;;  %v15822_v59 = vld [vmem:[#allocation29_spill] sm:$0xff] }
 0x354   : > { %15809 = vst [vmem:[#allocation4_spill] sm:$0xff] %v15247_v23  ;;  %v15816_v4 = vmax.f32 %v15814_v9, %v15815_v46  ;;  %v15823_v33 = vld [vmem:[#allocation79_spill] sm:$0xff]  ;;  %v15826_v46 = vld [vmem:[#allocation30_spill] sm:$0xff]  ;;  %v15831_v36 = vld [vmem:[#allocation81_spill] sm:$0xff] }
 0x355   : > { %v15824_v57 = vmax.f32 %v15822_v59, %v15823_v33 }
 0x358   : > { %v7423_v21 = vpop.f32.mrb[172].mxu0  ;;  %v7464_v7 = vpop.f32.mrb[172].mxu1 }
 0x359   : > { %v15252_v18 = vmax.f32 %v15812_v39, %v7423_v21  ;;  %v15257_v20 = vmax.f32 %v15816_v4, %v7464_v7  ;;  %v7425_v47 = vpop.f32.mrb[173].mxu0  ;;  %v7466_v53 = vpop.f32.mrb[173].mxu1  ;;  %v15827_v4 = vld [vmem:[#allocation78_spill] sm:$0xff] }
 0x35a   : > { %v15262_v32 = vmax.f32 %v15820_v54, %v7425_v47  ;;  %v15267_v23 = vmax.f32 %v15824_v57, %v7466_v53  ;;  %v7427_v13 = vpop.f32.mrb[174].mxu0  ;;  %v7468_v21 = vpop.f32.mrb[174].mxu1  ;;  %v15830_v47 = vld [vmem:[#allocation31_spill] sm:$0xff]  ;;  %v15834_v57 = vld [vmem:[#allocation32_spill] sm:$0xff] }
 0x35b   : > { %15813 = vst [vmem:[#allocation41_spill] sm:$0xff] %v15252_v18  ;;  %15817 = vst [vmem:[#allocation5_spill] sm:$0xff] %v15257_v20  ;;  %v7428_v8 = vpop.f32.mrb[175].mxu0  ;;  %v7469_v9 = vpop.f32.mrb[175].mxu1  ;;  %v15828_v20 = vmax.f32 %v15826_v46, %v15827_v4  ;;  %v15832_v54 = vmax.f32 %v15830_v47, %v15831_v36  ;;  %v15835_v13 = vld [vmem:[#allocation80_spill] sm:$0xff]  ;;  %v15842_v36 = vld [vmem:[#allocation34_spill] sm:$0xff] }
 0x35c   : > { %15821 = vst [vmem:[#allocation42_spill] sm:$0xff] %v15262_v32  ;;  %15825 = vst [vmem:[#allocation6_spill] sm:$0xff] %v15267_v23  ;;  %v15836_v21 = vmax.f32 %v15834_v57, %v15835_v13  ;;  %v15838_v9 = vld [vmem:[#allocation33_spill] sm:$0xff]  ;;  %v15839_v23 = vld [vmem:[#allocation83_spill] sm:$0xff] }
 0x35d   : > { %v15840_v32 = vmax.f32 %v15838_v9, %v15839_v23  ;;  %v15846_v13 = vld [vmem:[#allocation85_spill] sm:$0xff]  ;;  %v15849_v9 = vld [vmem:[#allocation36_spill] sm:$0xff] }
 0x360   : > { %v7505_v7 = vpop.f32.mrb[176].mxu0  ;;  %v7546_v39 = vpop.f32.mrb[176].mxu1 }
 0x361   : > { %v15272_v40 = vmax.f32 %v15828_v20, %v7505_v7  ;;  %v15277_v59 = vmax.f32 %v15832_v54, %v7546_v39  ;;  %v7507_v53 = vpop.f32.mrb[177].mxu0  ;;  %v7548_v33 = vpop.f32.mrb[177].mxu1  ;;  %v15843_v54 = vld [vmem:[#allocation82_spill] sm:$0xff] }
 0x362   : > { %v15282_v8 = vmax.f32 %v15836_v21, %v7507_v53  ;;  %v15287_v18 = vmax.f32 %v15840_v32, %v7548_v33  ;;  %v7509_v46 = vpop.f32.mrb[178].mxu0  ;;  %v7550_v20 = vpop.f32.mrb[178].mxu1  ;;  %v15845_v53 = vld [vmem:[#allocation35_spill] sm:$0xff] }
 0x363   : > { %15829 = vst [vmem:[#allocation43_spill] sm:$0xff] %v15272_v40  ;;  %15833 = vst [vmem:[#allocation45_spill] sm:$0xff] %v15277_v59  ;;  %v7510_v7 = vpop.f32.mrb[179].mxu0  ;;  %v7551_v4 = vpop.f32.mrb[179].mxu1  ;;  %v15844_v59 = vmax.f32 %v15842_v36, %v15843_v54  ;;  %v15847_v21 = vmax.f32 %v15845_v53, %v15846_v13  ;;  %v15850_v46 = vld [vmem:[#allocation84_spill] sm:$0xff] }
 0x364   : > { %15837 = vst [vmem:[#allocation7_spill] sm:$0xff] %v15282_v8  ;;  %15841 = vst [vmem:[#allocation44_spill] sm:$0xff] %v15287_v18  ;;  %v15851_v20 = vmax.f32 %v15849_v9, %v15850_v46  ;;  %v15852_v4 = vld [vmem:[#allocation37_spill] sm:$0xff]  ;;  %v15853_v18 = vld [vmem:[#allocation87_spill] sm:$0xff] }
 0x365   : > { %v15854_v8 = vmax.f32 %v15852_v4, %v15853_v18 }
 0x368   : > { %v7587_v39 = vpop.f32.mrb[180].mxu0  ;;  %v7628_v47 = vpop.f32.mrb[180].mxu1 }
 0x369   : > { %v15295_v57 = vmax.f32 %v15844_v59, %v7587_v39  ;;  %v15300_v23 = vmax.f32 %v15847_v21, %v7628_v47  ;;  %v7589_v32 = vpop.f32.mrb[181].mxu0  ;;  %v7630_v33 = vpop.f32.mrb[181].mxu1  ;;  %v15856_v21 = vld [vmem:[#allocation38_spill] sm:$0xff] }
 0x36a   : > { %v15305_v7 = vmax.f32 %v15851_v20, %v7589_v32  ;;  %v15310_v40 = vmax.f32 %v15854_v8, %v7630_v33  ;;  %v7591_v59 = vpop.f32.mrb[182].mxu0  ;;  %v7632_v39 = vpop.f32.mrb[182].mxu1 }
 0x36b   : > { %15848 = vst [vmem:[#allocation47_spill] sm:$0xff] %v15300_v23  ;;  %v7592_v36 = vpop.f32.mrb[183].mxu0  ;;  %v7633_v54 = vpop.f32.mrb[183].mxu1  ;;  %v15857_v23 = vld [vmem:[#allocation86_spill] sm:$0xff] }
 0x36c   : > { %15855 = vst [vmem:[#allocation8_spill] sm:$0xff] %v15310_v40  ;;  %v15312_v47 = vpop.permute.xlu0 %9929  ;;  %v15858_v9 = vmax.f32 %v15856_v21, %v15857_v23 }
 0x370   : > { %v7669_v53 = vpop.f32.mrb[184].mxu0  ;;  %v8629_v13 = vpop.f32.mrb[184].mxu1 }
 0x371   : > { %v15317_v32 = vmax.f32 %v15858_v9, %v7669_v53  ;;  %v9865_v46 = vmax.f32 %v14960_v60, %v8629_v13  ;;  %v11548_v18 = vpop.f32.mrb[185].mxu0  ;;  %v8631_v8 = vpop.f32.mrb[185].mxu1 }
 0x372   : > { %v9866_v33 = vmax.f32 %v14971_v51, %v8631_v8  ;;  %v7672_v20 = vpop.f32.mrb[186].mxu0  ;;  %v8633_v4 = vpop.f32.mrb[186].mxu1 }
 0x373   : > { %v11549_v59 = vpop.f32.mrb[187].mxu0  ;;  %v8634_v39 = vpop.f32.mrb[187].mxu1  ;;  %v9932_v36 = vadd.f32 %v15312_v47, %v9865_v46 }
 0x374   : > { %v9933_v54 = vadd.f32 %v15312_v47, %v9866_v33 }
 0x375   : > { %v9993_v40 = vmax.f32 %v9932_v36, 0.0 }
 0x376   : > { %v9994_v23 = vmax.f32 %v9933_v54, 0.0 }
 0x378   : > { %v8670_v60 = vpop.f32.mrb[188].mxu0  ;;  %v8711_v53 = vpop.f32.mrb[188].mxu1  ;;  %v11483_v51 = vpack.c.bf16 %v9994_v23, %v9993_v40 }
 0x379   : > { %v9867_v13 = vmax.f32 %v14965_v0, %v8670_v60  ;;  %v9869_v21 = vmax.f32 %v14998_v10, %v8711_v53  ;;  %v8672_v9 = vpop.f32.mrb[189].mxu0  ;;  %v8713_v46 = vpop.f32.mrb[189].mxu1 }
 0x37a   : > { %v9868_v18 = vmax.f32 %v14976_v37, %v8672_v9  ;;  %10299 = vst [vmem:[%s15326_s10] sm:$0xff] %v11483_v51  ;;  %v9870_v8 = vmax.f32 %v15009_v34, %v8713_v46  ;;  %v8674_v33 = vpop.f32.mrb[190].mxu0  ;;  %v8715_v20 = vpop.f32.mrb[190].mxu1 }
 0x37b   : > { %v9934_v4 = vadd.f32 %v15312_v47, %v9867_v13  ;;  %v9936_v59 = vadd.f32 %v15312_v47, %v9869_v21  ;;  %v8675_v39 = vpop.f32.mrb[191].mxu0  ;;  %v8716_v40 = vpop.f32.mrb[191].mxu1 }
 0x37c   : > { %v9935_v0 = vadd.f32 %v15312_v47, %v9868_v18  ;;  %v9937_v10 = vadd.f32 %v15312_v47, %v9870_v8 }
 0x37d   : > { %v9995_v36 = vmax.f32 %v9934_v4, 0.0  ;;  %v9997_v54 = vmax.f32 %v9936_v59, 0.0 }
 0x37e   : > { %v9996_v37 = vmax.f32 %v9935_v0, 0.0  ;;  %v9998_v23 = vmax.f32 %v9937_v10, 0.0 }
 0x380   : > { %v11484_v60 = vpack.c.bf16 %v9996_v37, %v9995_v36  ;;  %v11485_v34 = vpack.c.bf16 %v9998_v23, %v9997_v54  ;;  %v8752_v53 = vpop.f32.mrb[192].mxu0  ;;  %v8793_v51 = vpop.f32.mrb[192].mxu1 }
 0x381   : > { %v9871_v13 = vmax.f32 %v15003_v1, %v8752_v53  ;;  %v9873_v21 = vmax.f32 %v15034_v5, %v8793_v51  ;;  %v8754_v9 = vpop.f32.mrb[193].mxu0  ;;  %v8795_v46 = vpop.f32.mrb[193].mxu1 }
 0x382   : > { %10300 = vst [vmem:[%s15326_s10 + $0x8] sm:$0xff] %v11484_v60  ;;  %10301 = vst [vmem:[%s15326_s10 + $0x10] sm:$0xff] %v11485_v34  ;;  %v9872_v18 = vmax.f32 %v15014_v29, %v8754_v9  ;;  %v9874_v8 = vmax.f32 %v15045_v11, %v8795_v46  ;;  %v8756_v33 = vpop.f32.mrb[194].mxu0  ;;  %v8797_v20 = vpop.f32.mrb[194].mxu1 }
 0x383   : > { %v9938_v4 = vadd.f32 %v15312_v47, %v9871_v13  ;;  %v9940_v59 = vadd.f32 %v15312_v47, %v9873_v21  ;;  %v8757_v39 = vpop.f32.mrb[195].mxu0  ;;  %v8798_v40 = vpop.f32.mrb[195].mxu1 }
 0x384   : > { %v9939_v1 = vadd.f32 %v15312_v47, %v9872_v18  ;;  %v9941_v5 = vadd.f32 %v15312_v47, %v9874_v8 }
 0x385   : > { %v9999_v0 = vmax.f32 %v9938_v4, 0.0  ;;  %v10001_v10 = vmax.f32 %v9940_v59, 0.0 }
 0x386   : > { %v10000_v36 = vmax.f32 %v9939_v1, 0.0  ;;  %v10002_v29 = vmax.f32 %v9941_v5, 0.0 }
 0x388   : > { %v11486_v54 = vpack.c.bf16 %v10000_v36, %v9999_v0  ;;  %v11487_v11 = vpack.c.bf16 %v10002_v29, %v10001_v10  ;;  %v8834_v37 = vpop.f32.mrb[196].mxu0  ;;  %v8875_v23 = vpop.f32.mrb[196].mxu1 }
 0x389   : > { %v9875_v60 = vmax.f32 %v15039_v24, %v8834_v37  ;;  %v9877_v34 = vmax.f32 %v15068_v17, %v8875_v23  ;;  %v8836_v53 = vpop.f32.mrb[197].mxu0  ;;  %v8877_v51 = vpop.f32.mrb[197].mxu1 }
 0x38a   : > { %10302 = vst [vmem:[%s15326_s10 + $0x18] sm:$0xff] %v11486_v54  ;;  %10303 = vst [vmem:[%s15326_s10 + $0x20] sm:$0xff] %v11487_v11  ;;  %v9876_v13 = vmax.f32 %v15050_v12, %v8836_v53  ;;  %v9878_v21 = vmax.f32 %v15078_v19, %v8877_v51  ;;  %v8838_v9 = vpop.f32.mrb[198].mxu0  ;;  %v8879_v46 = vpop.f32.mrb[198].mxu1 }
 0x38b   : > { %v9942_v18 = vadd.f32 %v15312_v47, %v9875_v60  ;;  %v9944_v8 = vadd.f32 %v15312_v47, %v9877_v34  ;;  %v8839_v33 = vpop.f32.mrb[199].mxu0  ;;  %v8880_v20 = vpop.f32.mrb[199].mxu1 }
 0x38c   : > { %v9943_v24 = vadd.f32 %v15312_v47, %v9876_v13  ;;  %v9945_v17 = vadd.f32 %v15312_v47, %v9878_v21 }
 0x38d   : > { %v10003_v4 = vmax.f32 %v9942_v18, 0.0  ;;  %v10005_v59 = vmax.f32 %v9944_v8, 0.0 }
 0x38e   : > { %v10004_v39 = vmax.f32 %v9943_v24, 0.0  ;;  %v10006_v12 = vmax.f32 %v9945_v17, 0.0 }
 0x390   : > { %v11488_v40 = vpack.c.bf16 %v10004_v39, %v10003_v4  ;;  %v11489_v19 = vpack.c.bf16 %v10006_v12, %v10005_v59  ;;  %v8916_v1 = vpop.f32.mrb[200].mxu0  ;;  %v8957_v5 = vpop.f32.mrb[200].mxu1 }
 0x391   : > { %v9879_v0 = vmax.f32 %v15073_v26, %v8916_v1  ;;  %v9881_v10 = vmax.f32 %v15092_v28, %v8957_v5  ;;  %v8918_v36 = vpop.f32.mrb[201].mxu0  ;;  %v8959_v29 = vpop.f32.mrb[201].mxu1 }
 0x392   : > { %10304 = vst [vmem:[%s15326_s10 + $0x28] sm:$0xff] %v11488_v40  ;;  %10305 = vst [vmem:[%s15326_s10 + $0x30] sm:$0xff] %v11489_v19  ;;  %v9880_v54 = vmax.f32 %v15083_v58, %v8918_v36  ;;  %v9882_v11 = vmax.f32 %v15102_v30, %v8959_v29  ;;  %v8920_v37 = vpop.f32.mrb[202].mxu0  ;;  %v8961_v23 = vpop.f32.mrb[202].mxu1 }
 0x393   : > { %v9946_v60 = vadd.f32 %v15312_v47, %v9879_v0  ;;  %v9948_v34 = vadd.f32 %v15312_v47, %v9881_v10  ;;  %v8921_v53 = vpop.f32.mrb[203].mxu0  ;;  %v8962_v51 = vpop.f32.mrb[203].mxu1 }
 0x394   : > { %v9947_v26 = vadd.f32 %v15312_v47, %v9880_v54  ;;  %v9949_v28 = vadd.f32 %v15312_v47, %v9882_v11 }
 0x395   : > { %v10007_v13 = vmax.f32 %v9946_v60, 0.0  ;;  %v10009_v21 = vmax.f32 %v9948_v34, 0.0 }
 0x396   : > { %v10008_v9 = vmax.f32 %v9947_v26, 0.0  ;;  %v10010_v58 = vmax.f32 %v9949_v28, 0.0 }
 0x398   : > { %v11490_v46 = vpack.c.bf16 %v10008_v9, %v10007_v13  ;;  %v11491_v30 = vpack.c.bf16 %v10010_v58, %v10009_v21  ;;  %v8998_v18 = vpop.f32.mrb[204].mxu0  ;;  %v9039_v8 = vpop.f32.mrb[204].mxu1 }
 0x399   : > { %v9883_v33 = vmax.f32 %v15097_v63, %v8998_v18  ;;  %v9885_v20 = vmax.f32 %v15112_v25, %v9039_v8  ;;  %v9000_v24 = vpop.f32.mrb[205].mxu0  ;;  %v9041_v17 = vpop.f32.mrb[205].mxu1 }
 0x39a   : > { %10306 = vst [vmem:[%s15326_s10 + $0x38] sm:$0xff] %v11490_v46  ;;  %10307 = vst [vmem:[%s15326_s10 + $0x40] sm:$0xff] %v11491_v30  ;;  %v9884_v4 = vmax.f32 %v15107_v48, %v9000_v24  ;;  %v9886_v59 = vmax.f32 %v15122_v3, %v9041_v17  ;;  %v9002_v39 = vpop.f32.mrb[206].mxu0  ;;  %v9043_v12 = vpop.f32.mrb[206].mxu1 }
 0x39b   : > { %v9950_v40 = vadd.f32 %v15312_v47, %v9883_v33  ;;  %v9952_v19 = vadd.f32 %v15312_v47, %v9885_v20  ;;  %v9003_v1 = vpop.f32.mrb[207].mxu0  ;;  %v9044_v5 = vpop.f32.mrb[207].mxu1 }
 0x39c   : > { %v9951_v63 = vadd.f32 %v15312_v47, %v9884_v4  ;;  %v9953_v25 = vadd.f32 %v15312_v47, %v9886_v59 }
 0x39d   : > { %v10011_v0 = vmax.f32 %v9950_v40, 0.0  ;;  %v10013_v10 = vmax.f32 %v9952_v19, 0.0 }
 0x39e   : > { %v10012_v36 = vmax.f32 %v9951_v63, 0.0  ;;  %v10014_v48 = vmax.f32 %v9953_v25, 0.0 }
 0x3a0   : > { %v11492_v29 = vpack.c.bf16 %v10012_v36, %v10011_v0  ;;  %v11493_v3 = vpack.c.bf16 %v10014_v48, %v10013_v10  ;;  %v9080_v54 = vpop.f32.mrb[208].mxu0  ;;  %v9121_v11 = vpop.f32.mrb[208].mxu1 }
 0x3a1   : > { %v9887_v37 = vmax.f32 %v15117_v45, %v9080_v54  ;;  %v9889_v23 = vmax.f32 %v15132_v35, %v9121_v11  ;;  %v9082_v60 = vpop.f32.mrb[209].mxu0  ;;  %v9123_v34 = vpop.f32.mrb[209].mxu1 }
 0x3a2   : > { %10308 = vst [vmem:[%s15326_s10 + $0x48] sm:$0xff] %v11492_v29  ;;  %10309 = vst [vmem:[%s15326_s10 + $0x50] sm:$0xff] %v11493_v3  ;;  %v9888_v53 = vmax.f32 %v15127_v38, %v9082_v60  ;;  %v9890_v51 = vmax.f32 %v15142_v50, %v9123_v34  ;;  %v9084_v26 = vpop.f32.mrb[210].mxu0  ;;  %v9125_v28 = vpop.f32.mrb[210].mxu1 }
 0x3a3   : > { %v9954_v13 = vadd.f32 %v15312_v47, %v9887_v37  ;;  %v9956_v21 = vadd.f32 %v15312_v47, %v9889_v23  ;;  %v9085_v9 = vpop.f32.mrb[211].mxu0  ;;  %v9126_v58 = vpop.f32.mrb[211].mxu1 }
 0x3a4   : > { %v9955_v45 = vadd.f32 %v15312_v47, %v9888_v53  ;;  %v9957_v35 = vadd.f32 %v15312_v47, %v9890_v51 }
 0x3a5   : > { %v10015_v46 = vmax.f32 %v9954_v13, 0.0  ;;  %v10017_v30 = vmax.f32 %v9956_v21, 0.0 }
 0x3a6   : > { %v10016_v18 = vmax.f32 %v9955_v45, 0.0  ;;  %v10018_v38 = vmax.f32 %v9957_v35, 0.0 }
 0x3a8   : > { %v11494_v8 = vpack.c.bf16 %v10016_v18, %v10015_v46  ;;  %v11495_v50 = vpack.c.bf16 %v10018_v38, %v10017_v30  ;;  %v9162_v33 = vpop.f32.mrb[212].mxu0  ;;  %v9203_v20 = vpop.f32.mrb[212].mxu1 }
 0x3a9   : > { %v9891_v24 = vmax.f32 %v15137_v27, %v9162_v33  ;;  %v9893_v17 = vmax.f32 %v15152_v56, %v9203_v20  ;;  %v9164_v4 = vpop.f32.mrb[213].mxu0  ;;  %v9205_v59 = vpop.f32.mrb[213].mxu1 }
 0x3aa   : > { %10310 = vst [vmem:[%s15326_s10 + $0x58] sm:$0xff] %v11494_v8  ;;  %10311 = vst [vmem:[%s15326_s10 + $0x60] sm:$0xff] %v11495_v50  ;;  %v9892_v39 = vmax.f32 %v15147_v2, %v9164_v4  ;;  %v9894_v12 = vmax.f32 %v15162_v14, %v9205_v59  ;;  %v9166_v40 = vpop.f32.mrb[214].mxu0  ;;  %v9207_v19 = vpop.f32.mrb[214].mxu1 }
 0x3ab   : > { %v9958_v1 = vadd.f32 %v15312_v47, %v9891_v24  ;;  %v9960_v5 = vadd.f32 %v15312_v47, %v9893_v17  ;;  %v9167_v63 = vpop.f32.mrb[215].mxu0  ;;  %v9208_v25 = vpop.f32.mrb[215].mxu1 }
 0x3ac   : > { %v9959_v27 = vadd.f32 %v15312_v47, %v9892_v39  ;;  %v9961_v56 = vadd.f32 %v15312_v47, %v9894_v12 }
 0x3ad   : > { %v10019_v0 = vmax.f32 %v9958_v1, 0.0  ;;  %v10021_v10 = vmax.f32 %v9960_v5, 0.0 }
 0x3ae   : > { %v10020_v36 = vmax.f32 %v9959_v27, 0.0  ;;  %v10022_v2 = vmax.f32 %v9961_v56, 0.0 }
 0x3b0   : > { %v11496_v48 = vpack.c.bf16 %v10020_v36, %v10019_v0  ;;  %v11497_v14 = vpack.c.bf16 %v10022_v2, %v10021_v10  ;;  %v9244_v29 = vpop.f32.mrb[216].mxu0  ;;  %v9285_v3 = vpop.f32.mrb[216].mxu1 }
 0x3b1   : > { %v9895_v54 = vmax.f32 %v15157_v62, %v9244_v29  ;;  %v9897_v11 = vmax.f32 %v15172_v43, %v9285_v3  ;;  %v9246_v37 = vpop.f32.mrb[217].mxu0  ;;  %v9287_v23 = vpop.f32.mrb[217].mxu1 }
 0x3b2   : > { %10312 = vst [vmem:[%s15326_s10 + $0x68] sm:$0xff] %v11496_v48  ;;  %10313 = vst [vmem:[%s15326_s10 + $0x70] sm:$0xff] %v11497_v14  ;;  %v9896_v60 = vmax.f32 %v15167_v49, %v9246_v37  ;;  %v9898_v34 = vmax.f32 %v15182_v42, %v9287_v23  ;;  %v9248_v53 = vpop.f32.mrb[218].mxu0  ;;  %v9289_v51 = vpop.f32.mrb[218].mxu1 }
 0x3b3   : > { %v9962_v26 = vadd.f32 %v15312_v47, %v9895_v54  ;;  %v9964_v28 = vadd.f32 %v15312_v47, %v9897_v11  ;;  %v9249_v13 = vpop.f32.mrb[219].mxu0  ;;  %v9290_v21 = vpop.f32.mrb[219].mxu1 }
 0x3b4   : > { %v9963_v62 = vadd.f32 %v15312_v47, %v9896_v60  ;;  %v9965_v43 = vadd.f32 %v15312_v47, %v9898_v34 }
 0x3b5   : > { %v10023_v9 = vmax.f32 %v9962_v26, 0.0  ;;  %v10025_v58 = vmax.f32 %v9964_v28, 0.0  ;;  %v15859_v28 = vld [vmem:[#allocation3_spill] sm:$0xff] }
 0x3b6   : > { %v10024_v45 = vmax.f32 %v9963_v62, 0.0  ;;  %v10026_v49 = vmax.f32 %v9965_v43, 0.0  ;;  %v15860_v43 = vld [vmem:[#allocation39_spill] sm:$0xff] }
 0x3b8   : > { %v11498_v35 = vpack.c.bf16 %v10024_v45, %v10023_v9  ;;  %v11499_v42 = vpack.c.bf16 %v10026_v49, %v10025_v58  ;;  %v9326_v46 = vpop.f32.mrb[220].mxu0  ;;  %v9367_v30 = vpop.f32.mrb[220].mxu1 }
 0x3b9   : > { %v9899_v18 = vmax.f32 %v15177_v6, %v9326_v46  ;;  %v9901_v38 = vmax.f32 %v15192_v44, %v9367_v30  ;;  %v9328_v8 = vpop.f32.mrb[221].mxu0  ;;  %v9369_v50 = vpop.f32.mrb[221].mxu1 }
 0x3ba   : > { %10314 = vst [vmem:[%s15326_s10 + $0x78] sm:$0xff] %v11498_v35  ;;  %10315 = vst [vmem:[%s15326_s10 + $0x80] sm:$0xff] %v11499_v42  ;;  %v9900_v33 = vmax.f32 %v15187_v22, %v9328_v8  ;;  %v9902_v20 = vmax.f32 %v15202_v55, %v9369_v50  ;;  %v9330_v24 = vpop.f32.mrb[222].mxu0  ;;  %v9371_v17 = vpop.f32.mrb[222].mxu1 }
 0x3bb   : > { %v9966_v4 = vadd.f32 %v15312_v47, %v9899_v18  ;;  %v9968_v59 = vadd.f32 %v15312_v47, %v9901_v38  ;;  %v9331_v39 = vpop.f32.mrb[223].mxu0  ;;  %v9372_v12 = vpop.f32.mrb[223].mxu1 }
 0x3bc   : > { %v9967_v6 = vadd.f32 %v15312_v47, %v9900_v33  ;;  %v9969_v44 = vadd.f32 %v15312_v47, %v9902_v20  ;;  %v15862_v39 = vld [vmem:[#allocation41_spill] sm:$0xff] }
 0x3bd   : > { %v10027_v40 = vmax.f32 %v9966_v4, 0.0  ;;  %v10029_v19 = vmax.f32 %v9968_v59, 0.0  ;;  %v15861_v4 = vld [vmem:[#allocation40_spill] sm:$0xff] }
 0x3be   : > { %v10028_v1 = vmax.f32 %v9967_v6, 0.0  ;;  %v10030_v22 = vmax.f32 %v9969_v44, 0.0 }
 0x3c0   : > { %v11500_v5 = vpack.c.bf16 %v10028_v1, %v10027_v40  ;;  %v11501_v55 = vpack.c.bf16 %v10030_v22, %v10029_v19  ;;  %v9408_v63 = vpop.f32.mrb[224].mxu0  ;;  %v9449_v25 = vpop.f32.mrb[224].mxu1  ;;  %v15863_v40 = vld [vmem:[#allocation4_spill] sm:$0xff]  ;;  %v15864_v1 = vld [vmem:[#allocation42_spill] sm:$0xff] }
 0x3c1   : > { %v9903_v27 = vmax.f32 %v15197_v52, %v9408_v63  ;;  %v9905_v56 = vmax.f32 %v15212_v61, %v9449_v25  ;;  %v9410_v0 = vpop.f32.mrb[225].mxu0  ;;  %v9451_v10 = vpop.f32.mrb[225].mxu1 }
 0x3c2   : > { %10316 = vst [vmem:[%s15326_s10 + $0x88] sm:$0xff] %v11500_v5  ;;  %10317 = vst [vmem:[%s15326_s10 + $0x90] sm:$0xff] %v11501_v55  ;;  %v9904_v36 = vmax.f32 %v15207_v31, %v9410_v0  ;;  %v9906_v2 = vmax.f32 %v15222_v16, %v9451_v10  ;;  %v9412_v48 = vpop.f32.mrb[226].mxu0  ;;  %v9453_v14 = vpop.f32.mrb[226].mxu1 }
 0x3c3   : > { %v9970_v29 = vadd.f32 %v15312_v47, %v9903_v27  ;;  %v9972_v3 = vadd.f32 %v15312_v47, %v9905_v56  ;;  %v9413_v54 = vpop.f32.mrb[227].mxu0  ;;  %v9454_v11 = vpop.f32.mrb[227].mxu1 }
 0x3c4   : > { %v9971_v52 = vadd.f32 %v15312_v47, %v9904_v36  ;;  %v9973_v61 = vadd.f32 %v15312_v47, %v9906_v2 }
 0x3c5   : > { %v10031_v37 = vmax.f32 %v9970_v29, 0.0  ;;  %v10033_v23 = vmax.f32 %v9972_v3, 0.0 }
 0x3c6   : > { %v10032_v60 = vmax.f32 %v9971_v52, 0.0  ;;  %v10034_v31 = vmax.f32 %v9973_v61, 0.0  ;;  %v15865_v52 = vld [vmem:[#allocation5_spill] sm:$0xff] }
 0x3c8   : > { %v11502_v34 = vpack.c.bf16 %v10032_v60, %v10031_v37  ;;  %v11503_v16 = vpack.c.bf16 %v10034_v31, %v10033_v23  ;;  %v9490_v53 = vpop.f32.mrb[228].mxu0  ;;  %v9531_v51 = vpop.f32.mrb[228].mxu1  ;;  %v15866_v37 = vld [vmem:[#allocation43_spill] sm:$0xff] }
 0x3c9   : > { %v9907_v26 = vmax.f32 %v15217_v15, %v9490_v53  ;;  %v9909_v13 = vmax.f32 %v15859_v28, %v9531_v51  ;;  %v9492_v21 = vpop.f32.mrb[229].mxu0  ;;  %v9533_v62 = vpop.f32.mrb[229].mxu1  ;;  %v15868_v53 = vld [vmem:[#allocation7_spill] sm:$0xff] }
 0x3ca   : > { %10318 = vst [vmem:[%s15326_s10 + $0x98] sm:$0xff] %v11502_v34  ;;  %10319 = vst [vmem:[%s15326_s10 + $0xa0] sm:$0xff] %v11503_v16  ;;  %v9908_v9 = vmax.f32 %v15860_v43, %v9492_v21  ;;  %v9910_v58 = vmax.f32 %v15242_v41, %v9533_v62  ;;  %v9494_v45 = vpop.f32.mrb[230].mxu0  ;;  %v9535_v49 = vpop.f32.mrb[230].mxu1  ;;  %v15867_v34 = vld [vmem:[#allocation6_spill] sm:$0xff] }
 0x3cb   : > { %v9974_v35 = vadd.f32 %v15312_v47, %v9907_v26  ;;  %v9976_v42 = vadd.f32 %v15312_v47, %v9909_v13  ;;  %v9495_v46 = vpop.f32.mrb[231].mxu0  ;;  %v9536_v30 = vpop.f32.mrb[231].mxu1 }
 0x3cc   : > { %v9975_v15 = vadd.f32 %v15312_v47, %v9908_v9  ;;  %v9977_v18 = vadd.f32 %v15312_v47, %v9910_v58 }
 0x3cd   : > { %v10035_v38 = vmax.f32 %v9974_v35, 0.0  ;;  %v10037_v8 = vmax.f32 %v9976_v42, 0.0 }
 0x3ce   : > { %v10036_v50 = vmax.f32 %v9975_v15, 0.0  ;;  %v10038_v33 = vmax.f32 %v9977_v18, 0.0 }
 0x3d0   : > { %v11504_v20 = vpack.c.bf16 %v10036_v50, %v10035_v38  ;;  %v11505_v41 = vpack.c.bf16 %v10038_v33, %v10037_v8  ;;  %v9572_v24 = vpop.f32.mrb[232].mxu0  ;;  %v9613_v17 = vpop.f32.mrb[232].mxu1  ;;  %v15869_v38 = vld [vmem:[#allocation45_spill] sm:$0xff] }
 0x3d1   : > { %v9911_v59 = vmax.f32 %v15861_v4, %v9572_v24  ;;  %v9913_v12 = vmax.f32 %v15862_v39, %v9613_v17  ;;  %v9574_v6 = vpop.f32.mrb[233].mxu0  ;;  %v9615_v44 = vpop.f32.mrb[233].mxu1 }
 0x3d2   : > { %10320 = vst [vmem:[%s15326_s10 + $0xa8] sm:$0xff] %v11504_v20  ;;  %10321 = vst [vmem:[%s15326_s10 + $0xb0] sm:$0xff] %v11505_v41  ;;  %v9912_v19 = vmax.f32 %v15863_v40, %v9574_v6  ;;  %v9914_v22 = vmax.f32 %v15864_v1, %v9615_v44  ;;  %v9576_v5 = vpop.f32.mrb[234].mxu0  ;;  %v9617_v55 = vpop.f32.mrb[234].mxu1  ;;  %v15870_v41 = vld [vmem:[#allocation44_spill] sm:$0xff] }
 0x3d3   : > { %v9978_v63 = vadd.f32 %v15312_v47, %v9911_v59  ;;  %v9980_v25 = vadd.f32 %v15312_v47, %v9913_v12  ;;  %v9577_v27 = vpop.f32.mrb[235].mxu0  ;;  %v9618_v56 = vpop.f32.mrb[235].mxu1 }
 0x3d4   : > { %v9979_v0 = vadd.f32 %v15312_v47, %v9912_v19  ;;  %v9981_v10 = vadd.f32 %v15312_v47, %v9914_v22  ;;  %v15871_v27 = vld [vmem:[#allocation47_spill] sm:$0xff] }
 0x3d5   : > { %v10039_v36 = vmax.f32 %v9978_v63, 0.0  ;;  %v10041_v2 = vmax.f32 %v9980_v25, 0.0 }
 0x3d6   : > { %v10040_v48 = vmax.f32 %v9979_v0, 0.0  ;;  %v10042_v14 = vmax.f32 %v9981_v10, 0.0 }
 0x3d8   : > { %v11506_v29 = vpack.c.bf16 %v10040_v48, %v10039_v36  ;;  %v11507_v3 = vpack.c.bf16 %v10042_v14, %v10041_v2  ;;  %v9654_v54 = vpop.f32.mrb[236].mxu0  ;;  %v9695_v11 = vpop.f32.mrb[236].mxu1  ;;  %v15872_v2 = vld [vmem:[#allocation8_spill] sm:$0xff] }
 0x3d9   : > { %v9915_v61 = vmax.f32 %v15865_v52, %v9654_v54  ;;  %v9917_v23 = vmax.f32 %v15866_v37, %v9695_v11  ;;  %v9656_v60 = vpop.f32.mrb[237].mxu0  ;;  %v9697_v31 = vpop.f32.mrb[237].mxu1 }
 0x3da   : > { %10322 = vst [vmem:[%s15326_s10 + $0xb8] sm:$0xff] %v11506_v29  ;;  %10323 = vst [vmem:[%s15326_s10 + $0xc0] sm:$0xff] %v11507_v3  ;;  %v9916_v16 = vmax.f32 %v15867_v34, %v9656_v60  ;;  %v9918_v51 = vmax.f32 %v15868_v53, %v9697_v31  ;;  %v9658_v26 = vpop.f32.mrb[238].mxu0  ;;  %v9699_v28 = vpop.f32.mrb[238].mxu1 }
 0x3db   : > { %v9982_v13 = vadd.f32 %v15312_v47, %v9915_v61  ;;  %v9984_v21 = vadd.f32 %v15312_v47, %v9917_v23  ;;  %v9659_v62 = vpop.f32.mrb[239].mxu0  ;;  %v9700_v43 = vpop.f32.mrb[239].mxu1 }
 0x3dc   : > { %v9983_v9 = vadd.f32 %v15312_v47, %v9916_v16  ;;  %v9985_v58 = vadd.f32 %v15312_v47, %v9918_v51 }
 0x3dd   : > { %v10043_v45 = vmax.f32 %v9982_v13, 0.0  ;;  %v10045_v49 = vmax.f32 %v9984_v21, 0.0 }
 0x3de   : > { %v10044_v35 = vmax.f32 %v9983_v9, 0.0  ;;  %v10046_v42 = vmax.f32 %v9985_v58, 0.0 }
 0x3e0   : > { %v11508_v46 = vpack.c.bf16 %v10044_v35, %v10043_v45  ;;  %v11509_v30 = vpack.c.bf16 %v10046_v42, %v10045_v49  ;;  %v9736_v15 = vpop.f32.mrb[240].mxu0  ;;  %v9777_v18 = vpop.f32.mrb[240].mxu1 }
 0x3e1   : > { %v9919_v8 = vmax.f32 %v15869_v38, %v9736_v15  ;;  %v9921_v50 = vmax.f32 %v15295_v57, %v9777_v18  ;;  %v9738_v33 = vpop.f32.mrb[241].mxu0  ;;  %v9779_v20 = vpop.f32.mrb[241].mxu1 }
 0x3e2   : > { %10324 = vst [vmem:[%s15326_s10 + $0xc8] sm:$0xff] %v11508_v46  ;;  %10325 = vst [vmem:[%s15326_s10 + $0xd0] sm:$0xff] %v11509_v30  ;;  %v9920_v24 = vmax.f32 %v15870_v41, %v9738_v33  ;;  %v9922_v17 = vmax.f32 %v15305_v7, %v9779_v20  ;;  %v9740_v4 = vpop.f32.mrb[242].mxu0  ;;  %v9781_v59 = vpop.f32.mrb[242].mxu1 }
 0x3e3   : > { %v9986_v39 = vadd.f32 %v15312_v47, %v9919_v8  ;;  %v9988_v12 = vadd.f32 %v15312_v47, %v9921_v50  ;;  %v9741_v6 = vpop.f32.mrb[243].mxu0  ;;  %v9782_v44 = vpop.f32.mrb[243].mxu1 }
 0x3e4   : > { %v9987_v57 = vadd.f32 %v15312_v47, %v9920_v24  ;;  %v9989_v40 = vadd.f32 %v15312_v47, %v9922_v17 }
 0x3e5   : > { %v10047_v19 = vmax.f32 %v9986_v39, 0.0  ;;  %v10049_v1 = vmax.f32 %v9988_v12, 0.0 }
 0x3e6   : > { %v10048_v22 = vmax.f32 %v9987_v57, 0.0  ;;  %v10050_v5 = vmax.f32 %v9989_v40, 0.0 }
 0x3e8   : > { %v11510_v55 = vpack.c.bf16 %v10048_v22, %v10047_v19  ;;  %v11511_v7 = vpack.c.bf16 %v10050_v5, %v10049_v1  ;;  %v9818_v63 = vpop.f32.mrb[244].mxu0  ;;  %v9859_v25 = vpop.f32.mrb[244].mxu1 }
 0x3e9   : > { %v9923_v56 = vmax.f32 %v15871_v27, %v9818_v63  ;;  %v9925_v0 = vmax.f32 %v15317_v32, %v9859_v25  ;;  %v9820_v10 = vpop.f32.mrb[245].mxu0  ;;  %v11556_v36 = vpop.f32.mrb[245].mxu1 }
 0x3ea   : > { %10326 = vst [vmem:[%s15326_s10 + $0xd8] sm:$0xff] %v11510_v55  ;;  %10327 = vst [vmem:[%s15326_s10 + $0xe0] sm:$0xff] %v11511_v7  ;;  %v9924_v48 = vmax.f32 %v15872_v2, %v9820_v10  ;;  %v9822_v14 = vpop.f32.mrb[246].mxu0  ;;  %v9862_v29 = vpop.f32.mrb[246].mxu1 }
 0x3eb   : > { %v9990_v3 = vadd.f32 %v15312_v47, %v9923_v56  ;;  %v9992_v54 = vadd.f32 %v15312_v47, %v9925_v0  ;;  %v9823_v11 = vpop.f32.mrb[247].mxu0  ;;  %v11557_v52 = vpop.f32.mrb[247].mxu1 }
 0x3ec   : > { %v9991_v61 = vadd.f32 %v15312_v47, %v9924_v48 }
 0x3ed   : > { %v10051_v37 = vmax.f32 %v9990_v3, 0.0  ;;  %v10053_v32 = vmax.f32 %v9992_v54, 0.0 }
 0x3ee   : > { %v10052_v23 = vmax.f32 %v9991_v61, 0.0 }
 0x3ef   : > { %v11513_v60 = vpack.c.bf16 %v10053_v32, %v10053_v32 }
 0x3f0   : > { %v11512_v31 = vpack.c.bf16 %v10052_v23, %v10051_v37 }
 0x3f1   : > { %10329 = vst [vmem:[%s15326_s10 + $0xf0] sm:$0xf] %v11513_v60 }
 0x3f2   : > { %10328 = vst [vmem:[%s15326_s10 + $0xe8] sm:$0xff] %v11512_v31 }
 0x3f3 PF: > { %s13_s18 = sadd.s32 1, %s12409_s18   ;;  %s15873_s12 = smov %s12389_s13 }
 0x3f4   : > { %p10_p12 = scmp.ge.s32.totalorder %s13_s18, 12   ;;  %s15874_s13 = smov %s12486_s25 }
 0x3f5   : > { %s15875_s14 = smov %s12401_s16  ;;  %s15876_s15 = smov %s12405_s17 }
 0x3f6   : > { %s15877_s16 = smov %s15880_s19  ;;  %s15878_s17 = smov %s15884_s20 }
 0x3f7   :  { %12 = sbr.rel (!%p10_p12) target bundleno = 4 (0x4), region = 102 }

// kernel: net_forward.4
= control target key start
LH: loop header
LB: loop body
LE: loop exit
PB: predicated region body
PF: predicated region fallthrough
CT: control target
= control target key end

     0   :  { %s4222_s12 = smov 0   ;;  %s4224_s13 = smov 0   ;;  %s4771_s0 = inlined_call_operand.vmem [shape: bf16[2,4,128,1152], index: 0, kind: input, shape index: {}]   ;;  %s4772_s1 = inlined_call_operand.vmem [shape: bf16[16,128], index: 1, kind: input, shape index: {}]   ;;  %s4773_s2 = inlined_call_operand.vmem [shape: f32[16,1], index: 2, kind: input, shape index: {}]   ;;  %s4774_s3 = inlined_call_operand.vmem [shape: f32[2,16,1152], index: 3, kind: output, shape index: {}]  }
   0x1   :  { %s4226_s14 = smov 0  }
   0x2 LB: > { %s25_s15 = sadd.s32 1, %s4193_s13  ;;  %p3077_p0 = scmp.ge.s32.totalorder %s4197_s14, 1  ;;  %s4197_s14 = sphi %s4226_s14, %s13_s14   ;;  %s4193_s13 = sphi %s4224_s13, %s4776_s13   ;;  %s4189_s12 = sphi %s4222_s12, %s4775_s12  }
   0x3   : > { %p27_p1 = scmp.ge.s32.totalorder %s25_s15, 2  ;;  %p158_p2 = scmp.lt.s32.totalorder %s4197_s14, 3 }
   0x5   : > { %s4778_s15 = smov (%p27_p1, %s25_s15), 0  ;;  %p159_p3 = pnand %p3077_p0, %p158_p2 }
   0x6   : > { %p191_p4 = scmp.lt.s32.totalorder (!%p159_p3), %s4189_s12, 1  ;;  %v4199_v0 = vmov (!%p159_p3), 0   ;;  %v4288_v35 = vld [vmem:[%s4772_s1] sm:$0xff] (!%p159_p3)   ;;  %vm4201_vm0 = vmmov (!%p159_p3), 0  }
   0x7   : > { %162 = sbr.rel (%p159_p3) target bundleno = 561 (0x231), region = 32  ;;  %699 = vmatprep.mubr.bf16.mxu0 (!%p159_p3), %v4199_v0  ;;  %742 = vmatprep.mubr.bf16.mxu1 (!%p159_p3), %v4199_v0 }
   0x8   : > { %3756 = vset.pattern.permute.xlu0 (!%p159_p3), %v4199_v0 }
   0xe   : > { %s4780_s12 = smov (!%p191_p4, %s4189_s12), 1 }
   0xf   : > { %s3727_s16 = smul.u32 2304, %s4780_s12 }
  0x10   : > { %s3728_s28 = smul.u32 144, %s4780_s12 }
  0x11   : > { %s4249_s19 = scalar_lea.vmem %s4771_s0, %s3727_s16 }
  0x12   : > { %v3757_v1 = vld [vmem:[%s4249_s19 + $0x4] ss:$36 sps:$4 sm:$0xff]   ;;  %v3759_v2 = vld [vmem:[%s4249_s19 + $0xc] ss:$36 sps:$4 sm:$0xff]   ;;  %v3765_v6 = vld [vmem:[%s4249_s19 + $0x54] ss:$36 sps:$4 sm:$0xff]   ;;  %s4715_s4 = scalar_lea.vmem %s4774_s3, %s3728_s28 }
  0x13   : > { %667 = vmatprep.subr.bf16.mxu0 %v3757_v1  ;;  %v3761_v3 = vld [vmem:[%s4249_s19] ss:$36 sps:$4 sm:$0xff]   ;;  %v3762_v4 = vld [vmem:[%s4249_s19 + $0x8] ss:$36 sps:$4 sm:$0xff]   ;;  %710 = vmatprep.subr.bf16.mxu1 %v3759_v2  ;;  %v3768_v8 = vld [vmem:[%s4249_s19 + $0x50] ss:$36 sps:$4 sm:$0xff]  }
  0x14   : > { %v3763_v5 = vld [vmem:[%s4249_s19 + $0x4c] ss:$36 sps:$4 sm:$0xff]   ;;  %668 = vmatpush1.bf16.msra.mxu0 %v3761_v3  ;;  %711 = vmatpush1.bf16.msra.mxu1 %v3762_v4  ;;  %v3769_v9 = vld [vmem:[%s4249_s19 + $0x94] ss:$36 sps:$4 sm:$0xff]   ;;  %v3771_v10 = vld [vmem:[%s4249_s19 + $0x9c] ss:$36 sps:$4 sm:$0xff]  }
  0x15   : > { %v3767_v7 = vld [vmem:[%s4249_s19 + $0x48] ss:$36 sps:$4 sm:$0xff]   ;;  %669 = vmatprep.subr.bf16.mxu0 %v3763_v5  ;;  %712 = vmatprep.subr.bf16.mxu1 %v3765_v6  ;;  %v3773_v11 = vld [vmem:[%s4249_s19 + $0x90] ss:$36 sps:$4 sm:$0xff]   ;;  %v3774_v12 = vld [vmem:[%s4249_s19 + $0x98] ss:$36 sps:$4 sm:$0xff]  }
  0x16   : > { %v3775_v13 = vld [vmem:[%s4249_s19 + $0xdc] ss:$36 sps:$4 sm:$0xff]   ;;  %v3777_v14 = vld [vmem:[%s4249_s19 + $0xe4] ss:$36 sps:$4 sm:$0xff]   ;;  %v3783_v18 = vld [vmem:[%s4249_s19 + $0x12c] ss:$36 sps:$4 sm:$0xff]  }
  0x17   : > { %v3779_v15 = vld [vmem:[%s4249_s19 + $0xd8] ss:$36 sps:$4 sm:$0xff]   ;;  %v3780_v16 = vld [vmem:[%s4249_s19 + $0xe0] ss:$36 sps:$4 sm:$0xff]   ;;  %v3786_v20 = vld [vmem:[%s4249_s19 + $0x128] ss:$36 sps:$4 sm:$0xff]  }
  0x18   : > { %670 = vmatpush1.bf16.msra.mxu0 %v3767_v7  ;;  %713 = vmatpush1.bf16.msra.mxu1 %v3768_v8  ;;  %v3781_v17 = vld [vmem:[%s4249_s19 + $0x124] ss:$36 sps:$4 sm:$0xff]   ;;  %v3787_v21 = vld [vmem:[%s4249_s19 + $0x16c] ss:$36 sps:$4 sm:$0xff]   ;;  %v3789_v22 = vld [vmem:[%s4249_s19 + $0x174] ss:$36 sps:$4 sm:$0xff]  }
  0x19   : > { %671 = vmatprep.subr.bf16.mxu0 %v3769_v9  ;;  %714 = vmatprep.subr.bf16.mxu1 %v3771_v10  ;;  %v3785_v19 = vld [vmem:[%s4249_s19 + $0x120] ss:$36 sps:$4 sm:$0xff]   ;;  %v3791_v23 = vld [vmem:[%s4249_s19 + $0x168] ss:$36 sps:$4 sm:$0xff]   ;;  %v3792_v24 = vld [vmem:[%s4249_s19 + $0x170] ss:$36 sps:$4 sm:$0xff]  }
  0x1a   : > { %v3793_v25 = vld [vmem:[%s4249_s19 + $0x1b4] ss:$36 sps:$4 sm:$0xff]   ;;  %v3795_v26 = vld [vmem:[%s4249_s19 + $0x1bc] ss:$36 sps:$4 sm:$0xff]   ;;  %v3801_v30 = vld [vmem:[%s4249_s19 + $0x204] ss:$36 sps:$4 sm:$0xff]  }
  0x1b   : > { %v3797_v27 = vld [vmem:[%s4249_s19 + $0x1b0] ss:$36 sps:$4 sm:$0xff]   ;;  %v3798_v28 = vld [vmem:[%s4249_s19 + $0x1b8] ss:$36 sps:$4 sm:$0xff]   ;;  %v3804_v32 = vld [vmem:[%s4249_s19 + $0x200] ss:$36 sps:$4 sm:$0xff]  }
  0x1c   : > { %672 = vmatpush1.bf16.msra.mxu0 %v3773_v11  ;;  %715 = vmatpush1.bf16.msra.mxu1 %v3774_v12  ;;  %v3799_v29 = vld [vmem:[%s4249_s19 + $0x1fc] ss:$36 sps:$4 sm:$0xff]   ;;  %v3808_v33 = vld [vmem:[%s4249_s19 + $0x14] ss:$36 sps:$4 sm:$0xff]   ;;  %v3817_v39 = vld [vmem:[%s4249_s19 + $0x64] ss:$36 sps:$4 sm:$0xff]  }
  0x1d   : > { %673 = vmatprep.subr.bf16.mxu0 %v3775_v13  ;;  %716 = vmatprep.subr.bf16.mxu1 %v3777_v14  ;;  %v3803_v31 = vld [vmem:[%s4249_s19 + $0x1f8] ss:$36 sps:$4 sm:$0xff]   ;;  %v3806_v36 = vld [vmem:[%s4249_s19 + $0x10] ss:$36 sps:$4 sm:$0xff]   ;;  %v3815_v41 = vld [vmem:[%s4249_s19 + $0x60] ss:$36 sps:$4 sm:$0xff]  }
  0x1e   : > { %v3811_v34 = vld [vmem:[%s4249_s19 + $0x1c] ss:$36 sps:$4 sm:$0xff]   ;;  %v3820_v42 = vld [vmem:[%s4249_s19 + $0xa4] ss:$36 sps:$4 sm:$0xff]   ;;  %v3823_v43 = vld [vmem:[%s4249_s19 + $0xac] ss:$36 sps:$4 sm:$0xff]  }
  0x1f   : > { %v3809_v37 = vld [vmem:[%s4249_s19 + $0x18] ss:$36 sps:$4 sm:$0xff]   ;;  %v3818_v44 = vld [vmem:[%s4249_s19 + $0xa0] ss:$36 sps:$4 sm:$0xff]   ;;  %v3821_v45 = vld [vmem:[%s4249_s19 + $0xa8] ss:$36 sps:$4 sm:$0xff]  }
  0x20   : > { %674 = vmatpush1.bf16.msra.mxu0 %v3779_v15  ;;  %717 = vmatpush1.bf16.msra.mxu1 %v3780_v16  ;;  %v3814_v38 = vld [vmem:[%s4249_s19 + $0x5c] ss:$36 sps:$4 sm:$0xff]   ;;  %v3826_v46 = vld [vmem:[%s4249_s19 + $0xec] ss:$36 sps:$4 sm:$0xff]   ;;  %v3829_v47 = vld [vmem:[%s4249_s19 + $0xf4] ss:$36 sps:$4 sm:$0xff]  }
  0x21   : > { %675 = vmatprep.subr.bf16.mxu0 %v3781_v17  ;;  %718 = vmatprep.subr.bf16.mxu1 %v3783_v18  ;;  %v3812_v40 = vld [vmem:[%s4249_s19 + $0x58] ss:$36 sps:$4 sm:$0xff]   ;;  %v3824_v48 = vld [vmem:[%s4249_s19 + $0xe8] ss:$36 sps:$4 sm:$0xff]   ;;  %v3827_v49 = vld [vmem:[%s4249_s19 + $0xf0] ss:$36 sps:$4 sm:$0xff]  }
  0x22   : > { %v3832_v50 = vld [vmem:[%s4249_s19 + $0x134] ss:$36 sps:$4 sm:$0xff]   ;;  %v3835_v51 = vld [vmem:[%s4249_s19 + $0x13c] ss:$36 sps:$4 sm:$0xff]   ;;  %v3841_v55 = vld [vmem:[%s4249_s19 + $0x184] ss:$36 sps:$4 sm:$0xff]  }
  0x23   : > { %v3830_v52 = vld [vmem:[%s4249_s19 + $0x130] ss:$36 sps:$4 sm:$0xff]   ;;  %v3833_v53 = vld [vmem:[%s4249_s19 + $0x138] ss:$36 sps:$4 sm:$0xff]   ;;  %v3839_v57 = vld [vmem:[%s4249_s19 + $0x180] ss:$36 sps:$4 sm:$0xff]  }
  0x24   : > { %676 = vmatpush1.bf16.msra.mxu0 %v3785_v19  ;;  %719 = vmatpush1.bf16.msra.mxu1 %v3786_v20  ;;  %v3838_v54 = vld [vmem:[%s4249_s19 + $0x17c] ss:$36 sps:$4 sm:$0xff]   ;;  %v3844_v58 = vld [vmem:[%s4249_s19 + $0x1c4] ss:$36 sps:$4 sm:$0xff]   ;;  %v3847_v59 = vld [vmem:[%s4249_s19 + $0x1cc] ss:$36 sps:$4 sm:$0xff]  }
  0x25   : > { %677 = vmatprep.subr.bf16.mxu0 %v3787_v21  ;;  %720 = vmatprep.subr.bf16.mxu1 %v3789_v22  ;;  %v3836_v56 = vld [vmem:[%s4249_s19 + $0x178] ss:$36 sps:$4 sm:$0xff]   ;;  %v3842_v60 = vld [vmem:[%s4249_s19 + $0x1c0] ss:$36 sps:$4 sm:$0xff]   ;;  %v3845_v61 = vld [vmem:[%s4249_s19 + $0x1c8] ss:$36 sps:$4 sm:$0xff]  }
  0x26   : > { %v3850_v62 = vld [vmem:[%s4249_s19 + $0x20c] ss:$36 sps:$4 sm:$0xff]   ;;  %v3853_v63 = vld [vmem:[%s4249_s19 + $0x214] ss:$36 sps:$4 sm:$0xff]   ;;  %v3856_v3 = vld [vmem:[%s4249_s19 + $0x244] ss:$36 sps:$4 sm:$0xff]  }
  0x27   : > { %v3848_v1 = vld [vmem:[%s4249_s19 + $0x208] ss:$36 sps:$4 sm:$0xff]   ;;  %v3851_v2 = vld [vmem:[%s4249_s19 + $0x210] ss:$36 sps:$4 sm:$0xff]   ;;  %v3854_v4 = vld [vmem:[%s4249_s19 + $0x240] ss:$36 sps:$4 sm:$0xff]  }
  0x28   : > { %678 = vmatpush1.bf16.msra.mxu0 %v3791_v23  ;;  %721 = vmatpush1.bf16.msra.mxu1 %v3792_v24  ;;  %v3857_v5 = vld [vmem:[%s4249_s19 + $0x20] ss:$36 sps:$4 sm:$0xff]   ;;  %v4200_v6 = vmov 0.0   ;;  %v3860_v7 = vld [vmem:[%s4249_s19 + $0x28c] ss:$36 sps:$4 sm:$0xff]  }
  0x29   : > { %679 = vmatprep.subr.bf16.mxu0 %v3793_v25  ;;  %722 = vmatprep.subr.bf16.mxu1 %v3795_v26  ;;  %v3858_v8 = vld [vmem:[%s4249_s19 + $0x288] ss:$36 sps:$4 sm:$0xff]   ;;  %v3864_v10 = vld [vmem:[%s4249_s19 + $0x2d4] ss:$36 sps:$4 sm:$0xff]   ;;  %v3868_v13 = vld [vmem:[%s4249_s19 + $0x31c] ss:$36 sps:$4 sm:$0xff]  }
  0x2a   : > { %v3861_v9 = vld [vmem:[%s4249_s19 + $0x68] ss:$36 sps:$4 sm:$0xff]   ;;  %v3862_v11 = vld [vmem:[%s4249_s19 + $0x2d0] ss:$36 sps:$4 sm:$0xff]   ;;  %v3866_v14 = vld [vmem:[%s4249_s19 + $0x318] ss:$36 sps:$4 sm:$0xff]  }
  0x2b   : > { %v3865_v12 = vld [vmem:[%s4249_s19 + $0xb0] ss:$36 sps:$4 sm:$0xff]   ;;  %v3869_v15 = vld [vmem:[%s4249_s19 + $0xf8] ss:$36 sps:$4 sm:$0xff]   ;;  %v3872_v16 = vld [vmem:[%s4249_s19 + $0x364] ss:$36 sps:$4 sm:$0xff]  }
  0x2c   : > { %680 = vmatpush1.bf16.msra.mxu0 %v3797_v27  ;;  %723 = vmatpush1.bf16.msra.mxu1 %v3798_v28  ;;  %v3870_v17 = vld [vmem:[%s4249_s19 + $0x360] ss:$36 sps:$4 sm:$0xff]   ;;  %v3876_v19 = vld [vmem:[%s4249_s19 + $0x3ac] ss:$36 sps:$4 sm:$0xff]   ;;  %v3880_v22 = vld [vmem:[%s4249_s19 + $0x3f4] ss:$36 sps:$4 sm:$0xff]  }
  0x2d   : > { %681 = vmatprep.subr.bf16.mxu0 %v3799_v29  ;;  %724 = vmatprep.subr.bf16.mxu1 %v3801_v30  ;;  %v3873_v18 = vld [vmem:[%s4249_s19 + $0x140] ss:$36 sps:$4 sm:$0xff]   ;;  %v3874_v20 = vld [vmem:[%s4249_s19 + $0x3a8] ss:$36 sps:$4 sm:$0xff]   ;;  %v3878_v23 = vld [vmem:[%s4249_s19 + $0x3f0] ss:$36 sps:$4 sm:$0xff]  }
  0x2e   : > { %v3877_v21 = vld [vmem:[%s4249_s19 + $0x188] ss:$36 sps:$4 sm:$0xff]   ;;  %v3881_v24 = vld [vmem:[%s4249_s19 + $0x1d0] ss:$36 sps:$4 sm:$0xff]   ;;  %v3884_v25 = vld [vmem:[%s4249_s19 + $0x43c] ss:$36 sps:$4 sm:$0xff]  }
  0x2f   : > { %v3882_v26 = vld [vmem:[%s4249_s19 + $0x438] ss:$36 sps:$4 sm:$0xff]   ;;  %v3888_v28 = vld [vmem:[%s4249_s19 + $0x24c] ss:$36 sps:$4 sm:$0xff]  }
  0x30   : > { %682 = vmatpush1.bf16.msra.mxu0 %v3803_v31  ;;  %725 = vmatpush1.bf16.msra.mxu1 %v3804_v32  ;;  %v3885_v27 = vld [vmem:[%s4249_s19 + $0x218] ss:$36 sps:$4 sm:$0xff]   ;;  %v3886_v30 = vld [vmem:[%s4249_s19 + $0x248] ss:$36 sps:$4 sm:$0xff]   ;;  %v3889_v31 = vld [vmem:[%s4249_s19 + $0x250] ss:$36 sps:$4 sm:$0xff]  }
  0x31   : > { %753 = vmatprep.subr.bf16.mxu0 %v3808_v33  ;;  %796 = vmatprep.subr.bf16.mxu1 %v3811_v34  ;;  %v3891_v29 = vld [vmem:[%s4249_s19 + $0x254] ss:$36 sps:$4 sm:$0xff]   ;;  %v3897_v33 = vld [vmem:[%s4249_s19 + $0x29c] ss:$36 sps:$4 sm:$0xff]  }
  0x32   : > { %v3894_v32 = vld [vmem:[%s4249_s19 + $0x294] ss:$36 sps:$4 sm:$0xff]  }
  0x33   : > { %700 = vmatmul.mubr.bf16.vlgmr.msra.gmra.mrb[0].mxu0 %v4288_v35  ;;  %743 = vmatmul.mubr.bf16.vlgmr.msra.gmra.mrb[0].mxu1 %v4288_v35  ;;  %v3892_v34 = vld [vmem:[%s4249_s19 + $0x290] ss:$36 sps:$4 sm:$0xff]  }
  0x34   : > { %754 = vmatpush1.bf16.msra.mxu0 %v3806_v36  ;;  %797 = vmatpush1.bf16.msra.mxu1 %v3809_v37  ;;  %v3895_v36 = vld [vmem:[%s4249_s19 + $0x298] ss:$36 sps:$4 sm:$0xff]  }
  0x35   : > { %755 = vmatprep.subr.bf16.mxu0 %v3814_v38  ;;  %798 = vmatprep.subr.bf16.mxu1 %v3817_v39  ;;  %v3900_v37 = vld [vmem:[%s4249_s19 + $0x2dc] ss:$36 sps:$4 sm:$0xff]   ;;  %v3903_v38 = vld [vmem:[%s4249_s19 + $0x2e4] ss:$36 sps:$4 sm:$0xff]  }
  0x36   : > { %785 = vmatprep.mubr.bf16.mxu0 %v4199_v0  ;;  %828 = vmatprep.mubr.bf16.mxu1 %v4199_v0  ;;  %v3898_v39 = vld [vmem:[%s4249_s19 + $0x2d8] ss:$36 sps:$4 sm:$0xff]  }
  0x38   : > { %756 = vmatpush1.bf16.msra.mxu0 %v3812_v40  ;;  %799 = vmatpush1.bf16.msra.mxu1 %v3815_v41  ;;  %v3901_v40 = vld [vmem:[%s4249_s19 + $0x2e0] ss:$36 sps:$4 sm:$0xff]  }
  0x39   : > { %757 = vmatprep.subr.bf16.mxu0 %v3820_v42  ;;  %800 = vmatprep.subr.bf16.mxu1 %v3823_v43  ;;  %v3906_v41 = vld [vmem:[%s4249_s19 + $0x324] ss:$36 sps:$4 sm:$0xff]   ;;  %v3909_v42 = vld [vmem:[%s4249_s19 + $0x32c] ss:$36 sps:$4 sm:$0xff]  }
  0x3a   : > { %v3904_v43 = vld [vmem:[%s4249_s19 + $0x320] ss:$36 sps:$4 sm:$0xff]  }
  0x3c   : > { %758 = vmatpush1.bf16.msra.mxu0 %v3818_v44  ;;  %801 = vmatpush1.bf16.msra.mxu1 %v3821_v45  ;;  %v3907_v44 = vld [vmem:[%s4249_s19 + $0x328] ss:$36 sps:$4 sm:$0xff]  }
  0x3d   : > { %759 = vmatprep.subr.bf16.mxu0 %v3826_v46  ;;  %802 = vmatprep.subr.bf16.mxu1 %v3829_v47  ;;  %v3912_v45 = vld [vmem:[%s4249_s19 + $0x36c] ss:$36 sps:$4 sm:$0xff]   ;;  %v3915_v46 = vld [vmem:[%s4249_s19 + $0x374] ss:$36 sps:$4 sm:$0xff]  }
  0x3e   : > { %v3910_v47 = vld [vmem:[%s4249_s19 + $0x368] ss:$36 sps:$4 sm:$0xff]  }
  0x40   : > { %760 = vmatpush1.bf16.msra.mxu0 %v3824_v48  ;;  %803 = vmatpush1.bf16.msra.mxu1 %v3827_v49  ;;  %v3913_v48 = vld [vmem:[%s4249_s19 + $0x370] ss:$36 sps:$4 sm:$0xff]  }
  0x41   : > { %761 = vmatprep.subr.bf16.mxu0 %v3832_v50  ;;  %804 = vmatprep.subr.bf16.mxu1 %v3835_v51  ;;  %v3918_v49 = vld [vmem:[%s4249_s19 + $0x3b4] ss:$36 sps:$4 sm:$0xff]   ;;  %v3921_v50 = vld [vmem:[%s4249_s19 + $0x3bc] ss:$36 sps:$4 sm:$0xff]  }
  0x42   : > { %v3916_v51 = vld [vmem:[%s4249_s19 + $0x3b0] ss:$36 sps:$4 sm:$0xff]  }
  0x44   : > { %762 = vmatpush1.bf16.msra.mxu0 %v3830_v52  ;;  %805 = vmatpush1.bf16.msra.mxu1 %v3833_v53  ;;  %v3919_v52 = vld [vmem:[%s4249_s19 + $0x3b8] ss:$36 sps:$4 sm:$0xff]  }
  0x45   : > { %763 = vmatprep.subr.bf16.mxu0 %v3838_v54  ;;  %806 = vmatprep.subr.bf16.mxu1 %v3841_v55  ;;  %v3924_v53 = vld [vmem:[%s4249_s19 + $0x3fc] ss:$36 sps:$4 sm:$0xff]   ;;  %v3927_v54 = vld [vmem:[%s4249_s19 + $0x404] ss:$36 sps:$4 sm:$0xff]  }
  0x46   : > { %v3922_v55 = vld [vmem:[%s4249_s19 + $0x3f8] ss:$36 sps:$4 sm:$0xff]  }
  0x48   : > { %764 = vmatpush1.bf16.msra.mxu0 %v3836_v56  ;;  %807 = vmatpush1.bf16.msra.mxu1 %v3839_v57  ;;  %v3925_v56 = vld [vmem:[%s4249_s19 + $0x400] ss:$36 sps:$4 sm:$0xff]  }
  0x49   : > { %765 = vmatprep.subr.bf16.mxu0 %v3844_v58  ;;  %808 = vmatprep.subr.bf16.mxu1 %v3847_v59  ;;  %v3930_v57 = vld [vmem:[%s4249_s19 + $0x444] ss:$36 sps:$4 sm:$0xff]   ;;  %v3933_v58 = vld [vmem:[%s4249_s19 + $0x44c] ss:$36 sps:$4 sm:$0xff]  }
  0x4a   : > { %v3928_v59 = vld [vmem:[%s4249_s19 + $0x440] ss:$36 sps:$4 sm:$0xff]  }
  0x4c   : > { %766 = vmatpush1.bf16.msra.mxu0 %v3842_v60  ;;  %809 = vmatpush1.bf16.msra.mxu1 %v3845_v61  ;;  %v3931_v60 = vld [vmem:[%s4249_s19 + $0x448] ss:$36 sps:$4 sm:$0xff]   ;;  %v3936_v61 = vld [vmem:[%s4249_s19 + $0x25c] ss:$36 sps:$4 sm:$0xff]  }
  0x4d   : > { %767 = vmatprep.subr.bf16.mxu0 %v3850_v62  ;;  %810 = vmatprep.subr.bf16.mxu1 %v3853_v63  ;;  %v3934_v62 = vld [vmem:[%s4249_s19 + $0x258] ss:$36 sps:$4 sm:$0xff]   ;;  %v3937_v63 = vld [vmem:[%s4249_s19 + $0x260] ss:$36 sps:$4 sm:$0xff]  }
  0x50   : > { %768 = vmatpush1.bf16.msra.mxu0 %v3848_v1  ;;  %811 = vmatpush1.bf16.msra.mxu1 %v3851_v2  ;;  %v3940_v1 = vld [vmem:[%s4249_s19 + $0x2a4] ss:$36 sps:$4 sm:$0xff]  }
  0x51   : > { %3647 = vmatprep.subr.bf16.mxu0 %v4200_v6  ;;  %1329 = vmatprep.subr.bf16.mxu1 %v3856_v3  ;;  %v3938_v2 = vld [vmem:[%s4249_s19 + $0x2a0] ss:$36 sps:$4 sm:$0xff]   ;;  %v3941_v3 = vld [vmem:[%s4249_s19 + $0x2a8] ss:$36 sps:$4 sm:$0xff]  }
  0x53   : > { %786 = vmatmul.mubr.bf16.vlgmr.msra.gmra.mrb[4].mxu0 %v4288_v35  ;;  %829 = vmatmul.mubr.bf16.vlgmr.msra.gmra.mrb[4].mxu1 %v4288_v35 }
  0x54   : > { %3648 = vmatpush3.bf16.msra.mxu0 %v3857_v5  ;;  %1330 = vmatpush1.bf16.msra.mxu1 %v3854_v4  ;;  %v3944_v4 = vld [vmem:[%s4249_s19 + $0x2ec] ss:$36 sps:$4 sm:$0xff]  }
  0x55   : > { %3649 = vmatprep.subr.bf16.mxu0 %v4200_v6  ;;  %1331 = vmatprep.subr.bf16.mxu1 %v3860_v7  ;;  %v3942_v5 = vld [vmem:[%s4249_s19 + $0x2e8] ss:$36 sps:$4 sm:$0xff]   ;;  %v3945_v7 = vld [vmem:[%s4249_s19 + $0x2f0] ss:$36 sps:$4 sm:$0xff]  }
  0x56   : > { %3663 = vmatprep.mubr.msk.bf16.mxu0 %vm4201_vm0, %v4200_v6  ;;  %1361 = vmatprep.mubr.bf16.mxu1 %v4199_v0 }
  0x58   : > { %3650 = vmatpush3.bf16.msra.mxu0 %v3861_v9  ;;  %1332 = vmatpush1.bf16.msra.mxu1 %v3858_v8  ;;  %v3948_v8 = vld [vmem:[%s4249_s19 + $0x334] ss:$36 sps:$4 sm:$0xff]  }
  0x59   : > { %3651 = vmatprep.subr.bf16.mxu0 %v4200_v6  ;;  %1333 = vmatprep.subr.bf16.mxu1 %v3864_v10  ;;  %v3946_v9 = vld [vmem:[%s4249_s19 + $0x330] ss:$36 sps:$4 sm:$0xff]   ;;  %v3949_v10 = vld [vmem:[%s4249_s19 + $0x338] ss:$36 sps:$4 sm:$0xff]  }
  0x5c   : > { %3652 = vmatpush3.bf16.msra.mxu0 %v3865_v12  ;;  %1334 = vmatpush1.bf16.msra.mxu1 %v3862_v11  ;;  %v3952_v11 = vld [vmem:[%s4249_s19 + $0x37c] ss:$36 sps:$4 sm:$0xff]  }
  0x5d   : > { %3653 = vmatprep.subr.bf16.mxu0 %v4200_v6  ;;  %1335 = vmatprep.subr.bf16.mxu1 %v3868_v13  ;;  %v3950_v12 = vld [vmem:[%s4249_s19 + $0x378] ss:$36 sps:$4 sm:$0xff]   ;;  %v3953_v13 = vld [vmem:[%s4249_s19 + $0x380] ss:$36 sps:$4 sm:$0xff]  }
  0x60   : > { %3654 = vmatpush3.bf16.msra.mxu0 %v3869_v15  ;;  %1336 = vmatpush1.bf16.msra.mxu1 %v3866_v14  ;;  %v3956_v14 = vld [vmem:[%s4249_s19 + $0x3c4] ss:$36 sps:$4 sm:$0xff]  }
  0x61   : > { %3655 = vmatprep.subr.bf16.mxu0 %v4200_v6  ;;  %1337 = vmatprep.subr.bf16.mxu1 %v3872_v16  ;;  %v3954_v15 = vld [vmem:[%s4249_s19 + $0x3c0] ss:$36 sps:$4 sm:$0xff]   ;;  %v3957_v16 = vld [vmem:[%s4249_s19 + $0x3c8] ss:$36 sps:$4 sm:$0xff]  }
  0x64   : > { %3656 = vmatpush3.bf16.msra.mxu0 %v3873_v18  ;;  %1338 = vmatpush1.bf16.msra.mxu1 %v3870_v17  ;;  %v3960_v17 = vld [vmem:[%s4249_s19 + $0x40c] ss:$36 sps:$4 sm:$0xff]  }
  0x65   : > { %3657 = vmatprep.subr.bf16.mxu0 %v4200_v6  ;;  %1339 = vmatprep.subr.bf16.mxu1 %v3876_v19  ;;  %v3958_v18 = vld [vmem:[%s4249_s19 + $0x408] ss:$36 sps:$4 sm:$0xff]   ;;  %v3961_v19 = vld [vmem:[%s4249_s19 + $0x410] ss:$36 sps:$4 sm:$0xff]  }
  0x68   : > { %3658 = vmatpush3.bf16.msra.mxu0 %v3877_v21  ;;  %1340 = vmatpush1.bf16.msra.mxu1 %v3874_v20  ;;  %v3964_v20 = vld [vmem:[%s4249_s19 + $0x454] ss:$36 sps:$4 sm:$0xff]  }
  0x69   : > { %3659 = vmatprep.subr.bf16.mxu0 %v4200_v6  ;;  %1341 = vmatprep.subr.bf16.mxu1 %v3880_v22  ;;  %v3962_v21 = vld [vmem:[%s4249_s19 + $0x450] ss:$36 sps:$4 sm:$0xff]   ;;  %v3965_v22 = vld [vmem:[%s4249_s19 + $0x458] ss:$36 sps:$4 sm:$0xff]  }
  0x6c   : > { %3660 = vmatpush3.bf16.msra.mxu0 %v3881_v24  ;;  %1342 = vmatpush1.bf16.msra.mxu1 %v3878_v23  ;;  %v3968_v23 = vld [vmem:[%s4249_s19 + $0x484] ss:$36 sps:$4 sm:$0xff]   ;;  %v3971_v24 = vld [vmem:[%s4249_s19 + $0x48c] ss:$36 sps:$4 sm:$0xff]  }
  0x6d   : > { %3661 = vmatprep.subr.bf16.mxu0 %v4200_v6  ;;  %1343 = vmatprep.subr.bf16.mxu1 %v3884_v25  ;;  %v3966_v25 = vld [vmem:[%s4249_s19 + $0x480] ss:$36 sps:$4 sm:$0xff]  }
  0x70   : > { %3662 = vmatpush3.bf16.msra.mxu0 %v3885_v27  ;;  %1344 = vmatpush1.bf16.msra.mxu1 %v3882_v26  ;;  %v3969_v26 = vld [vmem:[%s4249_s19 + $0x488] ss:$36 sps:$4 sm:$0xff]  }
  0x71   : > { %1372 = vmatprep.subr.bf16.mxu0 %v3888_v28  ;;  %1415 = vmatprep.subr.bf16.mxu1 %v3891_v29  ;;  %v3974_v27 = vld [vmem:[%s4249_s19 + $0x4cc] ss:$36 sps:$4 sm:$0xff]   ;;  %v3977_v28 = vld [vmem:[%s4249_s19 + $0x4d4] ss:$36 sps:$4 sm:$0xff]  }
  0x72   : > { %v3972_v29 = vld [vmem:[%s4249_s19 + $0x4c8] ss:$36 sps:$4 sm:$0xff]  }
  0x73   : > { %3664 = vmatmul.mubr.bf16.vlgmr.msra.gmra.mrb[8].mxu0 %v4288_v35  ;;  %1362 = vmatmul.mubr.bf16.vlgmr.msra.gmra.mrb[8].mxu1 %v4288_v35 }
  0x74   : > { %1373 = vmatpush1.bf16.msra.mxu0 %v3886_v30  ;;  %1416 = vmatpush1.bf16.msra.mxu1 %v3889_v31  ;;  %v3975_v30 = vld [vmem:[%s4249_s19 + $0x4d0] ss:$36 sps:$4 sm:$0xff]  }
  0x75   : > { %1374 = vmatprep.subr.bf16.mxu0 %v3894_v32  ;;  %1417 = vmatprep.subr.bf16.mxu1 %v3897_v33  ;;  %v3980_v31 = vld [vmem:[%s4249_s19 + $0x514] ss:$36 sps:$4 sm:$0xff]   ;;  %v3983_v32 = vld [vmem:[%s4249_s19 + $0x51c] ss:$36 sps:$4 sm:$0xff]  }
  0x76   : > { %1404 = vmatprep.mubr.bf16.mxu0 %v4199_v0  ;;  %1447 = vmatprep.mubr.bf16.mxu1 %v4199_v0  ;;  %v3978_v33 = vld [vmem:[%s4249_s19 + $0x510] ss:$36 sps:$4 sm:$0xff]  }
  0x78   : > { %1375 = vmatpush1.bf16.msra.mxu0 %v3892_v34  ;;  %1418 = vmatpush1.bf16.msra.mxu1 %v3895_v36  ;;  %v3986_v34 = vld [vmem:[%s4249_s19 + $0x55c] ss:$36 sps:$4 sm:$0xff]   ;;  %v3989_v36 = vld [vmem:[%s4249_s19 + $0x564] ss:$36 sps:$4 sm:$0xff]  }
  0x79   : > { %1376 = vmatprep.subr.bf16.mxu0 %v3900_v37  ;;  %1419 = vmatprep.subr.bf16.mxu1 %v3903_v38  ;;  %v3984_v37 = vld [vmem:[%s4249_s19 + $0x558] ss:$36 sps:$4 sm:$0xff]   ;;  %v3987_v38 = vld [vmem:[%s4249_s19 + $0x560] ss:$36 sps:$4 sm:$0xff]  }
  0x7c   : > { %1377 = vmatpush1.bf16.msra.mxu0 %v3898_v39  ;;  %1420 = vmatpush1.bf16.msra.mxu1 %v3901_v40  ;;  %v3992_v39 = vld [vmem:[%s4249_s19 + $0x5a4] ss:$36 sps:$4 sm:$0xff]   ;;  %v3995_v40 = vld [vmem:[%s4249_s19 + $0x5ac] ss:$36 sps:$4 sm:$0xff]  }
  0x7d   : > { %1378 = vmatprep.subr.bf16.mxu0 %v3906_v41  ;;  %1421 = vmatprep.subr.bf16.mxu1 %v3909_v42  ;;  %v3990_v41 = vld [vmem:[%s4249_s19 + $0x5a0] ss:$36 sps:$4 sm:$0xff]   ;;  %v3993_v42 = vld [vmem:[%s4249_s19 + $0x5a8] ss:$36 sps:$4 sm:$0xff]  }
  0x80   : > { %1379 = vmatpush1.bf16.msra.mxu0 %v3904_v43  ;;  %1422 = vmatpush1.bf16.msra.mxu1 %v3907_v44  ;;  %v3998_v43 = vld [vmem:[%s4249_s19 + $0x5ec] ss:$36 sps:$4 sm:$0xff]   ;;  %v4001_v44 = vld [vmem:[%s4249_s19 + $0x5f4] ss:$36 sps:$4 sm:$0xff]  }
  0x81   : > { %1380 = vmatprep.subr.bf16.mxu0 %v3912_v45  ;;  %1423 = vmatprep.subr.bf16.mxu1 %v3915_v46  ;;  %v3996_v45 = vld [vmem:[%s4249_s19 + $0x5e8] ss:$36 sps:$4 sm:$0xff]   ;;  %v3999_v46 = vld [vmem:[%s4249_s19 + $0x5f0] ss:$36 sps:$4 sm:$0xff]  }
  0x84   : > { %1381 = vmatpush1.bf16.msra.mxu0 %v3910_v47  ;;  %1424 = vmatpush1.bf16.msra.mxu1 %v3913_v48  ;;  %v4004_v47 = vld [vmem:[%s4249_s19 + $0x634] ss:$36 sps:$4 sm:$0xff]   ;;  %v4007_v48 = vld [vmem:[%s4249_s19 + $0x63c] ss:$36 sps:$4 sm:$0xff]  }
  0x85   : > { %1382 = vmatprep.subr.bf16.mxu0 %v3918_v49  ;;  %1425 = vmatprep.subr.bf16.mxu1 %v3921_v50  ;;  %v4002_v49 = vld [vmem:[%s4249_s19 + $0x630] ss:$36 sps:$4 sm:$0xff]   ;;  %v4005_v50 = vld [vmem:[%s4249_s19 + $0x638] ss:$36 sps:$4 sm:$0xff]  }
  0x88   : > { %1383 = vmatpush1.bf16.msra.mxu0 %v3916_v51  ;;  %1426 = vmatpush1.bf16.msra.mxu1 %v3919_v52  ;;  %v4010_v51 = vld [vmem:[%s4249_s19 + $0x67c] ss:$36 sps:$4 sm:$0xff]   ;;  %v4013_v52 = vld [vmem:[%s4249_s19 + $0x684] ss:$36 sps:$4 sm:$0xff]  }
  0x89   : > { %1384 = vmatprep.subr.bf16.mxu0 %v3924_v53  ;;  %1427 = vmatprep.subr.bf16.mxu1 %v3927_v54  ;;  %v4008_v53 = vld [vmem:[%s4249_s19 + $0x678] ss:$36 sps:$4 sm:$0xff]   ;;  %v4011_v54 = vld [vmem:[%s4249_s19 + $0x680] ss:$36 sps:$4 sm:$0xff]  }
  0x8c   : > { %1385 = vmatpush1.bf16.msra.mxu0 %v3922_v55  ;;  %1428 = vmatpush1.bf16.msra.mxu1 %v3925_v56  ;;  %v4016_v55 = vld [vmem:[%s4249_s19 + $0x494] ss:$36 sps:$4 sm:$0xff]   ;;  %v4019_v56 = vld [vmem:[%s4249_s19 + $0x49c] ss:$36 sps:$4 sm:$0xff]  }
  0x8d   : > { %1386 = vmatprep.subr.bf16.mxu0 %v3930_v57  ;;  %1429 = vmatprep.subr.bf16.mxu1 %v3933_v58  ;;  %v4014_v57 = vld [vmem:[%s4249_s19 + $0x490] ss:$36 sps:$4 sm:$0xff]   ;;  %v4017_v58 = vld [vmem:[%s4249_s19 + $0x498] ss:$36 sps:$4 sm:$0xff]  }
  0x90   : > { %1387 = vmatpush1.bf16.msra.mxu0 %v3928_v59  ;;  %1430 = vmatpush1.bf16.msra.mxu1 %v3931_v60  ;;  %v4022_v59 = vld [vmem:[%s4249_s19 + $0x4dc] ss:$36 sps:$4 sm:$0xff]   ;;  %v4025_v60 = vld [vmem:[%s4249_s19 + $0x4e4] ss:$36 sps:$4 sm:$0xff]  }
  0x91   : > { %1458 = vmatprep.subr.bf16.mxu0 %v3936_v61  ;;  %3667 = vmatprep.subr.bf16.mxu1 %v4200_v6  ;;  %v4479_v61 = vld [vmem:[%s4772_s1] sm:$0xff]  }
  0x93   : > { %1405 = vmatmul.mubr.bf16.vlgmr.msra.gmra.mrb[12].mxu0 %v4288_v35  ;;  %1448 = vmatmul.mubr.bf16.vlgmr.msra.gmra.mrb[12].mxu1 %v4288_v35 }
  0x94   : > { %1459 = vmatpush1.bf16.msra.mxu0 %v3934_v62  ;;  %3668 = vmatpush3.bf16.msra.mxu1 %v3937_v63  ;;  %v4020_v62 = vld [vmem:[%s4249_s19 + $0x4d8] ss:$36 sps:$4 sm:$0xff]   ;;  %v4023_v63 = vld [vmem:[%s4249_s19 + $0x4e0] ss:$36 sps:$4 sm:$0xff]  }
  0x95   : > { %1460 = vmatprep.subr.bf16.mxu0 %v3940_v1  ;;  %3669 = vmatprep.subr.bf16.mxu1 %v4200_v6  ;;  %v4028_v1 = vld [vmem:[%s4249_s19 + $0x524] ss:$36 sps:$4 sm:$0xff]  }
  0x96   : > { %1490 = vmatprep.mubr.bf16.mxu0 %v4199_v0  ;;  %3683 = vmatprep.mubr.msk.bf16.mxu1 %vm4201_vm0, %v4200_v6 }
  0x98   : > { %1461 = vmatpush1.bf16.msra.mxu0 %v3938_v2  ;;  %3670 = vmatpush3.bf16.msra.mxu1 %v3941_v3  ;;  %v4031_v2 = vld [vmem:[%s4249_s19 + $0x52c] ss:$36 sps:$4 sm:$0xff]   ;;  %v4026_v3 = vld [vmem:[%s4249_s19 + $0x520] ss:$36 sps:$4 sm:$0xff]  }
  0x99   : > { %1462 = vmatprep.subr.bf16.mxu0 %v3944_v4  ;;  %3671 = vmatprep.subr.bf16.mxu1 %v4200_v6  ;;  %v4029_v4 = vld [vmem:[%s4249_s19 + $0x528] ss:$36 sps:$4 sm:$0xff]  }
  0x9c   : > { %1463 = vmatpush1.bf16.msra.mxu0 %v3942_v5  ;;  %3672 = vmatpush3.bf16.msra.mxu1 %v3945_v7  ;;  %v4034_v5 = vld [vmem:[%s4249_s19 + $0x56c] ss:$36 sps:$4 sm:$0xff]   ;;  %v4037_v7 = vld [vmem:[%s4249_s19 + $0x574] ss:$36 sps:$4 sm:$0xff]  }
  0x9d   : > { %1464 = vmatprep.subr.bf16.mxu0 %v3948_v8  ;;  %3673 = vmatprep.subr.bf16.mxu1 %v4200_v6  ;;  %v4032_v8 = vld [vmem:[%s4249_s19 + $0x568] ss:$36 sps:$4 sm:$0xff]  }
  0xa0   : > { %1465 = vmatpush1.bf16.msra.mxu0 %v3946_v9  ;;  %3674 = vmatpush3.bf16.msra.mxu1 %v3949_v10  ;;  %v4035_v9 = vld [vmem:[%s4249_s19 + $0x570] ss:$36 sps:$4 sm:$0xff]  }
  0xa1   : > { %1466 = vmatprep.subr.bf16.mxu0 %v3952_v11  ;;  %3675 = vmatprep.subr.bf16.mxu1 %v4200_v6  ;;  %v4040_v10 = vld [vmem:[%s4249_s19 + $0x5b4] ss:$36 sps:$4 sm:$0xff]   ;;  %v4043_v11 = vld [vmem:[%s4249_s19 + $0x5bc] ss:$36 sps:$4 sm:$0xff]  }
  0xa4   : > { %1467 = vmatpush1.bf16.msra.mxu0 %v3950_v12  ;;  %3676 = vmatpush3.bf16.msra.mxu1 %v3953_v13  ;;  %v4038_v12 = vld [vmem:[%s4249_s19 + $0x5b0] ss:$36 sps:$4 sm:$0xff]   ;;  %v4041_v13 = vld [vmem:[%s4249_s19 + $0x5b8] ss:$36 sps:$4 sm:$0xff]  }
  0xa5   : > { %1468 = vmatprep.subr.bf16.mxu0 %v3956_v14  ;;  %3677 = vmatprep.subr.bf16.mxu1 %v4200_v6  ;;  %v4046_v14 = vld [vmem:[%s4249_s19 + $0x5fc] ss:$36 sps:$4 sm:$0xff]  }
  0xa8   : > { %1469 = vmatpush1.bf16.msra.mxu0 %v3954_v15  ;;  %3678 = vmatpush3.bf16.msra.mxu1 %v3957_v16  ;;  %v4049_v15 = vld [vmem:[%s4249_s19 + $0x604] ss:$36 sps:$4 sm:$0xff]   ;;  %v4044_v16 = vld [vmem:[%s4249_s19 + $0x5f8] ss:$36 sps:$4 sm:$0xff]  }
  0xa9   : > { %1470 = vmatprep.subr.bf16.mxu0 %v3960_v17  ;;  %3679 = vmatprep.subr.bf16.mxu1 %v4200_v6  ;;  %v4047_v17 = vld [vmem:[%s4249_s19 + $0x600] ss:$36 sps:$4 sm:$0xff]  }
  0xac   : > { %1471 = vmatpush1.bf16.msra.mxu0 %v3958_v18  ;;  %3680 = vmatpush3.bf16.msra.mxu1 %v3961_v19  ;;  %v4052_v18 = vld [vmem:[%s4249_s19 + $0x644] ss:$36 sps:$4 sm:$0xff]   ;;  %v4055_v19 = vld [vmem:[%s4249_s19 + $0x64c] ss:$36 sps:$4 sm:$0xff]  }
  0xad   : > { %1472 = vmatprep.subr.bf16.mxu0 %v3964_v20  ;;  %3681 = vmatprep.subr.bf16.mxu1 %v4200_v6  ;;  %v2920_v20 = vld [vmem:[%s4773_s2] sm:$0xff] }
  0xae   : > { %2924 = vperm.xlu0 %3756, %v2920_v20   ;;  %v4129_v20 = vld [vmem:[%s4249_s19 + $0x83c] ss:$36 sps:$4 sm:$0xff]  }
  0xb0   : > { %1473 = vmatpush1.bf16.msra.mxu0 %v3962_v21  ;;  %3682 = vmatpush3.bf16.msra.mxu1 %v3965_v22  ;;  %v4050_v21 = vld [vmem:[%s4249_s19 + $0x640] ss:$36 sps:$4 sm:$0xff]   ;;  %v4053_v22 = vld [vmem:[%s4249_s19 + $0x648] ss:$36 sps:$4 sm:$0xff]  }
  0xb1   : > { %2009 = vmatprep.subr.bf16.mxu0 %v3968_v23  ;;  %2052 = vmatprep.subr.bf16.mxu1 %v3971_v24  ;;  %v4058_v23 = vld [vmem:[%s4249_s19 + $0x68c] ss:$36 sps:$4 sm:$0xff]   ;;  %v4061_v24 = vld [vmem:[%s4249_s19 + $0x694] ss:$36 sps:$4 sm:$0xff]  }
  0xb3   : > { %1491 = vmatmul.mubr.bf16.vlgmr.msra.gmra.mrb[16].mxu0 %v4288_v35  ;;  %3684 = vmatmul.mubr.bf16.vlgmr.msra.gmra.mrb[16].mxu1 %v4288_v35  ;;  %v3981_v35 = vld [vmem:[%s4249_s19 + $0x518] ss:$36 sps:$4 sm:$0xff]  }
  0xb4   : > { %2010 = vmatpush1.bf16.msra.mxu0 %v3966_v25  ;;  %2053 = vmatpush1.bf16.msra.mxu1 %v3969_v26  ;;  %v2921_v25 = vld [vmem:[%s4773_s2 + $0x8] sm:$0xff] }
  0xb5   : > { %2011 = vmatprep.subr.bf16.mxu0 %v3974_v27  ;;  %2054 = vmatprep.subr.bf16.mxu1 %v3977_v28  ;;  %v4056_v26 = vld [vmem:[%s4249_s19 + $0x688] ss:$36 sps:$4 sm:$0xff]   ;;  %v4059_v27 = vld [vmem:[%s4249_s19 + $0x690] ss:$36 sps:$4 sm:$0xff]  }
  0xb6   : > { %2041 = vmatprep.mubr.bf16.mxu0 %v4199_v0  ;;  %2084 = vmatprep.mubr.bf16.mxu1 %v4199_v0  ;;  %v4064_v28 = vld [vmem:[%s4249_s19 + $0x6c4] ss:$36 sps:$4 sm:$0xff]  }
  0xb7   : > { %2929 = vperm.xlu0 %3756, %v2921_v25  }
  0xb8   : > { %2012 = vmatpush1.bf16.msra.mxu0 %v3972_v29  ;;  %2055 = vmatpush1.bf16.msra.mxu1 %v3975_v30  ;;  %v4062_v29 = vld [vmem:[%s4249_s19 + $0x6c0] ss:$36 sps:$4 sm:$0xff]  }
  0xb9   : > { %2013 = vmatprep.subr.bf16.mxu0 %v3980_v31  ;;  %2056 = vmatprep.subr.bf16.mxu1 %v3983_v32  ;;  %v4065_v30 = vld [vmem:[%s4249_s19 + $0x4a0] ss:$36 sps:$4 sm:$0xff]   ;;  %v4068_v31 = vld [vmem:[%s4249_s19 + $0x70c] ss:$36 sps:$4 sm:$0xff]  }
  0xba   : > { %v4066_v32 = vld [vmem:[%s4249_s19 + $0x708] ss:$36 sps:$4 sm:$0xff]  }
  0xbc   : > { %2014 = vmatpush1.bf16.msra.mxu0 %v3978_v33  ;;  %2057 = vmatpush1.bf16.msra.mxu1 %v3981_v35  ;;  %v4069_v33 = vld [vmem:[%s4249_s19 + $0x4e8] ss:$36 sps:$4 sm:$0xff]   ;;  %v4072_v35 = vld [vmem:[%s4249_s19 + $0x754] ss:$36 sps:$4 sm:$0xff]  }
  0xbd   : > { %2015 = vmatprep.subr.bf16.mxu0 %v3986_v34  ;;  %2058 = vmatprep.subr.bf16.mxu1 %v3989_v36  ;;  %v4070_v34 = vld [vmem:[%s4249_s19 + $0x750] ss:$36 sps:$4 sm:$0xff]  }
  0xbe   : > { %v4073_v36 = vld [vmem:[%s4249_s19 + $0x530] ss:$36 sps:$4 sm:$0xff]  }
  0xc0   : > { %2016 = vmatpush1.bf16.msra.mxu0 %v3984_v37  ;;  %2059 = vmatpush1.bf16.msra.mxu1 %v3987_v38  ;;  %v4076_v37 = vld [vmem:[%s4249_s19 + $0x79c] ss:$36 sps:$4 sm:$0xff]  }
  0xc1   : > { %2017 = vmatprep.subr.bf16.mxu0 %v3992_v39  ;;  %2060 = vmatprep.subr.bf16.mxu1 %v3995_v40  ;;  %v4074_v38 = vld [vmem:[%s4249_s19 + $0x798] ss:$36 sps:$4 sm:$0xff]   ;;  %v4080_v40 = vld [vmem:[%s4249_s19 + $0x7e4] ss:$36 sps:$4 sm:$0xff]  }
  0xc2   : > { %v4077_v39 = vld [vmem:[%s4249_s19 + $0x578] ss:$36 sps:$4 sm:$0xff]  }
  0xc4   : > { %2018 = vmatpush1.bf16.msra.mxu0 %v3990_v41  ;;  %2061 = vmatpush1.bf16.msra.mxu1 %v3993_v42  ;;  %v4078_v41 = vld [vmem:[%s4249_s19 + $0x7e0] ss:$36 sps:$4 sm:$0xff]  }
  0xc5   : > { %2019 = vmatprep.subr.bf16.mxu0 %v3998_v43  ;;  %2062 = vmatprep.subr.bf16.mxu1 %v4001_v44  ;;  %v4081_v42 = vld [vmem:[%s4249_s19 + $0x5c0] ss:$36 sps:$4 sm:$0xff]   ;;  %v4084_v43 = vld [vmem:[%s4249_s19 + $0x82c] ss:$36 sps:$4 sm:$0xff]  }
  0xc6   : > { %v4082_v44 = vld [vmem:[%s4249_s19 + $0x828] ss:$36 sps:$4 sm:$0xff]  }
  0xc8   : > { %2020 = vmatpush1.bf16.msra.mxu0 %v3996_v45  ;;  %2063 = vmatpush1.bf16.msra.mxu1 %v3999_v46  ;;  %v4085_v45 = vld [vmem:[%s4249_s19 + $0x608] ss:$36 sps:$4 sm:$0xff]   ;;  %v4088_v46 = vld [vmem:[%s4249_s19 + $0x874] ss:$36 sps:$4 sm:$0xff]  }
  0xc9   : > { %2021 = vmatprep.subr.bf16.mxu0 %v4004_v47  ;;  %2064 = vmatprep.subr.bf16.mxu1 %v4007_v48 }
  0xcc   : > { %2022 = vmatpush1.bf16.msra.mxu0 %v4002_v49  ;;  %2065 = vmatpush1.bf16.msra.mxu1 %v4005_v50 }
  0xcd   : > { %2023 = vmatprep.subr.bf16.mxu0 %v4010_v51  ;;  %2066 = vmatprep.subr.bf16.mxu1 %v4013_v52 }
  0xd0   : > { %2024 = vmatpush1.bf16.msra.mxu0 %v4008_v53  ;;  %2067 = vmatpush1.bf16.msra.mxu1 %v4011_v54  ;;  %v4086_v53 = vld [vmem:[%s4249_s19 + $0x870] ss:$36 sps:$4 sm:$0xff]  }
  0xd1   : > { %2095 = vmatprep.subr.bf16.mxu0 %v4016_v55  ;;  %2138 = vmatprep.subr.bf16.mxu1 %v4019_v56  ;;  %v4089_v54 = vld [vmem:[%s4249_s19 + $0x650] ss:$36 sps:$4 sm:$0xff]  }
  0xd3   : > { %2042 = vmatmul.mubr.bf16.vlgmr.msra.gmra.mrb[20].mxu0 %v4479_v61  ;;  %2085 = vmatmul.mubr.bf16.vlgmr.msra.gmra.mrb[20].mxu1 %v4479_v61 }
  0xd4   : > { %2096 = vmatpush1.bf16.msra.mxu0 %v4014_v57  ;;  %2139 = vmatpush1.bf16.msra.mxu1 %v4017_v58  ;;  %v4092_v57 = vld [vmem:[%s4249_s19 + $0x8bc] ss:$36 sps:$4 sm:$0xff]  }
  0xd5   : > { %2097 = vmatprep.subr.bf16.mxu0 %v4022_v59  ;;  %2140 = vmatprep.subr.bf16.mxu1 %v4025_v60  ;;  %v4090_v58 = vld [vmem:[%s4249_s19 + $0x8b8] ss:$36 sps:$4 sm:$0xff]   ;;  %v4096_v60 = vld [vmem:[%s4249_s19 + $0x6cc] ss:$36 sps:$4 sm:$0xff]  }
  0xd6   : > { %2127 = vmatprep.mubr.bf16.mxu0 %v4199_v0  ;;  %2170 = vmatprep.mubr.bf16.mxu1 %v4199_v0  ;;  %v4093_v59 = vld [vmem:[%s4249_s19 + $0x698] ss:$36 sps:$4 sm:$0xff]  }
  0xd8   : > { %2098 = vmatpush1.bf16.msra.mxu0 %v4020_v62  ;;  %2141 = vmatpush1.bf16.msra.mxu1 %v4023_v63  ;;  %v4099_v62 = vld [vmem:[%s4249_s19 + $0x6d4] ss:$36 sps:$4 sm:$0xff]   ;;  %v4094_v63 = vld [vmem:[%s4249_s19 + $0x6c8] ss:$36 sps:$4 sm:$0xff]  }
  0xd9   : > { %2099 = vmatprep.subr.bf16.mxu0 %v4028_v1  ;;  %2142 = vmatprep.subr.bf16.mxu1 %v4031_v2  ;;  %v4097_v1 = vld [vmem:[%s4249_s19 + $0x6d0] ss:$36 sps:$4 sm:$0xff]  }
  0xda   : > { %v4102_v2 = vld [vmem:[%s4249_s19 + $0x714] ss:$36 sps:$4 sm:$0xff]  }
  0xdc   : > { %2100 = vmatpush1.bf16.msra.mxu0 %v4026_v3  ;;  %2143 = vmatpush1.bf16.msra.mxu1 %v4029_v4  ;;  %v4105_v3 = vld [vmem:[%s4249_s19 + $0x71c] ss:$36 sps:$4 sm:$0xff]   ;;  %v4100_v4 = vld [vmem:[%s4249_s19 + $0x710] ss:$36 sps:$4 sm:$0xff]  }
  0xdd   : > { %2101 = vmatprep.subr.bf16.mxu0 %v4034_v5  ;;  %2144 = vmatprep.subr.bf16.mxu1 %v4037_v7  ;;  %v4103_v5 = vld [vmem:[%s4249_s19 + $0x718] ss:$36 sps:$4 sm:$0xff]  }
  0xde   : > { %v4108_v7 = vld [vmem:[%s4249_s19 + $0x75c] ss:$36 sps:$4 sm:$0xff]  }
  0xe0   : > { %2102 = vmatpush1.bf16.msra.mxu0 %v4032_v8  ;;  %2145 = vmatpush1.bf16.msra.mxu1 %v4035_v9  ;;  %v4111_v8 = vld [vmem:[%s4249_s19 + $0x764] ss:$36 sps:$4 sm:$0xff]   ;;  %v4106_v9 = vld [vmem:[%s4249_s19 + $0x758] ss:$36 sps:$4 sm:$0xff]  }
  0xe1   : > { %2103 = vmatprep.subr.bf16.mxu0 %v4040_v10  ;;  %2146 = vmatprep.subr.bf16.mxu1 %v4043_v11  ;;  %v4109_v10 = vld [vmem:[%s4249_s19 + $0x760] ss:$36 sps:$4 sm:$0xff]  }
  0xe2   : > { %v4114_v11 = vld [vmem:[%s4249_s19 + $0x7a4] ss:$36 sps:$4 sm:$0xff]  }
  0xe4   : > { %2104 = vmatpush1.bf16.msra.mxu0 %v4038_v12  ;;  %2147 = vmatpush1.bf16.msra.mxu1 %v4041_v13  ;;  %v4117_v12 = vld [vmem:[%s4249_s19 + $0x7ac] ss:$36 sps:$4 sm:$0xff]   ;;  %v4112_v13 = vld [vmem:[%s4249_s19 + $0x7a0] ss:$36 sps:$4 sm:$0xff]  }
  0xe5   : > { %2105 = vmatprep.subr.bf16.mxu0 %v4046_v14  ;;  %2148 = vmatprep.subr.bf16.mxu1 %v4049_v15  ;;  %v4115_v14 = vld [vmem:[%s4249_s19 + $0x7a8] ss:$36 sps:$4 sm:$0xff]  }
  0xe6   : > { %v4120_v15 = vld [vmem:[%s4249_s19 + $0x7ec] ss:$36 sps:$4 sm:$0xff]  }
  0xe8   : > { %2106 = vmatpush1.bf16.msra.mxu0 %v4044_v16  ;;  %2149 = vmatpush1.bf16.msra.mxu1 %v4047_v17  ;;  %v4123_v16 = vld [vmem:[%s4249_s19 + $0x7f4] ss:$36 sps:$4 sm:$0xff]   ;;  %v4118_v17 = vld [vmem:[%s4249_s19 + $0x7e8] ss:$36 sps:$4 sm:$0xff]  }
  0xe9   : > { %2107 = vmatprep.subr.bf16.mxu0 %v4052_v18  ;;  %2150 = vmatprep.subr.bf16.mxu1 %v4055_v19  ;;  %v4121_v18 = vld [vmem:[%s4249_s19 + $0x7f0] ss:$36 sps:$4 sm:$0xff]  }
  0xea   : > { %v4126_v19 = vld [vmem:[%s4249_s19 + $0x834] ss:$36 sps:$4 sm:$0xff]  }
  0xec   : > { %2108 = vmatpush1.bf16.msra.mxu0 %v4050_v21  ;;  %2151 = vmatpush1.bf16.msra.mxu1 %v4053_v22  ;;  %v4124_v21 = vld [vmem:[%s4249_s19 + $0x830] ss:$36 sps:$4 sm:$0xff]   ;;  %v4127_v22 = vld [vmem:[%s4249_s19 + $0x838] ss:$36 sps:$4 sm:$0xff]  }
  0xed   : > { %2109 = vmatprep.subr.bf16.mxu0 %v4058_v23  ;;  %2152 = vmatprep.subr.bf16.mxu1 %v4061_v24  ;;  %v4132_v23 = vld [vmem:[%s4249_s19 + $0x87c] ss:$36 sps:$4 sm:$0xff]   ;;  %v4135_v24 = vld [vmem:[%s4249_s19 + $0x884] ss:$36 sps:$4 sm:$0xff]  }
  0xf0   : > { %2110 = vmatpush1.bf16.msra.mxu0 %v4056_v26  ;;  %2153 = vmatpush1.bf16.msra.mxu1 %v4059_v27 }
  0xf1   : > { %3687 = vmatprep.subr.bf16.mxu0 %v4200_v6  ;;  %2689 = vmatprep.subr.bf16.mxu1 %v4064_v28 }
  0xf3   : > { %2128 = vmatmul.mubr.bf16.vlgmr.msra.gmra.mrb[24].mxu0 %v4479_v61  ;;  %2171 = vmatmul.mubr.bf16.vlgmr.msra.gmra.mrb[24].mxu1 %v4479_v61 }
  0xf4   : > { %3688 = vmatpush3.bf16.msra.mxu0 %v4065_v30  ;;  %2690 = vmatpush1.bf16.msra.mxu1 %v4062_v29 }
  0xf5   : > { %3689 = vmatprep.subr.bf16.mxu0 %v4200_v6  ;;  %2691 = vmatprep.subr.bf16.mxu1 %v4068_v31  ;;  %v4130_v31 = vld [vmem:[%s4249_s19 + $0x878] ss:$36 sps:$4 sm:$0xff]  }
  0xf6   : > { %3703 = vmatprep.mubr.msk.bf16.mxu0 %vm4201_vm0, %v4200_v6  ;;  %2721 = vmatprep.mubr.bf16.mxu1 %v4199_v0 }
  0xf8   : > { %3690 = vmatpush3.bf16.msra.mxu0 %v4069_v33  ;;  %2692 = vmatpush1.bf16.msra.mxu1 %v4066_v32  ;;  %v4133_v32 = vld [vmem:[%s4249_s19 + $0x880] ss:$36 sps:$4 sm:$0xff]  }
  0xf9   : > { %3691 = vmatprep.subr.bf16.mxu0 %v4200_v6  ;;  %2693 = vmatprep.subr.bf16.mxu1 %v4072_v35 }
  0xfc   : > { %3692 = vmatpush3.bf16.msra.mxu0 %v4073_v36  ;;  %2694 = vmatpush1.bf16.msra.mxu1 %v4070_v34  ;;  %v4138_v34 = vld [vmem:[%s4249_s19 + $0x8c4] ss:$36 sps:$4 sm:$0xff]   ;;  %v4141_v36 = vld [vmem:[%s4249_s19 + $0x8cc] ss:$36 sps:$4 sm:$0xff]  }
  0xfd   : > { %3693 = vmatprep.subr.bf16.mxu0 %v4200_v6  ;;  %2695 = vmatprep.subr.bf16.mxu1 %v4076_v37  ;;  %v4136_v37 = vld [vmem:[%s4249_s19 + $0x8c0] ss:$36 sps:$4 sm:$0xff]  }
 0x100   : > { %3694 = vmatpush3.bf16.msra.mxu0 %v4077_v39  ;;  %2696 = vmatpush1.bf16.msra.mxu1 %v4074_v38  ;;  %v4139_v38 = vld [vmem:[%s4249_s19 + $0x8c8] ss:$36 sps:$4 sm:$0xff]   ;;  %v4144_v39 = vld [vmem:[%s4249_s19 + $0x6dc] ss:$36 sps:$4 sm:$0xff]  }
 0x101   : > { %3695 = vmatprep.subr.bf16.mxu0 %v4200_v6  ;;  %2697 = vmatprep.subr.bf16.mxu1 %v4080_v40  ;;  %v4142_v40 = vld [vmem:[%s4249_s19 + $0x6d8] ss:$36 sps:$4 sm:$0xff]  }
 0x104   : > { %3696 = vmatpush3.bf16.msra.mxu0 %v4081_v42  ;;  %2698 = vmatpush1.bf16.msra.mxu1 %v4078_v41  ;;  %v4145_v41 = vld [vmem:[%s4249_s19 + $0x6e0] ss:$36 sps:$4 sm:$0xff]  }
 0x105   : > { %3697 = vmatprep.subr.bf16.mxu0 %v4200_v6  ;;  %2699 = vmatprep.subr.bf16.mxu1 %v4084_v43  ;;  %v4148_v42 = vld [vmem:[%s4249_s19 + $0x724] ss:$36 sps:$4 sm:$0xff]  }
 0x106   : > { %v4547_v47 = vpop.f32.mrb[0].mxu0  ;;  %v4549_v48 = vpop.f32.mrb[0].mxu1  ;;  %v4146_v43 = vld [vmem:[%s4249_s19 + $0x720] ss:$36 sps:$4 sm:$0xff]  }
 0x107   : > { %v4551_v49 = vpop.f32.mrb[1].mxu0  ;;  %v4553_v50 = vpop.f32.mrb[1].mxu1 }
 0x108   : > { %v4555_v51 = vpop.f32.mrb[2].mxu0  ;;  %v4557_v52 = vpop.f32.mrb[2].mxu1  ;;  %3698 = vmatpush3.bf16.msra.mxu0 %v4085_v45  ;;  %2700 = vmatpush1.bf16.msra.mxu1 %v4082_v44  ;;  %v4149_v44 = vld [vmem:[%s4249_s19 + $0x728] ss:$36 sps:$4 sm:$0xff]  }
 0x109   : > { %v4561_v55 = vpop.f32.mrb[3].mxu0  ;;  %v4563_v56 = vpop.f32.mrb[3].mxu1  ;;  %3699 = vmatprep.subr.bf16.mxu0 %v4200_v6  ;;  %2701 = vmatprep.subr.bf16.mxu1 %v4088_v46  ;;  %v4152_v45 = vld [vmem:[%s4249_s19 + $0x76c] ss:$36 sps:$4 sm:$0xff]  }
 0x10a   : > { %v4150_v46 = vld [vmem:[%s4249_s19 + $0x768] ss:$36 sps:$4 sm:$0xff]  }
 0x10c   : > { %3700 = vmatpush3.bf16.msra.mxu0 %v4089_v54  ;;  %2702 = vmatpush1.bf16.msra.mxu1 %v4086_v53  ;;  %v4153_v53 = vld [vmem:[%s4249_s19 + $0x770] ss:$36 sps:$4 sm:$0xff]  }
 0x10d   : > { %3701 = vmatprep.subr.bf16.mxu0 %v4200_v6  ;;  %2703 = vmatprep.subr.bf16.mxu1 %v4092_v57  ;;  %v4156_v54 = vld [vmem:[%s4249_s19 + $0x7b4] ss:$36 sps:$4 sm:$0xff]  }
 0x10e   : > { %v4154_v57 = vld [vmem:[%s4249_s19 + $0x7b0] ss:$36 sps:$4 sm:$0xff]  }
 0x110   : > { %3702 = vmatpush3.bf16.msra.mxu0 %v4093_v59  ;;  %2704 = vmatpush1.bf16.msra.mxu1 %v4090_v58  ;;  %v4160_v58 = vld [vmem:[%s4249_s19 + $0x7fc] ss:$36 sps:$4 sm:$0xff]  }
 0x111   : > { %2732 = vmatprep.subr.bf16.mxu0 %v4096_v60  ;;  %2775 = vmatprep.subr.bf16.mxu1 %v4099_v62  ;;  %v4158_v59 = vld [vmem:[%s4249_s19 + $0x7f8] ss:$36 sps:$4 sm:$0xff]   ;;  %v4161_v60 = vld [vmem:[%s4249_s19 + $0x800] ss:$36 sps:$4 sm:$0xff]  }
 0x112   : > { %v4164_v62 = vld [vmem:[%s4249_s19 + $0x844] ss:$36 sps:$4 sm:$0xff]  }
 0x113   : > { %3704 = vmatmul.mubr.bf16.vlgmr.msra.gmra.mrb[28].mxu0 %v4479_v61  ;;  %2722 = vmatmul.mubr.bf16.vlgmr.msra.gmra.mrb[28].mxu1 %v4479_v61 }
 0x114   : > { %2733 = vmatpush1.bf16.msra.mxu0 %v4094_v63  ;;  %2776 = vmatpush1.bf16.msra.mxu1 %v4097_v1  ;;  %v4162_v63 = vld [vmem:[%s4249_s19 + $0x840] ss:$36 sps:$4 sm:$0xff]   ;;  %v4165_v1 = vld [vmem:[%s4249_s19 + $0x848] ss:$36 sps:$4 sm:$0xff]  }
 0x115   : > { %2734 = vmatprep.subr.bf16.mxu0 %v4102_v2  ;;  %2777 = vmatprep.subr.bf16.mxu1 %v4105_v3  ;;  %v4168_v2 = vld [vmem:[%s4249_s19 + $0x88c] ss:$36 sps:$4 sm:$0xff]  }
 0x116   : > { %2764 = vmatprep.mubr.bf16.mxu0 %v4199_v0  ;;  %2807 = vmatprep.mubr.bf16.mxu1 %v4199_v0 }
 0x118   : > { %2735 = vmatpush1.bf16.msra.mxu0 %v4100_v4  ;;  %2778 = vmatpush1.bf16.msra.mxu1 %v4103_v5 }
 0x119   : > { %2736 = vmatprep.subr.bf16.mxu0 %v4108_v7  ;;  %2779 = vmatprep.subr.bf16.mxu1 %v4111_v8 }
 0x11c   : > { %2737 = vmatpush1.bf16.msra.mxu0 %v4106_v9  ;;  %2780 = vmatpush1.bf16.msra.mxu1 %v4109_v10 }
 0x11d   : > { %2738 = vmatprep.subr.bf16.mxu0 %v4114_v11  ;;  %2781 = vmatprep.subr.bf16.mxu1 %v4117_v12  ;;  %v4166_v12 = vld [vmem:[%s4249_s19 + $0x888] ss:$36 sps:$4 sm:$0xff]  }
 0x120   : > { %2739 = vmatpush1.bf16.msra.mxu0 %v4112_v13  ;;  %2782 = vmatpush1.bf16.msra.mxu1 %v4115_v14  ;;  %v4169_v13 = vld [vmem:[%s4249_s19 + $0x890] ss:$36 sps:$4 sm:$0xff]  }
 0x121   : > { %2740 = vmatprep.subr.bf16.mxu0 %v4120_v15  ;;  %2783 = vmatprep.subr.bf16.mxu1 %v4123_v16 }
 0x124   : > { %2741 = vmatpush1.bf16.msra.mxu0 %v4118_v17  ;;  %2784 = vmatpush1.bf16.msra.mxu1 %v4121_v18  ;;  %v4170_v17 = vld [vmem:[%s4249_s19 + $0x8d0] ss:$36 sps:$4 sm:$0xff]   ;;  %v4173_v18 = vld [vmem:[%s4249_s19 + $0x8d8] ss:$36 sps:$4 sm:$0xff]  }
 0x125   : > { %2742 = vmatprep.subr.bf16.mxu0 %v4126_v19  ;;  %2785 = vmatprep.subr.bf16.mxu1 %v4129_v20 }
 0x126   : > { %v4600_v25 = vpop.f32.mrb[4].mxu0  ;;  %v4602_v26 = vpop.f32.mrb[4].mxu1 }
 0x127   : > { %v4604_v27 = vpop.f32.mrb[5].mxu0  ;;  %v4606_v28 = vpop.f32.mrb[5].mxu1 }
 0x128   : > { %v4608_v29 = vpop.f32.mrb[6].mxu0  ;;  %v4610_v30 = vpop.f32.mrb[6].mxu1  ;;  %2743 = vmatpush1.bf16.msra.mxu0 %v4124_v21  ;;  %2786 = vmatpush1.bf16.msra.mxu1 %v4127_v22 }
 0x129   : > { %v4614_v33 = vpop.f32.mrb[7].mxu0  ;;  %v4616_v35 = vpop.f32.mrb[7].mxu1  ;;  %2744 = vmatprep.subr.bf16.mxu0 %v4132_v23  ;;  %2787 = vmatprep.subr.bf16.mxu1 %v4135_v24 }
 0x12c   : > { %2745 = vmatpush1.bf16.msra.mxu0 %v4130_v31  ;;  %2788 = vmatpush1.bf16.msra.mxu1 %v4133_v32 }
 0x12d   : > { %2746 = vmatprep.subr.bf16.mxu0 %v4138_v34  ;;  %2789 = vmatprep.subr.bf16.mxu1 %v4141_v36 }
 0x130   : > { %2747 = vmatpush1.bf16.msra.mxu0 %v4136_v37  ;;  %2790 = vmatpush1.bf16.msra.mxu1 %v4139_v38 }
 0x131   : > { %2818 = vmatprep.subr.bf16.mxu0 %v4144_v39  ;;  %3707 = vmatprep.subr.bf16.mxu1 %v4200_v6 }
 0x133   : > { %2765 = vmatmul.mubr.bf16.vlgmr.msra.gmra.mrb[32].mxu0 %v4479_v61  ;;  %2808 = vmatmul.mubr.bf16.vlgmr.msra.gmra.mrb[32].mxu1 %v4479_v61 }
 0x134   : > { %2819 = vmatpush1.bf16.msra.mxu0 %v4142_v40  ;;  %3708 = vmatpush3.bf16.msra.mxu1 %v4145_v41 }
 0x135   : > { %2820 = vmatprep.subr.bf16.mxu0 %v4148_v42  ;;  %3709 = vmatprep.subr.bf16.mxu1 %v4200_v6 }
 0x136   : > { %2850 = vmatprep.mubr.bf16.mxu0 %v4199_v0  ;;  %3723 = vmatprep.mubr.msk.bf16.mxu1 %vm4201_vm0, %v4200_v6  ;;  %v4157_v0 = vld [vmem:[%s4249_s19 + $0x7b8] ss:$36 sps:$4 sm:$0xff]  }
 0x138   : > { %2821 = vmatpush1.bf16.msra.mxu0 %v4146_v43  ;;  %3710 = vmatpush3.bf16.msra.mxu1 %v4149_v44 }
 0x139   : > { %2822 = vmatprep.subr.bf16.mxu0 %v4152_v45  ;;  %3711 = vmatprep.subr.bf16.mxu1 %v4200_v6 }
 0x13c   : > { %2823 = vmatpush1.bf16.msra.mxu0 %v4150_v46  ;;  %3712 = vmatpush3.bf16.msra.mxu1 %v4153_v53 }
 0x13d   : > { %2824 = vmatprep.subr.bf16.mxu0 %v4156_v54  ;;  %3713 = vmatprep.subr.bf16.mxu1 %v4200_v6 }
 0x140   : > { %2825 = vmatpush1.bf16.msra.mxu0 %v4154_v57  ;;  %3714 = vmatpush3.bf16.msra.mxu1 %v4157_v0 }
 0x141   : > { %2826 = vmatprep.subr.bf16.mxu0 %v4160_v58  ;;  %3715 = vmatprep.subr.bf16.mxu1 %v4200_v6 }
 0x144   : > { %2827 = vmatpush1.bf16.msra.mxu0 %v4158_v59  ;;  %3716 = vmatpush3.bf16.msra.mxu1 %v4161_v60 }
 0x145   : > { %2828 = vmatprep.subr.bf16.mxu0 %v4164_v62  ;;  %3717 = vmatprep.subr.bf16.mxu1 %v4200_v6 }
 0x146   : > { %v4652_v3 = vpop.f32.mrb[8].mxu0  ;;  %v1363_v4 = vpop.f32.mrb[8].mxu1 }
 0x147   : > { %v1542_v5 = vmax.f32 %v4547_v47, %v1363_v4  ;;  %v3665_v7 = vpop.f32.mrb[9].mxu0  ;;  %v1365_v8 = vpop.f32.mrb[9].mxu1  ;;  %v4172_v47 = vld [vmem:[%s4249_s19 + $0x8d4] ss:$36 sps:$4 sm:$0xff]  }
 0x148   : > { %v1543_v9 = vmax.f32 %v4551_v49, %v1365_v8  ;;  %v4656_v10 = vpop.f32.mrb[10].mxu0  ;;  %v4658_v11 = vpop.f32.mrb[10].mxu1  ;;  %2829 = vmatpush1.bf16.msra.mxu0 %v4162_v63  ;;  %3718 = vmatpush3.bf16.msra.mxu1 %v4165_v1 }
 0x149   : > { %v1551_v14 = vmax.f32 %v4555_v51, %v4658_v11  ;;  %v3666_v15 = vpop.f32.mrb[11].mxu0  ;;  %v1369_v16 = vpop.f32.mrb[11].mxu1  ;;  %2830 = vmatprep.subr.bf16.mxu0 %v4168_v2  ;;  %3719 = vmatprep.subr.bf16.mxu1 %v4200_v6 }
 0x14a   : > { %v1552_v49 = vmax.f32 %v4561_v55, %v1369_v16 }
 0x14c   : > { %2831 = vmatpush1.bf16.msra.mxu0 %v4166_v12  ;;  %3720 = vmatpush3.bf16.msra.mxu1 %v4169_v13 }
 0x14d   : > { %2832 = vmatprep.subr.bf16.mxu0 %v4172_v47  ;;  %3721 = vmatprep.subr.bf16.mxu1 %v4200_v6 }
 0x150   : > { %2833 = vmatpush1.bf16.msra.mxu0 %v4170_v17  ;;  %3722 = vmatpush3.bf16.msra.mxu1 %v4173_v18  ;;  %v4702_v17 = vpop.permute.xlu0 %2924 }
 0x153   : > { %2851 = vmatmul.mubr.bf16.vlgmr.msra.gmra.mrb[36].mxu0 %v4479_v61  ;;  %3724 = vmatmul.mubr.bf16.vlgmr.msra.gmra.mrb[36].mxu1 %v4479_v61 }
 0x154   : > { %v4704_v18 = vpop.permute.xlu0 %2929 }
 0x166   : > { %v1406_v51 = vpop.f32.mrb[12].mxu0  ;;  %v1449_v19 = vpop.f32.mrb[12].mxu1 }
 0x167   : > { %v1544_v20 = vmax.f32 %v4549_v48, %v1406_v51  ;;  %v1546_v21 = vmax.f32 %v4600_v25, %v1449_v19  ;;  %v1408_v55 = vpop.f32.mrb[13].mxu0  ;;  %v1451_v22 = vpop.f32.mrb[13].mxu1 }
 0x168   : > { %v1545_v23 = vmax.f32 %v4553_v50, %v1408_v55  ;;  %v1547_v24 = vmax.f32 %v4604_v27, %v1451_v22  ;;  %v1410_v31 = vpop.f32.mrb[14].mxu0  ;;  %v1453_v6 = vpop.f32.mrb[14].mxu1 }
 0x169   : > { %v1553_v32 = vmax.f32 %v4557_v52, %v1410_v31  ;;  %v1555_v34 = vmax.f32 %v4608_v29, %v1453_v6  ;;  %v1412_v36 = vpop.f32.mrb[15].mxu0  ;;  %v1455_v61 = vpop.f32.mrb[15].mxu1 }
 0x16a   : > { %v1554_v37 = vmax.f32 %v4563_v56, %v1412_v36  ;;  %v1556_v48 = vmax.f32 %v4614_v33, %v1455_v61 }
 0x186   : > { %v1492_v38 = vpop.f32.mrb[16].mxu0  ;;  %v1535_v25 = vpop.f32.mrb[16].mxu1 }
 0x187   : > { %v1548_v39 = vmax.f32 %v4602_v26, %v1492_v38  ;;  %v1550_v50 = vmax.f32 %v4652_v3, %v1535_v25  ;;  %v1494_v40 = vpop.f32.mrb[17].mxu0  ;;  %v3685_v27 = vpop.f32.mrb[17].mxu1 }
 0x188   : > { %v1549_v41 = vmax.f32 %v4606_v28, %v1494_v40  ;;  %v1496_v42 = vpop.f32.mrb[18].mxu0  ;;  %v1538_v52 = vpop.f32.mrb[18].mxu1 }
 0x189   : > { %v1557_v29 = vmax.f32 %v4610_v30, %v1496_v42  ;;  %v1559_v43 = vmax.f32 %v4656_v10, %v1538_v52  ;;  %v1498_v44 = vpop.f32.mrb[19].mxu0  ;;  %v3686_v56 = vpop.f32.mrb[19].mxu1 }
 0x18a   : > { %v1558_v33 = vmax.f32 %v4616_v35, %v1498_v44 }
 0x1a6   : > { %v2043_v45 = vpop.f32.mrb[20].mxu0  ;;  %v2086_v46 = vpop.f32.mrb[20].mxu1 }
 0x1a7   : > { %v2222_v53 = vmax.f32 %v1542_v5, %v2043_v45  ;;  %v4686_v26 = vmax.f32 %v1544_v20, %v2086_v46  ;;  %v2045_v54 = vpop.f32.mrb[21].mxu0  ;;  %v2088_v57 = vpop.f32.mrb[21].mxu1 }
 0x1a8   : > { %v2223_v0 = vmax.f32 %v1543_v9, %v2045_v54  ;;  %v4688_v58 = vmax.f32 %v1545_v23, %v2088_v57  ;;  %v2047_v28 = vpop.f32.mrb[22].mxu0  ;;  %v2090_v59 = vpop.f32.mrb[22].mxu1 }
 0x1a9   : > { %v2231_v60 = vmax.f32 %v1551_v14, %v2047_v28  ;;  %v4690_v30 = vmax.f32 %v1553_v32, %v2090_v59  ;;  %v2049_v62 = vpop.f32.mrb[23].mxu0  ;;  %v2092_v63 = vpop.f32.mrb[23].mxu1 }
 0x1aa   : > { %v2232_v1 = vmax.f32 %v1552_v49, %v2049_v62  ;;  %v4692_v2 = vmax.f32 %v1554_v37, %v2092_v63 }
 0x1c6   : > { %v2129_v35 = vpop.f32.mrb[24].mxu0  ;;  %v2172_v3 = vpop.f32.mrb[24].mxu1 }
 0x1c7   : > { %v2226_v4 = vmax.f32 %v1546_v21, %v2129_v35  ;;  %v4694_v5 = vmax.f32 %v1548_v39, %v2172_v3  ;;  %v2131_v7 = vpop.f32.mrb[25].mxu0  ;;  %v2174_v8 = vpop.f32.mrb[25].mxu1 }
 0x1c8   : > { %v2227_v9 = vmax.f32 %v1547_v24, %v2131_v7  ;;  %v4696_v10 = vmax.f32 %v1549_v41, %v2174_v8  ;;  %v2133_v11 = vpop.f32.mrb[26].mxu0  ;;  %v2176_v12 = vpop.f32.mrb[26].mxu1 }
 0x1c9   : > { %v2235_v13 = vmax.f32 %v1555_v34, %v2133_v11  ;;  %v4698_v14 = vmax.f32 %v1557_v29, %v2176_v12  ;;  %v2135_v15 = vpop.f32.mrb[27].mxu0  ;;  %v2178_v16 = vpop.f32.mrb[27].mxu1 }
 0x1ca   : > { %v2236_v47 = vmax.f32 %v1556_v48, %v2135_v15  ;;  %v4700_v49 = vmax.f32 %v1558_v33, %v2178_v16 }
 0x1e6   : > { %v2215_v51 = vpop.f32.mrb[28].mxu0  ;;  %v2723_v19 = vpop.f32.mrb[28].mxu1 }
 0x1e7   : > { %v4707_v20 = vmax.f32 %v1550_v50, %v2215_v51  ;;  %v2902_v21 = vmax.f32 %v2222_v53, %v2723_v19  ;;  %v3705_v55 = vpop.f32.mrb[29].mxu0  ;;  %v2725_v22 = vpop.f32.mrb[29].mxu1 }
 0x1e8   : > { %v2903_v23 = vmax.f32 %v2223_v0, %v2725_v22  ;;  %v2218_v24 = vpop.f32.mrb[30].mxu0  ;;  %v2727_v31 = vpop.f32.mrb[30].mxu1 }
 0x1e9   : > { %v2932_v6 = vadd.f32 %v4702_v17, %v2902_v21  ;;  %v4710_v32 = vmax.f32 %v1559_v43, %v2218_v24  ;;  %v2911_v34 = vmax.f32 %v2231_v60, %v2727_v31  ;;  %v3706_v36 = vpop.f32.mrb[31].mxu0  ;;  %v2729_v61 = vpop.f32.mrb[31].mxu1 }
 0x1ea   : > { %v2933_v37 = vadd.f32 %v4702_v17, %v2903_v23  ;;  %v2912_v48 = vmax.f32 %v2232_v1, %v2729_v61 }
 0x1eb   : > { %v2950_v38 = vmax.f32 %v2932_v6, 0.0  ;;  %v2941_v25 = vadd.f32 %v4704_v18, %v2911_v34 }
 0x1ec   : > { %v2951_v39 = vmax.f32 %v2933_v37, 0.0  ;;  %v2942_v50 = vadd.f32 %v4704_v18, %v2912_v48 }
 0x1ed   : > { %2968 = vst [vmem:[%s4715_s4] sm:$0xff] %v2950_v38  ;;  %v2959_v40 = vmax.f32 %v2941_v25, 0.0 }
 0x1ee   : > { %2969 = vst [vmem:[%s4715_s4 + $0x8] sm:$0xff] %v2951_v39  ;;  %v2960_v27 = vmax.f32 %v2942_v50, 0.0 }
 0x1ef   : > { %2977 = vst [vmem:[%s4715_s4 + $0x48] sm:$0xff] %v2959_v40 }
 0x1f0   : > { %2978 = vst [vmem:[%s4715_s4 + $0x50] sm:$0xff] %v2960_v27 }
 0x206   : > { %v2766_v41 = vpop.f32.mrb[32].mxu0  ;;  %v2809_v42 = vpop.f32.mrb[32].mxu1 }
 0x207   : > { %v2904_v52 = vmax.f32 %v4686_v26, %v2766_v41  ;;  %v2906_v29 = vmax.f32 %v2226_v4, %v2809_v42  ;;  %v2768_v43 = vpop.f32.mrb[33].mxu0  ;;  %v2811_v44 = vpop.f32.mrb[33].mxu1 }
 0x208   : > { %v2905_v56 = vmax.f32 %v4688_v58, %v2768_v43  ;;  %v2907_v33 = vmax.f32 %v2227_v9, %v2811_v44  ;;  %v2770_v45 = vpop.f32.mrb[34].mxu0  ;;  %v2813_v46 = vpop.f32.mrb[34].mxu1 }
 0x209   : > { %v2934_v53 = vadd.f32 %v4702_v17, %v2904_v52  ;;  %v2936_v54 = vadd.f32 %v4702_v17, %v2906_v29  ;;  %v2913_v57 = vmax.f32 %v4690_v30, %v2770_v45  ;;  %v2915_v0 = vmax.f32 %v2235_v13, %v2813_v46  ;;  %v2772_v28 = vpop.f32.mrb[35].mxu0  ;;  %v2815_v59 = vpop.f32.mrb[35].mxu1 }
 0x20a   : > { %v2935_v26 = vadd.f32 %v4702_v17, %v2905_v56  ;;  %v2937_v60 = vadd.f32 %v4702_v17, %v2907_v33  ;;  %v2914_v58 = vmax.f32 %v4692_v2, %v2772_v28  ;;  %v2916_v62 = vmax.f32 %v2236_v47, %v2815_v59 }
 0x20b   : > { %v2952_v63 = vmax.f32 %v2934_v53, 0.0  ;;  %v2954_v1 = vmax.f32 %v2936_v54, 0.0  ;;  %v2943_v30 = vadd.f32 %v4704_v18, %v2913_v57  ;;  %v2945_v35 = vadd.f32 %v4704_v18, %v2915_v0 }
 0x20c   : > { %v2953_v3 = vmax.f32 %v2935_v26, 0.0  ;;  %v2955_v4 = vmax.f32 %v2937_v60, 0.0  ;;  %v2944_v7 = vadd.f32 %v4704_v18, %v2914_v58  ;;  %v2946_v8 = vadd.f32 %v4704_v18, %v2916_v62 }
 0x20d   : > { %2970 = vst [vmem:[%s4715_s4 + $0x10] sm:$0xff] %v2952_v63  ;;  %2972 = vst [vmem:[%s4715_s4 + $0x20] sm:$0xff] %v2954_v1  ;;  %v2961_v2 = vmax.f32 %v2943_v30, 0.0  ;;  %v2963_v9 = vmax.f32 %v2945_v35, 0.0 }
 0x20e   : > { %2971 = vst [vmem:[%s4715_s4 + $0x18] sm:$0xff] %v2953_v3  ;;  %2973 = vst [vmem:[%s4715_s4 + $0x28] sm:$0xff] %v2955_v4  ;;  %v2962_v11 = vmax.f32 %v2944_v7, 0.0  ;;  %v2964_v12 = vmax.f32 %v2946_v8, 0.0 }
 0x20f   : > { %2979 = vst [vmem:[%s4715_s4 + $0x58] sm:$0xff] %v2961_v2  ;;  %2981 = vst [vmem:[%s4715_s4 + $0x68] sm:$0xff] %v2963_v9 }
 0x210   : > { %2980 = vst [vmem:[%s4715_s4 + $0x60] sm:$0xff] %v2962_v11  ;;  %2982 = vst [vmem:[%s4715_s4 + $0x70] sm:$0xff] %v2964_v12 }
 0x226   : > { %v2852_v13 = vpop.f32.mrb[36].mxu0  ;;  %v2895_v15 = vpop.f32.mrb[36].mxu1 }
 0x227   : > { %v2908_v16 = vmax.f32 %v4694_v5, %v2852_v13  ;;  %v2910_v47 = vmax.f32 %v4707_v20, %v2895_v15  ;;  %v2854_v51 = vpop.f32.mrb[37].mxu0  ;;  %v3725_v19 = vpop.f32.mrb[37].mxu1 }
 0x228   : > { %v2909_v21 = vmax.f32 %v4696_v10, %v2854_v51  ;;  %v2856_v55 = vpop.f32.mrb[38].mxu0  ;;  %v2898_v22 = vpop.f32.mrb[38].mxu1 }
 0x229   : > { %v2938_v23 = vadd.f32 %v4702_v17, %v2908_v16  ;;  %v2940_v24 = vadd.f32 %v4702_v17, %v2910_v47  ;;  %v2917_v31 = vmax.f32 %v4698_v14, %v2856_v55  ;;  %v2919_v6 = vmax.f32 %v4710_v32, %v2898_v22  ;;  %v2858_v5 = vpop.f32.mrb[39].mxu0  ;;  %v3726_v20 = vpop.f32.mrb[39].mxu1 }
 0x22a   : > { %v2939_v34 = vadd.f32 %v4702_v17, %v2909_v21  ;;  %v2918_v10 = vmax.f32 %v4700_v49, %v2858_v5 }
 0x22b   : > { %v2956_v36 = vmax.f32 %v2938_v23, 0.0  ;;  %v2958_v61 = vmax.f32 %v2940_v24, 0.0  ;;  %v2947_v37 = vadd.f32 %v4704_v18, %v2917_v31  ;;  %v2949_v48 = vadd.f32 %v4704_v18, %v2919_v6 }
 0x22c   : > { %v2957_v38 = vmax.f32 %v2939_v34, 0.0  ;;  %v2948_v14 = vadd.f32 %v4704_v18, %v2918_v10 }
 0x22d   : > { %2974 = vst [vmem:[%s4715_s4 + $0x30] sm:$0xff] %v2956_v36  ;;  %2976 = vst [vmem:[%s4715_s4 + $0x40] sm:$0xff] %v2958_v61  ;;  %v2965_v32 = vmax.f32 %v2947_v37, 0.0  ;;  %v2967_v25 = vmax.f32 %v2949_v48, 0.0 }
 0x22e   : > { %2975 = vst [vmem:[%s4715_s4 + $0x38] sm:$0xff] %v2957_v38  ;;  %v2966_v39 = vmax.f32 %v2948_v14, 0.0 }
 0x22f   : > { %2983 = vst [vmem:[%s4715_s4 + $0x78] sm:$0xff] %v2965_v32  ;;  %2985 = vst [vmem:[%s4715_s4 + $0x88] sm:$0xff] %v2967_v25 }
 0x230   : > { %2984 = vst [vmem:[%s4715_s4 + $0x80] sm:$0xff] %v2966_v39 }
 0x231 PF: > { %s13_s14 = sadd.s32 1, %s4197_s14   ;;  %s4775_s12 = smov %s4193_s13 }
 0x232   : > { %p10_p5 = scmp.ge.s32.totalorder %s13_s14, 4   ;;  %s4776_s13 = smov %s4778_s15 }
 0x234   :  { %12 = sbr.rel (!%p10_p5) target bundleno = 2 (0x2), region = 65 }

// kernel: net_forward.5
= control target key start
LH: loop header
LB: loop body
LE: loop exit
PB: predicated region body
PF: predicated region fallthrough
CT: control target
= control target key end

     0   :  { %s6377_s26 = smov 0   ;;  %s7217_s0 = inlined_call_operand.vmem [shape: f32[2,17408], index: 0, kind: input, shape index: {}]   ;;  %s7218_s1 = inlined_call_operand.vmem [shape: bf16[17408,256], index: 1, kind: input, shape index: {}]   ;;  %s7219_s2 = inlined_call_operand.vmem [shape: f32[1,256], index: 2, kind: input, shape index: {}]   ;;  %s7220_s3 = inlined_call_operand.vmem [shape: f32[256,2], index: 3, kind: input, shape index: {}]   ;;  %s7221_s4 = inlined_call_operand.vmem [shape: f32[1,2], index: 4, kind: input, shape index: {}]   ;;  %s7222_s5 = inlined_call_operand.vmem [shape: f32[2,1], index: 5, kind: input, shape index: {}]   ;;  %s7223_s6 = inlined_call_operand.<no memory space> [shape: f32[1,1], index: 6, kind: input, shape index: {}]   ;;  %s7224_s7 = inlined_call_operand.vmem [shape: f32[2,1], index: 7, kind: output, shape index: {}]  }
   0x1   :  { %v12_v0 = vstv %s7223_s6 }
   0x2   :  { %13 = vst [vmem:[#allocation3] sm:$0x1] %v12_v0 }
   0x3 LB: > { %s6383_s27 = sadd.s32 4294967295, %s6328_s26   ;;  %p4787_p0 = scmp.ge.s32.totalorder %s6328_s26, 1  ;;  %s6328_s26 = sphi %s6377_s26, %s19_s26  }
   0x4   : > { %p247_p1 = scmp.lt.s32.totalorder %s6328_s26, 5 }
   0x6   : > { %p248_p2 = pnand %p4787_p0, %p247_p1 }
   0x7   : > { %s280_s6 = smul.u32 (!%p248_p2), 34, %s6383_s27  ;;  %p4791_p5 = scmp.ne.s32.totalorder (!%p248_p2), %s6383_s27, 0 }
   0x8   : > { %251 = sbr.rel (%p248_p2) target bundleno = 1301 (0x515), region = 48 }
   0x9   : > { %s286_s28 = smul.u32 (!%p248_p2), 544, %s6383_s27  ;;  %p281_p3 = scmp.lt.s32.totalorder (!%p248_p2), %s280_s6, 135 }
   0xb   : > { %p287_p4 = scmp.lt.s32.totalorder (!%p248_p2), %s286_s28, 2175 }
   0xf   : > { %s7226_s6 = smov (!%p281_p3, %s280_s6), 135  ;;  %s7228_s28 = smov (!%p287_p4, %s286_s28), 2175 }
  0x10   : > { %s4788_s29 = sshll.u32 %s7226_s6, 1  ;;  %s5345_s10 = sshll.u32 %s7228_s28, 3  ;;  %v6330_v1 = vmov (!%p4791_p5), 0.0  }
  0x11   : > { %s6392_s9 = scalar_lea.vmem %s7217_s0, %s4788_s29  ;;  %s6397_s13 = scalar_lea.vmem %s7218_s1, %s5345_s10  ;;  %297 = vst [vmem:[#allocation2] sm:$0xf] (!%p4791_p5), %v6330_v1 }
  0x12   : > { %296 = sbr.rel (%p4791_p5) target bundleno = 25 (0x19), region = 52 }
  0x19 PF: > { %v5494_v2 = vld [vmem:[%s6397_s13 + $0x4] ss:$8 sps:$4 sm:$0xff]   ;;  %v5498_v4 = vld [vmem:[%s6397_s13] ss:$8 sps:$4 sm:$0xff]   ;;  %v5500_v6 = vld [vmem:[%s6397_s13 + $0x14] ss:$8 sps:$4 sm:$0xff]   ;;  %v321_v40 = vlaneseq }
  0x1a   : > { %v5496_v3 = vld [vmem:[%s6397_s13 + $0x804] ss:$8 sps:$4 sm:$0xff]   ;;  %3793 = vmatprep.subr.bf16.mxu1 %v5494_v2  ;;  %v5499_v5 = vld [vmem:[%s6397_s13 + $0x800] ss:$8 sps:$4 sm:$0xff]   ;;  %v5502_v7 = vld [vmem:[%s6397_s13 + $0x814] ss:$8 sps:$4 sm:$0xff]  }
  0x1b   : > { %4121 = vmatprep.subr.bf16.mxu0 %v5496_v3  ;;  %3794 = vmatpush1.bf16.msra.mxu1 %v5498_v4  ;;  %v5504_v8 = vld [vmem:[%s6397_s13 + $0x10] ss:$8 sps:$4 sm:$0xff]   ;;  %v5506_v10 = vld [vmem:[%s6397_s13 + $0x24] ss:$8 sps:$4 sm:$0xff]   ;;  %v5510_v12 = vld [vmem:[%s6397_s13 + $0x20] ss:$8 sps:$4 sm:$0xff]  }
  0x1c   : > { %4122 = vmatpush1.bf16.msra.mxu0 %v5499_v5  ;;  %3795 = vmatprep.subr.bf16.mxu1 %v5500_v6  ;;  %v5505_v9 = vld [vmem:[%s6397_s13 + $0x810] ss:$8 sps:$4 sm:$0xff]   ;;  %v5508_v11 = vld [vmem:[%s6397_s13 + $0x824] ss:$8 sps:$4 sm:$0xff]   ;;  %v5511_v13 = vld [vmem:[%s6397_s13 + $0x820] ss:$8 sps:$4 sm:$0xff]  }
  0x1d   : > { %4123 = vmatprep.subr.bf16.mxu0 %v5502_v7  ;;  %v5512_v14 = vld [vmem:[%s6397_s13 + $0x34] ss:$8 sps:$4 sm:$0xff]   ;;  %v5516_v16 = vld [vmem:[%s6397_s13 + $0x30] ss:$8 sps:$4 sm:$0xff]   ;;  %v5518_v18 = vld [vmem:[%s6397_s13 + $0x44] ss:$8 sps:$4 sm:$0xff]  }
  0x1e   : > { %v5514_v15 = vld [vmem:[%s6397_s13 + $0x834] ss:$8 sps:$4 sm:$0xff]   ;;  %v5517_v17 = vld [vmem:[%s6397_s13 + $0x830] ss:$8 sps:$4 sm:$0xff]   ;;  %v5520_v19 = vld [vmem:[%s6397_s13 + $0x844] ss:$8 sps:$4 sm:$0xff]  }
  0x1f   : > { %3796 = vmatpush1.bf16.msra.mxu1 %v5504_v8  ;;  %v5522_v20 = vld [vmem:[%s6397_s13 + $0x40] ss:$8 sps:$4 sm:$0xff]   ;;  %v5524_v22 = vld [vmem:[%s6397_s13 + $0x54] ss:$8 sps:$4 sm:$0xff]   ;;  %v5528_v24 = vld [vmem:[%s6397_s13 + $0x50] ss:$8 sps:$4 sm:$0xff]  }
  0x20   : > { %4124 = vmatpush1.bf16.msra.mxu0 %v5505_v9  ;;  %3797 = vmatprep.subr.bf16.mxu1 %v5506_v10  ;;  %v5523_v21 = vld [vmem:[%s6397_s13 + $0x840] ss:$8 sps:$4 sm:$0xff]   ;;  %v5526_v23 = vld [vmem:[%s6397_s13 + $0x854] ss:$8 sps:$4 sm:$0xff]   ;;  %v5529_v25 = vld [vmem:[%s6397_s13 + $0x850] ss:$8 sps:$4 sm:$0xff]  }
  0x21   : > { %4125 = vmatprep.subr.bf16.mxu0 %v5508_v11  ;;  %v5530_v26 = vld [vmem:[%s6397_s13 + $0x64] ss:$8 sps:$4 sm:$0xff]   ;;  %v5534_v28 = vld [vmem:[%s6397_s13 + $0x60] ss:$8 sps:$4 sm:$0xff]   ;;  %v5536_v30 = vld [vmem:[%s6397_s13 + $0x74] ss:$8 sps:$4 sm:$0xff]  }
  0x22   : > { %v5532_v27 = vld [vmem:[%s6397_s13 + $0x864] ss:$8 sps:$4 sm:$0xff]   ;;  %v5535_v29 = vld [vmem:[%s6397_s13 + $0x860] ss:$8 sps:$4 sm:$0xff]   ;;  %v5538_v31 = vld [vmem:[%s6397_s13 + $0x874] ss:$8 sps:$4 sm:$0xff]  }
  0x23   : > { %3798 = vmatpush1.bf16.msra.mxu1 %v5510_v12  ;;  %v5540_v32 = vld [vmem:[%s6397_s13 + $0x70] ss:$8 sps:$4 sm:$0xff]   ;;  %v5542_v34 = vld [vmem:[%s6397_s13 + $0x84] ss:$8 sps:$4 sm:$0xff]   ;;  %v5546_v36 = vld [vmem:[%s6397_s13 + $0x80] ss:$8 sps:$4 sm:$0xff]  }
  0x24   : > { %4126 = vmatpush1.bf16.msra.mxu0 %v5511_v13  ;;  %3799 = vmatprep.subr.bf16.mxu1 %v5512_v14  ;;  %v5541_v33 = vld [vmem:[%s6397_s13 + $0x870] ss:$8 sps:$4 sm:$0xff]   ;;  %v5544_v35 = vld [vmem:[%s6397_s13 + $0x884] ss:$8 sps:$4 sm:$0xff]   ;;  %v5547_v37 = vld [vmem:[%s6397_s13 + $0x880] ss:$8 sps:$4 sm:$0xff]  }
  0x25   : > { %4127 = vmatprep.subr.bf16.mxu0 %v5514_v15  ;;  %v6331_v38 = vmov 1983009808   ;;  %v5548_v41 = vld [vmem:[%s6397_s13 + $0x94] ss:$8 sps:$4 sm:$0xff]   ;;  %v5552_v43 = vld [vmem:[%s6397_s13 + $0x90] ss:$8 sps:$4 sm:$0xff]  }
  0x26   : > { %v319_v39 = vunpack.c.l.s4 %v6331_v38  ;;  %v5550_v42 = vld [vmem:[%s6397_s13 + $0x894] ss:$8 sps:$4 sm:$0xff]   ;;  %v6439_v45 = vshrl.u32 %v321_v40, 7  ;;  %v5553_v46 = vld [vmem:[%s6397_s13 + $0x890] ss:$8 sps:$4 sm:$0xff]   ;;  %v299_v54 = vld [vmem:[%s6392_s9] sm:$0xff] }
  0x27   : > { %3800 = vmatpush1.bf16.msra.mxu1 %v5516_v16  ;;  %v5554_v47 = vld [vmem:[%s6397_s13 + $0xa4] ss:$8 sps:$4 sm:$0xff]   ;;  %v5558_v49 = vld [vmem:[%s6397_s13 + $0xa0] ss:$8 sps:$4 sm:$0xff]   ;;  %v5560_v52 = vld [vmem:[%s6397_s13 + $0xb4] ss:$8 sps:$4 sm:$0xff]   ;;  %v317_v10 = vcombine.high %v299_v54, %v299_v54 }
  0x28   : > { %4128 = vmatpush1.bf16.msra.mxu0 %v5517_v17  ;;  %3801 = vmatprep.subr.bf16.mxu1 %v5518_v18  ;;  %v320_v44 = vunpack.c.0.s8 %v319_v39  ;;  %v5556_v48 = vld [vmem:[%s6397_s13 + $0x8a4] ss:$8 sps:$4 sm:$0xff]   ;;  %v5559_v50 = vld [vmem:[%s6397_s13 + $0x8a0] ss:$8 sps:$4 sm:$0xff]   ;;  %v5562_v53 = vld [vmem:[%s6397_s13 + $0x8b4] ss:$8 sps:$4 sm:$0xff]  }
  0x29   : > { %4129 = vmatprep.subr.bf16.mxu0 %v5520_v19  ;;  %v5564_v55 = vld [vmem:[%s6397_s13 + $0xb0] ss:$8 sps:$4 sm:$0xff]   ;;  %v303_v58 = vld [vmem:[%s6392_s9 + $0x20] sm:$0xff]  ;;  %v5572_v3 = vld [vmem:[%s6397_s13 + $0xd4] ss:$8 sps:$4 sm:$0xff]   ;;  %p5337_p6 = scmp.ne.s32.totalorder %s6383_s27, 3 }
  0x2a   : > { %v6447_v51 = vsub.s32 %v320_v44, %v6439_v45  ;;  %v5565_v57 = vld [vmem:[%s6397_s13 + $0x8b0] ss:$8 sps:$4 sm:$0xff]   ;;  %v5566_v59 = vld [vmem:[%s6397_s13 + $0xc4] ss:$8 sps:$4 sm:$0xff]   ;;  %v5570_v1 = vld [vmem:[%s6397_s13 + $0xc0] ss:$8 sps:$4 sm:$0xff]   ;;  %v385_v11 = vcombine.high %v303_v58, %v303_v58 }
  0x2b   : > { %3802 = vmatpush1.bf16.msra.mxu1 %v5522_v20  ;;  %v5568_v60 = vld [vmem:[%s6397_s13 + $0x8c4] ss:$8 sps:$4 sm:$0xff]   ;;  %v5571_v2 = vld [vmem:[%s6397_s13 + $0x8c0] ss:$8 sps:$4 sm:$0xff]   ;;  %v5574_v4 = vld [vmem:[%s6397_s13 + $0x8d4] ss:$8 sps:$4 sm:$0xff]  }
  0x2c   : > { %4130 = vmatpush1.bf16.msra.mxu0 %v5523_v21  ;;  %3803 = vmatprep.subr.bf16.mxu1 %v5524_v22  ;;  %v6454_v56 = vrot.slane %v299_v54, %v6447_v51  ;;  %v392_v62 = vrot.slane %v303_v58, %v6447_v51  ;;  %v5576_v6 = vld [vmem:[%s6397_s13 + $0xd0] ss:$8 sps:$4 sm:$0xff]   ;;  %v5578_v8 = vld [vmem:[%s6397_s13 + $0xe4] ss:$8 sps:$4 sm:$0xff]   ;;  %v5582_v12 = vld [vmem:[%s6397_s13 + $0xe0] ss:$8 sps:$4 sm:$0xff]   ;;  %v6476_v16 = vrot.slane %v317_v10, %v6447_v51 }
  0x2d   : > { %4131 = vmatprep.subr.bf16.mxu0 %v5526_v23  ;;  %v5577_v7 = vld [vmem:[%s6397_s13 + $0x8d0] ss:$8 sps:$4 sm:$0xff]   ;;  %v5580_v9 = vld [vmem:[%s6397_s13 + $0x8e4] ss:$8 sps:$4 sm:$0xff]   ;;  %v5583_v13 = vld [vmem:[%s6397_s13 + $0x8e0] ss:$8 sps:$4 sm:$0xff]   ;;  %v6479_v17 = vrot.slane %v385_v11, %v6447_v51 }
  0x2e   : > { %v332_v61 = vcombine.high %v6454_v56, %v6454_v56  ;;  %v400_v0 = vcombine.high %v392_v62, %v392_v62  ;;  %v5584_v14 = vld [vmem:[%s6397_s13 + $0xf4] ss:$8 sps:$4 sm:$0xff]   ;;  %v5588_v18 = vld [vmem:[%s6397_s13 + $0xf0] ss:$8 sps:$4 sm:$0xff]   ;;  %v5593_v20 = vld [vmem:[%s6397_s13 + $0x104] ss:$8 sps:$4 sm:$0xff]   ;;  %v333_v22 = vcombine.high %v6476_v16, %v6476_v16 }
  0x2f   : > { %3804 = vmatpush1.bf16.msra.mxu1 %v5528_v24  ;;  %v5586_v15 = vld [vmem:[%s6397_s13 + $0x8f4] ss:$8 sps:$4 sm:$0xff]   ;;  %v5589_v19 = vld [vmem:[%s6397_s13 + $0x8f0] ss:$8 sps:$4 sm:$0xff]   ;;  %v5597_v21 = vld [vmem:[%s6397_s13 + $0x904] ss:$8 sps:$4 sm:$0xff]   ;;  %v401_v23 = vcombine.high %v6479_v17, %v6479_v17  ;;  %v495_v24 = vpack.c.bf16 %v6454_v56, %v6454_v56 }
  0x30   : > { %4132 = vmatpush1.bf16.msra.mxu0 %v5529_v25  ;;  %3805 = vmatprep.subr.bf16.mxu1 %v5530_v26  ;;  %v496_v63 = vpack.c.bf16 %v332_v61, %v332_v61  ;;  %v512_v5 = vpack.c.bf16 %v400_v0, %v400_v0  ;;  %v511_v25 = vpack.c.bf16 %v392_v62, %v392_v62  ;;  %v5591_v26 = vld [vmem:[%s6397_s13 + $0x100] ss:$8 sps:$4 sm:$0xff]   ;;  %v5612_v38 = vld [vmem:[%s6397_s13 + $0x134] ss:$8 sps:$4 sm:$0xff]   ;;  %v5610_v40 = vld [vmem:[%s6397_s13 + $0x130] ss:$8 sps:$4 sm:$0xff]  }
  0x31   : > { %4133 = vmatprep.subr.bf16.mxu0 %v5532_v27  ;;  %v5595_v27 = vld [vmem:[%s6397_s13 + $0x900] ss:$8 sps:$4 sm:$0xff]   ;;  %v5615_v39 = vld [vmem:[%s6397_s13 + $0x934] ss:$8 sps:$4 sm:$0xff]   ;;  %v5634_v58 = vld [vmem:[%s6397_s13 + $0x170] ss:$8 sps:$4 sm:$0xff]  }
  0x32   : > { %3825 = vmatprep.mubr.bf16.mxu1 %v496_v63  ;;  %4153 = vmatprep.mubr.bf16.mxu0 %v512_v5  ;;  %v5616_v44 = vld [vmem:[%s6397_s13 + $0x140] ss:$8 sps:$4 sm:$0xff]   ;;  %v5636_v56 = vld [vmem:[%s6397_s13 + $0x174] ss:$8 sps:$4 sm:$0xff]   ;;  %v5645_v61 = vld [vmem:[%s6397_s13 + $0x984] ss:$8 sps:$4 sm:$0xff]  }
  0x33   : > { %3806 = vmatpush1.bf16.msra.mxu1 %v5534_v28  ;;  %v5600_v28 = vld [vmem:[%s6397_s13 + $0x114] ss:$8 sps:$4 sm:$0xff]   ;;  %v5628_v54 = vld [vmem:[%s6397_s13 + $0x160] ss:$8 sps:$4 sm:$0xff]   ;;  %v5657_v5 = vld [vmem:[%s6397_s13 + $0x9a4] ss:$8 sps:$4 sm:$0xff]  }
  0x34   : > { %4134 = vmatpush1.bf16.msra.mxu0 %v5535_v29  ;;  %3807 = vmatprep.subr.bf16.mxu1 %v5536_v30  ;;  %v5603_v29 = vld [vmem:[%s6397_s13 + $0x914] ss:$8 sps:$4 sm:$0xff]   ;;  %v498_v30 = vpack.c.bf16 %v333_v22, %v333_v22  ;;  %v5640_v62 = vld [vmem:[%s6397_s13 + $0x180] ss:$8 sps:$4 sm:$0xff]   ;;  %v5658_v10 = vld [vmem:[%s6397_s13 + $0x1b0] ss:$8 sps:$4 sm:$0xff]  }
  0x35   : > { %4135 = vmatprep.subr.bf16.mxu0 %v5538_v31  ;;  %v514_v31 = vpack.c.bf16 %v401_v23, %v401_v23  ;;  %v5643_v63 = vld [vmem:[%s6397_s13 + $0x980] ss:$8 sps:$4 sm:$0xff]   ;;  %v5648_v0 = vld [vmem:[%s6397_s13 + $0x194] ss:$8 sps:$4 sm:$0xff]   ;;  %v5661_v11 = vld [vmem:[%s6397_s13 + $0x9b0] ss:$8 sps:$4 sm:$0xff]  }
  0x36   : > { %v5678_v22 = vld [vmem:[%s6397_s13 + $0x1e4] ss:$8 sps:$4 sm:$0xff]   ;;  %vm4662_vm0 = vcmask (!%p5337_p6), 1041408   ;;  %vm6333_vm1 = vmmov (!%p5337_p6), 0   ;;  %vm4658_vm2 = vcmask (!%p5337_p6), 15360   ;;  %vm4742_vm3 = vcmask (!%p5337_p6), 1024  }
  0x37   : > { %3808 = vmatpush1.bf16.msra.mxu1 %v5540_v32  ;;  %v5598_v32 = vld [vmem:[%s6397_s13 + $0x110] ss:$8 sps:$4 sm:$0xff]   ;;  %v5681_v23 = vld [vmem:[%s6397_s13 + $0x9e4] ss:$8 sps:$4 sm:$0xff]  }
  0x38   : > { %4136 = vmatpush1.bf16.msra.mxu0 %v5541_v33  ;;  %3809 = vmatprep.subr.bf16.mxu1 %v5542_v34  ;;  %v5601_v33 = vld [vmem:[%s6397_s13 + $0x910] ss:$8 sps:$4 sm:$0xff]   ;;  %v5606_v34 = vld [vmem:[%s6397_s13 + $0x124] ss:$8 sps:$4 sm:$0xff]  }
  0x39   : > { %4137 = vmatprep.subr.bf16.mxu0 %v5544_v35  ;;  %v5609_v35 = vld [vmem:[%s6397_s13 + $0x924] ss:$8 sps:$4 sm:$0xff]  }
  0x3b   : > { %3810 = vmatpush1.bf16.msra.mxu1 %v5546_v36  ;;  %v5604_v36 = vld [vmem:[%s6397_s13 + $0x120] ss:$8 sps:$4 sm:$0xff]  }
  0x3c   : > { %4138 = vmatpush1.bf16.msra.mxu0 %v5547_v37  ;;  %3811 = vmatprep.subr.bf16.mxu1 %v5548_v41  ;;  %v5607_v37 = vld [vmem:[%s6397_s13 + $0x920] ss:$8 sps:$4 sm:$0xff]   ;;  %v5613_v41 = vld [vmem:[%s6397_s13 + $0x930] ss:$8 sps:$4 sm:$0xff]  }
  0x3d   : > { %4139 = vmatprep.subr.bf16.mxu0 %v5550_v42  ;;  %v5618_v42 = vld [vmem:[%s6397_s13 + $0x144] ss:$8 sps:$4 sm:$0xff]  }
  0x3f   : > { %3812 = vmatpush1.bf16.msra.mxu1 %v5552_v43  ;;  %v5621_v43 = vld [vmem:[%s6397_s13 + $0x944] ss:$8 sps:$4 sm:$0xff]  }
  0x40   : > { %4140 = vmatpush1.bf16.msra.mxu0 %v5553_v46  ;;  %3813 = vmatprep.subr.bf16.mxu1 %v5554_v47  ;;  %v5619_v46 = vld [vmem:[%s6397_s13 + $0x940] ss:$8 sps:$4 sm:$0xff]   ;;  %v5624_v47 = vld [vmem:[%s6397_s13 + $0x154] ss:$8 sps:$4 sm:$0xff]  }
  0x41   : > { %4141 = vmatprep.subr.bf16.mxu0 %v5556_v48  ;;  %v5627_v48 = vld [vmem:[%s6397_s13 + $0x954] ss:$8 sps:$4 sm:$0xff]  }
  0x43   : > { %3814 = vmatpush1.bf16.msra.mxu1 %v5558_v49  ;;  %v5622_v49 = vld [vmem:[%s6397_s13 + $0x150] ss:$8 sps:$4 sm:$0xff]  }
  0x44   : > { %4142 = vmatpush1.bf16.msra.mxu0 %v5559_v50  ;;  %3815 = vmatprep.subr.bf16.mxu1 %v5560_v52  ;;  %v5625_v50 = vld [vmem:[%s6397_s13 + $0x950] ss:$8 sps:$4 sm:$0xff]   ;;  %v5630_v52 = vld [vmem:[%s6397_s13 + $0x164] ss:$8 sps:$4 sm:$0xff]  }
  0x45   : > { %4143 = vmatprep.subr.bf16.mxu0 %v5562_v53  ;;  %v5633_v53 = vld [vmem:[%s6397_s13 + $0x964] ss:$8 sps:$4 sm:$0xff]  }
  0x47   : > { %3816 = vmatpush1.bf16.msra.mxu1 %v5564_v55  ;;  %v5631_v55 = vld [vmem:[%s6397_s13 + $0x960] ss:$8 sps:$4 sm:$0xff]  }
  0x48   : > { %4144 = vmatpush1.bf16.msra.mxu0 %v5565_v57  ;;  %3817 = vmatprep.subr.bf16.mxu1 %v5566_v59  ;;  %v5639_v57 = vld [vmem:[%s6397_s13 + $0x974] ss:$8 sps:$4 sm:$0xff]   ;;  %v5637_v59 = vld [vmem:[%s6397_s13 + $0x970] ss:$8 sps:$4 sm:$0xff]  }
  0x49   : > { %4145 = vmatprep.subr.bf16.mxu0 %v5568_v60  ;;  %v5642_v60 = vld [vmem:[%s6397_s13 + $0x184] ss:$8 sps:$4 sm:$0xff]  }
  0x4b   : > { %3818 = vmatpush1.bf16.msra.mxu1 %v5570_v1  ;;  %v5651_v1 = vld [vmem:[%s6397_s13 + $0x994] ss:$8 sps:$4 sm:$0xff]  }
  0x4c   : > { %4146 = vmatpush1.bf16.msra.mxu0 %v5571_v2  ;;  %3819 = vmatprep.subr.bf16.mxu1 %v5572_v3  ;;  %v5646_v2 = vld [vmem:[%s6397_s13 + $0x190] ss:$8 sps:$4 sm:$0xff]  }
  0x4d   : > { %4147 = vmatprep.subr.bf16.mxu0 %v5574_v4  ;;  %v5649_v3 = vld [vmem:[%s6397_s13 + $0x990] ss:$8 sps:$4 sm:$0xff]   ;;  %v5654_v4 = vld [vmem:[%s6397_s13 + $0x1a4] ss:$8 sps:$4 sm:$0xff]  }
  0x4f   : > { %3820 = vmatpush1.bf16.msra.mxu1 %v5576_v6  ;;  %v5652_v6 = vld [vmem:[%s6397_s13 + $0x1a0] ss:$8 sps:$4 sm:$0xff]  }
  0x50   : > { %4148 = vmatpush1.bf16.msra.mxu0 %v5577_v7  ;;  %3821 = vmatprep.subr.bf16.mxu1 %v5578_v8  ;;  %v5655_v7 = vld [vmem:[%s6397_s13 + $0x9a0] ss:$8 sps:$4 sm:$0xff]   ;;  %v5660_v8 = vld [vmem:[%s6397_s13 + $0x1b4] ss:$8 sps:$4 sm:$0xff]  }
  0x51   : > { %4149 = vmatprep.subr.bf16.mxu0 %v5580_v9  ;;  %v5663_v9 = vld [vmem:[%s6397_s13 + $0x9b4] ss:$8 sps:$4 sm:$0xff]  }
  0x53   : > { %3822 = vmatpush1.bf16.msra.mxu1 %v5582_v12  ;;  %v5666_v12 = vld [vmem:[%s6397_s13 + $0x1c4] ss:$8 sps:$4 sm:$0xff]  }
  0x54   : > { %4150 = vmatpush1.bf16.msra.mxu0 %v5583_v13  ;;  %3823 = vmatprep.subr.bf16.mxu1 %v5584_v14  ;;  %v5669_v13 = vld [vmem:[%s6397_s13 + $0x9c4] ss:$8 sps:$4 sm:$0xff]   ;;  %v5664_v14 = vld [vmem:[%s6397_s13 + $0x1c0] ss:$8 sps:$4 sm:$0xff]  }
  0x55   : > { %4151 = vmatprep.subr.bf16.mxu0 %v5586_v15  ;;  %v5667_v15 = vld [vmem:[%s6397_s13 + $0x9c0] ss:$8 sps:$4 sm:$0xff]  }
  0x57   : > { %3824 = vmatpush1.bf16.msra.mxu1 %v5588_v18  ;;  %v5672_v18 = vld [vmem:[%s6397_s13 + $0x1d4] ss:$8 sps:$4 sm:$0xff]  }
  0x58   : > { %4152 = vmatpush1.bf16.msra.mxu0 %v5589_v19  ;;  %3834 = vmatprep.subr.bf16.mxu1 %v5593_v20  ;;  %v5675_v19 = vld [vmem:[%s6397_s13 + $0x9d4] ss:$8 sps:$4 sm:$0xff]   ;;  %v5670_v20 = vld [vmem:[%s6397_s13 + $0x1d0] ss:$8 sps:$4 sm:$0xff]  }
  0x59   : > { %4162 = vmatprep.subr.bf16.mxu0 %v5597_v21  ;;  %v5673_v21 = vld [vmem:[%s6397_s13 + $0x9d0] ss:$8 sps:$4 sm:$0xff]  }
  0x5a   : > { %3826 = vmatmul.mubr.bf16.vlgmr.msra.gmra.mrb[0].mxu1 %v495_v24  ;;  %v5676_v24 = vld [vmem:[%s6397_s13 + $0x1e0] ss:$8 sps:$4 sm:$0xff]  }
  0x5b   : > { %4154 = vmatmul.mubr.bf16.vlgmr.msra.gmra.mrb[0].mxu0 %v511_v25  ;;  %3835 = vmatpush1.bf16.msra.mxu1 %v5591_v26  ;;  %v5679_v25 = vld [vmem:[%s6397_s13 + $0x9e0] ss:$8 sps:$4 sm:$0xff]   ;;  %v5684_v26 = vld [vmem:[%s6397_s13 + $0x1f4] ss:$8 sps:$4 sm:$0xff]  }
  0x5c   : > { %4163 = vmatpush1.bf16.msra.mxu0 %v5595_v27  ;;  %3836 = vmatprep.subr.bf16.mxu1 %v5600_v28  ;;  %v5687_v27 = vld [vmem:[%s6397_s13 + $0x9f4] ss:$8 sps:$4 sm:$0xff]   ;;  %v5682_v28 = vld [vmem:[%s6397_s13 + $0x1f0] ss:$8 sps:$4 sm:$0xff]  }
  0x5d   : > { %4164 = vmatprep.subr.bf16.mxu0 %v5603_v29  ;;  %3866 = vmatprep.mubr.bf16.mxu1 %v498_v30  ;;  %v5685_v29 = vld [vmem:[%s6397_s13 + $0x9f0] ss:$8 sps:$4 sm:$0xff]   ;;  %v5690_v30 = vld [vmem:[%s6397_s13 + $0x204] ss:$8 sps:$4 sm:$0xff]  }
  0x5e   : > { %4194 = vmatprep.mubr.bf16.mxu0 %v514_v31  ;;  %v5693_v31 = vld [vmem:[%s6397_s13 + $0xa04] ss:$8 sps:$4 sm:$0xff]  }
  0x5f   : > { %3837 = vmatpush1.bf16.msra.mxu1 %v5598_v32  ;;  %v5688_v32 = vld [vmem:[%s6397_s13 + $0x200] ss:$8 sps:$4 sm:$0xff]  }
  0x60   : > { %4165 = vmatpush1.bf16.msra.mxu0 %v5601_v33  ;;  %3838 = vmatprep.subr.bf16.mxu1 %v5606_v34  ;;  %v497_v33 = vpack.c.bf16 %v6476_v16, %v6476_v16  ;;  %v513_v34 = vpack.c.bf16 %v6479_v17, %v6479_v17  ;;  %v6571_v16 = vld [vmem:[%s6392_s9 + $0x28] sm:$0xff]  ;;  %v5694_v17 = vld [vmem:[%s6397_s13 + $0x210] ss:$8 sps:$4 sm:$0xff]  }
  0x61   : > { %4166 = vmatprep.subr.bf16.mxu0 %v5609_v35  ;;  %v5691_v35 = vld [vmem:[%s6397_s13 + $0xa00] ss:$8 sps:$4 sm:$0xff]  }
  0x63   : > { %3839 = vmatpush1.bf16.msra.mxu1 %v5604_v36  ;;  %v5696_v36 = vld [vmem:[%s6397_s13 + $0x214] ss:$8 sps:$4 sm:$0xff]  }
  0x64   : > { %4167 = vmatpush1.bf16.msra.mxu0 %v5607_v37  ;;  %3840 = vmatprep.subr.bf16.mxu1 %v5612_v38  ;;  %v6563_v37 = vld [vmem:[%s6392_s9 + $0x8] sm:$0xff]  ;;  %v5699_v38 = vld [vmem:[%s6397_s13 + $0xa14] ss:$8 sps:$4 sm:$0xff]  }
  0x65   : > { %4168 = vmatprep.subr.bf16.mxu0 %v5615_v39  ;;  %v6568_v39 = vrot.slane %v6563_v37, %v6447_v51 }
  0x67   : > { %3841 = vmatpush1.bf16.msra.mxu1 %v5610_v40  ;;  %v5697_v40 = vld [vmem:[%s6397_s13 + $0xa10] ss:$8 sps:$4 sm:$0xff]  }
  0x68   : > { %4169 = vmatpush1.bf16.msra.mxu0 %v5613_v41  ;;  %3842 = vmatprep.subr.bf16.mxu1 %v5618_v42  ;;  %v349_v41 = vcombine.high %v6568_v39, %v6568_v39  ;;  %v6579_v42 = vrot.slane %v6571_v16, %v6447_v51 }
  0x69   : > { %4170 = vmatprep.subr.bf16.mxu0 %v5621_v43  ;;  %v5702_v43 = vld [vmem:[%s6397_s13 + $0x224] ss:$8 sps:$4 sm:$0xff]  }
  0x6b   : > { %3843 = vmatpush1.bf16.msra.mxu1 %v5616_v44  ;;  %v5705_v44 = vld [vmem:[%s6397_s13 + $0xa24] ss:$8 sps:$4 sm:$0xff]  }
  0x6c   : > { %4171 = vmatpush1.bf16.msra.mxu0 %v5619_v46  ;;  %3844 = vmatprep.subr.bf16.mxu1 %v5624_v47  ;;  %v500_v46 = vpack.c.bf16 %v349_v41, %v349_v41  ;;  %v417_v47 = vcombine.high %v6579_v42, %v6579_v42  ;;  %v5780_v41 = vld [vmem:[%s6397_s13 + $0x2f4] ss:$8 sps:$4 sm:$0xff]  }
  0x6d   : > { %4172 = vmatprep.subr.bf16.mxu0 %v5627_v48  ;;  %v5700_v48 = vld [vmem:[%s6397_s13 + $0x220] ss:$8 sps:$4 sm:$0xff]  }
  0x6f   : > { %3845 = vmatpush1.bf16.msra.mxu1 %v5622_v49  ;;  %v5703_v49 = vld [vmem:[%s6397_s13 + $0xa20] ss:$8 sps:$4 sm:$0xff]  }
  0x70   : > { %4173 = vmatpush1.bf16.msra.mxu0 %v5625_v50  ;;  %3846 = vmatprep.subr.bf16.mxu1 %v5630_v52  ;;  %v516_v50 = vpack.c.bf16 %v417_v47, %v417_v47  ;;  %v5708_v52 = vld [vmem:[%s6397_s13 + $0x234] ss:$8 sps:$4 sm:$0xff]   ;;  %v5786_v47 = vld [vmem:[%s6397_s13 + $0x304] ss:$8 sps:$4 sm:$0xff]  }
  0x71   : > { %4174 = vmatprep.subr.bf16.mxu0 %v5633_v53  ;;  %v5711_v53 = vld [vmem:[%s6397_s13 + $0xa34] ss:$8 sps:$4 sm:$0xff]  }
  0x73   : > { %3847 = vmatpush1.bf16.msra.mxu1 %v5628_v54  ;;  %v5706_v54 = vld [vmem:[%s6397_s13 + $0x230] ss:$8 sps:$4 sm:$0xff]  }
  0x74   : > { %4175 = vmatpush1.bf16.msra.mxu0 %v5631_v55  ;;  %3848 = vmatprep.subr.bf16.mxu1 %v5636_v56  ;;  %v5709_v55 = vld [vmem:[%s6397_s13 + $0xa30] ss:$8 sps:$4 sm:$0xff]   ;;  %v5714_v56 = vld [vmem:[%s6397_s13 + $0x244] ss:$8 sps:$4 sm:$0xff]  }
  0x75   : > { %4176 = vmatprep.subr.bf16.mxu0 %v5639_v57  ;;  %v5717_v57 = vld [vmem:[%s6397_s13 + $0xa44] ss:$8 sps:$4 sm:$0xff]  }
  0x77   : > { %3849 = vmatpush1.bf16.msra.mxu1 %v5634_v58  ;;  %v5712_v58 = vld [vmem:[%s6397_s13 + $0x240] ss:$8 sps:$4 sm:$0xff]  }
  0x78   : > { %4177 = vmatpush1.bf16.msra.mxu0 %v5637_v59  ;;  %3850 = vmatprep.subr.bf16.mxu1 %v5642_v60  ;;  %v5715_v59 = vld [vmem:[%s6397_s13 + $0xa40] ss:$8 sps:$4 sm:$0xff]   ;;  %v5720_v60 = vld [vmem:[%s6397_s13 + $0x254] ss:$8 sps:$4 sm:$0xff]  }
  0x79   : > { %4178 = vmatprep.subr.bf16.mxu0 %v5645_v61  ;;  %v5723_v61 = vld [vmem:[%s6397_s13 + $0xa54] ss:$8 sps:$4 sm:$0xff]  }
  0x7b   : > { %3851 = vmatpush1.bf16.msra.mxu1 %v5640_v62  ;;  %v5718_v62 = vld [vmem:[%s6397_s13 + $0x250] ss:$8 sps:$4 sm:$0xff]  }
  0x7c   : > { %4179 = vmatpush1.bf16.msra.mxu0 %v5643_v63  ;;  %3852 = vmatprep.subr.bf16.mxu1 %v5648_v0  ;;  %v5721_v63 = vld [vmem:[%s6397_s13 + $0xa50] ss:$8 sps:$4 sm:$0xff]   ;;  %v5726_v0 = vld [vmem:[%s6397_s13 + $0x264] ss:$8 sps:$4 sm:$0xff]  }
  0x7d   : > { %4180 = vmatprep.subr.bf16.mxu0 %v5651_v1  ;;  %v5729_v1 = vld [vmem:[%s6397_s13 + $0xa64] ss:$8 sps:$4 sm:$0xff]  }
  0x7f   : > { %3853 = vmatpush1.bf16.msra.mxu1 %v5646_v2  ;;  %v5724_v2 = vld [vmem:[%s6397_s13 + $0x260] ss:$8 sps:$4 sm:$0xff]  }
  0x80   : > { %4181 = vmatpush1.bf16.msra.mxu0 %v5649_v3  ;;  %3854 = vmatprep.subr.bf16.mxu1 %v5654_v4  ;;  %v5727_v3 = vld [vmem:[%s6397_s13 + $0xa60] ss:$8 sps:$4 sm:$0xff]   ;;  %v5732_v4 = vld [vmem:[%s6397_s13 + $0x274] ss:$8 sps:$4 sm:$0xff]  }
  0x81   : > { %4182 = vmatprep.subr.bf16.mxu0 %v5657_v5  ;;  %v5735_v5 = vld [vmem:[%s6397_s13 + $0xa74] ss:$8 sps:$4 sm:$0xff]  }
  0x83   : > { %3855 = vmatpush1.bf16.msra.mxu1 %v5652_v6  ;;  %v5730_v6 = vld [vmem:[%s6397_s13 + $0x270] ss:$8 sps:$4 sm:$0xff]  }
  0x84   : > { %4183 = vmatpush1.bf16.msra.mxu0 %v5655_v7  ;;  %3856 = vmatprep.subr.bf16.mxu1 %v5660_v8  ;;  %v5733_v7 = vld [vmem:[%s6397_s13 + $0xa70] ss:$8 sps:$4 sm:$0xff]   ;;  %v5738_v8 = vld [vmem:[%s6397_s13 + $0x284] ss:$8 sps:$4 sm:$0xff]  }
  0x85   : > { %4184 = vmatprep.subr.bf16.mxu0 %v5663_v9  ;;  %v5741_v9 = vld [vmem:[%s6397_s13 + $0xa84] ss:$8 sps:$4 sm:$0xff]  }
  0x87   : > { %3857 = vmatpush1.bf16.msra.mxu1 %v5658_v10  ;;  %v5736_v10 = vld [vmem:[%s6397_s13 + $0x280] ss:$8 sps:$4 sm:$0xff]  }
  0x88   : > { %4185 = vmatpush1.bf16.msra.mxu0 %v5661_v11  ;;  %3858 = vmatprep.subr.bf16.mxu1 %v5666_v12  ;;  %v5739_v11 = vld [vmem:[%s6397_s13 + $0xa80] ss:$8 sps:$4 sm:$0xff]   ;;  %v5744_v12 = vld [vmem:[%s6397_s13 + $0x294] ss:$8 sps:$4 sm:$0xff]  }
  0x89   : > { %4186 = vmatprep.subr.bf16.mxu0 %v5669_v13  ;;  %v5747_v13 = vld [vmem:[%s6397_s13 + $0xa94] ss:$8 sps:$4 sm:$0xff]  }
  0x8b   : > { %3859 = vmatpush1.bf16.msra.mxu1 %v5664_v14  ;;  %v5742_v14 = vld [vmem:[%s6397_s13 + $0x290] ss:$8 sps:$4 sm:$0xff]  }
  0x8c   : > { %4187 = vmatpush1.bf16.msra.mxu0 %v5667_v15  ;;  %3860 = vmatprep.subr.bf16.mxu1 %v5672_v18  ;;  %v5745_v15 = vld [vmem:[%s6397_s13 + $0xa90] ss:$8 sps:$4 sm:$0xff]   ;;  %v5750_v18 = vld [vmem:[%s6397_s13 + $0x2a4] ss:$8 sps:$4 sm:$0xff]  }
  0x8d   : > { %4188 = vmatprep.subr.bf16.mxu0 %v5675_v19  ;;  %v5753_v19 = vld [vmem:[%s6397_s13 + $0xaa4] ss:$8 sps:$4 sm:$0xff]  }
  0x8f   : > { %3861 = vmatpush1.bf16.msra.mxu1 %v5670_v20  ;;  %v5748_v20 = vld [vmem:[%s6397_s13 + $0x2a0] ss:$8 sps:$4 sm:$0xff]  }
  0x90   : > { %4189 = vmatpush1.bf16.msra.mxu0 %v5673_v21  ;;  %3862 = vmatprep.subr.bf16.mxu1 %v5678_v22  ;;  %v5751_v21 = vld [vmem:[%s6397_s13 + $0xaa0] ss:$8 sps:$4 sm:$0xff]   ;;  %v5756_v22 = vld [vmem:[%s6397_s13 + $0x2b4] ss:$8 sps:$4 sm:$0xff]  }
  0x91   : > { %4190 = vmatprep.subr.bf16.mxu0 %v5681_v23  ;;  %v5759_v23 = vld [vmem:[%s6397_s13 + $0xab4] ss:$8 sps:$4 sm:$0xff]  }
  0x93   : > { %3863 = vmatpush1.bf16.msra.mxu1 %v5676_v24  ;;  %v5754_v24 = vld [vmem:[%s6397_s13 + $0x2b0] ss:$8 sps:$4 sm:$0xff]  }
  0x94   : > { %4191 = vmatpush1.bf16.msra.mxu0 %v5679_v25  ;;  %3864 = vmatprep.subr.bf16.mxu1 %v5684_v26  ;;  %v5757_v25 = vld [vmem:[%s6397_s13 + $0xab0] ss:$8 sps:$4 sm:$0xff]   ;;  %v5762_v26 = vld [vmem:[%s6397_s13 + $0x2c4] ss:$8 sps:$4 sm:$0xff]  }
  0x95   : > { %4192 = vmatprep.subr.bf16.mxu0 %v5687_v27  ;;  %v5765_v27 = vld [vmem:[%s6397_s13 + $0xac4] ss:$8 sps:$4 sm:$0xff]  }
  0x97   : > { %3865 = vmatpush1.bf16.msra.mxu1 %v5682_v28  ;;  %v5760_v28 = vld [vmem:[%s6397_s13 + $0x2c0] ss:$8 sps:$4 sm:$0xff]  }
  0x98   : > { %4193 = vmatpush1.bf16.msra.mxu0 %v5685_v29  ;;  %3875 = vmatprep.subr.bf16.mxu1 %v5690_v30  ;;  %v5763_v29 = vld [vmem:[%s6397_s13 + $0xac0] ss:$8 sps:$4 sm:$0xff]   ;;  %v5768_v30 = vld [vmem:[%s6397_s13 + $0x2d4] ss:$8 sps:$4 sm:$0xff]  }
  0x99   : > { %4203 = vmatprep.subr.bf16.mxu0 %v5693_v31  ;;  %v5771_v31 = vld [vmem:[%s6397_s13 + $0xad4] ss:$8 sps:$4 sm:$0xff]  }
  0x9a   : > { %3867 = vmatmul.mubr.bf16.vlgmr.msra.gmra.mrb[0].mxu1 %v497_v33  ;;  %v5769_v33 = vld [vmem:[%s6397_s13 + $0xad0] ss:$8 sps:$4 sm:$0xff]  }
  0x9b   : > { %4195 = vmatmul.mubr.bf16.vlgmr.msra.gmra.mrb[0].mxu0 %v513_v34  ;;  %3876 = vmatpush1.bf16.msra.mxu1 %v5688_v32  ;;  %v5766_v32 = vld [vmem:[%s6397_s13 + $0x2d0] ss:$8 sps:$4 sm:$0xff]   ;;  %v5774_v34 = vld [vmem:[%s6397_s13 + $0x2e4] ss:$8 sps:$4 sm:$0xff]  }
  0x9c   : > { %4204 = vmatpush1.bf16.msra.mxu0 %v5691_v35  ;;  %3877 = vmatprep.subr.bf16.mxu1 %v5696_v36  ;;  %v5777_v35 = vld [vmem:[%s6397_s13 + $0xae4] ss:$8 sps:$4 sm:$0xff]   ;;  %v334_v36 = vcombine.high %v6563_v37, %v6563_v37 }
  0x9d   : > { %4205 = vmatprep.subr.bf16.mxu0 %v5699_v38  ;;  %3907 = vmatprep.mubr.bf16.mxu1 %v500_v46  ;;  %v402_v38 = vcombine.high %v6571_v16, %v6571_v16  ;;  %v5778_v46 = vld [vmem:[%s6397_s13 + $0x2f0] ss:$8 sps:$4 sm:$0xff]  }
  0x9e   : > { %4235 = vmatprep.mubr.bf16.mxu0 %v516_v50  ;;  %v5781_v16 = vld [vmem:[%s6397_s13 + $0xaf0] ss:$8 sps:$4 sm:$0xff]  }
  0x9f   : > { %3878 = vmatpush1.bf16.msra.mxu1 %v5694_v17  ;;  %v5772_v17 = vld [vmem:[%s6397_s13 + $0x2e0] ss:$8 sps:$4 sm:$0xff]   ;;  %v6645_v37 = vrot.slane %v402_v38, %v6447_v51  ;;  %v5853_v38 = vld [vmem:[%s6397_s13 + $0xbb0] ss:$8 sps:$4 sm:$0xff]  }
  0xa0   : > { %4206 = vmatpush1.bf16.msra.mxu0 %v5697_v40  ;;  %3879 = vmatprep.subr.bf16.mxu1 %v5702_v43  ;;  %v5775_v40 = vld [vmem:[%s6397_s13 + $0xae0] ss:$8 sps:$4 sm:$0xff]   ;;  %v5783_v43 = vld [vmem:[%s6397_s13 + $0xaf4] ss:$8 sps:$4 sm:$0xff]  }
  0xa1   : > { %4207 = vmatprep.subr.bf16.mxu0 %v5705_v44  ;;  %v6642_v44 = vrot.slane %v334_v36, %v6447_v51  ;;  %v418_v50 = vcombine.high %v6645_v37, %v6645_v37  ;;  %v5850_v36 = vld [vmem:[%s6397_s13 + $0x3b0] ss:$8 sps:$4 sm:$0xff]  }
  0xa3   : > { %3880 = vmatpush1.bf16.msra.mxu1 %v5700_v48  ;;  %v5789_v48 = vld [vmem:[%s6397_s13 + $0xb04] ss:$8 sps:$4 sm:$0xff]  }
  0xa4   : > { %4208 = vmatpush1.bf16.msra.mxu0 %v5703_v49  ;;  %3881 = vmatprep.subr.bf16.mxu1 %v5708_v52  ;;  %v350_v49 = vcombine.high %v6642_v44, %v6642_v44  ;;  %v5784_v52 = vld [vmem:[%s6397_s13 + $0x300] ss:$8 sps:$4 sm:$0xff]  }
  0xa5   : > { %4209 = vmatprep.subr.bf16.mxu0 %v5711_v53  ;;  %v5787_v53 = vld [vmem:[%s6397_s13 + $0xb00] ss:$8 sps:$4 sm:$0xff]  }
  0xa7   : > { %3882 = vmatpush1.bf16.msra.mxu1 %v5706_v54  ;;  %v499_v54 = vpack.c.bf16 %v6568_v39, %v6568_v39  ;;  %v5793_v39 = vld [vmem:[%s6397_s13 + $0xb10] ss:$8 sps:$4 sm:$0xff]  }
  0xa8   : > { %4210 = vmatpush1.bf16.msra.mxu0 %v5709_v55  ;;  %3883 = vmatprep.subr.bf16.mxu1 %v5714_v56  ;;  %v515_v55 = vpack.c.bf16 %v6579_v42, %v6579_v42  ;;  %v5792_v56 = vld [vmem:[%s6397_s13 + $0x314] ss:$8 sps:$4 sm:$0xff]   ;;  %v5798_v42 = vld [vmem:[%s6397_s13 + $0x324] ss:$8 sps:$4 sm:$0xff]  }
  0xa9   : > { %4211 = vmatprep.subr.bf16.mxu0 %v5717_v57  ;;  %v5795_v57 = vld [vmem:[%s6397_s13 + $0xb14] ss:$8 sps:$4 sm:$0xff]  }
  0xab   : > { %3884 = vmatpush1.bf16.msra.mxu1 %v5712_v58  ;;  %v502_v58 = vpack.c.bf16 %v350_v49, %v350_v49  ;;  %v5870_v49 = vld [vmem:[%s6397_s13 + $0x3e4] ss:$8 sps:$4 sm:$0xff]  }
  0xac   : > { %4212 = vmatpush1.bf16.msra.mxu0 %v5715_v59  ;;  %3885 = vmatprep.subr.bf16.mxu1 %v5720_v60  ;;  %v518_v59 = vpack.c.bf16 %v418_v50, %v418_v50  ;;  %v5790_v60 = vld [vmem:[%s6397_s13 + $0x310] ss:$8 sps:$4 sm:$0xff]   ;;  %v5873_v50 = vld [vmem:[%s6397_s13 + $0xbe4] ss:$8 sps:$4 sm:$0xff]  }
  0xad   : > { %4213 = vmatprep.subr.bf16.mxu0 %v5723_v61  ;;  %v5801_v61 = vld [vmem:[%s6397_s13 + $0xb24] ss:$8 sps:$4 sm:$0xff]  }
  0xaf   : > { %3886 = vmatpush1.bf16.msra.mxu1 %v5718_v62  ;;  %v5796_v62 = vld [vmem:[%s6397_s13 + $0x320] ss:$8 sps:$4 sm:$0xff]  }
  0xb0   : > { %4214 = vmatpush1.bf16.msra.mxu0 %v5721_v63  ;;  %3887 = vmatprep.subr.bf16.mxu1 %v5726_v0  ;;  %v5799_v63 = vld [vmem:[%s6397_s13 + $0xb20] ss:$8 sps:$4 sm:$0xff]   ;;  %v5804_v0 = vld [vmem:[%s6397_s13 + $0x334] ss:$8 sps:$4 sm:$0xff]  }
  0xb1   : > { %4215 = vmatprep.subr.bf16.mxu0 %v5729_v1  ;;  %v5807_v1 = vld [vmem:[%s6397_s13 + $0xb34] ss:$8 sps:$4 sm:$0xff]  }
  0xb3   : > { %3888 = vmatpush1.bf16.msra.mxu1 %v5724_v2  ;;  %v5802_v2 = vld [vmem:[%s6397_s13 + $0x330] ss:$8 sps:$4 sm:$0xff]  }
  0xb4   : > { %4216 = vmatpush1.bf16.msra.mxu0 %v5727_v3  ;;  %3889 = vmatprep.subr.bf16.mxu1 %v5732_v4  ;;  %v5805_v3 = vld [vmem:[%s6397_s13 + $0xb30] ss:$8 sps:$4 sm:$0xff]   ;;  %v5810_v4 = vld [vmem:[%s6397_s13 + $0x344] ss:$8 sps:$4 sm:$0xff]  }
  0xb5   : > { %4217 = vmatprep.subr.bf16.mxu0 %v5735_v5  ;;  %v5813_v5 = vld [vmem:[%s6397_s13 + $0xb44] ss:$8 sps:$4 sm:$0xff]  }
  0xb7   : > { %3890 = vmatpush1.bf16.msra.mxu1 %v5730_v6  ;;  %v5808_v6 = vld [vmem:[%s6397_s13 + $0x340] ss:$8 sps:$4 sm:$0xff]  }
  0xb8   : > { %4218 = vmatpush1.bf16.msra.mxu0 %v5733_v7  ;;  %3891 = vmatprep.subr.bf16.mxu1 %v5738_v8  ;;  %v5811_v7 = vld [vmem:[%s6397_s13 + $0xb40] ss:$8 sps:$4 sm:$0xff]   ;;  %v5816_v8 = vld [vmem:[%s6397_s13 + $0x354] ss:$8 sps:$4 sm:$0xff]  }
  0xb9   : > { %4219 = vmatprep.subr.bf16.mxu0 %v5741_v9  ;;  %v5819_v9 = vld [vmem:[%s6397_s13 + $0xb54] ss:$8 sps:$4 sm:$0xff]  }
  0xbb   : > { %3892 = vmatpush1.bf16.msra.mxu1 %v5736_v10  ;;  %v5814_v10 = vld [vmem:[%s6397_s13 + $0x350] ss:$8 sps:$4 sm:$0xff]  }
  0xbc   : > { %4220 = vmatpush1.bf16.msra.mxu0 %v5739_v11  ;;  %3893 = vmatprep.subr.bf16.mxu1 %v5744_v12  ;;  %v5817_v11 = vld [vmem:[%s6397_s13 + $0xb50] ss:$8 sps:$4 sm:$0xff]   ;;  %v5822_v12 = vld [vmem:[%s6397_s13 + $0x364] ss:$8 sps:$4 sm:$0xff]  }
  0xbd   : > { %4221 = vmatprep.subr.bf16.mxu0 %v5747_v13  ;;  %v5825_v13 = vld [vmem:[%s6397_s13 + $0xb64] ss:$8 sps:$4 sm:$0xff]  }
  0xbf   : > { %3894 = vmatpush1.bf16.msra.mxu1 %v5742_v14  ;;  %v5820_v14 = vld [vmem:[%s6397_s13 + $0x360] ss:$8 sps:$4 sm:$0xff]  }
  0xc0   : > { %4222 = vmatpush1.bf16.msra.mxu0 %v5745_v15  ;;  %3895 = vmatprep.subr.bf16.mxu1 %v5750_v18  ;;  %v5823_v15 = vld [vmem:[%s6397_s13 + $0xb60] ss:$8 sps:$4 sm:$0xff]   ;;  %v5828_v18 = vld [vmem:[%s6397_s13 + $0x374] ss:$8 sps:$4 sm:$0xff]  }
  0xc1   : > { %4223 = vmatprep.subr.bf16.mxu0 %v5753_v19  ;;  %v5831_v19 = vld [vmem:[%s6397_s13 + $0xb74] ss:$8 sps:$4 sm:$0xff]  }
  0xc3   : > { %3896 = vmatpush1.bf16.msra.mxu1 %v5748_v20  ;;  %v5826_v20 = vld [vmem:[%s6397_s13 + $0x370] ss:$8 sps:$4 sm:$0xff]  }
  0xc4   : > { %4224 = vmatpush1.bf16.msra.mxu0 %v5751_v21  ;;  %3897 = vmatprep.subr.bf16.mxu1 %v5756_v22  ;;  %v5829_v21 = vld [vmem:[%s6397_s13 + $0xb70] ss:$8 sps:$4 sm:$0xff]   ;;  %v5834_v22 = vld [vmem:[%s6397_s13 + $0x384] ss:$8 sps:$4 sm:$0xff]  }
  0xc5   : > { %4225 = vmatprep.subr.bf16.mxu0 %v5759_v23  ;;  %v5837_v23 = vld [vmem:[%s6397_s13 + $0xb84] ss:$8 sps:$4 sm:$0xff]  }
  0xc7   : > { %3898 = vmatpush1.bf16.msra.mxu1 %v5754_v24  ;;  %v5832_v24 = vld [vmem:[%s6397_s13 + $0x380] ss:$8 sps:$4 sm:$0xff]  }
  0xc8   : > { %4226 = vmatpush1.bf16.msra.mxu0 %v5757_v25  ;;  %3899 = vmatprep.subr.bf16.mxu1 %v5762_v26  ;;  %v5835_v25 = vld [vmem:[%s6397_s13 + $0xb80] ss:$8 sps:$4 sm:$0xff]   ;;  %v5840_v26 = vld [vmem:[%s6397_s13 + $0x394] ss:$8 sps:$4 sm:$0xff]  }
  0xc9   : > { %4227 = vmatprep.subr.bf16.mxu0 %v5765_v27  ;;  %v5843_v27 = vld [vmem:[%s6397_s13 + $0xb94] ss:$8 sps:$4 sm:$0xff]  }
  0xcb   : > { %3900 = vmatpush1.bf16.msra.mxu1 %v5760_v28  ;;  %v5838_v28 = vld [vmem:[%s6397_s13 + $0x390] ss:$8 sps:$4 sm:$0xff]  }
  0xcc   : > { %4228 = vmatpush1.bf16.msra.mxu0 %v5763_v29  ;;  %3901 = vmatprep.subr.bf16.mxu1 %v5768_v30  ;;  %v5841_v29 = vld [vmem:[%s6397_s13 + $0xb90] ss:$8 sps:$4 sm:$0xff]   ;;  %v5846_v30 = vld [vmem:[%s6397_s13 + $0x3a4] ss:$8 sps:$4 sm:$0xff]  }
  0xcd   : > { %4229 = vmatprep.subr.bf16.mxu0 %v5771_v31  ;;  %v5849_v31 = vld [vmem:[%s6397_s13 + $0xba4] ss:$8 sps:$4 sm:$0xff]  }
  0xcf   : > { %3902 = vmatpush1.bf16.msra.mxu1 %v5766_v32  ;;  %v5844_v32 = vld [vmem:[%s6397_s13 + $0x3a0] ss:$8 sps:$4 sm:$0xff]  }
  0xd0   : > { %4230 = vmatpush1.bf16.msra.mxu0 %v5769_v33  ;;  %3903 = vmatprep.subr.bf16.mxu1 %v5774_v34  ;;  %v5847_v33 = vld [vmem:[%s6397_s13 + $0xba0] ss:$8 sps:$4 sm:$0xff]   ;;  %v5852_v34 = vld [vmem:[%s6397_s13 + $0x3b4] ss:$8 sps:$4 sm:$0xff]  }
  0xd1   : > { %4231 = vmatprep.subr.bf16.mxu0 %v5777_v35  ;;  %v5855_v35 = vld [vmem:[%s6397_s13 + $0xbb4] ss:$8 sps:$4 sm:$0xff]  }
  0xd3   : > { %3904 = vmatpush1.bf16.msra.mxu1 %v5772_v17  ;;  %v5858_v17 = vld [vmem:[%s6397_s13 + $0x3c4] ss:$8 sps:$4 sm:$0xff]  }
  0xd4   : > { %4232 = vmatpush1.bf16.msra.mxu0 %v5775_v40  ;;  %3905 = vmatprep.subr.bf16.mxu1 %v5780_v41  ;;  %v5861_v40 = vld [vmem:[%s6397_s13 + $0xbc4] ss:$8 sps:$4 sm:$0xff]   ;;  %v5856_v41 = vld [vmem:[%s6397_s13 + $0x3c0] ss:$8 sps:$4 sm:$0xff]  }
  0xd5   : > { %4233 = vmatprep.subr.bf16.mxu0 %v5783_v43  ;;  %v5859_v43 = vld [vmem:[%s6397_s13 + $0xbc0] ss:$8 sps:$4 sm:$0xff]  }
  0xd7   : > { %3906 = vmatpush1.bf16.msra.mxu1 %v5778_v46  ;;  %v5864_v46 = vld [vmem:[%s6397_s13 + $0x3d4] ss:$8 sps:$4 sm:$0xff]  }
  0xd8   : > { %4234 = vmatpush1.bf16.msra.mxu0 %v5781_v16  ;;  %3916 = vmatprep.subr.bf16.mxu1 %v5786_v47  ;;  %v5867_v16 = vld [vmem:[%s6397_s13 + $0xbd4] ss:$8 sps:$4 sm:$0xff]   ;;  %v5862_v47 = vld [vmem:[%s6397_s13 + $0x3d0] ss:$8 sps:$4 sm:$0xff]  }
  0xd9   : > { %4244 = vmatprep.subr.bf16.mxu0 %v5789_v48  ;;  %v5865_v48 = vld [vmem:[%s6397_s13 + $0xbd0] ss:$8 sps:$4 sm:$0xff]  }
  0xda   : > { %3908 = vmatmul.mubr.bf16.vlgmr.msra.gmra.mrb[0].mxu1 %v499_v54  ;;  %v5868_v54 = vld [vmem:[%s6397_s13 + $0x3e0] ss:$8 sps:$4 sm:$0xff]  }
  0xdb   : > { %4236 = vmatmul.mubr.bf16.vlgmr.msra.gmra.mrb[0].mxu0 %v515_v55  ;;  %3917 = vmatpush1.bf16.msra.mxu1 %v5784_v52  ;;  %v6716_v52 = vld [vmem:[%s6392_s9 + $0x10] sm:$0xff]  ;;  %v5871_v55 = vld [vmem:[%s6397_s13 + $0xbe0] ss:$8 sps:$4 sm:$0xff]  }
  0xdc   : > { %4245 = vmatpush1.bf16.msra.mxu0 %v5787_v53  ;;  %3918 = vmatprep.subr.bf16.mxu1 %v5792_v56  ;;  %v6719_v53 = vld [vmem:[%s6392_s9 + $0x30] sm:$0xff] }
  0xdd   : > { %4246 = vmatprep.subr.bf16.mxu0 %v5795_v57  ;;  %3948 = vmatprep.mubr.bf16.mxu1 %v502_v58  ;;  %v5876_v56 = vld [vmem:[%s6397_s13 + $0x3f4] ss:$8 sps:$4 sm:$0xff]   ;;  %v6727_v58 = vrot.slane %v6716_v52, %v6447_v51 }
  0xde   : > { %4276 = vmatprep.mubr.bf16.mxu0 %v518_v59  ;;  %v5879_v57 = vld [vmem:[%s6397_s13 + $0xbf4] ss:$8 sps:$4 sm:$0xff]   ;;  %v6731_v59 = vrot.slane %v6719_v53, %v6447_v51 }
  0xdf   : > { %3919 = vmatpush1.bf16.msra.mxu1 %v5790_v60  ;;  %v5874_v60 = vld [vmem:[%s6397_s13 + $0x3f0] ss:$8 sps:$4 sm:$0xff]  }
  0xe0   : > { %4247 = vmatpush1.bf16.msra.mxu0 %v5793_v39  ;;  %3920 = vmatprep.subr.bf16.mxu1 %v5798_v42  ;;  %v5877_v39 = vld [vmem:[%s6397_s13 + $0xbf0] ss:$8 sps:$4 sm:$0xff]   ;;  %v5883_v42 = vld [vmem:[%s6397_s13 + $0x404] ss:$8 sps:$4 sm:$0xff]  }
  0xe1   : > { %4248 = vmatprep.subr.bf16.mxu0 %v5801_v61  ;;  %v5887_v61 = vld [vmem:[%s6397_s13 + $0xc04] ss:$8 sps:$4 sm:$0xff]  }
  0xe3   : > { %3921 = vmatpush1.bf16.msra.mxu1 %v5796_v62  ;;  %v366_v62 = vcombine.high %v6727_v58, %v6727_v58 }
  0xe4   : > { %4249 = vmatpush1.bf16.msra.mxu0 %v5799_v63  ;;  %3922 = vmatprep.subr.bf16.mxu1 %v5804_v0  ;;  %v434_v63 = vcombine.high %v6731_v59, %v6731_v59  ;;  %v501_v0 = vpack.c.bf16 %v6642_v44, %v6642_v44  ;;  %v5888_v44 = vld [vmem:[%s6397_s13 + $0x410] ss:$8 sps:$4 sm:$0xff]  }
  0xe5   : > { %4250 = vmatprep.subr.bf16.mxu0 %v5807_v1  ;;  %v517_v1 = vpack.c.bf16 %v6645_v37, %v6645_v37  ;;  %v5891_v37 = vld [vmem:[%s6397_s13 + $0xc10] ss:$8 sps:$4 sm:$0xff]  }
  0xe7   : > { %3923 = vmatpush1.bf16.msra.mxu1 %v5802_v2  ;;  %v5881_v2 = vld [vmem:[%s6397_s13 + $0x400] ss:$8 sps:$4 sm:$0xff]  }
  0xe8   : > { %4251 = vmatpush1.bf16.msra.mxu0 %v5805_v3  ;;  %3924 = vmatprep.subr.bf16.mxu1 %v5810_v4  ;;  %v5885_v3 = vld [vmem:[%s6397_s13 + $0xc00] ss:$8 sps:$4 sm:$0xff]   ;;  %v5890_v4 = vld [vmem:[%s6397_s13 + $0x414] ss:$8 sps:$4 sm:$0xff]  }
  0xe9   : > { %4252 = vmatprep.subr.bf16.mxu0 %v5813_v5  ;;  %v5893_v5 = vld [vmem:[%s6397_s13 + $0xc14] ss:$8 sps:$4 sm:$0xff]  }
  0xeb   : > { %3925 = vmatpush1.bf16.msra.mxu1 %v5808_v6  ;;  %v504_v6 = vpack.c.bf16 %v366_v62, %v366_v62  ;;  %v5960_v62 = vld [vmem:[%s6397_s13 + $0x4d0] ss:$8 sps:$4 sm:$0xff]  }
  0xec   : > { %4253 = vmatpush1.bf16.msra.mxu0 %v5811_v7  ;;  %3926 = vmatprep.subr.bf16.mxu1 %v5816_v8  ;;  %v520_v7 = vpack.c.bf16 %v434_v63, %v434_v63  ;;  %v5896_v8 = vld [vmem:[%s6397_s13 + $0x424] ss:$8 sps:$4 sm:$0xff]   ;;  %v5963_v63 = vld [vmem:[%s6397_s13 + $0xcd0] ss:$8 sps:$4 sm:$0xff]  }
  0xed   : > { %4254 = vmatprep.subr.bf16.mxu0 %v5819_v9  ;;  %v5899_v9 = vld [vmem:[%s6397_s13 + $0xc24] ss:$8 sps:$4 sm:$0xff]  }
  0xef   : > { %3927 = vmatpush1.bf16.msra.mxu1 %v5814_v10  ;;  %v5894_v10 = vld [vmem:[%s6397_s13 + $0x420] ss:$8 sps:$4 sm:$0xff]  }
  0xf0   : > { %4255 = vmatpush1.bf16.msra.mxu0 %v5817_v11  ;;  %3928 = vmatprep.subr.bf16.mxu1 %v5822_v12  ;;  %v5897_v11 = vld [vmem:[%s6397_s13 + $0xc20] ss:$8 sps:$4 sm:$0xff]   ;;  %v5902_v12 = vld [vmem:[%s6397_s13 + $0x434] ss:$8 sps:$4 sm:$0xff]  }
  0xf1   : > { %4256 = vmatprep.subr.bf16.mxu0 %v5825_v13  ;;  %v5905_v13 = vld [vmem:[%s6397_s13 + $0xc34] ss:$8 sps:$4 sm:$0xff]  }
  0xf3   : > { %3929 = vmatpush1.bf16.msra.mxu1 %v5820_v14  ;;  %v5900_v14 = vld [vmem:[%s6397_s13 + $0x430] ss:$8 sps:$4 sm:$0xff]  }
  0xf4   : > { %4257 = vmatpush1.bf16.msra.mxu0 %v5823_v15  ;;  %3930 = vmatprep.subr.bf16.mxu1 %v5828_v18  ;;  %v5903_v15 = vld [vmem:[%s6397_s13 + $0xc30] ss:$8 sps:$4 sm:$0xff]   ;;  %v5908_v18 = vld [vmem:[%s6397_s13 + $0x444] ss:$8 sps:$4 sm:$0xff]  }
  0xf5   : > { %4258 = vmatprep.subr.bf16.mxu0 %v5831_v19  ;;  %v5911_v19 = vld [vmem:[%s6397_s13 + $0xc44] ss:$8 sps:$4 sm:$0xff]  }
  0xf7   : > { %3931 = vmatpush1.bf16.msra.mxu1 %v5826_v20  ;;  %v5906_v20 = vld [vmem:[%s6397_s13 + $0x440] ss:$8 sps:$4 sm:$0xff]  }
  0xf8   : > { %4259 = vmatpush1.bf16.msra.mxu0 %v5829_v21  ;;  %3932 = vmatprep.subr.bf16.mxu1 %v5834_v22  ;;  %v5909_v21 = vld [vmem:[%s6397_s13 + $0xc40] ss:$8 sps:$4 sm:$0xff]   ;;  %v5914_v22 = vld [vmem:[%s6397_s13 + $0x454] ss:$8 sps:$4 sm:$0xff]  }
  0xf9   : > { %4260 = vmatprep.subr.bf16.mxu0 %v5837_v23  ;;  %v5917_v23 = vld [vmem:[%s6397_s13 + $0xc54] ss:$8 sps:$4 sm:$0xff]  }
  0xfb   : > { %3933 = vmatpush1.bf16.msra.mxu1 %v5832_v24  ;;  %v5912_v24 = vld [vmem:[%s6397_s13 + $0x450] ss:$8 sps:$4 sm:$0xff]  }
  0xfc   : > { %4261 = vmatpush1.bf16.msra.mxu0 %v5835_v25  ;;  %3934 = vmatprep.subr.bf16.mxu1 %v5840_v26  ;;  %v5915_v25 = vld [vmem:[%s6397_s13 + $0xc50] ss:$8 sps:$4 sm:$0xff]   ;;  %v5920_v26 = vld [vmem:[%s6397_s13 + $0x464] ss:$8 sps:$4 sm:$0xff]  }
  0xfd   : > { %4262 = vmatprep.subr.bf16.mxu0 %v5843_v27  ;;  %v5923_v27 = vld [vmem:[%s6397_s13 + $0xc64] ss:$8 sps:$4 sm:$0xff]  }
  0xff   : > { %3935 = vmatpush1.bf16.msra.mxu1 %v5838_v28  ;;  %v5918_v28 = vld [vmem:[%s6397_s13 + $0x460] ss:$8 sps:$4 sm:$0xff]  }
 0x100   : > { %4263 = vmatpush1.bf16.msra.mxu0 %v5841_v29  ;;  %3936 = vmatprep.subr.bf16.mxu1 %v5846_v30  ;;  %v5921_v29 = vld [vmem:[%s6397_s13 + $0xc60] ss:$8 sps:$4 sm:$0xff]   ;;  %v5926_v30 = vld [vmem:[%s6397_s13 + $0x474] ss:$8 sps:$4 sm:$0xff]  }
 0x101   : > { %4264 = vmatprep.subr.bf16.mxu0 %v5849_v31  ;;  %v5929_v31 = vld [vmem:[%s6397_s13 + $0xc74] ss:$8 sps:$4 sm:$0xff]  }
 0x103   : > { %3937 = vmatpush1.bf16.msra.mxu1 %v5844_v32  ;;  %v5924_v32 = vld [vmem:[%s6397_s13 + $0x470] ss:$8 sps:$4 sm:$0xff]  }
 0x104   : > { %4265 = vmatpush1.bf16.msra.mxu0 %v5847_v33  ;;  %3938 = vmatprep.subr.bf16.mxu1 %v5852_v34  ;;  %v5927_v33 = vld [vmem:[%s6397_s13 + $0xc70] ss:$8 sps:$4 sm:$0xff]   ;;  %v5932_v34 = vld [vmem:[%s6397_s13 + $0x484] ss:$8 sps:$4 sm:$0xff]  }
 0x105   : > { %4266 = vmatprep.subr.bf16.mxu0 %v5855_v35  ;;  %v5935_v35 = vld [vmem:[%s6397_s13 + $0xc84] ss:$8 sps:$4 sm:$0xff]  }
 0x107   : > { %3939 = vmatpush1.bf16.msra.mxu1 %v5850_v36  ;;  %v5930_v36 = vld [vmem:[%s6397_s13 + $0x480] ss:$8 sps:$4 sm:$0xff]  }
 0x108   : > { %4267 = vmatpush1.bf16.msra.mxu0 %v5853_v38  ;;  %3940 = vmatprep.subr.bf16.mxu1 %v5858_v17  ;;  %v5933_v38 = vld [vmem:[%s6397_s13 + $0xc80] ss:$8 sps:$4 sm:$0xff]   ;;  %v5938_v17 = vld [vmem:[%s6397_s13 + $0x494] ss:$8 sps:$4 sm:$0xff]  }
 0x109   : > { %4268 = vmatprep.subr.bf16.mxu0 %v5861_v40  ;;  %v5941_v40 = vld [vmem:[%s6397_s13 + $0xc94] ss:$8 sps:$4 sm:$0xff]  }
 0x10b   : > { %3941 = vmatpush1.bf16.msra.mxu1 %v5856_v41  ;;  %v5936_v41 = vld [vmem:[%s6397_s13 + $0x490] ss:$8 sps:$4 sm:$0xff]  }
 0x10c   : > { %4269 = vmatpush1.bf16.msra.mxu0 %v5859_v43  ;;  %3942 = vmatprep.subr.bf16.mxu1 %v5864_v46  ;;  %v5939_v43 = vld [vmem:[%s6397_s13 + $0xc90] ss:$8 sps:$4 sm:$0xff]   ;;  %v5944_v46 = vld [vmem:[%s6397_s13 + $0x4a4] ss:$8 sps:$4 sm:$0xff]  }
 0x10d   : > { %4270 = vmatprep.subr.bf16.mxu0 %v5867_v16  ;;  %v5947_v16 = vld [vmem:[%s6397_s13 + $0xca4] ss:$8 sps:$4 sm:$0xff]  }
 0x10f   : > { %3943 = vmatpush1.bf16.msra.mxu1 %v5862_v47  ;;  %v5942_v47 = vld [vmem:[%s6397_s13 + $0x4a0] ss:$8 sps:$4 sm:$0xff]  }
 0x110   : > { %4271 = vmatpush1.bf16.msra.mxu0 %v5865_v48  ;;  %3944 = vmatprep.subr.bf16.mxu1 %v5870_v49  ;;  %v5945_v48 = vld [vmem:[%s6397_s13 + $0xca0] ss:$8 sps:$4 sm:$0xff]   ;;  %v5950_v49 = vld [vmem:[%s6397_s13 + $0x4b4] ss:$8 sps:$4 sm:$0xff]  }
 0x111   : > { %4272 = vmatprep.subr.bf16.mxu0 %v5873_v50  ;;  %v5953_v50 = vld [vmem:[%s6397_s13 + $0xcb4] ss:$8 sps:$4 sm:$0xff]  }
 0x113   : > { %3945 = vmatpush1.bf16.msra.mxu1 %v5868_v54  ;;  %v5948_v54 = vld [vmem:[%s6397_s13 + $0x4b0] ss:$8 sps:$4 sm:$0xff]  }
 0x114   : > { %4273 = vmatpush1.bf16.msra.mxu0 %v5871_v55  ;;  %3946 = vmatprep.subr.bf16.mxu1 %v5876_v56  ;;  %v5951_v55 = vld [vmem:[%s6397_s13 + $0xcb0] ss:$8 sps:$4 sm:$0xff]   ;;  %v5956_v56 = vld [vmem:[%s6397_s13 + $0x4c4] ss:$8 sps:$4 sm:$0xff]  }
 0x115   : > { %4274 = vmatprep.subr.bf16.mxu0 %v5879_v57  ;;  %v5959_v57 = vld [vmem:[%s6397_s13 + $0xcc4] ss:$8 sps:$4 sm:$0xff]  }
 0x117   : > { %3947 = vmatpush1.bf16.msra.mxu1 %v5874_v60  ;;  %v5954_v60 = vld [vmem:[%s6397_s13 + $0x4c0] ss:$8 sps:$4 sm:$0xff]  }
 0x118   : > { %4275 = vmatpush1.bf16.msra.mxu0 %v5877_v39  ;;  %3957 = vmatprep.subr.bf16.mxu1 %v5883_v42  ;;  %v5957_v39 = vld [vmem:[%s6397_s13 + $0xcc0] ss:$8 sps:$4 sm:$0xff]   ;;  %v5962_v42 = vld [vmem:[%s6397_s13 + $0x4d4] ss:$8 sps:$4 sm:$0xff]  }
 0x119   : > { %4285 = vmatprep.subr.bf16.mxu0 %v5887_v61  ;;  %v5965_v61 = vld [vmem:[%s6397_s13 + $0xcd4] ss:$8 sps:$4 sm:$0xff]  }
 0x11a   : > { %3949 = vmatmul.mubr.bf16.vlgmr.msra.gmra.mrb[0].mxu1 %v501_v0  ;;  %v5968_v0 = vld [vmem:[%s6397_s13 + $0x4e4] ss:$8 sps:$4 sm:$0xff]  }
 0x11b   : > { %4277 = vmatmul.mubr.bf16.vlgmr.msra.gmra.mrb[0].mxu0 %v517_v1  ;;  %3958 = vmatpush1.bf16.msra.mxu1 %v5881_v2  ;;  %v5971_v1 = vld [vmem:[%s6397_s13 + $0xce4] ss:$8 sps:$4 sm:$0xff]   ;;  %v351_v2 = vcombine.high %v6716_v52, %v6716_v52  ;;  %v5972_v52 = vld [vmem:[%s6397_s13 + $0x4f0] ss:$8 sps:$4 sm:$0xff]  }
 0x11c   : > { %4286 = vmatpush1.bf16.msra.mxu0 %v5885_v3  ;;  %3959 = vmatprep.subr.bf16.mxu1 %v5890_v4  ;;  %v419_v3 = vcombine.high %v6719_v53, %v6719_v53  ;;  %v5966_v4 = vld [vmem:[%s6397_s13 + $0x4e0] ss:$8 sps:$4 sm:$0xff]   ;;  %v5975_v53 = vld [vmem:[%s6397_s13 + $0xcf0] ss:$8 sps:$4 sm:$0xff]  }
 0x11d   : > { %4287 = vmatprep.subr.bf16.mxu0 %v5893_v5  ;;  %3989 = vmatprep.mubr.bf16.mxu1 %v504_v6  ;;  %v5969_v5 = vld [vmem:[%s6397_s13 + $0xce0] ss:$8 sps:$4 sm:$0xff]   ;;  %v5974_v6 = vld [vmem:[%s6397_s13 + $0x4f4] ss:$8 sps:$4 sm:$0xff]  }
 0x11e   : > { %4317 = vmatprep.mubr.bf16.mxu0 %v520_v7  ;;  %v5977_v7 = vld [vmem:[%s6397_s13 + $0xcf4] ss:$8 sps:$4 sm:$0xff]  }
 0x11f   : > { %3960 = vmatpush1.bf16.msra.mxu1 %v5888_v44  ;;  %v6810_v44 = vrot.slane %v351_v2, %v6447_v51  ;;  %v6044_v2 = vld [vmem:[%s6397_s13 + $0x5b0] ss:$8 sps:$4 sm:$0xff]  }
 0x120   : > { %4288 = vmatpush1.bf16.msra.mxu0 %v5891_v37  ;;  %3961 = vmatprep.subr.bf16.mxu1 %v5896_v8  ;;  %v6813_v37 = vrot.slane %v419_v3, %v6447_v51  ;;  %v5980_v8 = vld [vmem:[%s6397_s13 + $0x504] ss:$8 sps:$4 sm:$0xff]   ;;  %v6047_v3 = vld [vmem:[%s6397_s13 + $0xdb0] ss:$8 sps:$4 sm:$0xff]  }
 0x121   : > { %4289 = vmatprep.subr.bf16.mxu0 %v5899_v9  ;;  %v5983_v9 = vld [vmem:[%s6397_s13 + $0xd04] ss:$8 sps:$4 sm:$0xff]  }
 0x123   : > { %3962 = vmatpush1.bf16.msra.mxu1 %v5894_v10  ;;  %v367_v10 = vcombine.high %v6810_v44, %v6810_v44 }
 0x124   : > { %4290 = vmatpush1.bf16.msra.mxu0 %v5897_v11  ;;  %3963 = vmatprep.subr.bf16.mxu1 %v5902_v12  ;;  %v435_v11 = vcombine.high %v6813_v37, %v6813_v37  ;;  %v503_v12 = vpack.c.bf16 %v6727_v58, %v6727_v58  ;;  %v5984_v58 = vld [vmem:[%s6397_s13 + $0x510] ss:$8 sps:$4 sm:$0xff]  }
 0x125   : > { %4291 = vmatprep.subr.bf16.mxu0 %v5905_v13  ;;  %v519_v13 = vpack.c.bf16 %v6731_v59, %v6731_v59  ;;  %v5987_v59 = vld [vmem:[%s6397_s13 + $0xd10] ss:$8 sps:$4 sm:$0xff]  }
 0x127   : > { %3964 = vmatpush1.bf16.msra.mxu1 %v5900_v14  ;;  %v5978_v14 = vld [vmem:[%s6397_s13 + $0x500] ss:$8 sps:$4 sm:$0xff]  }
 0x128   : > { %4292 = vmatpush1.bf16.msra.mxu0 %v5903_v15  ;;  %3965 = vmatprep.subr.bf16.mxu1 %v5908_v18  ;;  %v5981_v15 = vld [vmem:[%s6397_s13 + $0xd00] ss:$8 sps:$4 sm:$0xff]   ;;  %v5986_v18 = vld [vmem:[%s6397_s13 + $0x514] ss:$8 sps:$4 sm:$0xff]  }
 0x129   : > { %4293 = vmatprep.subr.bf16.mxu0 %v5911_v19  ;;  %v5989_v19 = vld [vmem:[%s6397_s13 + $0xd14] ss:$8 sps:$4 sm:$0xff]  }
 0x12b   : > { %3966 = vmatpush1.bf16.msra.mxu1 %v5906_v20  ;;  %v506_v20 = vpack.c.bf16 %v367_v10, %v367_v10  ;;  %v6064_v10 = vld [vmem:[%s6397_s13 + $0x5e4] ss:$8 sps:$4 sm:$0xff]  }
 0x12c   : > { %4294 = vmatpush1.bf16.msra.mxu0 %v5909_v21  ;;  %3967 = vmatprep.subr.bf16.mxu1 %v5914_v22  ;;  %v522_v21 = vpack.c.bf16 %v435_v11, %v435_v11  ;;  %v5992_v22 = vld [vmem:[%s6397_s13 + $0x524] ss:$8 sps:$4 sm:$0xff]  }
 0x12d   : > { %4295 = vmatprep.subr.bf16.mxu0 %v5917_v23  ;;  %v5995_v23 = vld [vmem:[%s6397_s13 + $0xd24] ss:$8 sps:$4 sm:$0xff]  }
 0x12e   : > { %v6067_v11 = vld [vmem:[%s6397_s13 + $0xde4] ss:$8 sps:$4 sm:$0xff]  }
 0x12f   : > { %3968 = vmatpush1.bf16.msra.mxu1 %v5912_v24  ;;  %v5990_v24 = vld [vmem:[%s6397_s13 + $0x520] ss:$8 sps:$4 sm:$0xff]  }
 0x130   : > { %4296 = vmatpush1.bf16.msra.mxu0 %v5915_v25  ;;  %3969 = vmatprep.subr.bf16.mxu1 %v5920_v26  ;;  %v5993_v25 = vld [vmem:[%s6397_s13 + $0xd20] ss:$8 sps:$4 sm:$0xff]   ;;  %v5998_v26 = vld [vmem:[%s6397_s13 + $0x534] ss:$8 sps:$4 sm:$0xff]  }
 0x131   : > { %4297 = vmatprep.subr.bf16.mxu0 %v5923_v27  ;;  %v6001_v27 = vld [vmem:[%s6397_s13 + $0xd34] ss:$8 sps:$4 sm:$0xff]  }
 0x133   : > { %3970 = vmatpush1.bf16.msra.mxu1 %v5918_v28  ;;  %v5996_v28 = vld [vmem:[%s6397_s13 + $0x530] ss:$8 sps:$4 sm:$0xff]  }
 0x134   : > { %4298 = vmatpush1.bf16.msra.mxu0 %v5921_v29  ;;  %3971 = vmatprep.subr.bf16.mxu1 %v5926_v30  ;;  %v5999_v29 = vld [vmem:[%s6397_s13 + $0xd30] ss:$8 sps:$4 sm:$0xff]   ;;  %v6004_v30 = vld [vmem:[%s6397_s13 + $0x544] ss:$8 sps:$4 sm:$0xff]  }
 0x135   : > { %4299 = vmatprep.subr.bf16.mxu0 %v5929_v31  ;;  %v6007_v31 = vld [vmem:[%s6397_s13 + $0xd44] ss:$8 sps:$4 sm:$0xff]  }
 0x137   : > { %3972 = vmatpush1.bf16.msra.mxu1 %v5924_v32  ;;  %v6002_v32 = vld [vmem:[%s6397_s13 + $0x540] ss:$8 sps:$4 sm:$0xff]  }
 0x138   : > { %4300 = vmatpush1.bf16.msra.mxu0 %v5927_v33  ;;  %3973 = vmatprep.subr.bf16.mxu1 %v5932_v34  ;;  %v6005_v33 = vld [vmem:[%s6397_s13 + $0xd40] ss:$8 sps:$4 sm:$0xff]   ;;  %v6010_v34 = vld [vmem:[%s6397_s13 + $0x554] ss:$8 sps:$4 sm:$0xff]  }
 0x139   : > { %4301 = vmatprep.subr.bf16.mxu0 %v5935_v35  ;;  %v6013_v35 = vld [vmem:[%s6397_s13 + $0xd54] ss:$8 sps:$4 sm:$0xff]  }
 0x13b   : > { %3974 = vmatpush1.bf16.msra.mxu1 %v5930_v36  ;;  %v6008_v36 = vld [vmem:[%s6397_s13 + $0x550] ss:$8 sps:$4 sm:$0xff]  }
 0x13c   : > { %4302 = vmatpush1.bf16.msra.mxu0 %v5933_v38  ;;  %3975 = vmatprep.subr.bf16.mxu1 %v5938_v17  ;;  %v6011_v38 = vld [vmem:[%s6397_s13 + $0xd50] ss:$8 sps:$4 sm:$0xff]   ;;  %v6016_v17 = vld [vmem:[%s6397_s13 + $0x564] ss:$8 sps:$4 sm:$0xff]  }
 0x13d   : > { %4303 = vmatprep.subr.bf16.mxu0 %v5941_v40  ;;  %v6019_v40 = vld [vmem:[%s6397_s13 + $0xd64] ss:$8 sps:$4 sm:$0xff]  }
 0x13f   : > { %3976 = vmatpush1.bf16.msra.mxu1 %v5936_v41  ;;  %v6014_v41 = vld [vmem:[%s6397_s13 + $0x560] ss:$8 sps:$4 sm:$0xff]  }
 0x140   : > { %4304 = vmatpush1.bf16.msra.mxu0 %v5939_v43  ;;  %3977 = vmatprep.subr.bf16.mxu1 %v5944_v46  ;;  %v6017_v43 = vld [vmem:[%s6397_s13 + $0xd60] ss:$8 sps:$4 sm:$0xff]   ;;  %v6022_v46 = vld [vmem:[%s6397_s13 + $0x574] ss:$8 sps:$4 sm:$0xff]  }
 0x141   : > { %4305 = vmatprep.subr.bf16.mxu0 %v5947_v16  ;;  %v6025_v16 = vld [vmem:[%s6397_s13 + $0xd74] ss:$8 sps:$4 sm:$0xff]  }
 0x143   : > { %3978 = vmatpush1.bf16.msra.mxu1 %v5942_v47  ;;  %v6020_v47 = vld [vmem:[%s6397_s13 + $0x570] ss:$8 sps:$4 sm:$0xff]  }
 0x144   : > { %4306 = vmatpush1.bf16.msra.mxu0 %v5945_v48  ;;  %3979 = vmatprep.subr.bf16.mxu1 %v5950_v49  ;;  %v6023_v48 = vld [vmem:[%s6397_s13 + $0xd70] ss:$8 sps:$4 sm:$0xff]   ;;  %v6028_v49 = vld [vmem:[%s6397_s13 + $0x584] ss:$8 sps:$4 sm:$0xff]  }
 0x145   : > { %4307 = vmatprep.subr.bf16.mxu0 %v5953_v50  ;;  %v6031_v50 = vld [vmem:[%s6397_s13 + $0xd84] ss:$8 sps:$4 sm:$0xff]  }
 0x147   : > { %3980 = vmatpush1.bf16.msra.mxu1 %v5948_v54  ;;  %v6026_v54 = vld [vmem:[%s6397_s13 + $0x580] ss:$8 sps:$4 sm:$0xff]  }
 0x148   : > { %4308 = vmatpush1.bf16.msra.mxu0 %v5951_v55  ;;  %3981 = vmatprep.subr.bf16.mxu1 %v5956_v56  ;;  %v6029_v55 = vld [vmem:[%s6397_s13 + $0xd80] ss:$8 sps:$4 sm:$0xff]   ;;  %v6034_v56 = vld [vmem:[%s6397_s13 + $0x594] ss:$8 sps:$4 sm:$0xff]  }
 0x149   : > { %4309 = vmatprep.subr.bf16.mxu0 %v5959_v57  ;;  %v6037_v57 = vld [vmem:[%s6397_s13 + $0xd94] ss:$8 sps:$4 sm:$0xff]  }
 0x14b   : > { %3982 = vmatpush1.bf16.msra.mxu1 %v5954_v60  ;;  %v6032_v60 = vld [vmem:[%s6397_s13 + $0x590] ss:$8 sps:$4 sm:$0xff]  }
 0x14c   : > { %4310 = vmatpush1.bf16.msra.mxu0 %v5957_v39  ;;  %3983 = vmatprep.subr.bf16.mxu1 %v5962_v42  ;;  %v6035_v39 = vld [vmem:[%s6397_s13 + $0xd90] ss:$8 sps:$4 sm:$0xff]   ;;  %v6040_v42 = vld [vmem:[%s6397_s13 + $0x5a4] ss:$8 sps:$4 sm:$0xff]  }
 0x14d   : > { %4311 = vmatprep.subr.bf16.mxu0 %v5965_v61  ;;  %v6043_v61 = vld [vmem:[%s6397_s13 + $0xda4] ss:$8 sps:$4 sm:$0xff]  }
 0x14f   : > { %3984 = vmatpush1.bf16.msra.mxu1 %v5960_v62  ;;  %v6038_v62 = vld [vmem:[%s6397_s13 + $0x5a0] ss:$8 sps:$4 sm:$0xff]  }
 0x150   : > { %4312 = vmatpush1.bf16.msra.mxu0 %v5963_v63  ;;  %3985 = vmatprep.subr.bf16.mxu1 %v5968_v0  ;;  %v6041_v63 = vld [vmem:[%s6397_s13 + $0xda0] ss:$8 sps:$4 sm:$0xff]   ;;  %v6046_v0 = vld [vmem:[%s6397_s13 + $0x5b4] ss:$8 sps:$4 sm:$0xff]  }
 0x151   : > { %4313 = vmatprep.subr.bf16.mxu0 %v5971_v1  ;;  %v6049_v1 = vld [vmem:[%s6397_s13 + $0xdb4] ss:$8 sps:$4 sm:$0xff]  }
 0x153   : > { %3986 = vmatpush1.bf16.msra.mxu1 %v5966_v4  ;;  %v6052_v4 = vld [vmem:[%s6397_s13 + $0x5c4] ss:$8 sps:$4 sm:$0xff]  }
 0x154   : > { %4314 = vmatpush1.bf16.msra.mxu0 %v5969_v5  ;;  %3987 = vmatprep.subr.bf16.mxu1 %v5974_v6  ;;  %v6055_v5 = vld [vmem:[%s6397_s13 + $0xdc4] ss:$8 sps:$4 sm:$0xff]   ;;  %v6050_v6 = vld [vmem:[%s6397_s13 + $0x5c0] ss:$8 sps:$4 sm:$0xff]  }
 0x155   : > { %4315 = vmatprep.subr.bf16.mxu0 %v5977_v7  ;;  %v6053_v7 = vld [vmem:[%s6397_s13 + $0xdc0] ss:$8 sps:$4 sm:$0xff]  }
 0x157   : > { %3988 = vmatpush1.bf16.msra.mxu1 %v5972_v52  ;;  %v6058_v52 = vld [vmem:[%s6397_s13 + $0x5d4] ss:$8 sps:$4 sm:$0xff]  }
 0x158   : > { %4316 = vmatpush1.bf16.msra.mxu0 %v5975_v53  ;;  %3998 = vmatprep.subr.bf16.mxu1 %v5980_v8  ;;  %v6061_v53 = vld [vmem:[%s6397_s13 + $0xdd4] ss:$8 sps:$4 sm:$0xff]   ;;  %v6056_v8 = vld [vmem:[%s6397_s13 + $0x5d0] ss:$8 sps:$4 sm:$0xff]  }
 0x159   : > { %4326 = vmatprep.subr.bf16.mxu0 %v5983_v9  ;;  %v6059_v9 = vld [vmem:[%s6397_s13 + $0xdd0] ss:$8 sps:$4 sm:$0xff]  }
 0x15a   : > { %3990 = vmatmul.mubr.bf16.vlgmr.msra.gmra.mrb[0].mxu1 %v503_v12  ;;  %v6884_v12 = vld [vmem:[%s6392_s9 + $0x18] sm:$0xff] }
 0x15b   : > { %4318 = vmatmul.mubr.bf16.vlgmr.msra.gmra.mrb[0].mxu0 %v519_v13  ;;  %3999 = vmatpush1.bf16.msra.mxu1 %v5978_v14  ;;  %v6887_v13 = vld [vmem:[%s6392_s9 + $0x38] sm:$0xff]  ;;  %v6062_v14 = vld [vmem:[%s6397_s13 + $0x5e0] ss:$8 sps:$4 sm:$0xff]  }
 0x15c   : > { %4327 = vmatpush1.bf16.msra.mxu0 %v5981_v15  ;;  %4000 = vmatprep.subr.bf16.mxu1 %v5986_v18  ;;  %v6065_v15 = vld [vmem:[%s6397_s13 + $0xde0] ss:$8 sps:$4 sm:$0xff]   ;;  %v6070_v18 = vld [vmem:[%s6397_s13 + $0x5f4] ss:$8 sps:$4 sm:$0xff]  }
 0x15d   : > { %4328 = vmatprep.subr.bf16.mxu0 %v5989_v19  ;;  %4030 = vmatprep.mubr.bf16.mxu1 %v506_v20  ;;  %v6073_v19 = vld [vmem:[%s6397_s13 + $0xdf4] ss:$8 sps:$4 sm:$0xff]   ;;  %v6895_v20 = vrot.slane %v6884_v12, %v6447_v51 }
 0x15e   : > { %4358 = vmatprep.mubr.bf16.mxu0 %v522_v21  ;;  %v6899_v21 = vrot.slane %v6887_v13, %v6447_v51 }
 0x15f   : > { %4001 = vmatpush1.bf16.msra.mxu1 %v5984_v58  ;;  %v6068_v58 = vld [vmem:[%s6397_s13 + $0x5f0] ss:$8 sps:$4 sm:$0xff]  }
 0x160   : > { %4329 = vmatpush1.bf16.msra.mxu0 %v5987_v59  ;;  %4002 = vmatprep.subr.bf16.mxu1 %v5992_v22  ;;  %v6071_v59 = vld [vmem:[%s6397_s13 + $0xdf0] ss:$8 sps:$4 sm:$0xff]   ;;  %v6077_v22 = vld [vmem:[%s6397_s13 + $0x604] ss:$8 sps:$4 sm:$0xff]  }
 0x161   : > { %4330 = vmatprep.subr.bf16.mxu0 %v5995_v23  ;;  %v6081_v23 = vld [vmem:[%s6397_s13 + $0xe04] ss:$8 sps:$4 sm:$0xff]  }
 0x163   : > { %4003 = vmatpush1.bf16.msra.mxu1 %v5990_v24  ;;  %v383_v24 = vcombine.high %v6895_v20, %v6895_v20 }
 0x164   : > { %4331 = vmatpush1.bf16.msra.mxu0 %v5993_v25  ;;  %4004 = vmatprep.subr.bf16.mxu1 %v5998_v26  ;;  %v451_v25 = vcombine.high %v6899_v21, %v6899_v21  ;;  %v505_v26 = vpack.c.bf16 %v6810_v44, %v6810_v44  ;;  %v6082_v44 = vld [vmem:[%s6397_s13 + $0x610] ss:$8 sps:$4 sm:$0xff]  }
 0x165   : > { %4332 = vmatprep.subr.bf16.mxu0 %v6001_v27  ;;  %v521_v27 = vpack.c.bf16 %v6813_v37, %v6813_v37  ;;  %v6085_v37 = vld [vmem:[%s6397_s13 + $0xe10] ss:$8 sps:$4 sm:$0xff]  }
 0x167   : > { %4005 = vmatpush1.bf16.msra.mxu1 %v5996_v28  ;;  %v6075_v28 = vld [vmem:[%s6397_s13 + $0x600] ss:$8 sps:$4 sm:$0xff]  }
 0x168   : > { %4333 = vmatpush1.bf16.msra.mxu0 %v5999_v29  ;;  %4006 = vmatprep.subr.bf16.mxu1 %v6004_v30  ;;  %v6079_v29 = vld [vmem:[%s6397_s13 + $0xe00] ss:$8 sps:$4 sm:$0xff]   ;;  %v6084_v30 = vld [vmem:[%s6397_s13 + $0x614] ss:$8 sps:$4 sm:$0xff]  }
 0x169   : > { %4334 = vmatprep.subr.bf16.mxu0 %v6007_v31  ;;  %v6087_v31 = vld [vmem:[%s6397_s13 + $0xe14] ss:$8 sps:$4 sm:$0xff]  }
 0x16b   : > { %4007 = vmatpush1.bf16.msra.mxu1 %v6002_v32  ;;  %v508_v32 = vpack.c.bf16 %v383_v24, %v383_v24  ;;  %v6154_v24 = vld [vmem:[%s6397_s13 + $0x6d0] ss:$8 sps:$4 sm:$0xff]  }
 0x16c   : > { %4335 = vmatpush1.bf16.msra.mxu0 %v6005_v33  ;;  %4008 = vmatprep.subr.bf16.mxu1 %v6010_v34  ;;  %v524_v33 = vpack.c.bf16 %v451_v25, %v451_v25  ;;  %v6090_v34 = vld [vmem:[%s6397_s13 + $0x624] ss:$8 sps:$4 sm:$0xff]   ;;  %v6157_v25 = vld [vmem:[%s6397_s13 + $0xed0] ss:$8 sps:$4 sm:$0xff]  }
 0x16d   : > { %4336 = vmatprep.subr.bf16.mxu0 %v6013_v35  ;;  %v6093_v35 = vld [vmem:[%s6397_s13 + $0xe24] ss:$8 sps:$4 sm:$0xff]  }
 0x16f   : > { %4009 = vmatpush1.bf16.msra.mxu1 %v6008_v36  ;;  %v6088_v36 = vld [vmem:[%s6397_s13 + $0x620] ss:$8 sps:$4 sm:$0xff]  }
 0x170   : > { %4337 = vmatpush1.bf16.msra.mxu0 %v6011_v38  ;;  %4010 = vmatprep.subr.bf16.mxu1 %v6016_v17  ;;  %v6091_v38 = vld [vmem:[%s6397_s13 + $0xe20] ss:$8 sps:$4 sm:$0xff]   ;;  %v6096_v17 = vld [vmem:[%s6397_s13 + $0x634] ss:$8 sps:$4 sm:$0xff]  }
 0x171   : > { %4338 = vmatprep.subr.bf16.mxu0 %v6019_v40  ;;  %v6099_v40 = vld [vmem:[%s6397_s13 + $0xe34] ss:$8 sps:$4 sm:$0xff]  }
 0x173   : > { %4011 = vmatpush1.bf16.msra.mxu1 %v6014_v41  ;;  %v6094_v41 = vld [vmem:[%s6397_s13 + $0x630] ss:$8 sps:$4 sm:$0xff]  }
 0x174   : > { %4339 = vmatpush1.bf16.msra.mxu0 %v6017_v43  ;;  %4012 = vmatprep.subr.bf16.mxu1 %v6022_v46  ;;  %v6097_v43 = vld [vmem:[%s6397_s13 + $0xe30] ss:$8 sps:$4 sm:$0xff]   ;;  %v6102_v46 = vld [vmem:[%s6397_s13 + $0x644] ss:$8 sps:$4 sm:$0xff]  }
 0x175   : > { %4340 = vmatprep.subr.bf16.mxu0 %v6025_v16  ;;  %v6105_v16 = vld [vmem:[%s6397_s13 + $0xe44] ss:$8 sps:$4 sm:$0xff]  }
 0x177   : > { %4013 = vmatpush1.bf16.msra.mxu1 %v6020_v47  ;;  %v6100_v47 = vld [vmem:[%s6397_s13 + $0x640] ss:$8 sps:$4 sm:$0xff]  }
 0x178   : > { %4341 = vmatpush1.bf16.msra.mxu0 %v6023_v48  ;;  %4014 = vmatprep.subr.bf16.mxu1 %v6028_v49  ;;  %v6103_v48 = vld [vmem:[%s6397_s13 + $0xe40] ss:$8 sps:$4 sm:$0xff]   ;;  %v6108_v49 = vld [vmem:[%s6397_s13 + $0x654] ss:$8 sps:$4 sm:$0xff]  }
 0x179   : > { %4342 = vmatprep.subr.bf16.mxu0 %v6031_v50  ;;  %v6111_v50 = vld [vmem:[%s6397_s13 + $0xe54] ss:$8 sps:$4 sm:$0xff]  }
 0x17b   : > { %4015 = vmatpush1.bf16.msra.mxu1 %v6026_v54  ;;  %v6106_v54 = vld [vmem:[%s6397_s13 + $0x650] ss:$8 sps:$4 sm:$0xff]  }
 0x17c   : > { %4343 = vmatpush1.bf16.msra.mxu0 %v6029_v55  ;;  %4016 = vmatprep.subr.bf16.mxu1 %v6034_v56  ;;  %v6109_v55 = vld [vmem:[%s6397_s13 + $0xe50] ss:$8 sps:$4 sm:$0xff]   ;;  %v6114_v56 = vld [vmem:[%s6397_s13 + $0x664] ss:$8 sps:$4 sm:$0xff]  }
 0x17d   : > { %4344 = vmatprep.subr.bf16.mxu0 %v6037_v57  ;;  %v6117_v57 = vld [vmem:[%s6397_s13 + $0xe64] ss:$8 sps:$4 sm:$0xff]  }
 0x17f   : > { %4017 = vmatpush1.bf16.msra.mxu1 %v6032_v60  ;;  %v6112_v60 = vld [vmem:[%s6397_s13 + $0x660] ss:$8 sps:$4 sm:$0xff]  }
 0x180   : > { %4345 = vmatpush1.bf16.msra.mxu0 %v6035_v39  ;;  %4018 = vmatprep.subr.bf16.mxu1 %v6040_v42  ;;  %v6115_v39 = vld [vmem:[%s6397_s13 + $0xe60] ss:$8 sps:$4 sm:$0xff]   ;;  %v6120_v42 = vld [vmem:[%s6397_s13 + $0x674] ss:$8 sps:$4 sm:$0xff]  }
 0x181   : > { %4346 = vmatprep.subr.bf16.mxu0 %v6043_v61  ;;  %v6123_v61 = vld [vmem:[%s6397_s13 + $0xe74] ss:$8 sps:$4 sm:$0xff]  }
 0x183   : > { %4019 = vmatpush1.bf16.msra.mxu1 %v6038_v62  ;;  %v6118_v62 = vld [vmem:[%s6397_s13 + $0x670] ss:$8 sps:$4 sm:$0xff]  }
 0x184   : > { %4347 = vmatpush1.bf16.msra.mxu0 %v6041_v63  ;;  %4020 = vmatprep.subr.bf16.mxu1 %v6046_v0  ;;  %v6121_v63 = vld [vmem:[%s6397_s13 + $0xe70] ss:$8 sps:$4 sm:$0xff]   ;;  %v6126_v0 = vld [vmem:[%s6397_s13 + $0x684] ss:$8 sps:$4 sm:$0xff]  }
 0x185   : > { %4348 = vmatprep.subr.bf16.mxu0 %v6049_v1  ;;  %v6129_v1 = vld [vmem:[%s6397_s13 + $0xe84] ss:$8 sps:$4 sm:$0xff]  }
 0x187   : > { %4021 = vmatpush1.bf16.msra.mxu1 %v6044_v2  ;;  %v6124_v2 = vld [vmem:[%s6397_s13 + $0x680] ss:$8 sps:$4 sm:$0xff]  }
 0x188   : > { %4349 = vmatpush1.bf16.msra.mxu0 %v6047_v3  ;;  %4022 = vmatprep.subr.bf16.mxu1 %v6052_v4  ;;  %v6127_v3 = vld [vmem:[%s6397_s13 + $0xe80] ss:$8 sps:$4 sm:$0xff]   ;;  %v6132_v4 = vld [vmem:[%s6397_s13 + $0x694] ss:$8 sps:$4 sm:$0xff]  }
 0x189   : > { %4350 = vmatprep.subr.bf16.mxu0 %v6055_v5  ;;  %v6135_v5 = vld [vmem:[%s6397_s13 + $0xe94] ss:$8 sps:$4 sm:$0xff]  }
 0x18b   : > { %4023 = vmatpush1.bf16.msra.mxu1 %v6050_v6  ;;  %v6130_v6 = vld [vmem:[%s6397_s13 + $0x690] ss:$8 sps:$4 sm:$0xff]  }
 0x18c   : > { %4351 = vmatpush1.bf16.msra.mxu0 %v6053_v7  ;;  %4024 = vmatprep.subr.bf16.mxu1 %v6058_v52  ;;  %v6133_v7 = vld [vmem:[%s6397_s13 + $0xe90] ss:$8 sps:$4 sm:$0xff]   ;;  %v6138_v52 = vld [vmem:[%s6397_s13 + $0x6a4] ss:$8 sps:$4 sm:$0xff]  }
 0x18d   : > { %4352 = vmatprep.subr.bf16.mxu0 %v6061_v53  ;;  %v6141_v53 = vld [vmem:[%s6397_s13 + $0xea4] ss:$8 sps:$4 sm:$0xff]  }
 0x18f   : > { %4025 = vmatpush1.bf16.msra.mxu1 %v6056_v8  ;;  %v6136_v8 = vld [vmem:[%s6397_s13 + $0x6a0] ss:$8 sps:$4 sm:$0xff]  }
 0x190   : > { %4353 = vmatpush1.bf16.msra.mxu0 %v6059_v9  ;;  %4026 = vmatprep.subr.bf16.mxu1 %v6064_v10  ;;  %v6139_v9 = vld [vmem:[%s6397_s13 + $0xea0] ss:$8 sps:$4 sm:$0xff]   ;;  %v6144_v10 = vld [vmem:[%s6397_s13 + $0x6b4] ss:$8 sps:$4 sm:$0xff]  }
 0x191   : > { %4354 = vmatprep.subr.bf16.mxu0 %v6067_v11  ;;  %v6147_v11 = vld [vmem:[%s6397_s13 + $0xeb4] ss:$8 sps:$4 sm:$0xff]  }
 0x193   : > { %4027 = vmatpush1.bf16.msra.mxu1 %v6062_v14  ;;  %v6142_v14 = vld [vmem:[%s6397_s13 + $0x6b0] ss:$8 sps:$4 sm:$0xff]  }
 0x194   : > { %4355 = vmatpush1.bf16.msra.mxu0 %v6065_v15  ;;  %4028 = vmatprep.subr.bf16.mxu1 %v6070_v18  ;;  %v6145_v15 = vld [vmem:[%s6397_s13 + $0xeb0] ss:$8 sps:$4 sm:$0xff]   ;;  %v6150_v18 = vld [vmem:[%s6397_s13 + $0x6c4] ss:$8 sps:$4 sm:$0xff]  }
 0x195   : > { %4356 = vmatprep.subr.bf16.mxu0 %v6073_v19  ;;  %v6153_v19 = vld [vmem:[%s6397_s13 + $0xec4] ss:$8 sps:$4 sm:$0xff]  }
 0x197   : > { %4029 = vmatpush1.bf16.msra.mxu1 %v6068_v58  ;;  %v6148_v58 = vld [vmem:[%s6397_s13 + $0x6c0] ss:$8 sps:$4 sm:$0xff]  }
 0x198   : > { %4357 = vmatpush1.bf16.msra.mxu0 %v6071_v59  ;;  %4039 = vmatprep.subr.bf16.mxu1 %v6077_v22  ;;  %v6151_v59 = vld [vmem:[%s6397_s13 + $0xec0] ss:$8 sps:$4 sm:$0xff]   ;;  %v6156_v22 = vld [vmem:[%s6397_s13 + $0x6d4] ss:$8 sps:$4 sm:$0xff]  }
 0x199   : > { %4367 = vmatprep.subr.bf16.mxu0 %v6081_v23  ;;  %v6159_v23 = vld [vmem:[%s6397_s13 + $0xed4] ss:$8 sps:$4 sm:$0xff]  }
 0x19a   : > { %4031 = vmatmul.mubr.bf16.vlgmr.msra.gmra.mrb[0].mxu1 %v505_v26  ;;  %v6162_v26 = vld [vmem:[%s6397_s13 + $0x6e4] ss:$8 sps:$4 sm:$0xff]  }
 0x19b   : > { %4359 = vmatmul.mubr.bf16.vlgmr.msra.gmra.mrb[0].mxu0 %v521_v27  ;;  %4040 = vmatpush1.bf16.msra.mxu1 %v6075_v28  ;;  %v6165_v27 = vld [vmem:[%s6397_s13 + $0xee4] ss:$8 sps:$4 sm:$0xff]   ;;  %v368_v28 = vcombine.high %v6884_v12, %v6884_v12  ;;  %v6166_v12 = vld [vmem:[%s6397_s13 + $0x6f0] ss:$8 sps:$4 sm:$0xff]  }
 0x19c   : > { %4368 = vmatpush1.bf16.msra.mxu0 %v6079_v29  ;;  %4041 = vmatprep.subr.bf16.mxu1 %v6084_v30  ;;  %v436_v29 = vcombine.high %v6887_v13, %v6887_v13  ;;  %v6160_v30 = vld [vmem:[%s6397_s13 + $0x6e0] ss:$8 sps:$4 sm:$0xff]   ;;  %v6169_v13 = vld [vmem:[%s6397_s13 + $0xef0] ss:$8 sps:$4 sm:$0xff]  }
 0x19d   : > { %4369 = vmatprep.subr.bf16.mxu0 %v6087_v31  ;;  %4071 = vmatprep.mubr.bf16.mxu1 %v508_v32  ;;  %v6163_v31 = vld [vmem:[%s6397_s13 + $0xee0] ss:$8 sps:$4 sm:$0xff]   ;;  %v6168_v32 = vld [vmem:[%s6397_s13 + $0x6f4] ss:$8 sps:$4 sm:$0xff]  }
 0x19e   : > { %4399 = vmatprep.mubr.bf16.mxu0 %v524_v33  ;;  %v6171_v33 = vld [vmem:[%s6397_s13 + $0xef4] ss:$8 sps:$4 sm:$0xff]  }
 0x19f   : > { %4042 = vmatpush1.bf16.msra.mxu1 %v6082_v44  ;;  %v6978_v44 = vrot.slane %v368_v28, %v6447_v51  ;;  %v6238_v28 = vld [vmem:[%s6397_s13 + $0x7b0] ss:$8 sps:$4 sm:$0xff]  }
 0x1a0   : > { %4370 = vmatpush1.bf16.msra.mxu0 %v6085_v37  ;;  %4043 = vmatprep.subr.bf16.mxu1 %v6090_v34  ;;  %v6981_v37 = vrot.slane %v436_v29, %v6447_v51  ;;  %v6174_v34 = vld [vmem:[%s6397_s13 + $0x704] ss:$8 sps:$4 sm:$0xff]   ;;  %v6241_v29 = vld [vmem:[%s6397_s13 + $0xfb0] ss:$8 sps:$4 sm:$0xff]  }
 0x1a1   : > { %4371 = vmatprep.subr.bf16.mxu0 %v6093_v35  ;;  %v6177_v35 = vld [vmem:[%s6397_s13 + $0xf04] ss:$8 sps:$4 sm:$0xff]  }
 0x1a3   : > { %4044 = vmatpush1.bf16.msra.mxu1 %v6088_v36  ;;  %v384_v36 = vcombine.high %v6978_v44, %v6978_v44 }
 0x1a4   : > { %4372 = vmatpush1.bf16.msra.mxu0 %v6091_v38  ;;  %4045 = vmatprep.subr.bf16.mxu1 %v6096_v17  ;;  %v452_v38 = vcombine.high %v6981_v37, %v6981_v37  ;;  %v507_v17 = vpack.c.bf16 %v6895_v20, %v6895_v20  ;;  %v6178_v20 = vld [vmem:[%s6397_s13 + $0x710] ss:$8 sps:$4 sm:$0xff]  }
 0x1a5   : > { %4373 = vmatprep.subr.bf16.mxu0 %v6099_v40  ;;  %v523_v40 = vpack.c.bf16 %v6899_v21, %v6899_v21  ;;  %v6181_v21 = vld [vmem:[%s6397_s13 + $0xf10] ss:$8 sps:$4 sm:$0xff]  }
 0x1a7   : > { %4046 = vmatpush1.bf16.msra.mxu1 %v6094_v41  ;;  %v6172_v41 = vld [vmem:[%s6397_s13 + $0x700] ss:$8 sps:$4 sm:$0xff]  }
 0x1a8   : > { %4374 = vmatpush1.bf16.msra.mxu0 %v6097_v43  ;;  %4047 = vmatprep.subr.bf16.mxu1 %v6102_v46  ;;  %v6175_v43 = vld [vmem:[%s6397_s13 + $0xf00] ss:$8 sps:$4 sm:$0xff]   ;;  %v6180_v46 = vld [vmem:[%s6397_s13 + $0x714] ss:$8 sps:$4 sm:$0xff]  }
 0x1a9   : > { %4375 = vmatprep.subr.bf16.mxu0 %v6105_v16  ;;  %v6183_v16 = vld [vmem:[%s6397_s13 + $0xf14] ss:$8 sps:$4 sm:$0xff]  }
 0x1ab   : > { %4048 = vmatpush1.bf16.msra.mxu1 %v6100_v47  ;;  %v510_v47 = vpack.c.bf16 %v384_v36, %v384_v36  ;;  %v6258_v36 = vld [vmem:[%s6397_s13 + $0x7e4] ss:$8 sps:$4 sm:$0xff]  }
 0x1ac   : > { %4376 = vmatpush1.bf16.msra.mxu0 %v6103_v48  ;;  %4049 = vmatprep.subr.bf16.mxu1 %v6108_v49  ;;  %v526_v48 = vpack.c.bf16 %v452_v38, %v452_v38  ;;  %v6186_v49 = vld [vmem:[%s6397_s13 + $0x724] ss:$8 sps:$4 sm:$0xff]  }
 0x1ad   : > { %4377 = vmatprep.subr.bf16.mxu0 %v6111_v50  ;;  %v6189_v50 = vld [vmem:[%s6397_s13 + $0xf24] ss:$8 sps:$4 sm:$0xff]  }
 0x1ae   : > { %v6261_v38 = vld [vmem:[%s6397_s13 + $0xfe4] ss:$8 sps:$4 sm:$0xff]  }
 0x1af   : > { %4050 = vmatpush1.bf16.msra.mxu1 %v6106_v54  ;;  %v6184_v54 = vld [vmem:[%s6397_s13 + $0x720] ss:$8 sps:$4 sm:$0xff]  }
 0x1b0   : > { %4378 = vmatpush1.bf16.msra.mxu0 %v6109_v55  ;;  %4051 = vmatprep.subr.bf16.mxu1 %v6114_v56  ;;  %v6187_v55 = vld [vmem:[%s6397_s13 + $0xf20] ss:$8 sps:$4 sm:$0xff]   ;;  %v6192_v56 = vld [vmem:[%s6397_s13 + $0x734] ss:$8 sps:$4 sm:$0xff]  }
 0x1b1   : > { %4379 = vmatprep.subr.bf16.mxu0 %v6117_v57  ;;  %v6195_v57 = vld [vmem:[%s6397_s13 + $0xf34] ss:$8 sps:$4 sm:$0xff]  }
 0x1b3   : > { %4052 = vmatpush1.bf16.msra.mxu1 %v6112_v60  ;;  %v6190_v60 = vld [vmem:[%s6397_s13 + $0x730] ss:$8 sps:$4 sm:$0xff]  }
 0x1b4   : > { %4380 = vmatpush1.bf16.msra.mxu0 %v6115_v39  ;;  %4053 = vmatprep.subr.bf16.mxu1 %v6120_v42  ;;  %v6193_v39 = vld [vmem:[%s6397_s13 + $0xf30] ss:$8 sps:$4 sm:$0xff]   ;;  %v6198_v42 = vld [vmem:[%s6397_s13 + $0x744] ss:$8 sps:$4 sm:$0xff]  }
 0x1b5   : > { %4381 = vmatprep.subr.bf16.mxu0 %v6123_v61  ;;  %v6201_v61 = vld [vmem:[%s6397_s13 + $0xf44] ss:$8 sps:$4 sm:$0xff]  }
 0x1b7   : > { %4054 = vmatpush1.bf16.msra.mxu1 %v6118_v62  ;;  %v6196_v62 = vld [vmem:[%s6397_s13 + $0x740] ss:$8 sps:$4 sm:$0xff]  }
 0x1b8   : > { %4382 = vmatpush1.bf16.msra.mxu0 %v6121_v63  ;;  %4055 = vmatprep.subr.bf16.mxu1 %v6126_v0  ;;  %v6199_v63 = vld [vmem:[%s6397_s13 + $0xf40] ss:$8 sps:$4 sm:$0xff]   ;;  %v6204_v0 = vld [vmem:[%s6397_s13 + $0x754] ss:$8 sps:$4 sm:$0xff]  }
 0x1b9   : > { %4383 = vmatprep.subr.bf16.mxu0 %v6129_v1  ;;  %v6207_v1 = vld [vmem:[%s6397_s13 + $0xf54] ss:$8 sps:$4 sm:$0xff]  }
 0x1bb   : > { %4056 = vmatpush1.bf16.msra.mxu1 %v6124_v2  ;;  %v6202_v2 = vld [vmem:[%s6397_s13 + $0x750] ss:$8 sps:$4 sm:$0xff]  }
 0x1bc   : > { %4384 = vmatpush1.bf16.msra.mxu0 %v6127_v3  ;;  %4057 = vmatprep.subr.bf16.mxu1 %v6132_v4  ;;  %v6205_v3 = vld [vmem:[%s6397_s13 + $0xf50] ss:$8 sps:$4 sm:$0xff]   ;;  %v6210_v4 = vld [vmem:[%s6397_s13 + $0x764] ss:$8 sps:$4 sm:$0xff]  }
 0x1bd   : > { %4385 = vmatprep.subr.bf16.mxu0 %v6135_v5  ;;  %v6213_v5 = vld [vmem:[%s6397_s13 + $0xf64] ss:$8 sps:$4 sm:$0xff]  }
 0x1bf   : > { %4058 = vmatpush1.bf16.msra.mxu1 %v6130_v6  ;;  %v6208_v6 = vld [vmem:[%s6397_s13 + $0x760] ss:$8 sps:$4 sm:$0xff]  }
 0x1c0   : > { %4386 = vmatpush1.bf16.msra.mxu0 %v6133_v7  ;;  %4059 = vmatprep.subr.bf16.mxu1 %v6138_v52  ;;  %v6211_v7 = vld [vmem:[%s6397_s13 + $0xf60] ss:$8 sps:$4 sm:$0xff]   ;;  %v6216_v52 = vld [vmem:[%s6397_s13 + $0x774] ss:$8 sps:$4 sm:$0xff]  }
 0x1c1   : > { %4387 = vmatprep.subr.bf16.mxu0 %v6141_v53  ;;  %v6219_v53 = vld [vmem:[%s6397_s13 + $0xf74] ss:$8 sps:$4 sm:$0xff]  }
 0x1c3   : > { %4060 = vmatpush1.bf16.msra.mxu1 %v6136_v8  ;;  %v6214_v8 = vld [vmem:[%s6397_s13 + $0x770] ss:$8 sps:$4 sm:$0xff]  }
 0x1c4   : > { %4388 = vmatpush1.bf16.msra.mxu0 %v6139_v9  ;;  %4061 = vmatprep.subr.bf16.mxu1 %v6144_v10  ;;  %v6217_v9 = vld [vmem:[%s6397_s13 + $0xf70] ss:$8 sps:$4 sm:$0xff]   ;;  %v6222_v10 = vld [vmem:[%s6397_s13 + $0x784] ss:$8 sps:$4 sm:$0xff]  }
 0x1c5   : > { %4389 = vmatprep.subr.bf16.mxu0 %v6147_v11  ;;  %v6225_v11 = vld [vmem:[%s6397_s13 + $0xf84] ss:$8 sps:$4 sm:$0xff]  }
 0x1c7   : > { %4062 = vmatpush1.bf16.msra.mxu1 %v6142_v14  ;;  %v6220_v14 = vld [vmem:[%s6397_s13 + $0x780] ss:$8 sps:$4 sm:$0xff]  }
 0x1c8   : > { %4390 = vmatpush1.bf16.msra.mxu0 %v6145_v15  ;;  %4063 = vmatprep.subr.bf16.mxu1 %v6150_v18  ;;  %v6223_v15 = vld [vmem:[%s6397_s13 + $0xf80] ss:$8 sps:$4 sm:$0xff]   ;;  %v6228_v18 = vld [vmem:[%s6397_s13 + $0x794] ss:$8 sps:$4 sm:$0xff]  }
 0x1c9   : > { %4391 = vmatprep.subr.bf16.mxu0 %v6153_v19  ;;  %v6231_v19 = vld [vmem:[%s6397_s13 + $0xf94] ss:$8 sps:$4 sm:$0xff]  }
 0x1cb   : > { %4064 = vmatpush1.bf16.msra.mxu1 %v6148_v58  ;;  %v6226_v58 = vld [vmem:[%s6397_s13 + $0x790] ss:$8 sps:$4 sm:$0xff]  }
 0x1cc   : > { %4392 = vmatpush1.bf16.msra.mxu0 %v6151_v59  ;;  %4065 = vmatprep.subr.bf16.mxu1 %v6156_v22  ;;  %v6229_v59 = vld [vmem:[%s6397_s13 + $0xf90] ss:$8 sps:$4 sm:$0xff]   ;;  %v6234_v22 = vld [vmem:[%s6397_s13 + $0x7a4] ss:$8 sps:$4 sm:$0xff]  }
 0x1cd   : > { %4393 = vmatprep.subr.bf16.mxu0 %v6159_v23  ;;  %v6237_v23 = vld [vmem:[%s6397_s13 + $0xfa4] ss:$8 sps:$4 sm:$0xff]  }
 0x1cf   : > { %4066 = vmatpush1.bf16.msra.mxu1 %v6154_v24  ;;  %v6232_v24 = vld [vmem:[%s6397_s13 + $0x7a0] ss:$8 sps:$4 sm:$0xff]  }
 0x1d0   : > { %4394 = vmatpush1.bf16.msra.mxu0 %v6157_v25  ;;  %4067 = vmatprep.subr.bf16.mxu1 %v6162_v26  ;;  %v6235_v25 = vld [vmem:[%s6397_s13 + $0xfa0] ss:$8 sps:$4 sm:$0xff]   ;;  %v6240_v26 = vld [vmem:[%s6397_s13 + $0x7b4] ss:$8 sps:$4 sm:$0xff]  }
 0x1d1   : > { %4395 = vmatprep.subr.bf16.mxu0 %v6165_v27  ;;  %v6243_v27 = vld [vmem:[%s6397_s13 + $0xfb4] ss:$8 sps:$4 sm:$0xff]  }
 0x1d3   : > { %4068 = vmatpush1.bf16.msra.mxu1 %v6160_v30  ;;  %v6246_v30 = vld [vmem:[%s6397_s13 + $0x7c4] ss:$8 sps:$4 sm:$0xff]  }
 0x1d4   : > { %4396 = vmatpush1.bf16.msra.mxu0 %v6163_v31  ;;  %4069 = vmatprep.subr.bf16.mxu1 %v6168_v32  ;;  %v6249_v31 = vld [vmem:[%s6397_s13 + $0xfc4] ss:$8 sps:$4 sm:$0xff]   ;;  %v6244_v32 = vld [vmem:[%s6397_s13 + $0x7c0] ss:$8 sps:$4 sm:$0xff]  }
 0x1d5   : > { %4397 = vmatprep.subr.bf16.mxu0 %v6171_v33  ;;  %v6247_v33 = vld [vmem:[%s6397_s13 + $0xfc0] ss:$8 sps:$4 sm:$0xff]  }
 0x1d7   : > { %4070 = vmatpush1.bf16.msra.mxu1 %v6166_v12  ;;  %v6252_v12 = vld [vmem:[%s6397_s13 + $0x7d4] ss:$8 sps:$4 sm:$0xff]  }
 0x1d8   : > { %4398 = vmatpush1.bf16.msra.mxu0 %v6169_v13  ;;  %4080 = vmatprep.subr.bf16.mxu1 %v6174_v34  ;;  %v6255_v13 = vld [vmem:[%s6397_s13 + $0xfd4] ss:$8 sps:$4 sm:$0xff]   ;;  %v6250_v34 = vld [vmem:[%s6397_s13 + $0x7d0] ss:$8 sps:$4 sm:$0xff]  }
 0x1d9   : > { %4408 = vmatprep.subr.bf16.mxu0 %v6177_v35  ;;  %v6253_v35 = vld [vmem:[%s6397_s13 + $0xfd0] ss:$8 sps:$4 sm:$0xff]  }
 0x1da   : > { %4072 = vmatmul.mubr.bf16.vlgmr.msra.gmra.mrb[0].mxu1 %v507_v17  ;;  %v6256_v17 = vld [vmem:[%s6397_s13 + $0x7e0] ss:$8 sps:$4 sm:$0xff]  }
 0x1db   : > { %4400 = vmatmul.mubr.bf16.vlgmr.msra.gmra.mrb[0].mxu0 %v523_v40  ;;  %4081 = vmatpush1.bf16.msra.mxu1 %v6172_v41  ;;  %v6259_v40 = vld [vmem:[%s6397_s13 + $0xfe0] ss:$8 sps:$4 sm:$0xff]   ;;  %v6264_v41 = vld [vmem:[%s6397_s13 + $0x7f4] ss:$8 sps:$4 sm:$0xff]  }
 0x1dc   : > { %4409 = vmatpush1.bf16.msra.mxu0 %v6175_v43  ;;  %4082 = vmatprep.subr.bf16.mxu1 %v6180_v46  ;;  %v6267_v43 = vld [vmem:[%s6397_s13 + $0xff4] ss:$8 sps:$4 sm:$0xff]   ;;  %v7056_v46 = vld.sshfl [vmem:[%s6392_s9 + $0x40] sm:$0x33 pattern:$0x76325410] }
 0x1dd   : > { %4410 = vmatprep.subr.bf16.mxu0 %v6183_v16  ;;  %4112 = vmatprep.mubr.bf16.mxu1 %v510_v47  ;;  %v6262_v16 = vld [vmem:[%s6397_s13 + $0x7f0] ss:$8 sps:$4 sm:$0xff]  }
 0x1de   : > { %4440 = vmatprep.mubr.bf16.mxu0 %v526_v48  ;;  %v6265_v47 = vld [vmem:[%s6397_s13 + $0xff0] ss:$8 sps:$4 sm:$0xff]   ;;  %v460_v48 = vcombine.high %v7056_v46, %v7056_v46 }
 0x1df   : > { %4083 = vmatpush1.bf16.msra.mxu1 %v6178_v20  ;;  %v6272_v20 = vld [vmem:[%s6397_s13 + $0x1004] ss:$8 sps:$4 sm:$0xff]  }
 0x1e0   : > { %4411 = vmatpush1.bf16.msra.mxu0 %v6181_v21  ;;  %4084 = vmatprep.subr.bf16.mxu1 %v6186_v49  ;;  %v509_v21 = vpack.c.bf16 %v6978_v44, %v6978_v44  ;;  %v525_v49 = vpack.c.bf16 %v6981_v37, %v6981_v37  ;;  %v6278_v44 = vld [vmem:[%s6397_s13 + $0x1024] ss:$8 sps:$4 sm:$0xff]   ;;  %v6276_v37 = vld [vmem:[%s6397_s13 + $0x1020] ss:$8 sps:$4 sm:$0xff]  }
 0x1e1   : > { %4412 = vmatprep.subr.bf16.mxu0 %v6189_v50  ;;  %v6270_v50 = vld [vmem:[%s6397_s13 + $0x1000] ss:$8 sps:$4 sm:$0xff]  }
 0x1e3   : > { %4085 = vmatpush1.bf16.msra.mxu1 %v6184_v54  ;;  %v528_v54 = vpack.c.bf16 %v460_v48, %v460_v48  ;;  %v4549_v48 = vld [vmem:[%s7220_s3 + $0xa0] sm:$0xff] (!%p5337_p6) }
 0x1e4   : > { %4413 = vmatpush1.bf16.msra.mxu0 %v6187_v55  ;;  %4086 = vmatprep.subr.bf16.mxu1 %v6192_v56  ;;  %v6275_v55 = vld [vmem:[%s6397_s13 + $0x1014] ss:$8 sps:$4 sm:$0xff]   ;;  %v6273_v56 = vld [vmem:[%s6397_s13 + $0x1010] ss:$8 sps:$4 sm:$0xff]  }
 0x1e5   : > { %4414 = vmatprep.subr.bf16.mxu0 %v6195_v57  ;;  %v6281_v57 = vld [vmem:[%s6397_s13 + $0x1034] ss:$8 sps:$4 sm:$0xff]  }
 0x1e7   : > { %4087 = vmatpush1.bf16.msra.mxu1 %v6190_v60  ;;  %v6279_v60 = vld [vmem:[%s6397_s13 + $0x1030] ss:$8 sps:$4 sm:$0xff]  }
 0x1e8   : > { %4415 = vmatpush1.bf16.msra.mxu0 %v6193_v39  ;;  %4088 = vmatprep.subr.bf16.mxu1 %v6198_v42  ;;  %v6284_v39 = vld [vmem:[%s6397_s13 + $0x1044] ss:$8 sps:$4 sm:$0xff]   ;;  %v6282_v42 = vld [vmem:[%s6397_s13 + $0x1040] ss:$8 sps:$4 sm:$0xff]  }
 0x1e9   : > { %4416 = vmatprep.subr.bf16.mxu0 %v6201_v61  ;;  %v6287_v61 = vld [vmem:[%s6397_s13 + $0x1054] ss:$8 sps:$4 sm:$0xff]  }
 0x1eb   : > { %4089 = vmatpush1.bf16.msra.mxu1 %v6196_v62  ;;  %v6285_v62 = vld [vmem:[%s6397_s13 + $0x1050] ss:$8 sps:$4 sm:$0xff]  }
 0x1ec   : > { %4417 = vmatpush1.bf16.msra.mxu0 %v6199_v63  ;;  %4090 = vmatprep.subr.bf16.mxu1 %v6204_v0  ;;  %v6290_v63 = vld [vmem:[%s6397_s13 + $0x1064] ss:$8 sps:$4 sm:$0xff]   ;;  %v6288_v0 = vld [vmem:[%s6397_s13 + $0x1060] ss:$8 sps:$4 sm:$0xff]  }
 0x1ed   : > { %4418 = vmatprep.subr.bf16.mxu0 %v6207_v1  ;;  %v6293_v1 = vld [vmem:[%s6397_s13 + $0x1074] ss:$8 sps:$4 sm:$0xff]  }
 0x1ef   : > { %4091 = vmatpush1.bf16.msra.mxu1 %v6202_v2  ;;  %v6291_v2 = vld [vmem:[%s6397_s13 + $0x1070] ss:$8 sps:$4 sm:$0xff]  }
 0x1f0   : > { %4419 = vmatpush1.bf16.msra.mxu0 %v6205_v3  ;;  %4092 = vmatprep.subr.bf16.mxu1 %v6210_v4  ;;  %v6296_v3 = vld [vmem:[%s6397_s13 + $0x1084] ss:$8 sps:$4 sm:$0xff]   ;;  %v6294_v4 = vld [vmem:[%s6397_s13 + $0x1080] ss:$8 sps:$4 sm:$0xff]  }
 0x1f1   : > { %4420 = vmatprep.subr.bf16.mxu0 %v6213_v5  ;;  %v6299_v5 = vld [vmem:[%s6397_s13 + $0x1094] ss:$8 sps:$4 sm:$0xff]  }
 0x1f3   : > { %4093 = vmatpush1.bf16.msra.mxu1 %v6208_v6  ;;  %v6297_v6 = vld [vmem:[%s6397_s13 + $0x1090] ss:$8 sps:$4 sm:$0xff]  }
 0x1f4   : > { %4421 = vmatpush1.bf16.msra.mxu0 %v6211_v7  ;;  %4094 = vmatprep.subr.bf16.mxu1 %v6216_v52  ;;  %v6302_v7 = vld [vmem:[%s6397_s13 + $0x10a4] ss:$8 sps:$4 sm:$0xff]   ;;  %v6300_v52 = vld [vmem:[%s6397_s13 + $0x10a0] ss:$8 sps:$4 sm:$0xff]  }
 0x1f5   : > { %4422 = vmatprep.subr.bf16.mxu0 %v6219_v53  ;;  %v6305_v53 = vld [vmem:[%s6397_s13 + $0x10b4] ss:$8 sps:$4 sm:$0xff]  }
 0x1f7   : > { %4095 = vmatpush1.bf16.msra.mxu1 %v6214_v8  ;;  %v6303_v8 = vld [vmem:[%s6397_s13 + $0x10b0] ss:$8 sps:$4 sm:$0xff]  }
 0x1f8   : > { %4423 = vmatpush1.bf16.msra.mxu0 %v6217_v9  ;;  %4096 = vmatprep.subr.bf16.mxu1 %v6222_v10  ;;  %v6308_v9 = vld [vmem:[%s6397_s13 + $0x10c4] ss:$8 sps:$4 sm:$0xff]   ;;  %v6306_v10 = vld [vmem:[%s6397_s13 + $0x10c0] ss:$8 sps:$4 sm:$0xff]  }
 0x1f9   : > { %4424 = vmatprep.subr.bf16.mxu0 %v6225_v11  ;;  %v6311_v11 = vld [vmem:[%s6397_s13 + $0x10d4] ss:$8 sps:$4 sm:$0xff]  }
 0x1fb   : > { %4097 = vmatpush1.bf16.msra.mxu1 %v6220_v14  ;;  %v6309_v14 = vld [vmem:[%s6397_s13 + $0x10d0] ss:$8 sps:$4 sm:$0xff]  }
 0x1fc   : > { %4425 = vmatpush1.bf16.msra.mxu0 %v6223_v15  ;;  %4098 = vmatprep.subr.bf16.mxu1 %v6228_v18  ;;  %v6314_v15 = vld [vmem:[%s6397_s13 + $0x10e4] ss:$8 sps:$4 sm:$0xff]   ;;  %v6312_v18 = vld [vmem:[%s6397_s13 + $0x10e0] ss:$8 sps:$4 sm:$0xff]  }
 0x1fd   : > { %4426 = vmatprep.subr.bf16.mxu0 %v6231_v19  ;;  %v6317_v19 = vld [vmem:[%s6397_s13 + $0x10f4] ss:$8 sps:$4 sm:$0xff]  }
 0x1ff   : > { %4099 = vmatpush1.bf16.msra.mxu1 %v6226_v58  ;;  %v6315_v58 = vld [vmem:[%s6397_s13 + $0x10f0] ss:$8 sps:$4 sm:$0xff]  }
 0x200   : > { %4427 = vmatpush1.bf16.msra.mxu0 %v6229_v59  ;;  %4100 = vmatprep.subr.bf16.mxu1 %v6234_v22  ;;  %v527_v59 = vpack.c.bf16 %v7056_v46, %v7056_v46 }
 0x201   : > { %4428 = vmatprep.subr.bf16.mxu0 %v6237_v23 }
 0x203   : > { %4101 = vmatpush1.bf16.msra.mxu1 %v6232_v24 }
 0x204   : > { %4429 = vmatpush1.bf16.msra.mxu0 %v6235_v25  ;;  %4102 = vmatprep.subr.bf16.mxu1 %v6240_v26 }
 0x205   : > { %4430 = vmatprep.subr.bf16.mxu0 %v6243_v27 }
 0x207   : > { %4103 = vmatpush1.bf16.msra.mxu1 %v6238_v28 }
 0x208   : > { %4431 = vmatpush1.bf16.msra.mxu0 %v6241_v29  ;;  %4104 = vmatprep.subr.bf16.mxu1 %v6246_v30 }
 0x209   : > { %4432 = vmatprep.subr.bf16.mxu0 %v6249_v31 }
 0x20b   : > { %4105 = vmatpush1.bf16.msra.mxu1 %v6244_v32 }
 0x20c   : > { %4433 = vmatpush1.bf16.msra.mxu0 %v6247_v33  ;;  %4106 = vmatprep.subr.bf16.mxu1 %v6252_v12  ;;  %v298_v33 = vld [vmem:[#allocation2] sm:$0xf] }
 0x20d   : > { %4434 = vmatprep.subr.bf16.mxu0 %v6255_v13 }
 0x20f   : > { %4107 = vmatpush1.bf16.msra.mxu1 %v6250_v34  ;;  %v4545_v34 = vld [vmem:[%s7220_s3 + $0x80] sm:$0xff] (!%p5337_p6) }
 0x210   : > { %4435 = vmatpush1.bf16.msra.mxu0 %v6253_v35  ;;  %4108 = vmatprep.subr.bf16.mxu1 %v6258_v36  ;;  %v4546_v35 = vld [vmem:[%s7220_s3 + $0x88] sm:$0xff] (!%p5337_p6)  ;;  %v4529_v36 = vld [vmem:[%s7220_s3] sm:$0xff] (!%p5337_p6) }
 0x211   : > { %4436 = vmatprep.subr.bf16.mxu0 %v6261_v38  ;;  %v5388_v38 = vpack.c.bf16 (!%p5337_p6), %v4546_v35, %v4545_v34 }
 0x213   : > { %4109 = vmatpush1.bf16.msra.mxu1 %v6256_v17  ;;  %v4530_v17 = vld [vmem:[%s7220_s3 + $0x8] sm:$0xff] (!%p5337_p6) }
 0x214   : > { %4437 = vmatpush1.bf16.msra.mxu0 %v6259_v40  ;;  %4110 = vmatprep.subr.bf16.mxu1 %v6264_v41  ;;  %v4547_v40 = vld [vmem:[%s7220_s3 + $0x90] sm:$0xff] (!%p5337_p6)  ;;  %v4548_v41 = vld [vmem:[%s7220_s3 + $0x98] sm:$0xff] (!%p5337_p6) }
 0x215   : > { %4438 = vmatprep.subr.bf16.mxu0 %v6267_v43  ;;  %v5390_v43 = vpack.c.bf16 (!%p5337_p6), %v4530_v17, %v4529_v36  ;;  %v5392_v46 = vpack.c.bf16 (!%p5337_p6), %v4548_v41, %v4547_v40  ;;  %v5339_v17 = vld [vmem:[#allocation3] ss:$0 sm:$0xff] (!%p5337_p6) }
 0x217   : > { %4111 = vmatpush1.bf16.msra.mxu1 %v6262_v16  ;;  %v4531_v16 = vld [vmem:[%s7220_s3 + $0x10] sm:$0xff] (!%p5337_p6) }
 0x218   : > { %4439 = vmatpush1.bf16.msra.mxu0 %v6265_v47  ;;  %v4532_v47 = vld [vmem:[%s7220_s3 + $0x18] sm:$0xff] (!%p5337_p6) }
 0x219   : > { %4449 = vmatprep.subr.bf16.mxu0 %v6272_v20  ;;  %v4550_v20 = vld [vmem:[%s7220_s3 + $0xa8] sm:$0xff] (!%p5337_p6) }
 0x21a   : > { %4113 = vmatmul.mubr.bf16.vlgmr.msra.gmra.mrb[0].mxu1 %v509_v21  ;;  %v5394_v21 = vpack.c.bf16 (!%p5337_p6), %v4532_v47, %v4531_v16 }
 0x21b   : > { %4441 = vmatmul.mubr.bf16.vlgmr.msra.gmra.mrb[0].mxu0 %v525_v49  ;;  %v5396_v49 = vpack.c.bf16 (!%p5337_p6), %v4550_v20, %v4549_v48 }
 0x21c   : > { %4450 = vmatpush1.bf16.msra.mxu0 %v6270_v50  ;;  %4481 = vmatprep.mubr.bf16.mxu0 %v528_v54  ;;  %v4533_v50 = vld [vmem:[%s7220_s3 + $0x20] sm:$0xff] (!%p5337_p6)  ;;  %v4534_v54 = vld [vmem:[%s7220_s3 + $0x28] sm:$0xff] (!%p5337_p6) }
 0x21d   : > { %4451 = vmatprep.subr.bf16.mxu0 %v6275_v55  ;;  %v4551_v55 = vld [vmem:[%s7220_s3 + $0xb0] sm:$0xff] (!%p5337_p6) }
 0x220   : > { %4452 = vmatpush1.bf16.msra.mxu0 %v6273_v56  ;;  %v4552_v56 = vld [vmem:[%s7220_s3 + $0xb8] sm:$0xff] (!%p5337_p6) }
 0x221   : > { %4453 = vmatprep.subr.bf16.mxu0 %v6278_v44  ;;  %v5398_v44 = vpack.c.bf16 (!%p5337_p6), %v4534_v54, %v4533_v50 }
 0x224   : > { %4454 = vmatpush1.bf16.msra.mxu0 %v6276_v37  ;;  %v4512_v37 = vsub.s32 (!%p5337_p6), 0, %v6439_v45 }
 0x225   : > { %4455 = vmatprep.subr.bf16.mxu0 %v6281_v57  ;;  %v4516_v57 = vsub.s32 (!%p5337_p6), 1, %v6439_v45  ;;  %v4508_v45 = vld [vmem:[%s7219_s2] sm:$0x3] (!%p5337_p6) }
 0x228   : > { %4456 = vmatpush1.bf16.msra.mxu0 %v6279_v60  ;;  %v5400_v60 = vpack.c.bf16 (!%p5337_p6), %v4552_v56, %v4551_v55 }
 0x229   : > { %4457 = vmatprep.subr.bf16.mxu0 %v6284_v39  ;;  %v4535_v39 = vld [vmem:[%s7220_s3 + $0x30] sm:$0xff] (!%p5337_p6) }
 0x22c   : > { %4458 = vmatpush1.bf16.msra.mxu0 %v6282_v42  ;;  %v4536_v42 = vld [vmem:[%s7220_s3 + $0x38] sm:$0xff] (!%p5337_p6) }
 0x22d   : > { %4459 = vmatprep.subr.bf16.mxu0 %v6287_v61  ;;  %v4553_v61 = vld [vmem:[%s7220_s3 + $0xc0] sm:$0xff] (!%p5337_p6) }
 0x230   : > { %4460 = vmatpush1.bf16.msra.mxu0 %v6285_v62  ;;  %v4554_v62 = vld [vmem:[%s7220_s3 + $0xc8] sm:$0xff] (!%p5337_p6) }
 0x231   : > { %4461 = vmatprep.subr.bf16.mxu0 %v6290_v63  ;;  %v5402_v63 = vpack.c.bf16 (!%p5337_p6), %v4536_v42, %v4535_v39 }
 0x234   : > { %4462 = vmatpush1.bf16.msra.mxu0 %v6288_v0  ;;  %v4513_v0 = vrot.slane (!%p5337_p6), %v4508_v45, %v4512_v37 }
 0x235   : > { %4463 = vmatprep.subr.bf16.mxu0 %v6293_v1  ;;  %v4517_v1 = vrot.slane (!%p5337_p6), %v4508_v45, %v4516_v57 }
 0x238   : > { %4464 = vmatpush1.bf16.msra.mxu0 %v6291_v2  ;;  %v5404_v2 = vpack.c.bf16 (!%p5337_p6), %v4554_v62, %v4553_v61 }
 0x239   : > { %4465 = vmatprep.subr.bf16.mxu0 %v6296_v3  ;;  %v4537_v3 = vld [vmem:[%s7220_s3 + $0x40] sm:$0xff] (!%p5337_p6) }
 0x23c   : > { %4466 = vmatpush1.bf16.msra.mxu0 %v6294_v4  ;;  %v4538_v4 = vld [vmem:[%s7220_s3 + $0x48] sm:$0xff] (!%p5337_p6) }
 0x23d   : > { %4467 = vmatprep.subr.bf16.mxu0 %v6299_v5  ;;  %v4555_v5 = vld [vmem:[%s7220_s3 + $0xd0] sm:$0xff] (!%p5337_p6) }
 0x240   : > { %4468 = vmatpush1.bf16.msra.mxu0 %v6297_v6  ;;  %v4556_v6 = vld [vmem:[%s7220_s3 + $0xd8] sm:$0xff] (!%p5337_p6) }
 0x241   : > { %4469 = vmatprep.subr.bf16.mxu0 %v6302_v7  ;;  %v4518_v7 = vcombine.low (!%p5337_p6), %v4513_v0, %v4517_v1 }
 0x244   : > { %4470 = vmatpush1.bf16.msra.mxu0 %v6300_v52 }
 0x245   : > { %4471 = vmatprep.subr.bf16.mxu0 %v6305_v53  ;;  %v5406_v53 = vpack.c.bf16 (!%p5337_p6), %v4538_v4, %v4537_v3 }
 0x248   : > { %4472 = vmatpush1.bf16.msra.mxu0 %v6303_v8  ;;  %v4525_v8 = vrot.slane (!%p5337_p6), %v4518_v7, %v6447_v51 }
 0x249   : > { %4473 = vmatprep.subr.bf16.mxu0 %v6308_v9  ;;  %v5408_v9 = vpack.c.bf16 (!%p5337_p6), %v4556_v6, %v4555_v5 }
 0x24c   : > { %4474 = vmatpush1.bf16.msra.mxu0 %v6306_v10  ;;  %v4539_v10 = vld [vmem:[%s7220_s3 + $0x50] sm:$0xff] (!%p5337_p6) }
 0x24d   : > { %4475 = vmatprep.subr.bf16.mxu0 %v6311_v11  ;;  %v4540_v11 = vld [vmem:[%s7220_s3 + $0x58] sm:$0xff] (!%p5337_p6) }
 0x250   : > { %4476 = vmatpush1.bf16.msra.mxu0 %v6309_v14  ;;  %v4557_v14 = vld [vmem:[%s7220_s3 + $0xe0] sm:$0xff] (!%p5337_p6) }
 0x251   : > { %4477 = vmatprep.subr.bf16.mxu0 %v6314_v15  ;;  %v4558_v15 = vld [vmem:[%s7220_s3 + $0xe8] sm:$0xff] (!%p5337_p6) }
 0x254   : > { %4478 = vmatpush1.bf16.msra.mxu0 %v6312_v18 }
 0x255   : > { %4479 = vmatprep.subr.bf16.mxu0 %v6317_v19  ;;  %v5410_v19 = vpack.c.bf16 (!%p5337_p6), %v4540_v11, %v4539_v10 }
 0x258   : > { %4480 = vmatpush1.bf16.msra.mxu0 %v6315_v58 }
 0x259   : > { %5389 = vmatprep.subr.bf16.mxu0 (!%p5337_p6), %v5388_v38 }
 0x25b   : > { %4482 = vmatmul.mubr.bf16.vlgmr.msra.gmra.mrb[0].mxu0 %v527_v59  ;;  %v5412_v59 = vpack.c.bf16 (!%p5337_p6), %v4558_v15, %v4557_v14 }
 0x25c   : > { %5391 = vmatpush3.bf16.msra.mxu0 (!%p5337_p6), %v5390_v43 }
 0x25d   : > { %5393 = vmatprep.subr.bf16.mxu0 (!%p5337_p6), %v5392_v46 }
 0x260   : > { %5395 = vmatpush3.bf16.msra.mxu0 (!%p5337_p6), %v5394_v21 }
 0x261   : > { %5397 = vmatprep.subr.bf16.mxu0 (!%p5337_p6), %v5396_v49 }
 0x264   : > { %5399 = vmatpush3.bf16.msra.mxu0 (!%p5337_p6), %v5398_v44 }
 0x265   : > { %5401 = vmatprep.subr.bf16.mxu0 (!%p5337_p6), %v5400_v60 }
 0x268   : > { %5403 = vmatpush3.bf16.msra.mxu0 (!%p5337_p6), %v5402_v63 }
 0x269   : > { %5405 = vmatprep.subr.bf16.mxu0 (!%p5337_p6), %v5404_v2 }
 0x26c   : > { %5407 = vmatpush3.bf16.msra.mxu0 (!%p5337_p6), %v5406_v53 }
 0x26d   : > { %5409 = vmatprep.subr.bf16.mxu0 (!%p5337_p6), %v5408_v9 }
 0x270   : > { %5411 = vmatpush3.bf16.msra.mxu0 (!%p5337_p6), %v5410_v19 }
 0x271   : > { %5413 = vmatprep.subr.bf16.mxu0 (!%p5337_p6), %v5412_v59 }
 0x2ed   : > { %v4114_v22 = vpop.f32.mrb[0].mxu1 }
 0x2ee   : > { %v4116_v23 = vpop.f32.mrb[1].mxu1 }
 0x2ef   : > { %v4118_v24 = vpop.f32.mrb[2].mxu1 }
 0x2f0   : > { %v4119_v25 = vpop.f32.mrb[3].mxu1  ;;  %v4559_v24 = vld [vmem:[%s7220_s3 + $0xf0] sm:$0xff] (!%p5337_p6) }
 0x2f1   : > { %v4560_v25 = vld [vmem:[%s7220_s3 + $0xf8] sm:$0xff] (!%p5337_p6) }
 0x32e   : > { %v4483_v26 = vpop.f32.mrb[0].mxu0 }
 0x32f   : > { %v5420_v27 = vadd.f32 %v4483_v26, %v4114_v22  ;;  %v4485_v28 = vpop.f32.mrb[1].mxu0  ;;  %v4541_v22 = vld [vmem:[%s7220_s3 + $0x60] sm:$0xff] (!%p5337_p6) }
 0x330   : > { %v5421_v29 = vadd.f32 %v4485_v28, %v4116_v23  ;;  %v4487_v30 = vpop.f32.mrb[2].mxu0  ;;  %v4542_v23 = vld [vmem:[%s7220_s3 + $0x68] sm:$0xff] (!%p5337_p6) }
 0x331   : > { %v4488_v31 = vpop.f32.mrb[3].mxu0  ;;  %v4543_v30 = vld [vmem:[%s7220_s3 + $0x70] sm:$0xff] (!%p5337_p6) }
 0x332   : > { %v4492_v32 = vcombine.low %v5420_v27, %v5421_v29  ;;  %4506 = sbr.rel (%p5337_p6) target bundleno = 1301 (0x515), region = 56  ;;  %v5414_v27 = vpack.c.bf16 (!%p5337_p6), %v4542_v23, %v4541_v22  ;;  %v5416_v29 = vpack.c.bf16 (!%p5337_p6), %v4560_v25, %v4559_v24  ;;  %v4544_v31 = vld [vmem:[%s7220_s3 + $0x78] sm:$0xff] (!%p5337_p6) }
 0x334   : > { %v4499_v12 = vrot.slane %v4492_v32, %v6447_v51  ;;  %5415 = vmatpush3.bf16.msra.mxu0 (!%p5337_p6), %v5414_v27  ;;  %v5418_v32 = vpack.c.bf16 (!%p5337_p6), %v4544_v31, %v4543_v30 }
 0x335   : > { %5417 = vmatprep.subr.bf16.mxu0 (!%p5337_p6), %v5416_v29 }
 0x336   : > { %v4501_v13 = vadd.f32 %v4499_v12, %v298_v33  ;;  %v4650_v33 = vld [vmem:[%s7222_s5] sm:$0x3] (!%p5337_p6) }
 0x338   : > { %4502 = vst [vmem:[#allocation2] sm:$0xf] %v4501_v13  ;;  %5419 = vmatpush3.bf16.msra.mxu0 (!%p5337_p6), %v5418_v32  ;;  %v5338_v13 = vld [vmem:[%s7221_s4] ss:$0 sm:$0xff] (!%p5337_p6) }
 0x33f   : > { %v4507_v52 = vld [vmem:[#allocation2] sm:$0xf] }
 0x340   : > { %v4527_v18 = vadd.f32 %v4525_v8, %v4507_v52 }
 0x342   : > { %v4528_v58 = vmax.f32 %v4527_v18, 0.0 }
 0x344   : > { %v4575_v26 = vrot.slane %v4528_v58, %v6447_v51  ;;  %v6332_v51 = vmov 0.0  }
 0x345   : > { %5383 = vmatprep.subr.mxu1 %v6332_v51  ;;  %5385 = vmatprep.mubr.msk.f32.mxu1 %vm6333_vm1, %v6332_v51 }
 0x346   : > { %v4576_v28 = vcombine.high %v4575_v26, %v4575_v26  ;;  %5384 = vmatpush3.msk.msra.mxu1 %vm4662_vm0, %v4650_v33 }
 0x348   : > { %4643 = vmatprep.mubr.f32.mxu0 %v4576_v28 }
 0x349   : > { %4644 = vmatmul.mubr.f32.vlgmr.msra.gmra.mrb[0].mxu0 %v4575_v26 }
 0x41c   : > { %v5378_v12 = vpop.f32.mrb[0].mxu0 }
 0x41d   : > { %v5379_v34 = vpop.f32.mrb[1].mxu0 }
 0x41e   : > { %v5380_v35 = vadd.f32 %v5379_v34, %v5378_v12 }
 0x420   : > { %v4646_v36 = vadd.f32 %v5380_v35, %v5338_v13 }
 0x422   : > { %v4649_v38 = vmax.f32 %v4646_v36, 0.0 }
 0x424   : > { %5386 = vmatmul.mubr.msk.f32.vlgmr.msra.gmra.mrb[0].mxu1 %vm4658_vm2, %v4649_v38 }
 0x4f7   : > { %v4732_v40 = vpop.f32.mrb[0].mxu1 }
 0x4f8   : > { %v4733_v41 = vadd.f32 %v5339_v17, %v4732_v40  ;;  %v5387_v43 = vpop.f32.mrb[1].mxu1 }
 0x4fa   : > { %v5342_v46 = vmul.f32 -1.442695, %v4733_v41 }
 0x4fc   : > { %6318 = vpow2.f32 %v5342_v46 }
 0x506   : > { %v6319_v16 = vpop.eup %6318 }
 0x507   : > { %v4739_v47 = vadd.f32 1.0, %v6319_v16 }
 0x509   : > { %6320 = vrcp.f32 %v4739_v47 }
 0x513   : > { %v6321_v48 = vpop.eup %6320 }
 0x514   : > { %4743 = vst.msk [vmem:[%s7224_s7] sm:$0x3] %vm4742_vm3, %v6321_v48 }
 0x515 PF: > { %s19_s26 = sadd.s32 1, %s6328_s26  }
 0x516   : > { %p16_p7 = scmp.ge.s32.totalorder %s19_s26, 6  }
 0x518   :  { %18 = sbr.rel (!%p16_p7) target bundleno = 3 (0x3), region = 85 }

</bundles_post_ra>
